<compile_context>
chip_gen: v7x
topology: tpu7x:2x2x1
jax: 0.10.0
libtpu: 0.0.40
codegen_flags: <defaults>
</compile_context>

<pallas_src>
import functools

import jax
import jax.numpy as jnp
import numpy as np
from jax.experimental import pallas as pl
from jax.experimental.pallas import tpu as pltpu


# ----------------------------- fused kernel ---------------------------------


def _fused_kernel(C, D, HW, K, eps,
                  x_ref, b_ref, p_ref, w2_ref, b2_ref, w3_ref, b3_ref,
                  o_ref, xdp_scr, yn_scr):
    """One batch element per grid step.

    x_ref  : (C*D, HW)      input (also the residual)
    b_ref  : (C*K, HW, HW)  banded depthwise-conv matrices (kh/kw taps + H/W pad)
    p_ref  : (3, C) SMEM    rows: conv1 bias, gamma, beta
    w2_ref : (Chid*D, C*D)  kron(conv2 weight, I_D);  b2_ref: (Chid*D, 1)
    w3_ref : (C*D, Chid*D)  kron(conv3 weight, I_D);  b3_ref: (C*D, 1)
    o_ref  : (C*D, HW)
    xdp_scr: (C, D+2P, HW)  VMEM scratch, D-padded per-channel planes
    yn_scr : (C*D, HW)      VMEM scratch, normalized activations
    """
    P = K // 2
    hp = jax.lax.Precision.HIGHEST

    # --- build the D-axis halo in VMEM (no HBM padding) ---
    xdp_scr[...] = jnp.zeros_like(xdp_scr)
    x = x_ref[...]                                        # (C*D, HW)
    for c in range(C):
        xdp_scr[c, P:P + D, :] = x[c * D:(c + 1) * D, :]

    inv_n = 1.0 / float(D * HW)
    for c in range(C):
        # depthwise conv: K matmuls against precomputed banded matrices
        acc = jnp.zeros((D, HW), jnp.float32)
        for kd in range(K):
            acc = acc + jnp.dot(xdp_scr[c, kd:kd + D, :], b_ref[c * K + kd],
                                precision=hp,
                                preferred_element_type=jnp.float32)
        acc = acc + p_ref[0, c]                           # conv1 bias
        # GroupNorm(num_groups=C): per-(n,c) stats, single pass
        mean = jnp.sum(acc) * inv_n
        var = jnp.sum(acc * acc) * inv_n - mean * mean
        yn = (acc - mean) * jax.lax.rsqrt(var + eps)
        yn_scr[c * D:(c + 1) * D, :] = p_ref[1, c] * yn + p_ref[2, c]

    # --- pointwise expand -> exact GELU -> pointwise project -> residual ---
    yn_all = yn_scr[...]                                  # (C*D, HW)
    h = jnp.dot(w2_ref[...], yn_all, precision=hp,
                preferred_element_type=jnp.float32) + b2_ref[...]
    h = 0.5 * h * (1.0 + jax.lax.erf(h * 0.7071067811865476))
    out = jnp.dot(w3_ref[...], h, precision=hp,
                  preferred_element_type=jnp.float32) + b3_ref[...]
    o_ref[...] = out + x


# ----------------------------- wrapper ---------------------------------------


def gbanet_block(x, w1, b1, gamma, beta, w2, b2, w3, b3, *,
                 kernel_size=7, eps=1e-5):
    N, C, D, H, W = x.shape
    K = kernel_size
    P = K // 2
    HW = H * W
    Chid = w2.shape[0]
    Cout = w3.shape[0]
    assert Cout == C, "residual path requires out_channels == in_channels"
    f32 = jnp.float32

    x = x.astype(f32)
    x2 = x.reshape(N, C * D, HW)

    # Banded matrices B[c,kd, h''*W+w'', h*W+w] = w1[c,kd,h''-h+P,w''-w+P]
    # (zero outside the kernel support) -- they encode the kh/kw taps and the
    # implicit H/W zero padding, so the conv is a matmul over the HW axis.
    w1r = w1.reshape(C, K, K, K).astype(f32)
    ih, iw, kk = jnp.arange(H), jnp.arange(W), jnp.arange(K)
    oneh_h = ((ih[:, None, None] - ih[None, :, None] + P)
              == kk[None, None, :]).astype(f32)           # (H, H, K)
    oneh_w = ((iw[:, None, None] - iw[None, :, None] + P)
              == kk[None, None, :]).astype(f32)           # (W, W, K)
    bmat = jnp.einsum('cdij,aei,bfj->cdabef', w1r, oneh_h, oneh_w)
    bmat = bmat.reshape(C * K, HW, HW)                    # (C*K, HW, HW)

    params = jnp.stack([b1, gamma, beta], axis=0).astype(f32)   # (3, C)

    # 1x1x1 convs applied to (C*D, HW) slabs: expand weights with kron(., I_D)
    eye_d = jnp.eye(D, dtype=f32)
    w2k = jnp.kron(w2.astype(f32), eye_d)                 # (Chid*D, C*D)
    w3k = jnp.kron(w3.astype(f32), eye_d)                 # (C*D, Chid*D)
    b2k = jnp.repeat(b2.astype(f32), D)[:, None]          # (Chid*D, 1)
    b3k = jnp.repeat(b3.astype(f32), D)[:, None]          # (C*D, 1)

    out = pl.pallas_call(
        functools.partial(_fused_kernel, C, D, HW, K, eps),
        out_shape=jax.ShapeDtypeStruct((N, C * D, HW), f32),
        grid=(N,),
        in_specs=[
            pl.BlockSpec((None, C * D, HW), lambda n: (n, 0, 0)),
            pl.BlockSpec((C * K, HW, HW), lambda n: (0, 0, 0)),
            pl.BlockSpec(memory_space=pltpu.MemorySpace.SMEM),
            pl.BlockSpec((Chid * D, C * D), lambda n: (0, 0)),
            pl.BlockSpec((Chid * D, 1), lambda n: (0, 0)),
            pl.BlockSpec((C * D, Chid * D), lambda n: (0, 0)),
            pl.BlockSpec((C * D, 1), lambda n: (0, 0)),
        ],
        out_specs=pl.BlockSpec((None, C * D, HW), lambda n: (n, 0, 0)),
        scratch_shapes=[
            pltpu.VMEM((C, D + 2 * P, HW), f32),
            pltpu.VMEM((C * D, HW), f32),
        ],
        compiler_params=pltpu.CompilerParams(
            dimension_semantics=("parallel",)),
    )(x2, bmat, params, w2k, b2k, w3k, b3k)

    return out.reshape(N, C, D, H, W)


# ----------------------------- reference -------------------------------------


def ref_forward(x, w1, b1, gamma, beta, w2, b2, w3, b3, *, eps=1e-5, pad=3):
    C = x.shape[1]
    hp = jax.lax.Precision.HIGHEST
    y = jax.lax.conv_general_dilated(
        x, w1, window_strides=(1, 1, 1),
        padding=[(pad, pad)] * 3,
        dimension_numbers=('NCDHW', 'OIDHW', 'NCDHW'),
        feature_group_count=C, precision=hp)
    y = y + b1[None, :, None, None, None]
    mean = y.mean(axis=(2, 3, 4), keepdims=True)
    var = ((y - mean) ** 2).mean(axis=(2, 3, 4), keepdims=True)
    yn = (y - mean) / jnp.sqrt(var + eps)
    yn = gamma[None, :, None, None, None] * yn + beta[None, :, None, None, None]
    h = jnp.einsum('oc,ncxyz->noxyz', w2, yn,
                   precision=hp) + b2[None, :, None, None, None]
    h = 0.5 * h * (1.0 + jax.lax.erf(h * 0.7071067811865476))
    out = jnp.einsum('oc,ncxyz->noxyz', w3, h,
                     precision=hp) + b3[None, :, None, None, None]
    return x + out


# ----------------------------- main -------------------------------------------


if __name__ == "__main__":
    # module config: in_channels = out_channels = 4, exp_r = 4, kernel_size = 7
    N, C, D, H, W = 2, 4, 8, 8, 8
    EXP_R, K = 4, 7
    CHID = EXP_R * C

    key = jax.random.PRNGKey(0)
    ks = jax.random.split(key, 8)
    x = jax.random.normal(ks[0], (N, C, D, H, W), jnp.float32)

    # synthetic parameters (shapes follow nn.Conv3d / nn.GroupNorm)
    w1 = 0.1 * jax.random.normal(ks[1], (C, 1, K, K, K), jnp.float32)   # depthwise
    b1 = 0.1 * jax.random.normal(ks[2], (C,), jnp.float32)
    gamma = jnp.ones((C,), jnp.float32)                                 # GroupNorm affine
    beta = jnp.zeros((C,), jnp.float32)
    w2 = 0.1 * jax.random.normal(ks[3], (CHID, C), jnp.float32)         # conv2 (1x1x1)
    b2 = 0.1 * jax.random.normal(ks[4], (CHID,), jnp.float32)
    w3 = 0.1 * jax.random.normal(ks[5], (C, CHID), jnp.float32)         # conv3 (1x1x1)
    b3 = 0.1 * jax.random.normal(ks[6], (C,), jnp.float32)

    fn = jax.jit(functools.partial(gbanet_block, kernel_size=K, eps=1e-5))
    out = jax.block_until_ready(fn(x, w1, b1, gamma, beta, w2, b2, w3, b3))

    ref = jax.block_until_ready(
        ref_forward(x, w1, b1, gamma, beta, w2, b2, w3, b3, eps=1e-5, pad=K // 2))

    np.testing.assert_allclose(np.asarray(out), np.asarray(ref),
                               rtol=2e-3, atol=2e-3)
    print("KERNEL_OK")
</pallas_src>

<mosaic_0001>
module attributes {stable_mosaic.version = 11 : i64} {
  func.func @_fused_kernel(%arg0: i32, %arg1: memref<1x32x64xf32, #tpu.memory_space<vmem>>, %arg2: memref<28x64x64xf32, #tpu.memory_space<vmem>>, %arg3: memref<3x4xf32, #tpu.memory_space<smem>>, %arg4: memref<128x32xf32, #tpu.memory_space<vmem>>, %arg5: memref<128x1xf32, #tpu.memory_space<vmem>>, %arg6: memref<32x128xf32, #tpu.memory_space<vmem>>, %arg7: memref<32x1xf32, #tpu.memory_space<vmem>>, %arg8: memref<1x32x64xf32, #tpu.memory_space<vmem>>, %arg9: memref<4x14x64xf32, #tpu.memory_space<vmem>>, %arg10: memref<32x64xf32, #tpu.memory_space<vmem>>) attributes {dimension_semantics = [#tpu.dimension_semantics<parallel>], iteration_bounds = array<i64: 2>, scalar_prefetch = 0 : i64, scratch_operands = 2 : i64, tpu.core_type = #tpu.core_type<tc>, window_params = [{transform_indices = @transform_0, window_bounds = array<i64: 1, 32, 64>}, {pipeline_mode = #tpu.pipeline_mode<synchronous>, transform_indices = @transform_1, window_bounds = array<i64: 28, 64, 64>}, {transform_indices = @transform_2, window_bounds = array<i64: 3, 4>}, {pipeline_mode = #tpu.pipeline_mode<synchronous>, transform_indices = @transform_3, window_bounds = array<i64: 128, 32>}, {pipeline_mode = #tpu.pipeline_mode<synchronous>, transform_indices = @transform_4, window_bounds = array<i64: 128, 1>}, {pipeline_mode = #tpu.pipeline_mode<synchronous>, transform_indices = @transform_5, window_bounds = array<i64: 32, 128>}, {pipeline_mode = #tpu.pipeline_mode<synchronous>, transform_indices = @transform_6, window_bounds = array<i64: 32, 1>}, {transform_indices = @transform_7, window_bounds = array<i64: 1, 32, 64>}]} {
    %cst = arith.constant 0.000000e+00 : f32
    %0 = vector.broadcast %cst : f32 to vector<4x14x64xf32>
    %c0 = arith.constant 0 : index
    %c0_0 = arith.constant 0 : index
    %c0_1 = arith.constant 0 : index
    %1 = vector.load %arg9[%c0, %c0_0, %c0_1] : memref<4x14x64xf32, #tpu.memory_space<vmem>>, vector<4x14x64xf32>
    tpu.vector_store %arg9[%c0, %c0_0, %c0_1], %0 {strides = array<i32>} : memref<4x14x64xf32, #tpu.memory_space<vmem>>, vector<4x14x64xf32>,
    %c0_2 = arith.constant 0 : index
    %c0_3 = arith.constant 0 : index
    %c0_4 = arith.constant 0 : index
    %2 = vector.load %arg1[%c0_2, %c0_3, %c0_4] : memref<1x32x64xf32, #tpu.memory_space<vmem>>, vector<1x32x64xf32>
    %3 = vector.shape_cast %2 : vector<1x32x64xf32> to vector<32x64xf32>
    %4 = vector.extract_strided_slice %3 {offsets = [0, 0], sizes = [8, 64], strides = [1, 1]} : vector<32x64xf32> to vector<8x64xf32>
    %c0_5 = arith.constant 0 : index
    %c3 = arith.constant 3 : index
    %c0_6 = arith.constant 0 : index
    %5 = vector.load %arg9[%c0_5, %c3, %c0_6] : memref<4x14x64xf32, #tpu.memory_space<vmem>>, vector<1x8x64xf32>
    %6 = vector.shape_cast %5 : vector<1x8x64xf32> to vector<8x64xf32>
    %7 = vector.shape_cast %4 : vector<8x64xf32> to vector<1x8x64xf32>
    tpu.vector_store %arg9[%c0_5, %c3, %c0_6], %7 {strides = array<i32>} : memref<4x14x64xf32, #tpu.memory_space<vmem>>, vector<1x8x64xf32>,
    %8 = vector.extract_strided_slice %3 {offsets = [8, 0], sizes = [8, 64], strides = [1, 1]} : vector<32x64xf32> to vector<8x64xf32>
    %c1 = arith.constant 1 : index
    %c3_7 = arith.constant 3 : index
    %c0_8 = arith.constant 0 : index
    %9 = vector.load %arg9[%c1, %c3_7, %c0_8] : memref<4x14x64xf32, #tpu.memory_space<vmem>>, vector<1x8x64xf32>
    %10 = vector.shape_cast %9 : vector<1x8x64xf32> to vector<8x64xf32>
    %11 = vector.shape_cast %8 : vector<8x64xf32> to vector<1x8x64xf32>
    tpu.vector_store %arg9[%c1, %c3_7, %c0_8], %11 {strides = array<i32>} : memref<4x14x64xf32, #tpu.memory_space<vmem>>, vector<1x8x64xf32>,
    %12 = vector.extract_strided_slice %3 {offsets = [16, 0], sizes = [8, 64], strides = [1, 1]} : vector<32x64xf32> to vector<8x64xf32>
    %c2 = arith.constant 2 : index
    %c3_9 = arith.constant 3 : index
    %c0_10 = arith.constant 0 : index
    %13 = vector.load %arg9[%c2, %c3_9, %c0_10] : memref<4x14x64xf32, #tpu.memory_space<vmem>>, vector<1x8x64xf32>
    %14 = vector.shape_cast %13 : vector<1x8x64xf32> to vector<8x64xf32>
    %15 = vector.shape_cast %12 : vector<8x64xf32> to vector<1x8x64xf32>
    tpu.vector_store %arg9[%c2, %c3_9, %c0_10], %15 {strides = array<i32>} : memref<4x14x64xf32, #tpu.memory_space<vmem>>, vector<1x8x64xf32>,
    %16 = vector.extract_strided_slice %3 {offsets = [24, 0], sizes = [8, 64], strides = [1, 1]} : vector<32x64xf32> to vector<8x64xf32>
    %c3_11 = arith.constant 3 : index
    %c3_12 = arith.constant 3 : index
    %c0_13 = arith.constant 0 : index
    %17 = vector.load %arg9[%c3_11, %c3_12, %c0_13] : memref<4x14x64xf32, #tpu.memory_space<vmem>>, vector<1x8x64xf32>
    %18 = vector.shape_cast %17 : vector<1x8x64xf32> to vector<8x64xf32>
    %19 = vector.shape_cast %16 : vector<8x64xf32> to vector<1x8x64xf32>
    tpu.vector_store %arg9[%c3_11, %c3_12, %c0_13], %19 {strides = array<i32>} : memref<4x14x64xf32, #tpu.memory_space<vmem>>, vector<1x8x64xf32>,
    %cst_14 = arith.constant 0.000000e+00 : f32
    %20 = vector.broadcast %cst_14 : f32 to vector<8x64xf32>
    %c0_15 = arith.constant 0 : index
    %c0_16 = arith.constant 0 : index
    %c0_17 = arith.constant 0 : index
    %21 = vector.load %arg9[%c0_15, %c0_16, %c0_17] : memref<4x14x64xf32, #tpu.memory_space<vmem>>, vector<1x8x64xf32>
    %22 = vector.shape_cast %21 : vector<1x8x64xf32> to vector<8x64xf32>
    %c0_18 = arith.constant 0 : index
    %c0_19 = arith.constant 0 : index
    %c0_20 = arith.constant 0 : index
    %23 = vector.load %arg2[%c0_18, %c0_19, %c0_20] : memref<28x64x64xf32, #tpu.memory_space<vmem>>, vector<1x64x64xf32>
    %24 = vector.shape_cast %23 : vector<1x64x64xf32> to vector<64x64xf32>
    %cst_21 = arith.constant dense<0.000000e+00> : vector<8x64xf32>
    %25 = tpu.matmul %22, %24, %cst_21 {dimension_numbers = #tpu.dot_dimension_numbers<[1], [0], [0], [1], [0, 0, 1, 1], [], []>, precision = #tpu.contract_precision<fp32>} : vector<8x64xf32>, vector<64x64xf32>, vector<8x64xf32> -> vector<8x64xf32>
    %26 = arith.addf %20, %25 : vector<8x64xf32>
    %c0_22 = arith.constant 0 : index
    %c1_23 = arith.constant 1 : index
    %c0_24 = arith.constant 0 : index
    %27 = vector.load %arg9[%c0_22, %c1_23, %c0_24] : memref<4x14x64xf32, #tpu.memory_space<vmem>>, vector<1x8x64xf32>
    %28 = vector.shape_cast %27 : vector<1x8x64xf32> to vector<8x64xf32>
    %c1_25 = arith.constant 1 : index
    %c0_26 = arith.constant 0 : index
    %c0_27 = arith.constant 0 : index
    %29 = vector.load %arg2[%c1_25, %c0_26, %c0_27] : memref<28x64x64xf32, #tpu.memory_space<vmem>>, vector<1x64x64xf32>
    %30 = vector.shape_cast %29 : vector<1x64x64xf32> to vector<64x64xf32>
    %cst_28 = arith.constant dense<0.000000e+00> : vector<8x64xf32>
    %31 = tpu.matmul %28, %30, %cst_28 {dimension_numbers = #tpu.dot_dimension_numbers<[1], [0], [0], [1], [0, 0, 1, 1], [], []>, precision = #tpu.contract_precision<fp32>} : vector<8x64xf32>, vector<64x64xf32>, vector<8x64xf32> -> vector<8x64xf32>
    %32 = arith.addf %26, %31 : vector<8x64xf32>
    %c0_29 = arith.constant 0 : index
    %c2_30 = arith.constant 2 : index
    %c0_31 = arith.constant 0 : index
    %33 = vector.load %arg9[%c0_29, %c2_30, %c0_31] : memref<4x14x64xf32, #tpu.memory_space<vmem>>, vector<1x8x64xf32>
    %34 = vector.shape_cast %33 : vector<1x8x64xf32> to vector<8x64xf32>
    %c2_32 = arith.constant 2 : index
    %c0_33 = arith.constant 0 : index
    %c0_34 = arith.constant 0 : index
    %35 = vector.load %arg2[%c2_32, %c0_33, %c0_34] : memref<28x64x64xf32, #tpu.memory_space<vmem>>, vector<1x64x64xf32>
    %36 = vector.shape_cast %35 : vector<1x64x64xf32> to vector<64x64xf32>
    %cst_35 = arith.constant dense<0.000000e+00> : vector<8x64xf32>
    %37 = tpu.matmul %34, %36, %cst_35 {dimension_numbers = #tpu.dot_dimension_numbers<[1], [0], [0], [1], [0, 0, 1, 1], [], []>, precision = #tpu.contract_precision<fp32>} : vector<8x64xf32>, vector<64x64xf32>, vector<8x64xf32> -> vector<8x64xf32>
    %38 = arith.addf %32, %37 : vector<8x64xf32>
    %c0_36 = arith.constant 0 : index
    %c3_37 = arith.constant 3 : index
    %c0_38 = arith.constant 0 : index
    %39 = vector.load %arg9[%c0_36, %c3_37, %c0_38] : memref<4x14x64xf32, #tpu.memory_space<vmem>>, vector<1x8x64xf32>
    %40 = vector.shape_cast %39 : vector<1x8x64xf32> to vector<8x64xf32>
    %c3_39 = arith.constant 3 : index
    %c0_40 = arith.constant 0 : index
    %c0_41 = arith.constant 0 : index
    %41 = vector.load %arg2[%c3_39, %c0_40, %c0_41] : memref<28x64x64xf32, #tpu.memory_space<vmem>>, vector<1x64x64xf32>
    %42 = vector.shape_cast %41 : vector<1x64x64xf32> to vector<64x64xf32>
    %cst_42 = arith.constant dense<0.000000e+00> : vector<8x64xf32>
    %43 = tpu.matmul %40, %42, %cst_42 {dimension_numbers = #tpu.dot_dimension_numbers<[1], [0], [0], [1], [0, 0, 1, 1], [], []>, precision = #tpu.contract_precision<fp32>} : vector<8x64xf32>, vector<64x64xf32>, vector<8x64xf32> -> vector<8x64xf32>
    %44 = arith.addf %38, %43 : vector<8x64xf32>
    %c0_43 = arith.constant 0 : index
    %c4 = arith.constant 4 : index
    %c0_44 = arith.constant 0 : index
    %45 = vector.load %arg9[%c0_43, %c4, %c0_44] : memref<4x14x64xf32, #tpu.memory_space<vmem>>, vector<1x8x64xf32>
    %46 = vector.shape_cast %45 : vector<1x8x64xf32> to vector<8x64xf32>
    %c4_45 = arith.constant 4 : index
    %c0_46 = arith.constant 0 : index
    %c0_47 = arith.constant 0 : index
    %47 = vector.load %arg2[%c4_45, %c0_46, %c0_47] : memref<28x64x64xf32, #tpu.memory_space<vmem>>, vector<1x64x64xf32>
    %48 = vector.shape_cast %47 : vector<1x64x64xf32> to vector<64x64xf32>
    %cst_48 = arith.constant dense<0.000000e+00> : vector<8x64xf32>
    %49 = tpu.matmul %46, %48, %cst_48 {dimension_numbers = #tpu.dot_dimension_numbers<[1], [0], [0], [1], [0, 0, 1, 1], [], []>, precision = #tpu.contract_precision<fp32>} : vector<8x64xf32>, vector<64x64xf32>, vector<8x64xf32> -> vector<8x64xf32>
    %50 = arith.addf %44, %49 : vector<8x64xf32>
    %c0_49 = arith.constant 0 : index
    %c5 = arith.constant 5 : index
    %c0_50 = arith.constant 0 : index
    %51 = vector.load %arg9[%c0_49, %c5, %c0_50] : memref<4x14x64xf32, #tpu.memory_space<vmem>>, vector<1x8x64xf32>
    %52 = vector.shape_cast %51 : vector<1x8x64xf32> to vector<8x64xf32>
    %c5_51 = arith.constant 5 : index
    %c0_52 = arith.constant 0 : index
    %c0_53 = arith.constant 0 : index
    %53 = vector.load %arg2[%c5_51, %c0_52, %c0_53] : memref<28x64x64xf32, #tpu.memory_space<vmem>>, vector<1x64x64xf32>
    %54 = vector.shape_cast %53 : vector<1x64x64xf32> to vector<64x64xf32>
    %cst_54 = arith.constant dense<0.000000e+00> : vector<8x64xf32>
    %55 = tpu.matmul %52, %54, %cst_54 {dimension_numbers = #tpu.dot_dimension_numbers<[1], [0], [0], [1], [0, 0, 1, 1], [], []>, precision = #tpu.contract_precision<fp32>} : vector<8x64xf32>, vector<64x64xf32>, vector<8x64xf32> -> vector<8x64xf32>
    %56 = arith.addf %50, %55 : vector<8x64xf32>
    %c0_55 = arith.constant 0 : index
    %c6 = arith.constant 6 : index
    %c0_56 = arith.constant 0 : index
    %57 = vector.load %arg9[%c0_55, %c6, %c0_56] : memref<4x14x64xf32, #tpu.memory_space<vmem>>, vector<1x8x64xf32>
    %58 = vector.shape_cast %57 : vector<1x8x64xf32> to vector<8x64xf32>
    %c6_57 = arith.constant 6 : index
    %c0_58 = arith.constant 0 : index
    %c0_59 = arith.constant 0 : index
    %59 = vector.load %arg2[%c6_57, %c0_58, %c0_59] : memref<28x64x64xf32, #tpu.memory_space<vmem>>, vector<1x64x64xf32>
    %60 = vector.shape_cast %59 : vector<1x64x64xf32> to vector<64x64xf32>
    %cst_60 = arith.constant dense<0.000000e+00> : vector<8x64xf32>
    %61 = tpu.matmul %58, %60, %cst_60 {dimension_numbers = #tpu.dot_dimension_numbers<[1], [0], [0], [1], [0, 0, 1, 1], [], []>, precision = #tpu.contract_precision<fp32>} : vector<8x64xf32>, vector<64x64xf32>, vector<8x64xf32> -> vector<8x64xf32>
    %62 = arith.addf %56, %61 : vector<8x64xf32>
    %c0_61 = arith.constant 0 : index
    %c0_62 = arith.constant 0 : index
    %63 = memref.load %arg3[%c0_61, %c0_62] : memref<3x4xf32, #tpu.memory_space<smem>>
    %64 = vector.broadcast %63 : f32 to vector<8x64xf32>
    %65 = arith.addf %62, %64 : vector<8x64xf32>
    %66 = vector.shape_cast %65 : vector<8x64xf32> to vector<1x8x64xf32>
    %cst_63 = arith.constant dense<0.000000e+00> : vector<1xf32>
    %67 = vector.multi_reduction <add>, %66, %cst_63 [1, 2] : vector<1x8x64xf32> to vector<1xf32>
    %68 = vector.shape_cast %67 : vector<1xf32> to vector<1x1x1xf32>
    %69 = vector.extract %68[0, 0, 0] : f32 from vector<1x1x1xf32>
    %cst_64 = arith.constant 0.001953125 : f32
    %70 = arith.mulf %69, %cst_64 : f32
    %71 = arith.mulf %65, %65 : vector<8x64xf32>
    %72 = vector.shape_cast %71 : vector<8x64xf32> to vector<1x8x64xf32>
    %cst_65 = arith.constant dense<0.000000e+00> : vector<1xf32>
    %73 = vector.multi_reduction <add>, %72, %cst_65 [1, 2] : vector<1x8x64xf32> to vector<1xf32>
    %74 = vector.shape_cast %73 : vector<1xf32> to vector<1x1x1xf32>
    %75 = vector.extract %74[0, 0, 0] : f32 from vector<1x1x1xf32>
    %cst_66 = arith.constant 0.001953125 : f32
    %76 = arith.mulf %75, %cst_66 : f32
    %77 = arith.mulf %70, %70 : f32
    %78 = arith.subf %76, %77 : f32
    %79 = vector.broadcast %70 : f32 to vector<8x64xf32>
    %80 = arith.subf %65, %79 : vector<8x64xf32>
    %cst_67 = arith.constant 9.99999974E-6 : f32
    %81 = arith.addf %78, %cst_67 : f32
    %82 = math.rsqrt %81 : f32
    %83 = vector.broadcast %82 : f32 to vector<8x64xf32>
    %84 = arith.mulf %80, %83 : vector<8x64xf32>
    %c1_68 = arith.constant 1 : index
    %c0_69 = arith.constant 0 : index
    %85 = memref.load %arg3[%c1_68, %c0_69] : memref<3x4xf32, #tpu.memory_space<smem>>
    %86 = vector.broadcast %85 : f32 to vector<8x64xf32>
    %87 = arith.mulf %86, %84 : vector<8x64xf32>
    %c2_70 = arith.constant 2 : index
    %c0_71 = arith.constant 0 : index
    %88 = memref.load %arg3[%c2_70, %c0_71] : memref<3x4xf32, #tpu.memory_space<smem>>
    %89 = vector.broadcast %88 : f32 to vector<8x64xf32>
    %90 = arith.addf %87, %89 : vector<8x64xf32>
    %c0_72 = arith.constant 0 : index
    %c0_73 = arith.constant 0 : index
    %91 = vector.load %arg10[%c0_72, %c0_73] : memref<32x64xf32, #tpu.memory_space<vmem>>, vector<8x64xf32>
    tpu.vector_store %arg10[%c0_72, %c0_73], %90 {strides = array<i32>} : memref<32x64xf32, #tpu.memory_space<vmem>>, vector<8x64xf32>,
    %cst_74 = arith.constant 0.000000e+00 : f32
    %92 = vector.broadcast %cst_74 : f32 to vector<8x64xf32>
    %c1_75 = arith.constant 1 : index
    %c0_76 = arith.constant 0 : index
    %c0_77 = arith.constant 0 : index
    %93 = vector.load %arg9[%c1_75, %c0_76, %c0_77] : memref<4x14x64xf32, #tpu.memory_space<vmem>>, vector<1x8x64xf32>
    %94 = vector.shape_cast %93 : vector<1x8x64xf32> to vector<8x64xf32>
    %c7 = arith.constant 7 : index
    %c0_78 = arith.constant 0 : index
    %c0_79 = arith.constant 0 : index
    %95 = vector.load %arg2[%c7, %c0_78, %c0_79] : memref<28x64x64xf32, #tpu.memory_space<vmem>>, vector<1x64x64xf32>
    %96 = vector.shape_cast %95 : vector<1x64x64xf32> to vector<64x64xf32>
    %cst_80 = arith.constant dense<0.000000e+00> : vector<8x64xf32>
    %97 = tpu.matmul %94, %96, %cst_80 {dimension_numbers = #tpu.dot_dimension_numbers<[1], [0], [0], [1], [0, 0, 1, 1], [], []>, precision = #tpu.contract_precision<fp32>} : vector<8x64xf32>, vector<64x64xf32>, vector<8x64xf32> -> vector<8x64xf32>
    %98 = arith.addf %92, %97 : vector<8x64xf32>
    %c1_81 = arith.constant 1 : index
    %c1_82 = arith.constant 1 : index
    %c0_83 = arith.constant 0 : index
    %99 = vector.load %arg9[%c1_81, %c1_82, %c0_83] : memref<4x14x64xf32, #tpu.memory_space<vmem>>, vector<1x8x64xf32>
    %100 = vector.shape_cast %99 : vector<1x8x64xf32> to vector<8x64xf32>
    %c8 = arith.constant 8 : index
    %c0_84 = arith.constant 0 : index
    %c0_85 = arith.constant 0 : index
    %101 = vector.load %arg2[%c8, %c0_84, %c0_85] : memref<28x64x64xf32, #tpu.memory_space<vmem>>, vector<1x64x64xf32>
    %102 = vector.shape_cast %101 : vector<1x64x64xf32> to vector<64x64xf32>
    %cst_86 = arith.constant dense<0.000000e+00> : vector<8x64xf32>
    %103 = tpu.matmul %100, %102, %cst_86 {dimension_numbers = #tpu.dot_dimension_numbers<[1], [0], [0], [1], [0, 0, 1, 1], [], []>, precision = #tpu.contract_precision<fp32>} : vector<8x64xf32>, vector<64x64xf32>, vector<8x64xf32> -> vector<8x64xf32>
    %104 = arith.addf %98, %103 : vector<8x64xf32>
    %c1_87 = arith.constant 1 : index
    %c2_88 = arith.constant 2 : index
    %c0_89 = arith.constant 0 : index
    %105 = vector.load %arg9[%c1_87, %c2_88, %c0_89] : memref<4x14x64xf32, #tpu.memory_space<vmem>>, vector<1x8x64xf32>
    %106 = vector.shape_cast %105 : vector<1x8x64xf32> to vector<8x64xf32>
    %c9 = arith.constant 9 : index
    %c0_90 = arith.constant 0 : index
    %c0_91 = arith.constant 0 : index
    %107 = vector.load %arg2[%c9, %c0_90, %c0_91] : memref<28x64x64xf32, #tpu.memory_space<vmem>>, vector<1x64x64xf32>
    %108 = vector.shape_cast %107 : vector<1x64x64xf32> to vector<64x64xf32>
    %cst_92 = arith.constant dense<0.000000e+00> : vector<8x64xf32>
    %109 = tpu.matmul %106, %108, %cst_92 {dimension_numbers = #tpu.dot_dimension_numbers<[1], [0], [0], [1], [0, 0, 1, 1], [], []>, precision = #tpu.contract_precision<fp32>} : vector<8x64xf32>, vector<64x64xf32>, vector<8x64xf32> -> vector<8x64xf32>
    %110 = arith.addf %104, %109 : vector<8x64xf32>
    %c1_93 = arith.constant 1 : index
    %c3_94 = arith.constant 3 : index
    %c0_95 = arith.constant 0 : index
    %111 = vector.load %arg9[%c1_93, %c3_94, %c0_95] : memref<4x14x64xf32, #tpu.memory_space<vmem>>, vector<1x8x64xf32>
    %112 = vector.shape_cast %111 : vector<1x8x64xf32> to vector<8x64xf32>
    %c10 = arith.constant 10 : index
    %c0_96 = arith.constant 0 : index
    %c0_97 = arith.constant 0 : index
    %113 = vector.load %arg2[%c10, %c0_96, %c0_97] : memref<28x64x64xf32, #tpu.memory_space<vmem>>, vector<1x64x64xf32>
    %114 = vector.shape_cast %113 : vector<1x64x64xf32> to vector<64x64xf32>
    %cst_98 = arith.constant dense<0.000000e+00> : vector<8x64xf32>
    %115 = tpu.matmul %112, %114, %cst_98 {dimension_numbers = #tpu.dot_dimension_numbers<[1], [0], [0], [1], [0, 0, 1, 1], [], []>, precision = #tpu.contract_precision<fp32>} : vector<8x64xf32>, vector<64x64xf32>, vector<8x64xf32> -> vector<8x64xf32>
    %116 = arith.addf %110, %115 : vector<8x64xf32>
    %c1_99 = arith.constant 1 : index
    %c4_100 = arith.constant 4 : index
    %c0_101 = arith.constant 0 : index
    %117 = vector.load %arg9[%c1_99, %c4_100, %c0_101] : memref<4x14x64xf32, #tpu.memory_space<vmem>>, vector<1x8x64xf32>
    %118 = vector.shape_cast %117 : vector<1x8x64xf32> to vector<8x64xf32>
    %c11 = arith.constant 11 : index
    %c0_102 = arith.constant 0 : index
    %c0_103 = arith.constant 0 : index
    %119 = vector.load %arg2[%c11, %c0_102, %c0_103] : memref<28x64x64xf32, #tpu.memory_space<vmem>>, vector<1x64x64xf32>
    %120 = vector.shape_cast %119 : vector<1x64x64xf32> to vector<64x64xf32>
    %cst_104 = arith.constant dense<0.000000e+00> : vector<8x64xf32>
    %121 = tpu.matmul %118, %120, %cst_104 {dimension_numbers = #tpu.dot_dimension_numbers<[1], [0], [0], [1], [0, 0, 1, 1], [], []>, precision = #tpu.contract_precision<fp32>} : vector<8x64xf32>, vector<64x64xf32>, vector<8x64xf32> -> vector<8x64xf32>
    %122 = arith.addf %116, %121 : vector<8x64xf32>
    %c1_105 = arith.constant 1 : index
    %c5_106 = arith.constant 5 : index
    %c0_107 = arith.constant 0 : index
    %123 = vector.load %arg9[%c1_105, %c5_106, %c0_107] : memref<4x14x64xf32, #tpu.memory_space<vmem>>, vector<1x8x64xf32>
    %124 = vector.shape_cast %123 : vector<1x8x64xf32> to vector<8x64xf32>
    %c12 = arith.constant 12 : index
    %c0_108 = arith.constant 0 : index
    %c0_109 = arith.constant 0 : index
    %125 = vector.load %arg2[%c12, %c0_108, %c0_109] : memref<28x64x64xf32, #tpu.memory_space<vmem>>, vector<1x64x64xf32>
    %126 = vector.shape_cast %125 : vector<1x64x64xf32> to vector<64x64xf32>
    %cst_110 = arith.constant dense<0.000000e+00> : vector<8x64xf32>
    %127 = tpu.matmul %124, %126, %cst_110 {dimension_numbers = #tpu.dot_dimension_numbers<[1], [0], [0], [1], [0, 0, 1, 1], [], []>, precision = #tpu.contract_precision<fp32>} : vector<8x64xf32>, vector<64x64xf32>, vector<8x64xf32> -> vector<8x64xf32>
    %128 = arith.addf %122, %127 : vector<8x64xf32>
    %c1_111 = arith.constant 1 : index
    %c6_112 = arith.constant 6 : index
    %c0_113 = arith.constant 0 : index
    %129 = vector.load %arg9[%c1_111, %c6_112, %c0_113] : memref<4x14x64xf32, #tpu.memory_space<vmem>>, vector<1x8x64xf32>
    %130 = vector.shape_cast %129 : vector<1x8x64xf32> to vector<8x64xf32>
    %c13 = arith.constant 13 : index
    %c0_114 = arith.constant 0 : index
    %c0_115 = arith.constant 0 : index
    %131 = vector.load %arg2[%c13, %c0_114, %c0_115] : memref<28x64x64xf32, #tpu.memory_space<vmem>>, vector<1x64x64xf32>
    %132 = vector.shape_cast %131 : vector<1x64x64xf32> to vector<64x64xf32>
    %cst_116 = arith.constant dense<0.000000e+00> : vector<8x64xf32>
    %133 = tpu.matmul %130, %132, %cst_116 {dimension_numbers = #tpu.dot_dimension_numbers<[1], [0], [0], [1], [0, 0, 1, 1], [], []>, precision = #tpu.contract_precision<fp32>} : vector<8x64xf32>, vector<64x64xf32>, vector<8x64xf32> -> vector<8x64xf32>
    %134 = arith.addf %128, %133 : vector<8x64xf32>
    %c0_117 = arith.constant 0 : index
    %c1_118 = arith.constant 1 : index
    %135 = memref.load %arg3[%c0_117, %c1_118] : memref<3x4xf32, #tpu.memory_space<smem>>
    %136 = vector.broadcast %135 : f32 to vector<8x64xf32>
    %137 = arith.addf %134, %136 : vector<8x64xf32>
    %138 = vector.shape_cast %137 : vector<8x64xf32> to vector<1x8x64xf32>
    %cst_119 = arith.constant dense<0.000000e+00> : vector<1xf32>
    %139 = vector.multi_reduction <add>, %138, %cst_119 [1, 2] : vector<1x8x64xf32> to vector<1xf32>
    %140 = vector.shape_cast %139 : vector<1xf32> to vector<1x1x1xf32>
    %141 = vector.extract %140[0, 0, 0] : f32 from vector<1x1x1xf32>
    %cst_120 = arith.constant 0.001953125 : f32
    %142 = arith.mulf %141, %cst_120 : f32
    %143 = arith.mulf %137, %137 : vector<8x64xf32>
    %144 = vector.shape_cast %143 : vector<8x64xf32> to vector<1x8x64xf32>
    %cst_121 = arith.constant dense<0.000000e+00> : vector<1xf32>
    %145 = vector.multi_reduction <add>, %144, %cst_121 [1, 2] : vector<1x8x64xf32> to vector<1xf32>
    %146 = vector.shape_cast %145 : vector<1xf32> to vector<1x1x1xf32>
    %147 = vector.extract %146[0, 0, 0] : f32 from vector<1x1x1xf32>
    %cst_122 = arith.constant 0.001953125 : f32
    %148 = arith.mulf %147, %cst_122 : f32
    %149 = arith.mulf %142, %142 : f32
    %150 = arith.subf %148, %149 : f32
    %151 = vector.broadcast %142 : f32 to vector<8x64xf32>
    %152 = arith.subf %137, %151 : vector<8x64xf32>
    %cst_123 = arith.constant 9.99999974E-6 : f32
    %153 = arith.addf %150, %cst_123 : f32
    %154 = math.rsqrt %153 : f32
    %155 = vector.broadcast %154 : f32 to vector<8x64xf32>
    %156 = arith.mulf %152, %155 : vector<8x64xf32>
    %c1_124 = arith.constant 1 : index
    %c1_125 = arith.constant 1 : index
    %157 = memref.load %arg3[%c1_124, %c1_125] : memref<3x4xf32, #tpu.memory_space<smem>>
    %158 = vector.broadcast %157 : f32 to vector<8x64xf32>
    %159 = arith.mulf %158, %156 : vector<8x64xf32>
    %c2_126 = arith.constant 2 : index
    %c1_127 = arith.constant 1 : index
    %160 = memref.load %arg3[%c2_126, %c1_127] : memref<3x4xf32, #tpu.memory_space<smem>>
    %161 = vector.broadcast %160 : f32 to vector<8x64xf32>
    %162 = arith.addf %159, %161 : vector<8x64xf32>
    %c8_128 = arith.constant 8 : index
    %c0_129 = arith.constant 0 : index
    %163 = vector.load %arg10[%c8_128, %c0_129] : memref<32x64xf32, #tpu.memory_space<vmem>>, vector<8x64xf32>
    tpu.vector_store %arg10[%c8_128, %c0_129], %162 {strides = array<i32>} : memref<32x64xf32, #tpu.memory_space<vmem>>, vector<8x64xf32>,
    %cst_130 = arith.constant 0.000000e+00 : f32
    %164 = vector.broadcast %cst_130 : f32 to vector<8x64xf32>
    %c2_131 = arith.constant 2 : index
    %c0_132 = arith.constant 0 : index
    %c0_133 = arith.constant 0 : index
    %165 = vector.load %arg9[%c2_131, %c0_132, %c0_133] : memref<4x14x64xf32, #tpu.memory_space<vmem>>, vector<1x8x64xf32>
    %166 = vector.shape_cast %165 : vector<1x8x64xf32> to vector<8x64xf32>
    %c14 = arith.constant 14 : index
    %c0_134 = arith.constant 0 : index
    %c0_135 = arith.constant 0 : index
    %167 = vector.load %arg2[%c14, %c0_134, %c0_135] : memref<28x64x64xf32, #tpu.memory_space<vmem>>, vector<1x64x64xf32>
    %168 = vector.shape_cast %167 : vector<1x64x64xf32> to vector<64x64xf32>
    %cst_136 = arith.constant dense<0.000000e+00> : vector<8x64xf32>
    %169 = tpu.matmul %166, %168, %cst_136 {dimension_numbers = #tpu.dot_dimension_numbers<[1], [0], [0], [1], [0, 0, 1, 1], [], []>, precision = #tpu.contract_precision<fp32>} : vector<8x64xf32>, vector<64x64xf32>, vector<8x64xf32> -> vector<8x64xf32>
    %170 = arith.addf %164, %169 : vector<8x64xf32>
    %c2_137 = arith.constant 2 : index
    %c1_138 = arith.constant 1 : index
    %c0_139 = arith.constant 0 : index
    %171 = vector.load %arg9[%c2_137, %c1_138, %c0_139] : memref<4x14x64xf32, #tpu.memory_space<vmem>>, vector<1x8x64xf32>
    %172 = vector.shape_cast %171 : vector<1x8x64xf32> to vector<8x64xf32>
    %c15 = arith.constant 15 : index
    %c0_140 = arith.constant 0 : index
    %c0_141 = arith.constant 0 : index
    %173 = vector.load %arg2[%c15, %c0_140, %c0_141] : memref<28x64x64xf32, #tpu.memory_space<vmem>>, vector<1x64x64xf32>
    %174 = vector.shape_cast %173 : vector<1x64x64xf32> to vector<64x64xf32>
    %cst_142 = arith.constant dense<0.000000e+00> : vector<8x64xf32>
    %175 = tpu.matmul %172, %174, %cst_142 {dimension_numbers = #tpu.dot_dimension_numbers<[1], [0], [0], [1], [0, 0, 1, 1], [], []>, precision = #tpu.contract_precision<fp32>} : vector<8x64xf32>, vector<64x64xf32>, vector<8x64xf32> -> vector<8x64xf32>
    %176 = arith.addf %170, %175 : vector<8x64xf32>
    %c2_143 = arith.constant 2 : index
    %c2_144 = arith.constant 2 : index
    %c0_145 = arith.constant 0 : index
    %177 = vector.load %arg9[%c2_143, %c2_144, %c0_145] : memref<4x14x64xf32, #tpu.memory_space<vmem>>, vector<1x8x64xf32>
    %178 = vector.shape_cast %177 : vector<1x8x64xf32> to vector<8x64xf32>
    %c16 = arith.constant 16 : index
    %c0_146 = arith.constant 0 : index
    %c0_147 = arith.constant 0 : index
    %179 = vector.load %arg2[%c16, %c0_146, %c0_147] : memref<28x64x64xf32, #tpu.memory_space<vmem>>, vector<1x64x64xf32>
    %180 = vector.shape_cast %179 : vector<1x64x64xf32> to vector<64x64xf32>
    %cst_148 = arith.constant dense<0.000000e+00> : vector<8x64xf32>
    %181 = tpu.matmul %178, %180, %cst_148 {dimension_numbers = #tpu.dot_dimension_numbers<[1], [0], [0], [1], [0, 0, 1, 1], [], []>, precision = #tpu.contract_precision<fp32>} : vector<8x64xf32>, vector<64x64xf32>, vector<8x64xf32> -> vector<8x64xf32>
    %182 = arith.addf %176, %181 : vector<8x64xf32>
    %c2_149 = arith.constant 2 : index
    %c3_150 = arith.constant 3 : index
    %c0_151 = arith.constant 0 : index
    %183 = vector.load %arg9[%c2_149, %c3_150, %c0_151] : memref<4x14x64xf32, #tpu.memory_space<vmem>>, vector<1x8x64xf32>
    %184 = vector.shape_cast %183 : vector<1x8x64xf32> to vector<8x64xf32>
    %c17 = arith.constant 17 : index
    %c0_152 = arith.constant 0 : index
    %c0_153 = arith.constant 0 : index
    %185 = vector.load %arg2[%c17, %c0_152, %c0_153] : memref<28x64x64xf32, #tpu.memory_space<vmem>>, vector<1x64x64xf32>
    %186 = vector.shape_cast %185 : vector<1x64x64xf32> to vector<64x64xf32>
    %cst_154 = arith.constant dense<0.000000e+00> : vector<8x64xf32>
    %187 = tpu.matmul %184, %186, %cst_154 {dimension_numbers = #tpu.dot_dimension_numbers<[1], [0], [0], [1], [0, 0, 1, 1], [], []>, precision = #tpu.contract_precision<fp32>} : vector<8x64xf32>, vector<64x64xf32>, vector<8x64xf32> -> vector<8x64xf32>
    %188 = arith.addf %182, %187 : vector<8x64xf32>
    %c2_155 = arith.constant 2 : index
    %c4_156 = arith.constant 4 : index
    %c0_157 = arith.constant 0 : index
    %189 = vector.load %arg9[%c2_155, %c4_156, %c0_157] : memref<4x14x64xf32, #tpu.memory_space<vmem>>, vector<1x8x64xf32>
    %190 = vector.shape_cast %189 : vector<1x8x64xf32> to vector<8x64xf32>
    %c18 = arith.constant 18 : index
    %c0_158 = arith.constant 0 : index
    %c0_159 = arith.constant 0 : index
    %191 = vector.load %arg2[%c18, %c0_158, %c0_159] : memref<28x64x64xf32, #tpu.memory_space<vmem>>, vector<1x64x64xf32>
    %192 = vector.shape_cast %191 : vector<1x64x64xf32> to vector<64x64xf32>
    %cst_160 = arith.constant dense<0.000000e+00> : vector<8x64xf32>
    %193 = tpu.matmul %190, %192, %cst_160 {dimension_numbers = #tpu.dot_dimension_numbers<[1], [0], [0], [1], [0, 0, 1, 1], [], []>, precision = #tpu.contract_precision<fp32>} : vector<8x64xf32>, vector<64x64xf32>, vector<8x64xf32> -> vector<8x64xf32>
    %194 = arith.addf %188, %193 : vector<8x64xf32>
    %c2_161 = arith.constant 2 : index
    %c5_162 = arith.constant 5 : index
    %c0_163 = arith.constant 0 : index
    %195 = vector.load %arg9[%c2_161, %c5_162, %c0_163] : memref<4x14x64xf32, #tpu.memory_space<vmem>>, vector<1x8x64xf32>
    %196 = vector.shape_cast %195 : vector<1x8x64xf32> to vector<8x64xf32>
    %c19 = arith.constant 19 : index
    %c0_164 = arith.constant 0 : index
    %c0_165 = arith.constant 0 : index
    %197 = vector.load %arg2[%c19, %c0_164, %c0_165] : memref<28x64x64xf32, #tpu.memory_space<vmem>>, vector<1x64x64xf32>
    %198 = vector.shape_cast %197 : vector<1x64x64xf32> to vector<64x64xf32>
    %cst_166 = arith.constant dense<0.000000e+00> : vector<8x64xf32>
    %199 = tpu.matmul %196, %198, %cst_166 {dimension_numbers = #tpu.dot_dimension_numbers<[1], [0], [0], [1], [0, 0, 1, 1], [], []>, precision = #tpu.contract_precision<fp32>} : vector<8x64xf32>, vector<64x64xf32>, vector<8x64xf32> -> vector<8x64xf32>
    %200 = arith.addf %194, %199 : vector<8x64xf32>
    %c2_167 = arith.constant 2 : index
    %c6_168 = arith.constant 6 : index
    %c0_169 = arith.constant 0 : index
    %201 = vector.load %arg9[%c2_167, %c6_168, %c0_169] : memref<4x14x64xf32, #tpu.memory_space<vmem>>, vector<1x8x64xf32>
    %202 = vector.shape_cast %201 : vector<1x8x64xf32> to vector<8x64xf32>
    %c20 = arith.constant 20 : index
    %c0_170 = arith.constant 0 : index
    %c0_171 = arith.constant 0 : index
    %203 = vector.load %arg2[%c20, %c0_170, %c0_171] : memref<28x64x64xf32, #tpu.memory_space<vmem>>, vector<1x64x64xf32>
    %204 = vector.shape_cast %203 : vector<1x64x64xf32> to vector<64x64xf32>
    %cst_172 = arith.constant dense<0.000000e+00> : vector<8x64xf32>
    %205 = tpu.matmul %202, %204, %cst_172 {dimension_numbers = #tpu.dot_dimension_numbers<[1], [0], [0], [1], [0, 0, 1, 1], [], []>, precision = #tpu.contract_precision<fp32>} : vector<8x64xf32>, vector<64x64xf32>, vector<8x64xf32> -> vector<8x64xf32>
    %206 = arith.addf %200, %205 : vector<8x64xf32>
    %c0_173 = arith.constant 0 : index
    %c2_174 = arith.constant 2 : index
    %207 = memref.load %arg3[%c0_173, %c2_174] : memref<3x4xf32, #tpu.memory_space<smem>>
    %208 = vector.broadcast %207 : f32 to vector<8x64xf32>
    %209 = arith.addf %206, %208 : vector<8x64xf32>
    %210 = vector.shape_cast %209 : vector<8x64xf32> to vector<1x8x64xf32>
    %cst_175 = arith.constant dense<0.000000e+00> : vector<1xf32>
    %211 = vector.multi_reduction <add>, %210, %cst_175 [1, 2] : vector<1x8x64xf32> to vector<1xf32>
    %212 = vector.shape_cast %211 : vector<1xf32> to vector<1x1x1xf32>
    %213 = vector.extract %212[0, 0, 0] : f32 from vector<1x1x1xf32>
    %cst_176 = arith.constant 0.001953125 : f32
    %214 = arith.mulf %213, %cst_176 : f32
    %215 = arith.mulf %209, %209 : vector<8x64xf32>
    %216 = vector.shape_cast %215 : vector<8x64xf32> to vector<1x8x64xf32>
    %cst_177 = arith.constant dense<0.000000e+00> : vector<1xf32>
    %217 = vector.multi_reduction <add>, %216, %cst_177 [1, 2] : vector<1x8x64xf32> to vector<1xf32>
    %218 = vector.shape_cast %217 : vector<1xf32> to vector<1x1x1xf32>
    %219 = vector.extract %218[0, 0, 0] : f32 from vector<1x1x1xf32>
    %cst_178 = arith.constant 0.001953125 : f32
    %220 = arith.mulf %219, %cst_178 : f32
    %221 = arith.mulf %214, %214 : f32
    %222 = arith.subf %220, %221 : f32
    %223 = vector.broadcast %214 : f32 to vector<8x64xf32>
    %224 = arith.subf %209, %223 : vector<8x64xf32>
    %cst_179 = arith.constant 9.99999974E-6 : f32
    %225 = arith.addf %222, %cst_179 : f32
    %226 = math.rsqrt %225 : f32
    %227 = vector.broadcast %226 : f32 to vector<8x64xf32>
    %228 = arith.mulf %224, %227 : vector<8x64xf32>
    %c1_180 = arith.constant 1 : index
    %c2_181 = arith.constant 2 : index
    %229 = memref.load %arg3[%c1_180, %c2_181] : memref<3x4xf32, #tpu.memory_space<smem>>
    %230 = vector.broadcast %229 : f32 to vector<8x64xf32>
    %231 = arith.mulf %230, %228 : vector<8x64xf32>
    %c2_182 = arith.constant 2 : index
    %c2_183 = arith.constant 2 : index
    %232 = memref.load %arg3[%c2_182, %c2_183] : memref<3x4xf32, #tpu.memory_space<smem>>
    %233 = vector.broadcast %232 : f32 to vector<8x64xf32>
    %234 = arith.addf %231, %233 : vector<8x64xf32>
    %c16_184 = arith.constant 16 : index
    %c0_185 = arith.constant 0 : index
    %235 = vector.load %arg10[%c16_184, %c0_185] : memref<32x64xf32, #tpu.memory_space<vmem>>, vector<8x64xf32>
    tpu.vector_store %arg10[%c16_184, %c0_185], %234 {strides = array<i32>} : memref<32x64xf32, #tpu.memory_space<vmem>>, vector<8x64xf32>,
    %cst_186 = arith.constant 0.000000e+00 : f32
    %236 = vector.broadcast %cst_186 : f32 to vector<8x64xf32>
    %c3_187 = arith.constant 3 : index
    %c0_188 = arith.constant 0 : index
    %c0_189 = arith.constant 0 : index
    %237 = vector.load %arg9[%c3_187, %c0_188, %c0_189] : memref<4x14x64xf32, #tpu.memory_space<vmem>>, vector<1x8x64xf32>
    %238 = vector.shape_cast %237 : vector<1x8x64xf32> to vector<8x64xf32>
    %c21 = arith.constant 21 : index
    %c0_190 = arith.constant 0 : index
    %c0_191 = arith.constant 0 : index
    %239 = vector.load %arg2[%c21, %c0_190, %c0_191] : memref<28x64x64xf32, #tpu.memory_space<vmem>>, vector<1x64x64xf32>
    %240 = vector.shape_cast %239 : vector<1x64x64xf32> to vector<64x64xf32>
    %cst_192 = arith.constant dense<0.000000e+00> : vector<8x64xf32>
    %241 = tpu.matmul %238, %240, %cst_192 {dimension_numbers = #tpu.dot_dimension_numbers<[1], [0], [0], [1], [0, 0, 1, 1], [], []>, precision = #tpu.contract_precision<fp32>} : vector<8x64xf32>, vector<64x64xf32>, vector<8x64xf32> -> vector<8x64xf32>
    %242 = arith.addf %236, %241 : vector<8x64xf32>
    %c3_193 = arith.constant 3 : index
    %c1_194 = arith.constant 1 : index
    %c0_195 = arith.constant 0 : index
    %243 = vector.load %arg9[%c3_193, %c1_194, %c0_195] : memref<4x14x64xf32, #tpu.memory_space<vmem>>, vector<1x8x64xf32>
    %244 = vector.shape_cast %243 : vector<1x8x64xf32> to vector<8x64xf32>
    %c22 = arith.constant 22 : index
    %c0_196 = arith.constant 0 : index
    %c0_197 = arith.constant 0 : index
    %245 = vector.load %arg2[%c22, %c0_196, %c0_197] : memref<28x64x64xf32, #tpu.memory_space<vmem>>, vector<1x64x64xf32>
    %246 = vector.shape_cast %245 : vector<1x64x64xf32> to vector<64x64xf32>
    %cst_198 = arith.constant dense<0.000000e+00> : vector<8x64xf32>
    %247 = tpu.matmul %244, %246, %cst_198 {dimension_numbers = #tpu.dot_dimension_numbers<[1], [0], [0], [1], [0, 0, 1, 1], [], []>, precision = #tpu.contract_precision<fp32>} : vector<8x64xf32>, vector<64x64xf32>, vector<8x64xf32> -> vector<8x64xf32>
    %248 = arith.addf %242, %247 : vector<8x64xf32>
    %c3_199 = arith.constant 3 : index
    %c2_200 = arith.constant 2 : index
    %c0_201 = arith.constant 0 : index
    %249 = vector.load %arg9[%c3_199, %c2_200, %c0_201] : memref<4x14x64xf32, #tpu.memory_space<vmem>>, vector<1x8x64xf32>
    %250 = vector.shape_cast %249 : vector<1x8x64xf32> to vector<8x64xf32>
    %c23 = arith.constant 23 : index
    %c0_202 = arith.constant 0 : index
    %c0_203 = arith.constant 0 : index
    %251 = vector.load %arg2[%c23, %c0_202, %c0_203] : memref<28x64x64xf32, #tpu.memory_space<vmem>>, vector<1x64x64xf32>
    %252 = vector.shape_cast %251 : vector<1x64x64xf32> to vector<64x64xf32>
    %cst_204 = arith.constant dense<0.000000e+00> : vector<8x64xf32>
    %253 = tpu.matmul %250, %252, %cst_204 {dimension_numbers = #tpu.dot_dimension_numbers<[1], [0], [0], [1], [0, 0, 1, 1], [], []>, precision = #tpu.contract_precision<fp32>} : vector<8x64xf32>, vector<64x64xf32>, vector<8x64xf32> -> vector<8x64xf32>
    %254 = arith.addf %248, %253 : vector<8x64xf32>
    %c3_205 = arith.constant 3 : index
    %c3_206 = arith.constant 3 : index
    %c0_207 = arith.constant 0 : index
    %255 = vector.load %arg9[%c3_205, %c3_206, %c0_207] : memref<4x14x64xf32, #tpu.memory_space<vmem>>, vector<1x8x64xf32>
    %256 = vector.shape_cast %255 : vector<1x8x64xf32> to vector<8x64xf32>
    %c24 = arith.constant 24 : index
    %c0_208 = arith.constant 0 : index
    %c0_209 = arith.constant 0 : index
    %257 = vector.load %arg2[%c24, %c0_208, %c0_209] : memref<28x64x64xf32, #tpu.memory_space<vmem>>, vector<1x64x64xf32>
    %258 = vector.shape_cast %257 : vector<1x64x64xf32> to vector<64x64xf32>
    %cst_210 = arith.constant dense<0.000000e+00> : vector<8x64xf32>
    %259 = tpu.matmul %256, %258, %cst_210 {dimension_numbers = #tpu.dot_dimension_numbers<[1], [0], [0], [1], [0, 0, 1, 1], [], []>, precision = #tpu.contract_precision<fp32>} : vector<8x64xf32>, vector<64x64xf32>, vector<8x64xf32> -> vector<8x64xf32>
    %260 = arith.addf %254, %259 : vector<8x64xf32>
    %c3_211 = arith.constant 3 : index
    %c4_212 = arith.constant 4 : index
    %c0_213 = arith.constant 0 : index
    %261 = vector.load %arg9[%c3_211, %c4_212, %c0_213] : memref<4x14x64xf32, #tpu.memory_space<vmem>>, vector<1x8x64xf32>
    %262 = vector.shape_cast %261 : vector<1x8x64xf32> to vector<8x64xf32>
    %c25 = arith.constant 25 : index
    %c0_214 = arith.constant 0 : index
    %c0_215 = arith.constant 0 : index
    %263 = vector.load %arg2[%c25, %c0_214, %c0_215] : memref<28x64x64xf32, #tpu.memory_space<vmem>>, vector<1x64x64xf32>
    %264 = vector.shape_cast %263 : vector<1x64x64xf32> to vector<64x64xf32>
    %cst_216 = arith.constant dense<0.000000e+00> : vector<8x64xf32>
    %265 = tpu.matmul %262, %264, %cst_216 {dimension_numbers = #tpu.dot_dimension_numbers<[1], [0], [0], [1], [0, 0, 1, 1], [], []>, precision = #tpu.contract_precision<fp32>} : vector<8x64xf32>, vector<64x64xf32>, vector<8x64xf32> -> vector<8x64xf32>
    %266 = arith.addf %260, %265 : vector<8x64xf32>
    %c3_217 = arith.constant 3 : index
    %c5_218 = arith.constant 5 : index
    %c0_219 = arith.constant 0 : index
    %267 = vector.load %arg9[%c3_217, %c5_218, %c0_219] : memref<4x14x64xf32, #tpu.memory_space<vmem>>, vector<1x8x64xf32>
    %268 = vector.shape_cast %267 : vector<1x8x64xf32> to vector<8x64xf32>
    %c26 = arith.constant 26 : index
    %c0_220 = arith.constant 0 : index
    %c0_221 = arith.constant 0 : index
    %269 = vector.load %arg2[%c26, %c0_220, %c0_221] : memref<28x64x64xf32, #tpu.memory_space<vmem>>, vector<1x64x64xf32>
    %270 = vector.shape_cast %269 : vector<1x64x64xf32> to vector<64x64xf32>
    %cst_222 = arith.constant dense<0.000000e+00> : vector<8x64xf32>
    %271 = tpu.matmul %268, %270, %cst_222 {dimension_numbers = #tpu.dot_dimension_numbers<[1], [0], [0], [1], [0, 0, 1, 1], [], []>, precision = #tpu.contract_precision<fp32>} : vector<8x64xf32>, vector<64x64xf32>, vector<8x64xf32> -> vector<8x64xf32>
    %272 = arith.addf %266, %271 : vector<8x64xf32>
    %c3_223 = arith.constant 3 : index
    %c6_224 = arith.constant 6 : index
    %c0_225 = arith.constant 0 : index
    %273 = vector.load %arg9[%c3_223, %c6_224, %c0_225] : memref<4x14x64xf32, #tpu.memory_space<vmem>>, vector<1x8x64xf32>
    %274 = vector.shape_cast %273 : vector<1x8x64xf32> to vector<8x64xf32>
    %c27 = arith.constant 27 : index
    %c0_226 = arith.constant 0 : index
    %c0_227 = arith.constant 0 : index
    %275 = vector.load %arg2[%c27, %c0_226, %c0_227] : memref<28x64x64xf32, #tpu.memory_space<vmem>>, vector<1x64x64xf32>
    %276 = vector.shape_cast %275 : vector<1x64x64xf32> to vector<64x64xf32>
    %cst_228 = arith.constant dense<0.000000e+00> : vector<8x64xf32>
    %277 = tpu.matmul %274, %276, %cst_228 {dimension_numbers = #tpu.dot_dimension_numbers<[1], [0], [0], [1], [0, 0, 1, 1], [], []>, precision = #tpu.contract_precision<fp32>} : vector<8x64xf32>, vector<64x64xf32>, vector<8x64xf32> -> vector<8x64xf32>
    %278 = arith.addf %272, %277 : vector<8x64xf32>
    %c0_229 = arith.constant 0 : index
    %c3_230 = arith.constant 3 : index
    %279 = memref.load %arg3[%c0_229, %c3_230] : memref<3x4xf32, #tpu.memory_space<smem>>
    %280 = vector.broadcast %279 : f32 to vector<8x64xf32>
    %281 = arith.addf %278, %280 : vector<8x64xf32>
    %282 = vector.shape_cast %281 : vector<8x64xf32> to vector<1x8x64xf32>
    %cst_231 = arith.constant dense<0.000000e+00> : vector<1xf32>
    %283 = vector.multi_reduction <add>, %282, %cst_231 [1, 2] : vector<1x8x64xf32> to vector<1xf32>
    %284 = vector.shape_cast %283 : vector<1xf32> to vector<1x1x1xf32>
    %285 = vector.extract %284[0, 0, 0] : f32 from vector<1x1x1xf32>
    %cst_232 = arith.constant 0.001953125 : f32
    %286 = arith.mulf %285, %cst_232 : f32
    %287 = arith.mulf %281, %281 : vector<8x64xf32>
    %288 = vector.shape_cast %287 : vector<8x64xf32> to vector<1x8x64xf32>
    %cst_233 = arith.constant dense<0.000000e+00> : vector<1xf32>
    %289 = vector.multi_reduction <add>, %288, %cst_233 [1, 2] : vector<1x8x64xf32> to vector<1xf32>
    %290 = vector.shape_cast %289 : vector<1xf32> to vector<1x1x1xf32>
    %291 = vector.extract %290[0, 0, 0] : f32 from vector<1x1x1xf32>
    %cst_234 = arith.constant 0.001953125 : f32
    %292 = arith.mulf %291, %cst_234 : f32
    %293 = arith.mulf %286, %286 : f32
    %294 = arith.subf %292, %293 : f32
    %295 = vector.broadcast %286 : f32 to vector<8x64xf32>
    %296 = arith.subf %281, %295 : vector<8x64xf32>
    %cst_235 = arith.constant 9.99999974E-6 : f32
    %297 = arith.addf %294, %cst_235 : f32
    %298 = math.rsqrt %297 : f32
    %299 = vector.broadcast %298 : f32 to vector<8x64xf32>
    %300 = arith.mulf %296, %299 : vector<8x64xf32>
    %c1_236 = arith.constant 1 : index
    %c3_237 = arith.constant 3 : index
    %301 = memref.load %arg3[%c1_236, %c3_237] : memref<3x4xf32, #tpu.memory_space<smem>>
    %302 = vector.broadcast %301 : f32 to vector<8x64xf32>
    %303 = arith.mulf %302, %300 : vector<8x64xf32>
    %c2_238 = arith.constant 2 : index
    %c3_239 = arith.constant 3 : index
    %304 = memref.load %arg3[%c2_238, %c3_239] : memref<3x4xf32, #tpu.memory_space<smem>>
    %305 = vector.broadcast %304 : f32 to vector<8x64xf32>
    %306 = arith.addf %303, %305 : vector<8x64xf32>
    %c24_240 = arith.constant 24 : index
    %c0_241 = arith.constant 0 : index
    %307 = vector.load %arg10[%c24_240, %c0_241] : memref<32x64xf32, #tpu.memory_space<vmem>>, vector<8x64xf32>
    tpu.vector_store %arg10[%c24_240, %c0_241], %306 {strides = array<i32>} : memref<32x64xf32, #tpu.memory_space<vmem>>, vector<8x64xf32>,
    %c0_242 = arith.constant 0 : index
    %c0_243 = arith.constant 0 : index
    %308 = vector.load %arg10[%c0_242, %c0_243] : memref<32x64xf32, #tpu.memory_space<vmem>>, vector<32x64xf32>
    %c0_244 = arith.constant 0 : index
    %c0_245 = arith.constant 0 : index
    %309 = vector.load %arg4[%c0_244, %c0_245] : memref<128x32xf32, #tpu.memory_space<vmem>>, vector<128x32xf32>
    %cst_246 = arith.constant dense<0.000000e+00> : vector<128x64xf32>
    %310 = tpu.matmul %309, %308, %cst_246 {dimension_numbers = #tpu.dot_dimension_numbers<[1], [0], [0], [1], [0, 0, 1, 1], [], []>, precision = #tpu.contract_precision<fp32>} : vector<128x32xf32>, vector<32x64xf32>, vector<128x64xf32> -> vector<128x64xf32>
    %c0_247 = arith.constant 0 : index
    %c0_248 = arith.constant 0 : index
    %311 = vector.load %arg5[%c0_247, %c0_248] : memref<128x1xf32, #tpu.memory_space<vmem>>, vector<128x1xf32>
    %312 = vector.broadcast %311 : vector<128x1xf32> to vector<128x64xf32>
    %313 = arith.addf %310, %312 : vector<128x64xf32>
    %cst_249 = arith.constant 5.000000e-01 : f32
    %314 = vector.broadcast %cst_249 : f32 to vector<128x64xf32>
    %315 = arith.mulf %314, %313 : vector<128x64xf32>
    %cst_250 = arith.constant 0.707106769 : f32
    %316 = vector.broadcast %cst_250 : f32 to vector<128x64xf32>
    %317 = arith.mulf %313, %316 : vector<128x64xf32>
    %318 = math.erf %317 : vector<128x64xf32>
    %cst_251 = arith.constant 1.000000e+00 : f32
    %319 = vector.broadcast %cst_251 : f32 to vector<128x64xf32>
    %320 = arith.addf %319, %318 : vector<128x64xf32>
    %321 = arith.mulf %315, %320 : vector<128x64xf32>
    %c0_252 = arith.constant 0 : index
    %c0_253 = arith.constant 0 : index
    %322 = vector.load %arg6[%c0_252, %c0_253] : memref<32x128xf32, #tpu.memory_space<vmem>>, vector<32x128xf32>
    %cst_254 = arith.constant dense<0.000000e+00> : vector<32x64xf32>
    %323 = tpu.matmul %322, %321, %cst_254 {dimension_numbers = #tpu.dot_dimension_numbers<[1], [0], [0], [1], [0, 0, 1, 1], [], []>, precision = #tpu.contract_precision<fp32>} : vector<32x128xf32>, vector<128x64xf32>, vector<32x64xf32> -> vector<32x64xf32>
    %c0_255 = arith.constant 0 : index
    %c0_256 = arith.constant 0 : index
    %324 = vector.load %arg7[%c0_255, %c0_256] : memref<32x1xf32, #tpu.memory_space<vmem>>, vector<32x1xf32>
    %325 = vector.broadcast %324 : vector<32x1xf32> to vector<32x64xf32>
    %326 = arith.addf %323, %325 : vector<32x64xf32>
    %327 = arith.addf %326, %3 : vector<32x64xf32>
    %c0_257 = arith.constant 0 : index
    %c0_258 = arith.constant 0 : index
    %c0_259 = arith.constant 0 : index
    %328 = vector.load %arg8[%c0_257, %c0_258, %c0_259] : memref<1x32x64xf32, #tpu.memory_space<vmem>>, vector<1x32x64xf32>
    %329 = vector.shape_cast %328 : vector<1x32x64xf32> to vector<32x64xf32>
    %330 = vector.shape_cast %327 : vector<32x64xf32> to vector<1x32x64xf32>
    tpu.vector_store %arg8[%c0_257, %c0_258, %c0_259], %330 {strides = array<i32>} : memref<1x32x64xf32, #tpu.memory_space<vmem>>, vector<1x32x64xf32>,
    return
  }
  func.func @transform_0(%arg0: i32) -> (i32, i32, i32) {
    %c0_i32 = arith.constant 0 : i32
    %c0_i32_0 = arith.constant 0 : i32
    %c0_i32_1 = arith.constant 0 : i32
    return %arg0, %c0_i32, %c0_i32_0 : i32, i32, i32
  }
  func.func @transform_1(%arg0: i32) -> (i32, i32, i32) {
    %c0_i32 = arith.constant 0 : i32
    %c0_i32_0 = arith.constant 0 : i32
    %c0_i32_1 = arith.constant 0 : i32
    %c0_i32_2 = arith.constant 0 : i32
    return %c0_i32, %c0_i32_0, %c0_i32_1 : i32, i32, i32
  }
  func.func @transform_2(%arg0: i32) -> (i32, i32) {
    %c0_i32 = arith.constant 0 : i32
    %c0_i32_0 = arith.constant 0 : i32
    %c0_i32_1 = arith.constant 0 : i32
    return %c0_i32, %c0_i32_0 : i32, i32
  }
  func.func @transform_3(%arg0: i32) -> (i32, i32) {
    %c0_i32 = arith.constant 0 : i32
    %c0_i32_0 = arith.constant 0 : i32
    %c0_i32_1 = arith.constant 0 : i32
    return %c0_i32, %c0_i32_0 : i32, i32
  }
  func.func @transform_4(%arg0: i32) -> (i32, i32) {
    %c0_i32 = arith.constant 0 : i32
    %c0_i32_0 = arith.constant 0 : i32
    %c0_i32_1 = arith.constant 0 : i32
    return %c0_i32, %c0_i32_0 : i32, i32
  }
  func.func @transform_5(%arg0: i32) -> (i32, i32) {
    %c0_i32 = arith.constant 0 : i32
    %c0_i32_0 = arith.constant 0 : i32
    %c0_i32_1 = arith.constant 0 : i32
    return %c0_i32, %c0_i32_0 : i32, i32
  }
  func.func @transform_6(%arg0: i32) -> (i32, i32) {
    %c0_i32 = arith.constant 0 : i32
    %c0_i32_0 = arith.constant 0 : i32
    %c0_i32_1 = arith.constant 0 : i32
    return %c0_i32, %c0_i32_0 : i32, i32
  }
  func.func @transform_7(%arg0: i32) -> (i32, i32, i32) {
    %c0_i32 = arith.constant 0 : i32
    %c0_i32_0 = arith.constant 0 : i32
    %c0_i32_1 = arith.constant 0 : i32
    return %arg0, %c0_i32, %c0_i32_0 : i32, i32, i32
  }
}

</mosaic_0001>

<bundles_post_ra>
// kernel: gbanet_block.1
= control target key start
LH: loop header
LB: loop body
LE: loop exit
PB: predicated region body
PF: predicated region fallthrough
CT: control target
= control target key end

     0   :  { %12 = vsyncpa [#allocation5], 0  ;;  %s26296_s24 = smov 0   ;;  %s33595_s0 = inlined_call_operand.vmem [shape: f32[2,32,64], index: 0, kind: input, shape index: {}]   ;;  %s33596_s1 = inlined_call_operand.vmem [shape: f32[28,64,64], index: 1, kind: input, shape index: {}]   ;;  %s33597_s2 = inlined_call_operand.vmem [shape: f32[3,4], index: 2, kind: input, shape index: {}]   ;;  %s33598_s3 = inlined_call_operand.vmem [shape: f32[128,32], index: 3, kind: input, shape index: {}]   ;;  %s33599_s4 = inlined_call_operand.vmem [shape: f32[128,1], index: 4, kind: input, shape index: {}]   ;;  %s33600_s5 = inlined_call_operand.vmem [shape: f32[32,128], index: 5, kind: input, shape index: {}]   ;;  %s33601_s6 = inlined_call_operand.vmem [shape: f32[32,1], index: 6, kind: input, shape index: {}]   ;;  %s33602_s7 = inlined_call_operand.vmem [shape: f32[2,32,64], index: 7, kind: output, shape index: {}]  }
   0x1 LB: > { %s26302_s25 = sadd.s32 4294967295, %s26249_s24   ;;  %p18155_p0 = scmp.ge.s32.totalorder %s26249_s24, 1  ;;  %s26249_s24 = sphi %s26296_s24, %s18_s24  }
   0x2   : > { %p201_p1 = scmp.lt.s32.totalorder %s26249_s24, 3  ;;  %s217_s28 = sshll.u32 %s33597_s2, 4  ;;  %s218_s28 = int_to_ptr.vmem [resolvable:$true] %s217_s28 }
   0x3   : > { %p26167_p3 = scmp.eq.s32.totalorder %s26302_s25, 0  ;;  %s26224_s30 = scalar_lea.vmem %s218_s28, 64 }
   0x4   : > { %p26309_p2 = pnand %p18155_p0, %p201_p1  ;;  %p26225_p6 = scmp.ne.s32.totalorder %s218_s28, %s26224_s30 }
   0x5   : > { %p26232_p10 = scmp.lt.s32.totalorder %s218_s28, %s218_s28  ;;  %p26233_p11 = scmp.lt.s32.totalorder %s26224_s30, %s26224_s30 }
   0x6   : > { %p26163_p4 = pneg %p26309_p2 }
   0x7   : > { %p26234_p12 = por %p26233_p11, %p26232_p10 }
   0x8   : > { %p26164_p5 = pnand %p26167_p3, %p26163_p4 }
   0xa   : > { %p26226_p7 = pneg %p26164_p5 }
   0xc   : > { %p26227_p8 = pnand %p26226_p7, %p26225_p6 }
   0xe   : > { %p26228_p9 = pneg %p26227_p8 }
  0x10   : > { %p26235_p13 = pnand %p26234_p12, %p26228_p9 }
  0x12   : > { %26238 = shalt.err (!%p26235_p13)
}
  0x13   : > { %s26251_s8 = smov [#allocation4]   ;;  %250 = sbr.rel (%p26309_p2) target bundleno = 2727 (0xaa7), region = 48 }
  0x14   : > { %26166 = dma.vmem_to_smem (!%p26164_p5), %s218_s28, 64, %s26251_s8, [#allocation5]  }
  0x1a   : > { %26244 = dma.done.wait (%p26167_p3), [#allocation5], 64  }
  0x1b   : > { %26246 = vsyncadd (%p26167_p3), [#allocation5], 4294967232 }
  0x1c   : > { %256 = sfence }
  0x1d   : > { %v18164_v0 = vld [vmem:[%s33596_s1 + $0x40] sm:$0xff]  ;;  %v18165_v1 = vld [vmem:[%s33596_s1 + $0x48] sm:$0xff]  ;;  %v18166_v2 = vld [vmem:[%s33596_s1 + $0x50] sm:$0xff]  ;;  %v26252_v3 = vmov 0.0|0.0   ;;  %vm26253_vm0 = vmmov 0   ;;  %v26254_v13 = vmov 0.0  }
  0x1e   : > { %23759 = vmatprep.subr.bf16.mxu0 %v26252_v3  ;;  %v337_v4 = vand.u32 4294901760, %v18164_v0  ;;  %v340_v5 = vand.u32 4294901760, %v18165_v1  ;;  %23771 = vmatprep.subr.bf16.mxu1 %v26252_v3  ;;  %v18167_v6 = vld [vmem:[%s33596_s1 + $0x58] sm:$0xff]  ;;  %v343_v7 = vand.u32 4294901760, %v18166_v2  ;;  %v18168_v8 = vld [vmem:[%s33596_s1 + $0x60] sm:$0xff]  ;;  %v18169_v9 = vld [vmem:[%s33596_s1 + $0x68] sm:$0xff] }
  0x1f   : > { %v346_v10 = vand.u32 4294901760, %v18167_v6  ;;  %v349_v11 = vand.u32 4294901760, %v18168_v8  ;;  %v352_v12 = vand.u32 4294901760, %v18169_v9  ;;  %20163 = vmatprep.mubr.msk.f32.mxu0 %vm26253_vm0, %v26254_v13  ;;  %p283_p0 = scmp.lt.s32.totalorder %s26302_s25, 1  ;;  %20182 = vmatprep.mubr.msk.f32.mxu1 %vm26253_vm0, %v26254_v13  ;;  %v18170_v18 = vld [vmem:[%s33596_s1 + $0x70] sm:$0xff]  ;;  %v18171_v19 = vld [vmem:[%s33596_s1 + $0x78] sm:$0xff] }
  0x20   : > { %v26349_v14 = vpack.c.bf16 %v340_v5, %v337_v4  ;;  %v26351_v15 = vsub.f32 %v18164_v0, %v337_v4  ;;  %v26353_v16 = vsub.f32 %v18165_v1, %v340_v5  ;;  %v26355_v17 = vsub.f32 %v18166_v2, %v343_v7  ;;  %v26468_v5 = vld [vmem:[%s33596_s1] sm:$0xff]  ;;  %s28993_s13 = sld [smem:[#allocation4]] }
  0x21   : > { %v26363_v20 = vpack.c.bf16 %v346_v10, %v343_v7  ;;  %v26365_v21 = vsub.f32 %v18167_v6, %v346_v10  ;;  %v26367_v22 = vsub.f32 %v18168_v8, %v349_v11  ;;  %s33673_s25 = smov (!%p283_p0, %s26302_s25), 1  ;;  %v26376_v26 = vsub.f32 %v18169_v9, %v352_v12  ;;  %v26473_v6 = vld [vmem:[%s33596_s1 + $0x8] sm:$0xff]  ;;  %v26487_v10 = vld [vmem:[%s33596_s1 + $0x10] sm:$0xff] }
  0x22   : > { %23761 = vmatpush3.bf16.msra.mxu0 %v26349_v14  ;;  %v422_v23 = vand.u32 4294901760, %v26351_v15  ;;  %v429_v24 = vand.u32 4294901760, %v26353_v16  ;;  %v436_v25 = vand.u32 4294901760, %v26355_v17  ;;  %v355_v29 = vand.u32 4294901760, %v18170_v18  ;;  %s18393_s27 = sshll.u32 %s33673_s25, 5 }
  0x23   : > { %23762 = vmatprep.subr.bf16.mxu0 %v26252_v3  ;;  %v443_v27 = vand.u32 4294901760, %v26365_v21  ;;  %v450_v28 = vand.u32 4294901760, %v26367_v22  ;;  %v358_v30 = vand.u32 4294901760, %v18171_v19  ;;  %v457_v34 = vand.u32 4294901760, %v26376_v26  ;;  %s26397_s30 = scalar_lea.vmem %s33595_s0, %s18393_s27 }
  0x24   : > { %v423_v31 = vsub.f32 %v26351_v15, %v422_v23  ;;  %v430_v32 = vsub.f32 %v26353_v16, %v429_v24  ;;  %v437_v33 = vsub.f32 %v26355_v17, %v436_v25  ;;  %v26402_v36 = vpack.c.bf16 %v352_v12, %v349_v11  ;;  %v26418_v46 = vld [vmem:[%s26397_s30] sm:$0xff]  ;;  %v26494_v11 = vld [vmem:[%s33596_s1 + $0x18] sm:$0xff] }
  0x25   : > { %v444_v35 = vsub.f32 %v26365_v21, %v443_v27  ;;  %v451_v37 = vsub.f32 %v26367_v22, %v450_v28  ;;  %v26407_v38 = vsub.f32 %v18170_v18, %v355_v29  ;;  %v458_v42 = vsub.f32 %v26376_v26, %v457_v34  ;;  %33635 = vst [vmem:[#allocation7_spill] sm:$0xff] %v26418_v46 }
  0x26   : > { %v424_v39 = vand.u32 4294901760, %v423_v31  ;;  %v431_v40 = vand.u32 4294901760, %v430_v32  ;;  %23764 = vmatpush3.bf16.msra.mxu0 %v26363_v20  ;;  %v438_v41 = vand.u32 4294901760, %v437_v33  ;;  %v26414_v44 = vsub.f32 %v18171_v19, %v358_v30  ;;  %v26519_v32 = vld [vmem:[%s33596_s1 + $0x28] sm:$0xff] }
  0x27   : > { %23765 = vmatprep.subr.bf16.mxu0 %v26252_v3  ;;  %v445_v43 = vand.u32 4294901760, %v444_v35  ;;  %v464_v45 = vand.u32 4294901760, %v26407_v38  ;;  %vm293_vm1 = vcmask 523264   ;;  %vm295_vm2 = vcmask 521216  }
  0x28   : > { %v23772_v47 = vpack.c.bf16 %v431_v40, %v424_v39  ;;  %v26420_v48 = vpack.c.bf16 %v358_v30, %v355_v29  ;;  %v471_v49 = vand.u32 4294901760, %v26414_v44  ;;  %294 = vst.msk [vmem:[#allocation2] sm:$0xff] %vm293_vm1, %v26254_v13  ;;  %297 = vst.msk [vmem:[#allocation2 + $0x10] sm:$0xff] %vm293_vm1, %v26254_v13  ;;  %v452_v51 = vand.u32 4294901760, %v451_v37  ;;  %v26510_v29 = vld [vmem:[%s33596_s1 + $0x20] sm:$0xff] }
  0x29   : > { %296 = vst.msk [vmem:[#allocation2 + $0x8] sm:$0x3f] %vm295_vm2, %v26254_v13  ;;  %298 = vst.msk [vmem:[#allocation2 + $0x18] sm:$0x3f] %vm295_vm2, %v26254_v13  ;;  %v23775_v50 = vpack.c.bf16 %v445_v43, %v438_v41  ;;  %v459_v52 = vand.u32 4294901760, %v458_v42  ;;  %v465_v53 = vsub.f32 %v26407_v38, %v464_v45  ;;  %v23784_v1 = vpack.c.bf16 %v26353_v16, %v26351_v15  ;;  %v26547_v43 = vld [vmem:[%s33596_s1 + $0x30] sm:$0xff] }
  0x2a   : > { %299 = vst.msk [vmem:[#allocation2 + $0x20] sm:$0xff] %vm293_vm1, %v26254_v13  ;;  %301 = vst.msk [vmem:[#allocation2 + $0x30] sm:$0xff] %vm293_vm1, %v26254_v13  ;;  %23773 = vmatpush3.bf16.msra.mxu1 %v23772_v47  ;;  %23767 = vmatpush3.bf16.msra.mxu0 %v26402_v36  ;;  %v472_v54 = vsub.f32 %v26414_v44, %v471_v49  ;;  %v23787_v4 = vpack.c.bf16 %v26365_v21, %v26355_v17  ;;  %v877_v7 = vand.u32 4294901760, %v26468_v5  ;;  %v26552_v15 = vld [vmem:[%s33596_s1 + $0x38] sm:$0xff]  ;;  %vm16021_vm3 = vcmask 261120  }
  0x2b   : > { %300 = vst.msk [vmem:[#allocation2 + $0x28] sm:$0x3f] %vm295_vm2, %v26254_v13  ;;  %302 = vst.msk [vmem:[#allocation2 + $0x38] sm:$0x3f] %vm295_vm2, %v26254_v13  ;;  %23774 = vmatprep.subr.bf16.mxu1 %v26252_v3  ;;  %23768 = vmatprep.subr.bf16.mxu0 %v26252_v3  ;;  %v23778_v55 = vpack.c.bf16 %v459_v52, %v452_v51  ;;  %v466_v56 = vand.u32 4294901760, %v465_v53  ;;  %v880_v8 = vand.u32 4294901760, %v26473_v6 }
  0x2c   : > { %307 = vst.msk [vmem:[#allocation2 + $0x3] sm:$0xff] %vm293_vm1, %v26418_v46  ;;  %v473_v57 = vand.u32 4294901760, %v472_v54  ;;  %v23790_v9 = vpack.c.bf16 %v26376_v26, %v26367_v22  ;;  %v26499_v12 = vsub.f32 %v26468_v5, %v877_v7  ;;  %v883_v19 = vand.u32 4294901760, %v26487_v10 }
  0x2d   : > { %v26504_v18 = vsub.f32 %v26473_v6, %v880_v8  ;;  %v23793_v30 = vpack.c.bf16 %v26414_v44, %v26407_v38  ;;  %v886_v31 = vand.u32 4294901760, %v26494_v11  ;;  %v889_v33 = vand.u32 4294901760, %v26510_v29 }
  0x2e   : > { %23776 = vmatpush3.bf16.msra.mxu1 %v23775_v50  ;;  %23770 = vmatpush3.bf16.msra.mxu0 %v26420_v48  ;;  %v23781_v59 = vpack.c.bf16 %v473_v57, %v466_v56  ;;  %v962_v35 = vand.u32 4294901760, %v26499_v12  ;;  %v26529_v39 = vsub.f32 %v26487_v10, %v883_v19  ;;  %v892_v40 = vand.u32 4294901760, %v26519_v32 }
  0x2f   : > { %23777 = vmatprep.subr.bf16.mxu1 %v26252_v3  ;;  %23783 = vmatprep.subr.bf16.mxu0 %v26252_v3  ;;  %v969_v37 = vand.u32 4294901760, %v26504_v18  ;;  %v23808_v41 = vpack.c.bf16 %v429_v24, %v422_v23  ;;  %v26540_v42 = vsub.f32 %v26494_v11, %v886_v31  ;;  %v23811_v50 = vpack.c.bf16 %v443_v27, %v436_v25 }
  0x30   : > { %v963_v16 = vsub.f32 %v26499_v12, %v962_v35  ;;  %v976_v24 = vand.u32 4294901760, %v26529_v39  ;;  %v26571_v47 = vsub.f32 %v26519_v32, %v892_v40  ;;  %v895_v52 = vand.u32 4294901760, %v26547_v43  ;;  %v26702_v32 = vld [vmem:[%s33596_s1 + $0x88] sm:$0xff] }
  0x31   : > { %v970_v23 = vsub.f32 %v26504_v18, %v969_v37  ;;  %v983_v51 = vand.u32 4294901760, %v26540_v42  ;;  %v898_v53 = vand.u32 4294901760, %v26552_v15  ;;  %v23814_v17 = vpack.c.bf16 %v457_v34, %v450_v28 }
  0x32   : > { %23779 = vmatpush3.bf16.msra.mxu1 %v23778_v55  ;;  %v964_v21 = vand.u32 4294901760, %v963_v16  ;;  %v977_v27 = vsub.f32 %v26529_v39, %v976_v24  ;;  %v997_v54 = vand.u32 4294901760, %v26571_v47  ;;  %v26601_v26 = vsub.f32 %v26547_v43, %v895_v52  ;;  %v26714_v43 = vld [vmem:[%s33596_s1 + $0x90] sm:$0xff] }
  0x33   : > { %v323_v58 = vld [vmem:[#allocation2 + $0x1] sm:$0xff]  ;;  %23780 = vmatprep.subr.bf16.mxu1 %v26252_v3  ;;  %v971_v25 = vand.u32 4294901760, %v970_v23  ;;  %v984_v22 = vsub.f32 %v26540_v42, %v983_v51  ;;  %v26606_v28 = vsub.f32 %v26552_v15, %v898_v53  ;;  %v26676_v11 = vpack.c.bf16 %v898_v53, %v895_v52  ;;  %v26719_v15 = vld [vmem:[%s33596_s1 + $0x98] sm:$0xff] }
  0x34   : > { %v334_v60 = vsel %vm293_vm1, %v323_v58, 0  ;;  %v314_v34 = vld [vmem:[#allocation2] sm:$0xff]  ;;  %v978_v56 = vand.u32 4294901760, %v977_v27  ;;  %v998_v58 = vsub.f32 %v26571_v47, %v997_v54  ;;  %v1004_v38 = vand.u32 4294901760, %v26601_v26 }
  0x35   : > { %v26451_v61 = vand.u32 4294901760, %v334_v60  ;;  %v23844_v55 = vpack.c.bf16 %v971_v25, %v964_v21  ;;  %v1011_v44 = vand.u32 4294901760, %v26606_v28  ;;  %v1433_v23 = vand.u32 4294901760, %v26714_v43  ;;  %v26748_v21 = vld [vmem:[%s33596_s1 + $0xa8] sm:$0xff] }
  0x36   : > { %23782 = vmatpush3.bf16.msra.mxu1 %v23781_v59  ;;  %v985_v59 = vand.u32 4294901760, %v984_v22  ;;  %v23865_v52 = vpack.c.bf16 %v26606_v28, %v26601_v26 }
  0x37   : > { %v410_v62 = vsub.f32 %v334_v60, %v26451_v61  ;;  %23795 = vmatprep.subr.bf16.mxu1 %v26252_v3  ;;  %v874_v60 = vsel %vm293_vm1, %v314_v34, 0  ;;  %v26754_v27 = vsub.f32 %v26714_v43, %v1433_v23 }
  0x39   : > { %v411_v63 = vand.u32 4294901760, %v410_v62  ;;  %20183 = vmatmul.mubr.f32.vlgmr.msra.gmra.mrb[0].mxu1 %v26451_v61 }
  0x3a   : > { %23797 = vmatpush3.bf16.msra.mxu1 %v26349_v14  ;;  %20220 = vmatprep.mubr.msk.f32.mxu1 %vm26253_vm0, %v26254_v13 }
  0x3b   : > { %v412_v0 = vsub.f32 %v410_v62, %v411_v63  ;;  %23798 = vmatprep.subr.bf16.mxu1 %v26252_v3 }
  0x3d   : > { %v413_v2 = vand.u32 4294901760, %v412_v0  ;;  %v1005_v0 = vsub.f32 %v26601_v26, %v1004_v38 }
  0x3e   : > { %23800 = vmatpush3.bf16.msra.mxu1 %v26363_v20 }
  0x3f   : > { %20164 = vmatmul.mubr.f32.vlgmr.msra.gmra.mrb[0].mxu0 %v413_v2  ;;  %23801 = vmatprep.subr.bf16.mxu1 %v26252_v3  ;;  %v1006_v6 = vand.u32 4294901760, %v1005_v0  ;;  %v1413_v0 = vld [vmem:[#allocation2 + $0x2] sm:$0xff] }
  0x40   : > { %23785 = vmatpush3.bf16.msra.mxu0 %v23784_v1  ;;  %20201 = vmatprep.mubr.msk.f32.mxu0 %vm26253_vm0, %v26254_v13  ;;  %v1012_v1 = vsub.f32 %v26606_v28, %v1011_v44 }
  0x41   : > { %23786 = vmatprep.subr.bf16.mxu0 %v26252_v3 }
  0x42   : > { %23803 = vmatpush3.bf16.msra.mxu1 %v26402_v36 }
  0x43   : > { %23804 = vmatprep.subr.bf16.mxu1 %v26252_v3 }
  0x44   : > { %23788 = vmatpush3.bf16.msra.mxu0 %v23787_v4  ;;  %v26654_v4 = vpack.c.bf16 %v886_v31, %v883_v19  ;;  %v26695_v31 = vld [vmem:[%s33596_s1 + $0x80] sm:$0xff] }
  0x45   : > { %23789 = vmatprep.subr.bf16.mxu0 %v26252_v3 }
  0x46   : > { %23806 = vmatpush3.bf16.msra.mxu1 %v26420_v48 }
  0x47   : > { %23819 = vmatprep.subr.bf16.mxu1 %v26252_v3 }
  0x48   : > { %23791 = vmatpush3.bf16.msra.mxu0 %v23790_v9 }
  0x49   : > { %23792 = vmatprep.subr.bf16.mxu0 %v26252_v3  ;;  %20221 = vmatmul.mubr.f32.vlgmr.msra.gmra.mrb[2].mxu1 %v411_v63  ;;  %v999_v63 = vand.u32 4294901760, %v998_v58 }
  0x4a   : > { %23821 = vmatpush3.bf16.msra.mxu1 %v26349_v14  ;;  %20258 = vmatprep.mubr.msk.f32.mxu1 %vm26253_vm0, %v26254_v13  ;;  %v26559_v14 = vsub.f32 %v26510_v29, %v889_v33  ;;  %v23856_v29 = vpack.c.bf16 %v26504_v18, %v26499_v12  ;;  %v26779_v12 = vld [vmem:[%s33596_s1 + $0xb8] sm:$0xff]  ;;  %v23883_v18 = vpack.c.bf16 %v983_v51, %v976_v24 }
  0x4b   : > { %23822 = vmatprep.subr.bf16.mxu1 %v26252_v3 }
  0x4c   : > { %23794 = vmatpush3.bf16.msra.mxu0 %v23793_v30  ;;  %v23859_v30 = vpack.c.bf16 %v26540_v42, %v26529_v39 }
  0x4d   : > { %23807 = vmatprep.subr.bf16.mxu0 %v26252_v3 }
  0x4e   : > { %23824 = vmatpush3.bf16.msra.mxu1 %v26363_v20  ;;  %v990_v20 = vand.u32 4294901760, %v26559_v14 }
  0x4f   : > { %20202 = vmatmul.mubr.f32.vlgmr.msra.gmra.mrb[2].mxu0 %v410_v62  ;;  %23825 = vmatprep.subr.bf16.mxu1 %v26252_v3  ;;  %v23847_v62 = vpack.c.bf16 %v985_v59, %v978_v56  ;;  %v1442_v56 = vand.u32 4294901760, %v26748_v21  ;;  %v1448_v59 = vand.u32 4294901760, %v26779_v12 }
  0x50   : > { %23809 = vmatpush3.bf16.msra.mxu0 %v23808_v41  ;;  %20239 = vmatprep.mubr.msk.f32.mxu0 %vm26253_vm0, %v26254_v13  ;;  %v991_v57 = vsub.f32 %v26559_v14, %v990_v20  ;;  %v1430_v41 = vand.u32 4294901760, %v26702_v32 }
  0x51   : > { %23810 = vmatprep.subr.bf16.mxu0 %v26252_v3  ;;  %v26805_v24 = vsub.f32 %v26748_v21, %v1442_v56  ;;  %v26930_v21 = vld [vmem:[%s33596_s1 + $0xc8] sm:$0xff] }
  0x52   : > { %23827 = vmatpush3.bf16.msra.mxu1 %v26402_v36  ;;  %v23817_v36 = vpack.c.bf16 %v471_v49, %v464_v45  ;;  %v26630_v45 = vpack.c.bf16 %v880_v8, %v877_v7  ;;  %v26633_v49 = vand.u32 4294901760, %v874_v60  ;;  %v1013_v7 = vand.u32 4294901760, %v1012_v1 }
  0x53   : > { %23828 = vmatprep.subr.bf16.mxu1 %v26252_v3  ;;  %v26666_v8 = vpack.c.bf16 %v892_v40, %v889_v33  ;;  %v1427_v33 = vand.u32 4294901760, %v26695_v31  ;;  %v23862_v40 = vpack.c.bf16 %v26571_v47, %v26559_v14  ;;  %v26736_v53 = vsub.f32 %v26702_v32, %v1430_v41 }
  0x54   : > { %23812 = vmatpush3.bf16.msra.mxu0 %v23811_v50  ;;  %v26647_v2 = vsub.f32 %v874_v60, %v26633_v49  ;;  %v23853_v9 = vpack.c.bf16 %v1013_v7, %v1006_v6  ;;  %v1436_v50 = vand.u32 4294901760, %v26719_v15  ;;  %v23886_v60 = vpack.c.bf16 %v997_v54, %v990_v20 }
  0x55   : > { %23813 = vmatprep.subr.bf16.mxu0 %v26252_v3  ;;  %v26726_v16 = vsub.f32 %v26695_v31, %v1427_v33  ;;  %v1547_v47 = vand.u32 4294901760, %v26805_v24  ;;  %v26834_v54 = vsub.f32 %v26779_v12, %v1448_v59  ;;  %v23889_v1 = vpack.c.bf16 %v1011_v44, %v1004_v38  ;;  %v26947_v12 = vld [vmem:[%s33596_s1 + $0xd8] sm:$0xff] }
  0x56   : > { %23830 = vmatpush3.bf16.msra.mxu1 %v26420_v48  ;;  %v992_v48 = vand.u32 4294901760, %v991_v57  ;;  %v26759_v22 = vsub.f32 %v26719_v15, %v1436_v50  ;;  %v26774_v57 = vld [vmem:[%s33596_s1 + $0xb0] sm:$0xff]  ;;  %v1424_v6 = vsel %vm293_vm1, %v1413_v0, 0  ;;  %v26858_v38 = vpack.c.bf16 %v1430_v41, %v1427_v33 }
  0x57   : > { %23843 = vmatprep.subr.bf16.mxu1 %v26252_v3  ;;  %v1512_v25 = vand.u32 4294901760, %v26726_v16  ;;  %v1445_v51 = vand.u32 4294901760, %v26774_v57  ;;  %v1561_v28 = vand.u32 4294901760, %v26834_v54 }
  0x58   : > { %23815 = vmatpush3.bf16.msra.mxu0 %v23814_v17  ;;  %v23850_v5 = vpack.c.bf16 %v999_v63, %v992_v48  ;;  %v26741_v17 = vld [vmem:[%s33596_s1 + $0xa0] sm:$0xff]  ;;  %v1533_v58 = vand.u32 4294901760, %v26759_v22 }
  0x59   : > { %23816 = vmatprep.subr.bf16.mxu0 %v26252_v3  ;;  %20259 = vmatmul.mubr.f32.vlgmr.msra.gmra.mrb[4].mxu1 %v26451_v61  ;;  %v1439_v34 = vand.u32 4294901760, %v26741_v17  ;;  %v26829_v20 = vsub.f32 %v26774_v57, %v1445_v51  ;;  %v26904_v15 = vpack.c.bf16 %v1448_v59, %v1445_v51  ;;  %v26942_v57 = vld [vmem:[%s33596_s1 + $0xd0] sm:$0xff] }
  0x5a   : > { %23845 = vmatpush3.bf16.msra.mxu1 %v23844_v55  ;;  %20296 = vmatprep.mubr.msk.f32.mxu1 %vm26253_vm0, %v26254_v13  ;;  %v1519_v55 = vand.u32 4294901760, %v26736_v53 }
  0x5b   : > { %23846 = vmatprep.subr.bf16.mxu1 %v26252_v3  ;;  %v26796_v39 = vsub.f32 %v26741_v17, %v1439_v34  ;;  %v1554_v26 = vand.u32 4294901760, %v26829_v20  ;;  %v26925_v17 = vld [vmem:[%s33596_s1 + $0xc0] sm:$0xff] }
  0x5c   : > { %23818 = vmatpush3.bf16.msra.mxu0 %v23817_v36  ;;  %v23880_v36 = vpack.c.bf16 %v969_v37, %v962_v35  ;;  %v1513_v35 = vsub.f32 %v26726_v16, %v1512_v25  ;;  %v1526_v37 = vand.u32 4294901760, %v26754_v27  ;;  %v1520_v42 = vsub.f32 %v26736_v53, %v1519_v55 }
  0x5d   : > { %23831 = vmatprep.subr.bf16.mxu0 %v26252_v3  ;;  %v1540_v63 = vand.u32 4294901760, %v26796_v39 }
  0x5e   : > { %23848 = vmatpush3.bf16.msra.mxu1 %v23847_v62  ;;  %v1527_v48 = vsub.f32 %v26754_v27, %v1526_v37  ;;  %v1534_v62 = vsub.f32 %v26759_v22, %v1533_v58  ;;  %v1521_v14 = vand.u32 4294901760, %v1520_v42  ;;  %v23937_v42 = vpack.c.bf16 %v26834_v54, %v26829_v20 }
  0x5f   : > { %20240 = vmatmul.mubr.f32.vlgmr.msra.gmra.mrb[4].mxu0 %v26451_v61  ;;  %23849 = vmatprep.subr.bf16.mxu1 %v26252_v3  ;;  %v951_v61 = vand.u32 4294901760, %v26647_v2 }
  0x60   : > { %23833 = vmatpush3.bf16.msra.mxu0 %v26630_v45  ;;  %20277 = vmatprep.mubr.msk.f32.mxu0 %vm26253_vm0, %v26254_v13 }
  0x61   : > { %23834 = vmatprep.subr.bf16.mxu0 %v26252_v3  ;;  %v952_v10 = vsub.f32 %v26647_v2, %v951_v61 }
  0x62   : > { %23851 = vmatpush3.bf16.msra.mxu1 %v23850_v5  ;;  %v1541_v5 = vsub.f32 %v26796_v39, %v1540_v63 }
  0x63   : > { %23852 = vmatprep.subr.bf16.mxu1 %v26252_v3  ;;  %v953_v19 = vand.u32 4294901760, %v952_v10 }
  0x64   : > { %23836 = vmatpush3.bf16.msra.mxu0 %v26654_v4 }
  0x65   : > { %23837 = vmatprep.subr.bf16.mxu0 %v26252_v3 }
  0x66   : > { %23854 = vmatpush3.bf16.msra.mxu1 %v23853_v9  ;;  %v1542_v9 = vand.u32 4294901760, %v1541_v5  ;;  %v27002_v5 = vld [vmem:[%s33596_s1 + $0xf0] sm:$0xff] }
  0x67   : > { %23867 = vmatprep.subr.bf16.mxu1 %v26252_v3 }
  0x68   : > { %23839 = vmatpush3.bf16.msra.mxu0 %v26666_v8 }
  0x69   : > { %23840 = vmatprep.subr.bf16.mxu0 %v26252_v3  ;;  %20297 = vmatmul.mubr.f32.vlgmr.msra.gmra.mrb[6].mxu1 %v26633_v49 }
  0x6a   : > { %23869 = vmatpush3.bf16.msra.mxu1 %v26630_v45  ;;  %20334 = vmatprep.mubr.msk.f32.mxu1 %vm26253_vm0, %v26254_v13 }
  0x6b   : > { %23870 = vmatprep.subr.bf16.mxu1 %v26252_v3 }
  0x6c   : > { %23842 = vmatpush3.bf16.msra.mxu0 %v26676_v11 }
  0x6d   : > { %23855 = vmatprep.subr.bf16.mxu0 %v26252_v3 }
  0x6e   : > { %23872 = vmatpush3.bf16.msra.mxu1 %v26654_v4 }
  0x6f   : > { %20278 = vmatmul.mubr.f32.vlgmr.msra.gmra.mrb[6].mxu0 %v953_v19  ;;  %23873 = vmatprep.subr.bf16.mxu1 %v26252_v3  ;;  %v1562_v19 = vsub.f32 %v26834_v54, %v1561_v28 }
  0x70   : > { %23857 = vmatpush3.bf16.msra.mxu0 %v23856_v29  ;;  %20315 = vmatprep.mubr.msk.f32.mxu0 %vm26253_vm0, %v26254_v13 }
  0x71   : > { %23858 = vmatprep.subr.bf16.mxu0 %v26252_v3  ;;  %v1563_v33 = vand.u32 4294901760, %v1562_v19  ;;  %v23961_v19 = vpack.c.bf16 %v1561_v28, %v1554_v26 }
  0x72   : > { %23875 = vmatpush3.bf16.msra.mxu1 %v26666_v8 }
  0x73   : > { %23876 = vmatprep.subr.bf16.mxu1 %v26252_v3 }
  0x74   : > { %23860 = vmatpush3.bf16.msra.mxu0 %v23859_v30  ;;  %v26882_v30 = vpack.c.bf16 %v1436_v50, %v1433_v23  ;;  %v23928_v50 = vpack.c.bf16 %v26736_v53, %v26726_v16  ;;  %v27007_v16 = vld [vmem:[%s33596_s1 + $0xf8] sm:$0xff]  ;;  %v23955_v53 = vpack.c.bf16 %v1533_v58, %v1526_v37  ;;  %v1996_v58 = vand.u32 4294901760, %v27002_v5 }
  0x75   : > { %23861 = vmatprep.subr.bf16.mxu0 %v26252_v3 }
  0x76   : > { %23878 = vmatpush3.bf16.msra.mxu1 %v26676_v11 }
  0x77   : > { %23891 = vmatprep.subr.bf16.mxu1 %v26252_v3 }
  0x78   : > { %23863 = vmatpush3.bf16.msra.mxu0 %v23862_v40  ;;  %v26894_v40 = vpack.c.bf16 %v1442_v56, %v1439_v34  ;;  %v23934_v34 = vpack.c.bf16 %v26805_v24, %v26796_v39  ;;  %v1981_v56 = vand.u32 4294901760, %v26930_v21 }
  0x79   : > { %23864 = vmatprep.subr.bf16.mxu0 %v26252_v3  ;;  %20335 = vmatmul.mubr.f32.vlgmr.msra.gmra.mrb[8].mxu1 %v951_v61  ;;  %v1548_v61 = vsub.f32 %v26805_v24, %v1547_v47 }
  0x7a   : > { %23893 = vmatpush3.bf16.msra.mxu1 %v26630_v45  ;;  %20372 = vmatprep.mubr.msk.f32.mxu1 %vm26253_vm0, %v26254_v13  ;;  %v1514_v45 = vand.u32 4294901760, %v1513_v35  ;;  %v1987_v35 = vand.u32 4294901760, %v26947_v12  ;;  %v26964_v59 = vsub.f32 %v26930_v21, %v1981_v56 }
  0x7b   : > { %23894 = vmatprep.subr.bf16.mxu1 %v26252_v3  ;;  %v1549_v10 = vand.u32 4294901760, %v1548_v61  ;;  %v23958_v61 = vpack.c.bf16 %v1547_v47, %v1540_v63  ;;  %v27057_v63 = vsub.f32 %v27002_v5, %v1996_v58  ;;  %v27170_v5 = vld [vmem:[%s33596_s1 + $0x110] sm:$0xff] }
  0x7c   : > { %23866 = vmatpush3.bf16.msra.mxu0 %v23865_v52  ;;  %v23916_v7 = vpack.c.bf16 %v1521_v14, %v1514_v45  ;;  %v23931_v52 = vpack.c.bf16 %v26759_v22, %v26754_v27  ;;  %v26974_v45 = vld [vmem:[%s33596_s1 + $0xe8] sm:$0xff] }
  0x7d   : > { %23879 = vmatprep.subr.bf16.mxu0 %v26252_v3  ;;  %v23922_v31 = vpack.c.bf16 %v1549_v10, %v1542_v9  ;;  %v1993_v0 = vand.u32 4294901760, %v26974_v45 }
  0x7e   : > { %23896 = vmatpush3.bf16.msra.mxu1 %v26654_v4  ;;  %v1535_v4 = vand.u32 4294901760, %v1534_v62  ;;  %v26986_v62 = vsub.f32 %v26947_v12, %v1987_v35 }
  0x7f   : > { %20316 = vmatmul.mubr.f32.vlgmr.msra.gmra.mrb[8].mxu0 %v26647_v2  ;;  %23897 = vmatprep.subr.bf16.mxu1 %v26252_v3  ;;  %v1528_v2 = vand.u32 4294901760, %v1527_v48  ;;  %v27026_v27 = vsub.f32 %v26974_v45, %v1993_v0  ;;  %v27156_v45 = vld [vmem:[%s33596_s1 + $0x108] sm:$0xff] }
  0x80   : > { %23881 = vmatpush3.bf16.msra.mxu0 %v23880_v36  ;;  %20353 = vmatprep.mubr.msk.f32.mxu0 %vm26253_vm0, %v26254_v13  ;;  %v1978_v36 = vand.u32 4294901760, %v26925_v17 }
  0x81   : > { %23882 = vmatprep.subr.bf16.mxu0 %v26252_v3  ;;  %v23919_v44 = vpack.c.bf16 %v1535_v4, %v1528_v2  ;;  %v2070_v4 = vand.u32 4294901760, %v26964_v59  ;;  %v2098_v10 = vand.u32 4294901760, %v27026_v27 }
  0x82   : > { %23899 = vmatpush3.bf16.msra.mxu1 %v26666_v8  ;;  %v26861_v8 = vand.u32 4294901760, %v1424_v6  ;;  %v26959_v51 = vsub.f32 %v26925_v17, %v1978_v36 }
  0x83   : > { %23900 = vmatprep.subr.bf16.mxu1 %v26252_v3  ;;  %v2071_v37 = vsub.f32 %v26964_v59, %v2070_v4 }
  0x84   : > { %23884 = vmatpush3.bf16.msra.mxu0 %v23883_v18  ;;  %v26875_v29 = vsub.f32 %v1424_v6, %v26861_v8  ;;  %v1984_v18 = vand.u32 4294901760, %v26942_v57  ;;  %v2063_v2 = vand.u32 4294901760, %v26959_v51 }
  0x85   : > { %23885 = vmatprep.subr.bf16.mxu0 %v26252_v3  ;;  %v2072_v24 = vand.u32 4294901760, %v2071_v37  ;;  %v2535_v37 = vand.u32 4294901760, %v27170_v5 }
  0x86   : > { %23902 = vmatpush3.bf16.msra.mxu1 %v26676_v11  ;;  %v1555_v11 = vsub.f32 %v26829_v20, %v1554_v26  ;;  %v26981_v48 = vsub.f32 %v26942_v57, %v1984_v18  ;;  %v2064_v22 = vsub.f32 %v26959_v51, %v2063_v2  ;;  %v27086_v26 = vpack.c.bf16 %v1981_v56, %v1978_v36 }
  0x87   : > { %23915 = vmatprep.subr.bf16.mxu1 %v26252_v3 }
  0x88   : > { %23887 = vmatpush3.bf16.msra.mxu0 %v23886_v60  ;;  %v1556_v32 = vand.u32 4294901760, %v1555_v11  ;;  %v26969_v60 = vld [vmem:[%s33596_s1 + $0xe0] sm:$0xff]  ;;  %v2065_v39 = vand.u32 4294901760, %v2064_v22 }
  0x89   : > { %23888 = vmatprep.subr.bf16.mxu0 %v26252_v3  ;;  %20373 = vmatmul.mubr.f32.vlgmr.msra.gmra.mrb[10].mxu1 %v26633_v49  ;;  %v1990_v14 = vand.u32 4294901760, %v26969_v60  ;;  %v1964_v11 = vld [vmem:[#allocation2 + $0x3] sm:$0xff] }
  0x8a   : > { %23917 = vmatpush3.bf16.msra.mxu1 %v23916_v7  ;;  %20410 = vmatprep.mubr.msk.f32.mxu1 %vm26253_vm0, %v26254_v13  ;;  %v23925_v41 = vpack.c.bf16 %v1563_v33, %v1556_v32  ;;  %v1999_v7 = vand.u32 4294901760, %v27007_v16  ;;  %v2099_v32 = vsub.f32 %v27026_v27, %v2098_v10  ;;  %v23988_v33 = vpack.c.bf16 %v2072_v24, %v2065_v39 }
  0x8b   : > { %23918 = vmatprep.subr.bf16.mxu1 %v26252_v3  ;;  %v27021_v6 = vsub.f32 %v26969_v60, %v1990_v14  ;;  %v1975_v54 = vsel %vm293_vm1, %v1964_v11, 0  ;;  %v27122_v36 = vpack.c.bf16 %v1993_v0, %v1990_v14  ;;  %v27151_v60 = vld [vmem:[%s33596_s1 + $0x100] sm:$0xff]  ;;  %v2532_v0 = vand.u32 4294901760, %v27156_v45 }
  0x8c   : > { %23890 = vmatpush3.bf16.msra.mxu0 %v23889_v1  ;;  %v23952_v1 = vpack.c.bf16 %v1519_v55, %v1512_v25  ;;  %v2077_v25 = vand.u32 4294901760, %v26981_v48  ;;  %v2084_v55 = vand.u32 4294901760, %v26986_v62  ;;  %v27062_v47 = vsub.f32 %v27007_v16, %v1999_v7  ;;  %v27175_v16 = vld [vmem:[%s33596_s1 + $0x118] sm:$0xff] }
  0x8d   : > { %23903 = vmatprep.subr.bf16.mxu0 %v26252_v3  ;;  %v2091_v9 = vand.u32 4294901760, %v27021_v6  ;;  %v27132_v12 = vpack.c.bf16 %v1999_v7, %v1996_v58  ;;  %v2529_v14 = vand.u32 4294901760, %v27151_v60  ;;  %v27187_v22 = vsub.f32 %v27156_v45, %v2532_v0 }
  0x8e   : > { %23920 = vmatpush3.bf16.msra.mxu1 %v23919_v44  ;;  %v2085_v44 = vsub.f32 %v26986_v62, %v2084_v55  ;;  %v2112_v20 = vand.u32 4294901760, %v27062_v47  ;;  %v2538_v58 = vand.u32 4294901760, %v27175_v16  ;;  %v24009_v7 = vpack.c.bf16 %v27062_v47, %v27057_v63 }
  0x8f   : > { %20354 = vmatmul.mubr.f32.vlgmr.msra.gmra.mrb[10].mxu0 %v26633_v49  ;;  %23921 = vmatprep.subr.bf16.mxu1 %v26252_v3  ;;  %v1501_v49 = vand.u32 4294901760, %v26875_v29  ;;  %v2621_v39 = vand.u32 4294901760, %v27187_v22  ;;  %v27211_v24 = vsub.f32 %v27170_v5, %v2535_v37 }
  0x90   : > { %23905 = vmatpush3.bf16.msra.mxu0 %v26858_v38  ;;  %20391 = vmatprep.mubr.msk.f32.mxu0 %vm26253_vm0, %v26254_v13  ;;  %v27216_v11 = vsub.f32 %v27175_v16, %v2538_v58 }
  0x91   : > { %23906 = vmatprep.subr.bf16.mxu0 %v26252_v3  ;;  %v1502_v43 = vsub.f32 %v26875_v29, %v1501_v49 }
  0x92   : > { %23923 = vmatpush3.bf16.msra.mxu1 %v23922_v31  ;;  %v2092_v31 = vsub.f32 %v27021_v6, %v2091_v9 }
  0x93   : > { %23924 = vmatprep.subr.bf16.mxu1 %v26252_v3  ;;  %v1503_v23 = vand.u32 4294901760, %v1502_v43  ;;  %v2100_v43 = vand.u32 4294901760, %v2099_v32  ;;  %v2628_v32 = vand.u32 4294901760, %v27211_v24 }
  0x94   : > { %23908 = vmatpush3.bf16.msra.mxu0 %v26882_v30  ;;  %v2093_v28 = vand.u32 4294901760, %v2092_v31  ;;  %v27230_v31 = vld [vmem:[%s33596_s1 + $0x130] sm:$0xff] }
  0x95   : > { %23909 = vmatprep.subr.bf16.mxu0 %v26252_v3 }
  0x96   : > { %23926 = vmatpush3.bf16.msra.mxu1 %v23925_v41  ;;  %v23994_v17 = vpack.c.bf16 %v2100_v43, %v2093_v28 }
  0x97   : > { %23939 = vmatprep.subr.bf16.mxu1 %v26252_v3 }
  0x98   : > { %23911 = vmatpush3.bf16.msra.mxu0 %v26894_v40 }
  0x99   : > { %23912 = vmatprep.subr.bf16.mxu0 %v26252_v3  ;;  %20411 = vmatmul.mubr.f32.vlgmr.msra.gmra.mrb[12].mxu1 %v26861_v8 }
  0x9a   : > { %23941 = vmatpush3.bf16.msra.mxu1 %v26858_v38  ;;  %20448 = vmatprep.mubr.msk.f32.mxu1 %vm26253_vm0, %v26254_v13 }
  0x9b   : > { %23942 = vmatprep.subr.bf16.mxu1 %v26252_v3 }
  0x9c   : > { %23914 = vmatpush3.bf16.msra.mxu0 %v26904_v15 }
  0x9d   : > { %23927 = vmatprep.subr.bf16.mxu0 %v26252_v3 }
  0x9e   : > { %23944 = vmatpush3.bf16.msra.mxu1 %v26882_v30 }
  0x9f   : > { %20392 = vmatmul.mubr.f32.vlgmr.msra.gmra.mrb[12].mxu0 %v1503_v23  ;;  %23945 = vmatprep.subr.bf16.mxu1 %v26252_v3  ;;  %v2113_v23 = vsub.f32 %v27062_v47, %v2112_v20 }
  0xa0   : > { %23929 = vmatpush3.bf16.msra.mxu0 %v23928_v50  ;;  %20429 = vmatprep.mubr.msk.f32.mxu0 %vm26253_vm0, %v26254_v13 }
  0xa1   : > { %23930 = vmatprep.subr.bf16.mxu0 %v26252_v3 }
  0xa2   : > { %23947 = vmatpush3.bf16.msra.mxu1 %v26894_v40 }
  0xa3   : > { %23948 = vmatprep.subr.bf16.mxu1 %v26252_v3 }
  0xa4   : > { %23932 = vmatpush3.bf16.msra.mxu0 %v23931_v52  ;;  %v27110_v52 = vpack.c.bf16 %v1987_v35, %v1984_v18  ;;  %v24000_v35 = vpack.c.bf16 %v26964_v59, %v26959_v51  ;;  %v27235_v51 = vld [vmem:[%s33596_s1 + $0x138] sm:$0xff]  ;;  %v24027_v59 = vpack.c.bf16 %v2084_v55, %v2077_v25  ;;  %v2547_v55 = vand.u32 4294901760, %v27230_v31 }
  0xa5   : > { %23933 = vmatprep.subr.bf16.mxu0 %v26252_v3 }
  0xa6   : > { %23950 = vmatpush3.bf16.msra.mxu1 %v26904_v15 }
  0xa7   : > { %23963 = vmatprep.subr.bf16.mxu1 %v26252_v3 }
  0xa8   : > { %23935 = vmatpush3.bf16.msra.mxu0 %v23934_v34  ;;  %v2114_v34 = vand.u32 4294901760, %v2113_v23 }
  0xa9   : > { %23936 = vmatprep.subr.bf16.mxu0 %v26252_v3  ;;  %20449 = vmatmul.mubr.f32.vlgmr.msra.gmra.mrb[14].mxu1 %v1501_v49  ;;  %v2105_v49 = vand.u32 4294901760, %v27057_v63 }
  0xaa   : > { %23965 = vmatpush3.bf16.msra.mxu1 %v26858_v38  ;;  %20486 = vmatprep.mubr.msk.f32.mxu1 %vm26253_vm0, %v26254_v13  ;;  %v2078_v38 = vsub.f32 %v26981_v48, %v2077_v25 }
  0xab   : > { %23966 = vmatprep.subr.bf16.mxu1 %v26252_v3  ;;  %v24033_v23 = vpack.c.bf16 %v2112_v20, %v2105_v49 }
  0xac   : > { %23938 = vmatpush3.bf16.msra.mxu0 %v23937_v42  ;;  %v24003_v42 = vpack.c.bf16 %v26986_v62, %v26981_v48  ;;  %v2635_v48 = vand.u32 4294901760, %v27216_v11 }
  0xad   : > { %23951 = vmatprep.subr.bf16.mxu0 %v26252_v3 }
  0xae   : > { %23968 = vmatpush3.bf16.msra.mxu1 %v26882_v30  ;;  %v2086_v30 = vand.u32 4294901760, %v2085_v44  ;;  %v2636_v43 = vsub.f32 %v27216_v11, %v2635_v48 }
  0xaf   : > { %20430 = vmatmul.mubr.f32.vlgmr.msra.gmra.mrb[14].mxu0 %v26875_v29  ;;  %23969 = vmatprep.subr.bf16.mxu1 %v26252_v3  ;;  %v2079_v29 = vand.u32 4294901760, %v2078_v38  ;;  %v27204_v38 = vld [vmem:[%s33596_s1 + $0x128] sm:$0xff] }
  0xb0   : > { %23953 = vmatpush3.bf16.msra.mxu0 %v23952_v1  ;;  %20467 = vmatprep.mubr.msk.f32.mxu0 %vm26253_vm0, %v26254_v13  ;;  %v24006_v1 = vpack.c.bf16 %v27026_v27, %v27021_v6 }
  0xb1   : > { %23954 = vmatprep.subr.bf16.mxu0 %v26252_v3  ;;  %v23991_v41 = vpack.c.bf16 %v2086_v30, %v2079_v29  ;;  %v2544_v30 = vand.u32 4294901760, %v27204_v38 }
  0xb2   : > { %23971 = vmatpush3.bf16.msra.mxu1 %v26894_v40  ;;  %v27089_v40 = vand.u32 4294901760, %v1975_v54 }
  0xb3   : > { %23972 = vmatprep.subr.bf16.mxu1 %v26252_v3  ;;  %v27261_v25 = vsub.f32 %v27204_v38, %v2544_v30  ;;  %v27386_v38 = vld [vmem:[%s33596_s1 + $0x148] sm:$0xff] }
  0xb4   : > { %23956 = vmatpush3.bf16.msra.mxu0 %v23955_v53  ;;  %v27103_v50 = vsub.f32 %v1975_v54, %v27089_v40  ;;  %v27182_v53 = vsub.f32 %v27151_v60, %v2529_v14  ;;  %v24030_v54 = vpack.c.bf16 %v2098_v10, %v2091_v9  ;;  %v27285_v9 = vsub.f32 %v27230_v31, %v2547_v55 }
  0xb5   : > { %23957 = vmatprep.subr.bf16.mxu0 %v26252_v3  ;;  %v2649_v27 = vand.u32 4294901760, %v27261_v25 }
  0xb6   : > { %23974 = vmatpush3.bf16.msra.mxu1 %v26904_v15  ;;  %v2106_v15 = vsub.f32 %v27057_v63, %v2105_v49  ;;  %v2614_v44 = vand.u32 4294901760, %v27182_v53  ;;  %v2656_v63 = vand.u32 4294901760, %v27285_v9  ;;  %v27314_v49 = vpack.c.bf16 %v2532_v0, %v2529_v14 }
  0xb7   : > { %23987 = vmatprep.subr.bf16.mxu1 %v26252_v3 }
  0xb8   : > { %23959 = vmatpush3.bf16.msra.mxu0 %v23958_v61  ;;  %v2107_v21 = vand.u32 4294901760, %v2106_v15  ;;  %v27199_v61 = vld [vmem:[%s33596_s1 + $0x120] sm:$0xff] }
  0xb9   : > { %23960 = vmatprep.subr.bf16.mxu0 %v26252_v3  ;;  %20487 = vmatmul.mubr.f32.vlgmr.msra.gmra.mrb[16].mxu1 %v26861_v8  ;;  %v2541_v29 = vand.u32 4294901760, %v27199_v61  ;;  %v2515_v15 = vld [vmem:[#allocation2 + $0x4] sm:$0xff] }
  0xba   : > { %23989 = vmatpush3.bf16.msra.mxu1 %v23988_v33  ;;  %20524 = vmatprep.mubr.msk.f32.mxu1 %vm26253_vm0, %v26254_v13  ;;  %v23997_v56 = vpack.c.bf16 %v2114_v34, %v2107_v21  ;;  %v2550_v33 = vand.u32 4294901760, %v27235_v51  ;;  %v2526_v21 = vsel %vm293_vm1, %v2515_v15, 0 }
  0xbb   : > { %23990 = vmatprep.subr.bf16.mxu1 %v26252_v3  ;;  %v27256_v62 = vsub.f32 %v27199_v61, %v2541_v29  ;;  %v27350_v0 = vpack.c.bf16 %v2544_v30, %v2541_v29  ;;  %v27381_v61 = vld [vmem:[%s33596_s1 + $0x140] sm:$0xff]  ;;  %v3083_v30 = vand.u32 4294901760, %v27386_v38 }
  0xbc   : > { %23962 = vmatpush3.bf16.msra.mxu0 %v23961_v19  ;;  %v24024_v19 = vpack.c.bf16 %v2070_v4, %v2063_v2  ;;  %v2615_v2 = vsub.f32 %v27182_v53, %v2614_v44  ;;  %v2622_v4 = vsub.f32 %v27187_v22, %v2621_v39  ;;  %v27290_v10 = vsub.f32 %v27235_v51, %v2550_v33  ;;  %v27403_v51 = vld [vmem:[%s33596_s1 + $0x150] sm:$0xff] }
  0xbd   : > { %23975 = vmatprep.subr.bf16.mxu0 %v26252_v3  ;;  %v2642_v6 = vand.u32 4294901760, %v27256_v62  ;;  %v27360_v16 = vpack.c.bf16 %v2550_v33, %v2547_v55  ;;  %v3080_v29 = vand.u32 4294901760, %v27381_v61  ;;  %v24078_v31 = vpack.c.bf16 %v27261_v25, %v27256_v62 }
  0xbe   : > { %23992 = vmatpush3.bf16.msra.mxu1 %v23991_v41  ;;  %v2623_v28 = vand.u32 4294901760, %v2622_v4  ;;  %v2629_v41 = vsub.f32 %v27211_v24, %v2628_v32  ;;  %v2663_v47 = vand.u32 4294901760, %v27290_v10  ;;  %v27420_v4 = vsub.f32 %v27386_v38, %v3083_v30 }
  0xbf   : > { %20468 = vmatmul.mubr.f32.vlgmr.msra.gmra.mrb[16].mxu0 %v26861_v8  ;;  %23993 = vmatprep.subr.bf16.mxu1 %v26252_v3  ;;  %v2052_v8 = vand.u32 4294901760, %v27103_v50  ;;  %v2643_v34 = vsub.f32 %v27256_v62, %v2642_v6  ;;  %v3086_v55 = vand.u32 4294901760, %v27403_v51  ;;  %v3066_v62 = vld [vmem:[#allocation2 + $0x5] sm:$0xff] }
  0xc0   : > { %23977 = vmatpush3.bf16.msra.mxu0 %v27086_v26  ;;  %20505 = vmatprep.mubr.msk.f32.mxu0 %vm26253_vm0, %v26254_v13 }
  0xc1   : > { %23978 = vmatprep.subr.bf16.mxu0 %v26252_v3  ;;  %v2053_v57 = vsub.f32 %v27103_v50, %v2052_v8  ;;  %v27444_v15 = vsub.f32 %v27403_v51, %v3086_v55 }
  0xc2   : > { %23995 = vmatpush3.bf16.msra.mxu1 %v23994_v17  ;;  %v2637_v17 = vand.u32 4294901760, %v2636_v43  ;;  %v3172_v43 = vand.u32 4294901760, %v27420_v4 }
  0xc3   : > { %23996 = vmatprep.subr.bf16.mxu1 %v26252_v3  ;;  %v2054_v18 = vand.u32 4294901760, %v2053_v57 }
  0xc4   : > { %23980 = vmatpush3.bf16.msra.mxu0 %v27110_v52 }
  0xc5   : > { %23981 = vmatprep.subr.bf16.mxu0 %v26252_v3 }
  0xc6   : > { %23998 = vmatpush3.bf16.msra.mxu1 %v23997_v56  ;;  %v2644_v56 = vand.u32 4294901760, %v2643_v34 }
  0xc7   : > { %24011 = vmatprep.subr.bf16.mxu1 %v26252_v3 }
  0xc8   : > { %23983 = vmatpush3.bf16.msra.mxu0 %v27122_v36 }
  0xc9   : > { %23984 = vmatprep.subr.bf16.mxu0 %v26252_v3  ;;  %20525 = vmatmul.mubr.f32.vlgmr.msra.gmra.mrb[18].mxu1 %v27089_v40 }
  0xca   : > { %24013 = vmatpush3.bf16.msra.mxu1 %v27086_v26  ;;  %20562 = vmatprep.mubr.msk.f32.mxu1 %vm26253_vm0, %v26254_v13 }
  0xcb   : > { %24014 = vmatprep.subr.bf16.mxu1 %v26252_v3 }
  0xcc   : > { %23986 = vmatpush3.bf16.msra.mxu0 %v27132_v12 }
  0xcd   : > { %23999 = vmatprep.subr.bf16.mxu0 %v26252_v3 }
  0xce   : > { %24016 = vmatpush3.bf16.msra.mxu1 %v27110_v52 }
  0xcf   : > { %20506 = vmatmul.mubr.f32.vlgmr.msra.gmra.mrb[18].mxu0 %v2054_v18  ;;  %24017 = vmatprep.subr.bf16.mxu1 %v26252_v3  ;;  %v2664_v18 = vsub.f32 %v27290_v10, %v2663_v47 }
  0xd0   : > { %24001 = vmatpush3.bf16.msra.mxu0 %v24000_v35  ;;  %20543 = vmatprep.mubr.msk.f32.mxu0 %vm26253_vm0, %v26254_v13 }
  0xd1   : > { %24002 = vmatprep.subr.bf16.mxu0 %v26252_v3  ;;  %v2665_v14 = vand.u32 4294901760, %v2664_v18 }
  0xd2   : > { %24019 = vmatpush3.bf16.msra.mxu1 %v27122_v36 }
  0xd3   : > { %24020 = vmatprep.subr.bf16.mxu1 %v26252_v3 }
  0xd4   : > { %24004 = vmatpush3.bf16.msra.mxu0 %v24003_v42  ;;  %v27338_v42 = vpack.c.bf16 %v2538_v58, %v2535_v37  ;;  %v24072_v58 = vpack.c.bf16 %v27187_v22, %v27182_v53  ;;  %v27468_v53 = vld [vmem:[%s33596_s1 + $0x178] sm:$0xff] }
  0xd5   : > { %24005 = vmatprep.subr.bf16.mxu0 %v26252_v3  ;;  %v3101_v18 = vand.u32 4294901760, %v27468_v53 }
  0xd6   : > { %24022 = vmatpush3.bf16.msra.mxu1 %v27132_v12 }
  0xd7   : > { %24035 = vmatprep.subr.bf16.mxu1 %v26252_v3 }
  0xd8   : > { %24007 = vmatpush3.bf16.msra.mxu0 %v24006_v1 }
  0xd9   : > { %24008 = vmatprep.subr.bf16.mxu0 %v26252_v3  ;;  %20563 = vmatmul.mubr.f32.vlgmr.msra.gmra.mrb[20].mxu1 %v2052_v8  ;;  %v2650_v8 = vsub.f32 %v27261_v25, %v2649_v27  ;;  %v24105_v25 = vpack.c.bf16 %v2663_v47, %v2656_v63 }
  0xda   : > { %24037 = vmatpush3.bf16.msra.mxu1 %v27086_v26  ;;  %20600 = vmatprep.mubr.msk.f32.mxu1 %vm26253_vm0, %v26254_v13  ;;  %v2616_v26 = vand.u32 4294901760, %v2615_v2  ;;  %v27415_v2 = vsub.f32 %v27381_v61, %v3080_v29 }
  0xdb   : > { %24038 = vmatprep.subr.bf16.mxu1 %v26252_v3  ;;  %v2651_v57 = vand.u32 4294901760, %v2650_v8  ;;  %v3179_v8 = vand.u32 4294901760, %v27444_v15 }
  0xdc   : > { %24010 = vmatpush3.bf16.msra.mxu0 %v24009_v7  ;;  %v27370_v7 = vld [vmem:[%s26397_s30 + $0x8] sm:$0xff] }
  0xdd   : > { %24023 = vmatprep.subr.bf16.mxu0 %v26252_v3  ;;  %v24066_v60 = vpack.c.bf16 %v2651_v57, %v2644_v56  ;;  %33636 = vst [vmem:[#allocation8_spill] sm:$0xff] %v27370_v7  ;;  %309 = vst.msk [vmem:[#allocation2 + $0x13] sm:$0xff] %vm293_vm1, %v27370_v7  ;;  %v24099_v56 = vpack.c.bf16 %v2635_v48, %v2628_v32 }
  0xde   : > { %24040 = vmatpush3.bf16.msra.mxu1 %v27110_v52  ;;  %v2630_v52 = vand.u32 4294901760, %v2629_v41  ;;  %v3165_v41 = vand.u32 4294901760, %v27415_v2 }
  0xdf   : > { %20544 = vmatmul.mubr.f32.vlgmr.msra.gmra.mrb[20].mxu0 %v27103_v50  ;;  %24041 = vmatprep.subr.bf16.mxu1 %v26252_v3  ;;  %v24060_v50 = vpack.c.bf16 %v2623_v28, %v2616_v26  ;;  %v27430_v26 = vld [vmem:[%s33596_s1 + $0x160] sm:$0xff]  ;;  %v27437_v28 = vld [vmem:[%s33596_s1 + $0x168] sm:$0xff] }
  0xe0   : > { %24025 = vmatpush3.bf16.msra.mxu0 %v24024_v19  ;;  %20581 = vmatprep.mubr.msk.f32.mxu0 %vm26253_vm0, %v26254_v13  ;;  %v24063_v20 = vpack.c.bf16 %v2637_v17, %v2630_v52  ;;  %v24075_v19 = vpack.c.bf16 %v27216_v11, %v27211_v24  ;;  %v24096_v52 = vpack.c.bf16 %v2621_v39, %v2614_v44  ;;  %v3095_v17 = vand.u32 4294901760, %v27437_v28 }
  0xe1   : > { %24026 = vmatprep.subr.bf16.mxu0 %v26252_v3  ;;  %v3166_v44 = vsub.f32 %v27415_v2, %v3165_v41  ;;  %v3173_v39 = vsub.f32 %v27420_v4, %v3172_v43 }
  0xe2   : > { %24043 = vmatpush3.bf16.msra.mxu1 %v27122_v36  ;;  %v27317_v36 = vand.u32 4294901760, %v2526_v21  ;;  %v27494_v57 = vsub.f32 %v27437_v28, %v3095_v17 }
  0xe3   : > { %24044 = vmatprep.subr.bf16.mxu1 %v26252_v3  ;;  %v3167_v24 = vand.u32 4294901760, %v3166_v44  ;;  %v3174_v11 = vand.u32 4294901760, %v3173_v39 }
  0xe4   : > { %24028 = vmatpush3.bf16.msra.mxu0 %v24027_v59  ;;  %v27331_v35 = vsub.f32 %v2526_v21, %v27317_v36  ;;  %v27408_v59 = vld [vmem:[%s33596_s1 + $0x158] sm:$0xff]  ;;  %v27463_v21 = vld [vmem:[%s33596_s1 + $0x170] sm:$0xff] }
  0xe5   : > { %24029 = vmatprep.subr.bf16.mxu0 %v26252_v3  ;;  %v3089_v33 = vand.u32 4294901760, %v27408_v59 }
  0xe6   : > { %24046 = vmatpush3.bf16.msra.mxu1 %v27132_v12  ;;  %v2657_v12 = vsub.f32 %v27285_v9, %v2656_v63  ;;  %v27547_v63 = vpack.c.bf16 %v3083_v30, %v3080_v29 }
  0xe7   : > { %24059 = vmatprep.subr.bf16.mxu1 %v26252_v3 }
  0xe8   : > { %24031 = vmatpush3.bf16.msra.mxu0 %v24030_v54  ;;  %v2658_v45 = vand.u32 4294901760, %v2657_v12  ;;  %v24081_v54 = vpack.c.bf16 %v27290_v10, %v27285_v9  ;;  %v3098_v12 = vand.u32 4294901760, %v27463_v21  ;;  %v3077_v10 = vsel %vm293_vm1, %v3066_v62, 0  ;;  %v27631_v62 = vld [vmem:[%s33596_s1 + $0x190] sm:$0xff] }
  0xe9   : > { %24032 = vmatprep.subr.bf16.mxu0 %v26252_v3  ;;  %20601 = vmatmul.mubr.f32.vlgmr.msra.gmra.mrb[22].mxu1 %v27089_v40 }
  0xea   : > { %24061 = vmatpush3.bf16.msra.mxu1 %v24060_v50  ;;  %20638 = vmatprep.mubr.msk.f32.mxu1 %vm26253_vm0, %v26254_v13  ;;  %v24069_v1 = vpack.c.bf16 %v2665_v14, %v2658_v45  ;;  %v3092_v50 = vand.u32 4294901760, %v27430_v26  ;;  %v24102_v14 = vpack.c.bf16 %v2649_v27, %v2642_v6  ;;  %v24132_v6 = vpack.c.bf16 %v3174_v11, %v3167_v24 }
  0xeb   : > { %24062 = vmatprep.subr.bf16.mxu1 %v26252_v3 }
  0xec   : > { %24034 = vmatpush3.bf16.msra.mxu0 %v24033_v23  ;;  %v27449_v23 = vsub.f32 %v27408_v59, %v3089_v33  ;;  %v27583_v59 = vpack.c.bf16 %v3095_v17, %v3092_v50 }
  0xed   : > { %24047 = vmatprep.subr.bf16.mxu0 %v26252_v3 }
  0xee   : > { %24064 = vmatpush3.bf16.msra.mxu1 %v24063_v20  ;;  %v27484_v20 = vsub.f32 %v27430_v26, %v3092_v50  ;;  %v27593_v26 = vpack.c.bf16 %v3101_v18, %v3098_v12  ;;  %v24144_v50 = vpack.c.bf16 %v27420_v4, %v27415_v2  ;;  %v27696_v2 = vld [vmem:[%s33596_s1 + $0x1b8] sm:$0xff] }
  0xef   : > { %20582 = vmatmul.mubr.f32.vlgmr.msra.gmra.mrb[22].mxu0 %v27089_v40  ;;  %24065 = vmatprep.subr.bf16.mxu1 %v26252_v3  ;;  %v2603_v40 = vand.u32 4294901760, %v27331_v35 }
  0xf0   : > { %24049 = vmatpush3.bf16.msra.mxu0 %v27314_v49  ;;  %20619 = vmatprep.mubr.msk.f32.mxu0 %vm26253_vm0, %v26254_v13  ;;  %v3193_v45 = vand.u32 4294901760, %v27484_v20 }
  0xf1   : > { %24050 = vmatprep.subr.bf16.mxu0 %v26252_v3  ;;  %v2604_v5 = vsub.f32 %v27331_v35, %v2603_v40 }
  0xf2   : > { %24067 = vmatpush3.bf16.msra.mxu1 %v24066_v60 }
  0xf3   : > { %24068 = vmatprep.subr.bf16.mxu1 %v26252_v3  ;;  %v2605_v37 = vand.u32 4294901760, %v2604_v5  ;;  %v27523_v5 = vsub.f32 %v27468_v53, %v3101_v18  ;;  %v27609_v53 = vld [vmem:[%s33596_s1 + $0x180] sm:$0xff]  ;;  %v24147_v18 = vpack.c.bf16 %v27449_v23, %v27444_v15 }
  0xf4   : > { %24052 = vmatpush3.bf16.msra.mxu0 %v27338_v42 }
  0xf5   : > { %24053 = vmatprep.subr.bf16.mxu0 %v26252_v3  ;;  %v3214_v9 = vand.u32 4294901760, %v27523_v5 }
  0xf6   : > { %24070 = vmatpush3.bf16.msra.mxu1 %v24069_v1  ;;  %v27518_v1 = vsub.f32 %v27463_v21, %v3098_v12  ;;  %v27614_v12 = vld [vmem:[%s33596_s1 + $0x188] sm:$0xff] }
  0xf7   : > { %24083 = vmatprep.subr.bf16.mxu1 %v26252_v3  ;;  %v3215_v61 = vsub.f32 %v27523_v5, %v3214_v9 }
  0xf8   : > { %24055 = vmatpush3.bf16.msra.mxu0 %v27350_v0 }
  0xf9   : > { %24056 = vmatprep.subr.bf16.mxu0 %v26252_v3  ;;  %20639 = vmatmul.mubr.f32.vlgmr.msra.gmra.mrb[24].mxu1 %v27317_v36 }
  0xfa   : > { %24085 = vmatpush3.bf16.msra.mxu1 %v27314_v49  ;;  %20676 = vmatprep.mubr.msk.f32.mxu1 %vm26253_vm0, %v26254_v13 }
  0xfb   : > { %24086 = vmatprep.subr.bf16.mxu1 %v26252_v3 }
  0xfc   : > { %24058 = vmatpush3.bf16.msra.mxu0 %v27360_v16 }
  0xfd   : > { %24071 = vmatprep.subr.bf16.mxu0 %v26252_v3 }
  0xfe   : > { %24088 = vmatpush3.bf16.msra.mxu1 %v27338_v42 }
  0xff   : > { %20620 = vmatmul.mubr.f32.vlgmr.msra.gmra.mrb[24].mxu0 %v2605_v37  ;;  %24089 = vmatprep.subr.bf16.mxu1 %v26252_v3  ;;  %v3194_v37 = vsub.f32 %v27484_v20, %v3193_v45 }
 0x100   : > { %24073 = vmatpush3.bf16.msra.mxu0 %v24072_v58  ;;  %20657 = vmatprep.mubr.msk.f32.mxu0 %vm26253_vm0, %v26254_v13 }
 0x101   : > { %24074 = vmatprep.subr.bf16.mxu0 %v26252_v3 }
 0x102   : > { %24091 = vmatpush3.bf16.msra.mxu1 %v27350_v0 }
 0x103   : > { %24092 = vmatprep.subr.bf16.mxu1 %v26252_v3 }
 0x104   : > { %24076 = vmatpush3.bf16.msra.mxu0 %v24075_v19  ;;  %v3207_v19 = vand.u32 4294901760, %v27518_v1 }
 0x105   : > { %24077 = vmatprep.subr.bf16.mxu0 %v26252_v3 }
 0x106   : > { %24094 = vmatpush3.bf16.msra.mxu1 %v27360_v16 }
 0x107   : > { %24107 = vmatprep.subr.bf16.mxu1 %v26252_v3 }
 0x108   : > { %24079 = vmatpush3.bf16.msra.mxu0 %v24078_v31  ;;  %v3195_v31 = vand.u32 4294901760, %v3194_v37  ;;  %v3637_v37 = vand.u32 4294901760, %v27631_v62 }
 0x109   : > { %24080 = vmatprep.subr.bf16.mxu0 %v26252_v3  ;;  %20677 = vmatmul.mubr.f32.vlgmr.msra.gmra.mrb[26].mxu1 %v2603_v40  ;;  %v3200_v40 = vand.u32 4294901760, %v27494_v57 }
 0x10a   : > { %24109 = vmatpush3.bf16.msra.mxu1 %v27314_v49  ;;  %20714 = vmatprep.mubr.msk.f32.mxu1 %vm26253_vm0, %v26254_v13  ;;  %v3186_v49 = vand.u32 4294901760, %v27449_v23 }
 0x10b   : > { %24110 = vmatprep.subr.bf16.mxu1 %v26252_v3  ;;  %v3201_v58 = vsub.f32 %v27494_v57, %v3200_v40 }
 0x10c   : > { %24082 = vmatpush3.bf16.msra.mxu0 %v24081_v54  ;;  %v526_v22 = vpop.f32.mrb[0].mxu1  ;;  %v3187_v60 = vsub.f32 %v27449_v23, %v3186_v49 }
 0x10d   : > { %24095 = vmatprep.subr.bf16.mxu0 %v26252_v3  ;;  %v20184_v34 = vpop.f32.mrb[1].mxu1  ;;  %v3202_v54 = vand.u32 4294901760, %v3201_v58 }
 0x10e   : > { %24112 = vmatpush3.bf16.msra.mxu1 %v27338_v42  ;;  %v3180_v42 = vsub.f32 %v27444_v15, %v3179_v8  ;;  %v3216_v34 = vand.u32 4294901760, %v3215_v61  ;;  %v27672_v61 = vsub.f32 %v27631_v62, %v3637_v37 }
 0x10f   : > { %20658 = vmatmul.mubr.f32.vlgmr.msra.gmra.mrb[26].mxu0 %v27331_v35  ;;  %24113 = vmatprep.subr.bf16.mxu1 %v26252_v3  ;;  %v24138_v44 = vpack.c.bf16 %v3202_v54, %v3195_v31  ;;  %v27665_v31 = vld [vmem:[%s33596_s1 + $0x1a8] sm:$0xff] }
 0x110   : > { %24097 = vmatpush3.bf16.msra.mxu0 %v24096_v52  ;;  %20695 = vmatprep.mubr.msk.f32.mxu0 %vm26253_vm0, %v26254_v13  ;;  %v3181_v27 = vand.u32 4294901760, %v3180_v42  ;;  %v3208_v52 = vsub.f32 %v27518_v1, %v3207_v19 }
 0x111   : > { %24098 = vmatprep.subr.bf16.mxu0 %v26252_v3 }
 0x112   : > { %v415_v35 = vpop.f32.mrb[0].mxu0  ;;  %24115 = vmatpush3.bf16.msra.mxu1 %v27350_v0  ;;  %v3188_v0 = vand.u32 4294901760, %v3187_v60  ;;  %v3209_v39 = vand.u32 4294901760, %v3208_v52 }
 0x113   : > { %v20165_v32 = vpop.f32.mrb[1].mxu0  ;;  %v527_v48 = vadd.f32 %v526_v22, %v415_v35  ;;  %24116 = vmatprep.subr.bf16.mxu1 %v26252_v3  ;;  %v27571_v22 = vpack.c.bf16 %v3089_v33, %v3086_v55 }
 0x114   : > { %24100 = vmatpush3.bf16.msra.mxu0 %v24099_v56  ;;  %v24135_v47 = vpack.c.bf16 %v3188_v0, %v3181_v27  ;;  %v24141_v55 = vpack.c.bf16 %v3216_v34, %v3209_v39  ;;  %v3631_v32 = vand.u32 4294901760, %v27609_v53  ;;  %v3646_v39 = vand.u32 4294901760, %v27665_v31  ;;  %v27691_v34 = vld [vmem:[%s33596_s1 + $0x1b0] sm:$0xff] }
 0x115   : > { %24101 = vmatprep.subr.bf16.mxu0 %v26252_v3 }
 0x116   : > { %24118 = vmatpush3.bf16.msra.mxu1 %v27360_v16  ;;  %v27550_v16 = vand.u32 4294901760, %v3077_v10  ;;  %v27643_v27 = vsub.f32 %v27609_v53, %v3631_v32 }
 0x117   : > { %24131 = vmatprep.subr.bf16.mxu1 %v26252_v3 }
 0x118   : > { %24103 = vmatpush3.bf16.msra.mxu0 %v24102_v14  ;;  %v27564_v30 = vsub.f32 %v3077_v10, %v27550_v16  ;;  %v24150_v14 = vpack.c.bf16 %v27494_v57, %v27484_v20  ;;  %v24153_v10 = vpack.c.bf16 %v27523_v5, %v27518_v1  ;;  %v3716_v54 = vand.u32 4294901760, %v27643_v27  ;;  %v3617_v20 = vld [vmem:[#allocation2 + $0x6] sm:$0xff] }
 0x119   : > { %24104 = vmatprep.subr.bf16.mxu0 %v26252_v3  ;;  %20715 = vmatmul.mubr.f32.vlgmr.msra.gmra.mrb[28].mxu1 %v27317_v36  ;;  %v24177_v57 = vpack.c.bf16 %v3214_v9, %v3207_v19  ;;  %v3628_v5 = vsel %vm293_vm1, %v3617_v20, 0  ;;  %v27859_v20 = vld [vmem:[%s33596_s1 + $0x210] sm:$0xff] }
 0x11a   : > { %24133 = vmatpush3.bf16.msra.mxu1 %v24132_v6  ;;  %20752 = vmatprep.mubr.msk.f32.mxu1 %vm26253_vm0, %v26254_v13  ;;  %v3154_v51 = vand.u32 4294901760, %v27564_v30 }
 0x11b   : > { %24134 = vmatprep.subr.bf16.mxu1 %v26252_v3 }
 0x11c   : > { %24106 = vmatpush3.bf16.msra.mxu0 %v24105_v25  ;;  %v695_v38 = vpop.f32.mrb[2].mxu1  ;;  %v3155_v24 = vsub.f32 %v27564_v30, %v3154_v51  ;;  %v27636_v25 = vld [vmem:[%s33596_s1 + $0x198] sm:$0xff] }
 0x11d   : > { %24119 = vmatprep.subr.bf16.mxu0 %v26252_v3  ;;  %v20222_v29 = vpop.f32.mrb[3].mxu1  ;;  %v3640_v58 = vand.u32 4294901760, %v27636_v25 }
 0x11e   : > { %24136 = vmatpush3.bf16.msra.mxu1 %v24135_v47  ;;  %v3156_v28 = vand.u32 4294901760, %v3155_v24  ;;  %v27658_v47 = vld [vmem:[%s33596_s1 + $0x1a0] sm:$0xff] }
 0x11f   : > { %20696 = vmatmul.mubr.f32.vlgmr.msra.gmra.mrb[28].mxu0 %v27317_v36  ;;  %24137 = vmatprep.subr.bf16.mxu1 %v26252_v3  ;;  %v3643_v29 = vand.u32 4294901760, %v27658_v47 }
 0x120   : > { %24121 = vmatpush3.bf16.msra.mxu0 %v27547_v63  ;;  %20733 = vmatprep.mubr.msk.f32.mxu0 %vm26253_vm0, %v26254_v13 }
 0x121   : > { %24122 = vmatprep.subr.bf16.mxu0 %v26252_v3 }
 0x122   : > { %v614_v36 = vpop.f32.mrb[2].mxu0  ;;  %24139 = vmatpush3.bf16.msra.mxu1 %v24138_v44  ;;  %v24168_v44 = vpack.c.bf16 %v3172_v43, %v3165_v41  ;;  %v3717_v41 = vsub.f32 %v27643_v27, %v3716_v54 }
 0x123   : > { %v615_v56 = vadd.f32 %v614_v36, %v527_v48  ;;  %v20203_v35 = vpop.f32.mrb[3].mxu0  ;;  %24140 = vmatprep.subr.bf16.mxu1 %v26252_v3  ;;  %v3634_v48 = vand.u32 4294901760, %v27614_v12  ;;  %v3730_v36 = vand.u32 4294901760, %v27672_v61 }
 0x124   : > { %24124 = vmatpush3.bf16.msra.mxu0 %v27571_v22  ;;  %v27712_v35 = vsub.f32 %v27658_v47, %v3643_v29  ;;  %v3718_v15 = vand.u32 4294901760, %v3717_v41  ;;  %v27799_v41 = vpack.c.bf16 %v3640_v58, %v3637_v37 }
 0x125   : > { %v696_v33 = vadd.f32 %v695_v38, %v615_v56  ;;  %24125 = vmatprep.subr.bf16.mxu0 %v26252_v3  ;;  %v27648_v0 = vsub.f32 %v27614_v12, %v3634_v48  ;;  %v27677_v38 = vsub.f32 %v27636_v25, %v3640_v58  ;;  %v27775_v19 = vpack.c.bf16 %v3634_v48, %v3631_v32 }
 0x126   : > { %24142 = vmatpush3.bf16.msra.mxu1 %v24141_v55  ;;  %v3649_v55 = vand.u32 4294901760, %v27691_v34  ;;  %v27811_v25 = vpack.c.bf16 %v3646_v39, %v3643_v29 }
 0x127   : > { %24155 = vmatprep.subr.bf16.mxu1 %v26252_v3  ;;  %v3723_v52 = vand.u32 4294901760, %v27648_v0  ;;  %v3737_v56 = vand.u32 4294901760, %v27677_v38  ;;  %v24216_v29 = vpack.c.bf16 %v27648_v0, %v27643_v27  ;;  %v27926_v27 = vld [vmem:[%s33596_s1 + $0x238] sm:$0xff] }
 0x128   : > { %24127 = vmatpush3.bf16.msra.mxu0 %v27583_v59 }
 0x129   : > { %24128 = vmatprep.subr.bf16.mxu0 %v26252_v3  ;;  %20753 = vmatmul.mubr.f32.vlgmr.msra.gmra.mrb[30].mxu1 %v27550_v16  ;;  %v3724_v43 = vsub.f32 %v27648_v0, %v3723_v52 }
 0x12a   : > { %24157 = vmatpush3.bf16.msra.mxu1 %v27547_v63  ;;  %20790 = vmatprep.mubr.msk.f32.mxu1 %vm26253_vm0, %v26254_v13 }
 0x12b   : > { %24158 = vmatprep.subr.bf16.mxu1 %v26252_v3  ;;  %v3725_v23 = vand.u32 4294901760, %v3724_v43 }
 0x12c   : > { %24130 = vmatpush3.bf16.msra.mxu0 %v27593_v26  ;;  %v869_v17 = vpop.f32.mrb[4].mxu1 }
 0x12d   : > { %24143 = vmatprep.subr.bf16.mxu0 %v26252_v3  ;;  %v20260_v21 = vpop.f32.mrb[5].mxu1 }
 0x12e   : > { %24160 = vmatpush3.bf16.msra.mxu1 %v27571_v22 }
 0x12f   : > { %20734 = vmatmul.mubr.f32.vlgmr.msra.gmra.mrb[30].mxu0 %v3156_v28  ;;  %24161 = vmatprep.subr.bf16.mxu1 %v26252_v3  ;;  %v3738_v28 = vsub.f32 %v27677_v38, %v3737_v56 }
 0x130   : > { %24145 = vmatpush3.bf16.msra.mxu0 %v24144_v50  ;;  %20771 = vmatprep.mubr.msk.f32.mxu0 %vm26253_vm0, %v26254_v13  ;;  %v3744_v50 = vand.u32 4294901760, %v27712_v35 }
 0x131   : > { %24146 = vmatprep.subr.bf16.mxu0 %v26252_v3 }
 0x132   : > { %v790_v11 = vpop.f32.mrb[4].mxu0  ;;  %24163 = vmatpush3.bf16.msra.mxu1 %v27583_v59 }
 0x133   : > { %v791_v42 = vadd.f32 %v790_v11, %v696_v33  ;;  %v20241_v60 = vpop.f32.mrb[5].mxu0  ;;  %24164 = vmatprep.subr.bf16.mxu1 %v26252_v3  ;;  %v3652_v33 = vand.u32 4294901760, %v27696_v2 }
 0x134   : > { %24148 = vmatpush3.bf16.msra.mxu0 %v24147_v18  ;;  %v27746_v18 = vsub.f32 %v27691_v34, %v3649_v55  ;;  %v3745_v60 = vsub.f32 %v27712_v35, %v3744_v50 }
 0x135   : > { %v870_v6 = vadd.f32 %v869_v17, %v791_v42  ;;  %24149 = vmatprep.subr.bf16.mxu0 %v26252_v3  ;;  %v24174_v17 = vpack.c.bf16 %v3200_v40, %v3193_v45  ;;  %v27751_v11 = vsub.f32 %v27696_v2, %v3652_v33  ;;  %v24204_v45 = vpack.c.bf16 %v3725_v23, %v3718_v15  ;;  %v27837_v2 = vld [vmem:[%s33596_s1 + $0x200] sm:$0xff] }
 0x136   : > { %24166 = vmatpush3.bf16.msra.mxu1 %v27593_v26  ;;  %v27821_v47 = vpack.c.bf16 %v3652_v33, %v3649_v55  ;;  %v27842_v55 = vld [vmem:[%s33596_s1 + $0x208] sm:$0xff]  ;;  %v24219_v33 = vpack.c.bf16 %v27677_v38, %v27672_v61 }
 0x137   : > { %24179 = vmatprep.subr.bf16.mxu1 %v26252_v3  ;;  %v3765_v1 = vand.u32 4294901760, %v27751_v11 }
 0x138   : > { %24151 = vmatpush3.bf16.msra.mxu0 %v24150_v14 }
 0x139   : > { %24152 = vmatprep.subr.bf16.mxu0 %v26252_v3  ;;  %20791 = vmatmul.mubr.f32.vlgmr.msra.gmra.mrb[32].mxu1 %v3154_v51  ;;  %v24171_v51 = vpack.c.bf16 %v3186_v49, %v3179_v8  ;;  %v3766_v53 = vsub.f32 %v27751_v11, %v3765_v1 }
 0x13a   : > { %24181 = vmatpush3.bf16.msra.mxu1 %v27547_v63  ;;  %20828 = vmatprep.mubr.msk.f32.mxu1 %vm26253_vm0, %v26254_v13 }
 0x13b   : > { %24182 = vmatprep.subr.bf16.mxu1 %v26252_v3 }
 0x13c   : > { %24154 = vmatpush3.bf16.msra.mxu0 %v24153_v10  ;;  %v1066_v4 = vpop.f32.mrb[6].mxu1  ;;  %v3746_v10 = vand.u32 4294901760, %v3745_v60  ;;  %v4241_v60 = vand.u32 4294901760, %v27859_v20 }
 0x13d   : > { %24167 = vmatprep.subr.bf16.mxu0 %v26252_v3  ;;  %v20298_v63 = vpop.f32.mrb[7].mxu1 }
 0x13e   : > { %24184 = vmatpush3.bf16.msra.mxu1 %v27571_v22  ;;  %v3731_v22 = vsub.f32 %v27672_v61, %v3730_v36 }
 0x13f   : > { %20772 = vmatmul.mubr.f32.vlgmr.msra.gmra.mrb[32].mxu0 %v27564_v30  ;;  %v27722_v30 = vsub.f32 %v27665_v31, %v3646_v39  ;;  %24185 = vmatprep.subr.bf16.mxu1 %v26252_v3 }
 0x140   : > { %24169 = vmatpush3.bf16.msra.mxu0 %v24168_v44  ;;  %20809 = vmatprep.mubr.msk.f32.mxu0 %vm26253_vm0, %v26254_v13  ;;  %v3732_v40 = vand.u32 4294901760, %v3731_v22  ;;  %v4238_v22 = vand.u32 4294901760, %v27842_v55 }
 0x141   : > { %24170 = vmatprep.subr.bf16.mxu0 %v26252_v3  ;;  %v3751_v21 = vand.u32 4294901760, %v27722_v30 }
 0x142   : > { %v955_v24 = vpop.f32.mrb[6].mxu0  ;;  %24187 = vmatpush3.bf16.msra.mxu1 %v27583_v59  ;;  %v3739_v59 = vand.u32 4294901760, %v3738_v28 }
 0x143   : > { %v956_v8 = vadd.f32 %v955_v24, %v870_v6  ;;  %v20279_v49 = vpop.f32.mrb[7].mxu0  ;;  %24188 = vmatprep.subr.bf16.mxu1 %v26252_v3  ;;  %v3752_v14 = vsub.f32 %v27722_v30, %v3751_v21  ;;  %v3758_v6 = vand.u32 4294901760, %v27746_v18 }
 0x144   : > { %24172 = vmatpush3.bf16.msra.mxu0 %v24171_v51  ;;  %v24207_v9 = vpack.c.bf16 %v3739_v59, %v3732_v40  ;;  %v3767_v51 = vand.u32 4294901760, %v3766_v53  ;;  %v4235_v49 = vand.u32 4294901760, %v27837_v2  ;;  %v27878_v59 = vsub.f32 %v27842_v55, %v4238_v22 }
 0x145   : > { %v1067_v42 = vadd.f32 %v1066_v4, %v956_v8  ;;  %24173 = vmatprep.subr.bf16.mxu0 %v26252_v3  ;;  %v3753_v44 = vand.u32 4294901760, %v3752_v14  ;;  %v3759_v4 = vsub.f32 %v27746_v18, %v3758_v6  ;;  %v27902_v53 = vsub.f32 %v27859_v20, %v4241_v60 }
 0x146   : > { %24190 = vmatpush3.bf16.msra.mxu1 %v27593_v26  ;;  %v27778_v26 = vand.u32 4294901760, %v3628_v5  ;;  %v27873_v40 = vsub.f32 %v27837_v2, %v4235_v49 }
 0x147   : > { %24203 = vmatprep.subr.bf16.mxu1 %v26252_v3  ;;  %v24210_v43 = vpack.c.bf16 %v3753_v44, %v3746_v10  ;;  %v3760_v63 = vand.u32 4294901760, %v3759_v4  ;;  %v27895_v10 = vld [vmem:[%s33596_s1 + $0x228] sm:$0xff]  ;;  %v4327_v4 = vand.u32 4294901760, %v27878_v59 }
 0x148   : > { %24175 = vmatpush3.bf16.msra.mxu0 %v24174_v17  ;;  %v27792_v48 = vsub.f32 %v3628_v5, %v27778_v26  ;;  %v24225_v5 = vpack.c.bf16 %v27751_v11, %v27746_v18  ;;  %v4320_v44 = vand.u32 4294901760, %v27873_v40 }
 0x149   : > { %24176 = vmatprep.subr.bf16.mxu0 %v26252_v3  ;;  %20829 = vmatmul.mubr.f32.vlgmr.msra.gmra.mrb[34].mxu1 %v27550_v16  ;;  %v24213_v37 = vpack.c.bf16 %v3767_v51, %v3760_v63  ;;  %v4250_v63 = vand.u32 4294901760, %v27895_v10  ;;  %v27921_v51 = vld [vmem:[%s33596_s1 + $0x230] sm:$0xff] }
 0x14a   : > { %24205 = vmatpush3.bf16.msra.mxu1 %v24204_v45  ;;  %20866 = vmatprep.mubr.msk.f32.mxu1 %vm26253_vm0, %v26254_v13  ;;  %v3705_v62 = vand.u32 4294901760, %v27792_v48 }
 0x14b   : > { %24206 = vmatprep.subr.bf16.mxu1 %v26252_v3 }
 0x14c   : > { %24178 = vmatpush3.bf16.msra.mxu0 %v24177_v57  ;;  %v1235_v12 = vpop.f32.mrb[8].mxu1  ;;  %v3706_v23 = vsub.f32 %v27792_v48, %v3705_v62  ;;  %v27864_v57 = vld [vmem:[%s33596_s1 + $0x218] sm:$0xff] }
 0x14d   : > { %24191 = vmatprep.subr.bf16.mxu0 %v26252_v3  ;;  %v20336_v32 = vpop.f32.mrb[9].mxu1  ;;  %v4244_v14 = vand.u32 4294901760, %v27864_v57 }
 0x14e   : > { %24208 = vmatpush3.bf16.msra.mxu1 %v24207_v9  ;;  %v3707_v31 = vand.u32 4294901760, %v3706_v23  ;;  %v27888_v9 = vld [vmem:[%s33596_s1 + $0x220] sm:$0xff] }
 0x14f   : > { %20810 = vmatmul.mubr.f32.vlgmr.msra.gmra.mrb[34].mxu0 %v27550_v16  ;;  %24209 = vmatprep.subr.bf16.mxu1 %v26252_v3  ;;  %v4247_v32 = vand.u32 4294901760, %v27888_v9 }
 0x150   : > { %24193 = vmatpush3.bf16.msra.mxu0 %v27775_v19  ;;  %20847 = vmatprep.mubr.msk.f32.mxu0 %vm26253_vm0, %v26254_v13 }
 0x151   : > { %24194 = vmatprep.subr.bf16.mxu0 %v26252_v3 }
 0x152   : > { %v1154_v16 = vpop.f32.mrb[8].mxu0  ;;  %24211 = vmatpush3.bf16.msra.mxu1 %v24210_v43  ;;  %v24240_v43 = vpack.c.bf16 %v3723_v52, %v3716_v54  ;;  %v4321_v54 = vsub.f32 %v27873_v40, %v4320_v44  ;;  %v4328_v52 = vsub.f32 %v27878_v59, %v4327_v4 }
 0x153   : > { %v1155_v24 = vadd.f32 %v1154_v16, %v1067_v42  ;;  %v20317_v15 = vpop.f32.mrb[9].mxu0  ;;  %24212 = vmatprep.subr.bf16.mxu1 %v26252_v3  ;;  %v24222_v42 = vpack.c.bf16 %v27722_v30, %v27712_v35  ;;  %v4334_v16 = vand.u32 4294901760, %v27902_v53  ;;  %v4221_v35 = vld [vmem:[#allocation2 + $0x11] sm:$0xff]  ;;  %v24249_v30 = vpack.c.bf16 %v3765_v1, %v3758_v6 }
 0x154   : > { %24196 = vmatpush3.bf16.msra.mxu0 %v27799_v41  ;;  %v27942_v15 = vsub.f32 %v27888_v9, %v4247_v32  ;;  %v4322_v61 = vand.u32 4294901760, %v4321_v54  ;;  %v4329_v38 = vand.u32 4294901760, %v4328_v52  ;;  %v4232_v11 = vsel %vm293_vm1, %v4221_v35, 0 }
 0x155   : > { %v1236_v58 = vadd.f32 %v1235_v12, %v1155_v24  ;;  %24197 = vmatprep.subr.bf16.mxu0 %v26252_v3  ;;  %v27907_v12 = vsub.f32 %v27864_v57, %v4244_v14  ;;  %v28005_v6 = vpack.c.bf16 %v4238_v22, %v4235_v49  ;;  %v28029_v54 = vpack.c.bf16 %v4244_v14, %v4241_v60 }
 0x156   : > { %24214 = vmatpush3.bf16.msra.mxu1 %v24213_v37  ;;  %v4253_v37 = vand.u32 4294901760, %v27921_v51  ;;  %v28041_v57 = vpack.c.bf16 %v4250_v63, %v4247_v32  ;;  %v24288_v32 = vpack.c.bf16 %v27878_v59, %v27873_v40  ;;  %v28157_v40 = vld [vmem:[%s33596_s1 + $0x1f8] sm:$0xff] }
 0x157   : > { %24227 = vmatprep.subr.bf16.mxu1 %v26252_v3  ;;  %v4341_v24 = vand.u32 4294901760, %v27907_v12 }
 0x158   : > { %24199 = vmatpush3.bf16.msra.mxu0 %v27811_v25 }
 0x159   : > { %24200 = vmatprep.subr.bf16.mxu0 %v26252_v3  ;;  %20867 = vmatmul.mubr.f32.vlgmr.msra.gmra.mrb[36].mxu1 %v27778_v26 }
 0x15a   : > { %24229 = vmatpush3.bf16.msra.mxu1 %v27775_v19  ;;  %20904 = vmatprep.mubr.msk.f32.mxu1 %vm26253_vm0, %v26254_v13 }
 0x15b   : > { %24230 = vmatprep.subr.bf16.mxu1 %v26252_v3 }
 0x15c   : > { %24202 = vmatpush3.bf16.msra.mxu0 %v27821_v47  ;;  %v1409_v39 = vpop.f32.mrb[10].mxu1 }
 0x15d   : > { %24215 = vmatprep.subr.bf16.mxu0 %v26252_v3  ;;  %v20374_v34 = vpop.f32.mrb[11].mxu1 }
 0x15e   : > { %24232 = vmatpush3.bf16.msra.mxu1 %v27799_v41 }
 0x15f   : > { %20848 = vmatmul.mubr.f32.vlgmr.msra.gmra.mrb[36].mxu0 %v3707_v31  ;;  %24233 = vmatprep.subr.bf16.mxu1 %v26252_v3  ;;  %v4342_v31 = vsub.f32 %v27907_v12, %v4341_v24 }
 0x160   : > { %24217 = vmatpush3.bf16.msra.mxu0 %v24216_v29  ;;  %20885 = vmatprep.mubr.msk.f32.mxu0 %vm26253_vm0, %v26254_v13  ;;  %v4348_v29 = vand.u32 4294901760, %v27942_v15 }
 0x161   : > { %24218 = vmatprep.subr.bf16.mxu0 %v26252_v3 }
 0x162   : > { %v1330_v8 = vpop.f32.mrb[10].mxu0  ;;  %24235 = vmatpush3.bf16.msra.mxu1 %v27811_v25 }
 0x163   : > { %v1331_v28 = vadd.f32 %v1330_v8, %v1236_v58  ;;  %v20355_v17 = vpop.f32.mrb[11].mxu0  ;;  %24236 = vmatprep.subr.bf16.mxu1 %v26252_v3  ;;  %v4256_v58 = vand.u32 4294901760, %v27926_v27 }
 0x164   : > { %24220 = vmatpush3.bf16.msra.mxu0 %v24219_v33  ;;  %v27976_v33 = vsub.f32 %v27921_v51, %v4253_v37 }
 0x165   : > { %v27866_v45 = vadd.f32 %v1409_v39, %v1331_v28  ;;  %24221 = vmatprep.subr.bf16.mxu0 %v26252_v3  ;;  %v24246_v39 = vpack.c.bf16 %v3751_v21, %v3744_v50  ;;  %v27981_v8 = vsub.f32 %v27926_v27, %v4256_v58  ;;  %v24276_v50 = vpack.c.bf16 %v4329_v38, %v4322_v61  ;;  %v28067_v27 = vld [vmem:[%s33596_s1 + $0x1c0] sm:$0xff] }
 0x166   : > { %24238 = vmatpush3.bf16.msra.mxu1 %v27821_v47  ;;  %v4349_v28 = vsub.f32 %v27942_v15, %v4348_v29  ;;  %v28051_v9 = vpack.c.bf16 %v4256_v58, %v4253_v37  ;;  %v24291_v37 = vpack.c.bf16 %v27907_v12, %v27902_v53  ;;  %v28075_v58 = vld [vmem:[%s33596_s1 + $0x1c8] sm:$0xff] }
 0x167   : > { %24251 = vmatprep.subr.bf16.mxu1 %v26252_v3  ;;  %v4369_v18 = vand.u32 4294901760, %v27981_v8 }
 0x168   : > { %24223 = vmatpush3.bf16.msra.mxu0 %v24222_v42  ;;  %v4362_v42 = vand.u32 4294901760, %v27976_v33 }
 0x169   : > { %24224 = vmatprep.subr.bf16.mxu0 %v26252_v3  ;;  %20905 = vmatmul.mubr.f32.vlgmr.msra.gmra.mrb[38].mxu1 %v3705_v62  ;;  %v24243_v62 = vpack.c.bf16 %v3737_v56, %v3730_v36  ;;  %v4370_v2 = vsub.f32 %v27981_v8, %v4369_v18 }
 0x16a   : > { %24253 = vmatpush3.bf16.msra.mxu1 %v27775_v19  ;;  %20942 = vmatprep.mubr.msk.f32.mxu1 %vm26253_vm0, %v26254_v13 }
 0x16b   : > { %24254 = vmatprep.subr.bf16.mxu1 %v26252_v3 }
 0x16c   : > { %24226 = vmatpush3.bf16.msra.mxu0 %v24225_v5  ;;  %v1616_v0 = vpop.f32.mrb[12].mxu1  ;;  %v4350_v5 = vand.u32 4294901760, %v4349_v28 }
 0x16d   : > { %24239 = vmatprep.subr.bf16.mxu0 %v26252_v3  ;;  %v20412_v19 = vpop.f32.mrb[13].mxu1 }
 0x16e   : > { %24256 = vmatpush3.bf16.msra.mxu1 %v27799_v41  ;;  %v4335_v41 = vsub.f32 %v27902_v53, %v4334_v16 }
 0x16f   : > { %20886 = vmatmul.mubr.f32.vlgmr.msra.gmra.mrb[38].mxu0 %v27792_v48  ;;  %v27952_v48 = vsub.f32 %v27895_v10, %v4250_v63  ;;  %24257 = vmatprep.subr.bf16.mxu1 %v26252_v3 }
 0x170   : > { %24241 = vmatpush3.bf16.msra.mxu0 %v24240_v43  ;;  %20923 = vmatprep.mubr.msk.f32.mxu0 %vm26253_vm0, %v26254_v13  ;;  %v4336_v21 = vand.u32 4294901760, %v4335_v41 }
 0x171   : > { %24242 = vmatprep.subr.bf16.mxu0 %v26252_v3  ;;  %v4355_v34 = vand.u32 4294901760, %v27952_v48  ;;  %v24294_v35 = vpack.c.bf16 %v27952_v48, %v27942_v15 }
 0x172   : > { %v1505_v23 = vpop.f32.mrb[12].mxu0  ;;  %24259 = vmatpush3.bf16.msra.mxu1 %v27811_v25  ;;  %v4343_v25 = vand.u32 4294901760, %v4342_v31 }
 0x173   : > { %v20393_v36 = vpop.f32.mrb[13].mxu0  ;;  %v1617_v56 = vadd.f32 %v1616_v0, %v1505_v23  ;;  %24260 = vmatprep.subr.bf16.mxu1 %v26252_v3  ;;  %v4356_v17 = vsub.f32 %v27952_v48, %v4355_v34  ;;  %v4363_v0 = vsub.f32 %v27976_v33, %v4362_v42 }
 0x174   : > { %24244 = vmatpush3.bf16.msra.mxu0 %v24243_v62  ;;  %v24279_v1 = vpack.c.bf16 %v4343_v25, %v4336_v21  ;;  %v4371_v62 = vand.u32 4294901760, %v4370_v2 }
 0x175   : > { %24245 = vmatprep.subr.bf16.mxu0 %v26252_v3  ;;  %v4357_v43 = vand.u32 4294901760, %v4356_v17  ;;  %v4364_v19 = vand.u32 4294901760, %v4363_v0 }
 0x176   : > { %24262 = vmatpush3.bf16.msra.mxu1 %v27821_v47  ;;  %v28008_v47 = vand.u32 4294901760, %v4232_v11 }
 0x177   : > { %24275 = vmatprep.subr.bf16.mxu1 %v26252_v3  ;;  %v24282_v52 = vpack.c.bf16 %v4357_v43, %v4350_v5  ;;  %v24285_v60 = vpack.c.bf16 %v4371_v62, %v4364_v19  ;;  %v24297_v5 = vpack.c.bf16 %v27981_v8, %v27976_v33  ;;  %v28126_v43 = vld [vmem:[%s33596_s1 + $0x1e8] sm:$0xff] }
 0x178   : > { %24247 = vmatpush3.bf16.msra.mxu0 %v24246_v39  ;;  %v28022_v22 = vsub.f32 %v4232_v11, %v28008_v47  ;;  %v4778_v39 = vand.u32 4294901760, %v28075_v58  ;;  %v4790_v62 = vand.u32 4294901760, %v28126_v43 }
 0x179   : > { %24248 = vmatprep.subr.bf16.mxu0 %v26252_v3  ;;  %20943 = vmatmul.mubr.f32.vlgmr.msra.gmra.mrb[40].mxu1 %v27778_v26 }
 0x17a   : > { %24277 = vmatpush3.bf16.msra.mxu1 %v24276_v50  ;;  %20980 = vmatprep.mubr.msk.f32.mxu1 %vm26253_vm0, %v26254_v13  ;;  %v4309_v20 = vand.u32 4294901760, %v28022_v22  ;;  %v28094_v50 = vld [vmem:[%s33596_s1 + $0x1d8] sm:$0xff]  ;;  %v28109_v17 = vsub.f32 %v28075_v58, %v4778_v39  ;;  %v28183_v53 = vsub.f32 %v28126_v43, %v4790_v62 }
 0x17b   : > { %24278 = vmatprep.subr.bf16.mxu1 %v26252_v3 }
 0x17c   : > { %24250 = vmatpush3.bf16.msra.mxu0 %v24249_v30  ;;  %v1785_v55 = vpop.f32.mrb[14].mxu1  ;;  %v4310_v38 = vsub.f32 %v28022_v22, %v4309_v20  ;;  %v28089_v30 = vld [vmem:[%s33596_s1 + $0x1d0] sm:$0xff]  ;;  %v4867_v2 = vand.u32 4294901760, %v28109_v17  ;;  %v4895_v48 = vand.u32 4294901760, %v28183_v53 }
 0x17d   : > { %24263 = vmatprep.subr.bf16.mxu0 %v26252_v3  ;;  %v20450_v49 = vpop.f32.mrb[15].mxu1  ;;  %v4781_v11 = vand.u32 4294901760, %v28089_v30 }
 0x17e   : > { %24280 = vmatpush3.bf16.msra.mxu1 %v24279_v1  ;;  %v4311_v10 = vand.u32 4294901760, %v4310_v38  ;;  %v4784_v1 = vand.u32 4294901760, %v28094_v50 }
 0x17f   : > { %20924 = vmatmul.mubr.f32.vlgmr.msra.gmra.mrb[40].mxu0 %v27778_v26  ;;  %24281 = vmatprep.subr.bf16.mxu1 %v26252_v3 }
 0x180   : > { %24265 = vmatpush3.bf16.msra.mxu0 %v28005_v6  ;;  %20961 = vmatprep.mubr.msk.f32.mxu0 %vm26253_vm0, %v26254_v13  ;;  %v28138_v49 = vsub.f32 %v28094_v50, %v4784_v1 }
 0x181   : > { %24266 = vmatprep.subr.bf16.mxu0 %v26252_v3 }
 0x182   : > { %v1704_v26 = vpop.f32.mrb[14].mxu0  ;;  %24283 = vmatpush3.bf16.msra.mxu1 %v24282_v52  ;;  %v24312_v52 = vpack.c.bf16 %v4327_v4, %v4320_v44  ;;  %v24315_v4 = vpack.c.bf16 %v4341_v24, %v4334_v16  ;;  %v4796_v16 = vand.u32 4294901760, %v28157_v40 }
 0x183   : > { %v1705_v23 = vadd.f32 %v1704_v26, %v1617_v56  ;;  %v20431_v61 = vpop.f32.mrb[15].mxu0  ;;  %24284 = vmatprep.subr.bf16.mxu1 %v26252_v3  ;;  %v4775_v56 = vand.u32 4294901760, %v28067_v27  ;;  %v28152_v26 = vld [vmem:[%s33596_s1 + $0x1f0] sm:$0xff] }
 0x184   : > { %24268 = vmatpush3.bf16.msra.mxu0 %v28029_v54  ;;  %v4793_v12 = vand.u32 4294901760, %v28152_v26 }
 0x185   : > { %v1786_v14 = vadd.f32 %v1785_v55, %v1705_v23  ;;  %24269 = vmatprep.subr.bf16.mxu0 %v26252_v3  ;;  %v28101_v25 = vsub.f32 %v28067_v27, %v4775_v56  ;;  %v28133_v55 = vsub.f32 %v28089_v30, %v4781_v11  ;;  %v4868_v23 = vsub.f32 %v28109_v17, %v4867_v2 }
 0x186   : > { %24286 = vmatpush3.bf16.msra.mxu1 %v24285_v60 }
 0x187   : > { %24299 = vmatprep.subr.bf16.mxu1 %v26252_v3  ;;  %v4860_v0 = vand.u32 4294901760, %v28101_v25  ;;  %v4874_v61 = vand.u32 4294901760, %v28133_v55 }
 0x188   : > { %24271 = vmatpush3.bf16.msra.mxu0 %v28041_v57 }
 0x189   : > { %24272 = vmatprep.subr.bf16.mxu0 %v26252_v3  ;;  %20981 = vmatmul.mubr.f32.vlgmr.msra.gmra.mrb[42].mxu1 %v28008_v47  ;;  %v4861_v44 = vsub.f32 %v28101_v25, %v4860_v0 }
 0x18a   : > { %24301 = vmatpush3.bf16.msra.mxu1 %v28005_v6  ;;  %21018 = vmatprep.mubr.msk.f32.mxu1 %vm26253_vm0, %v26254_v13 }
 0x18b   : > { %24302 = vmatprep.subr.bf16.mxu1 %v26252_v3  ;;  %v4862_v60 = vand.u32 4294901760, %v4861_v44  ;;  %v28260_v44 = vpack.c.bf16 %v4784_v1, %v4781_v11 }
 0x18c   : > { %24274 = vmatpush3.bf16.msra.mxu0 %v28051_v9  ;;  %v1959_v63 = vpop.f32.mrb[16].mxu1 }
 0x18d   : > { %24287 = vmatprep.subr.bf16.mxu0 %v26252_v3  ;;  %v20488_v51 = vpop.f32.mrb[17].mxu1 }
 0x18e   : > { %24304 = vmatpush3.bf16.msra.mxu1 %v28029_v54  ;;  %v4211_v51 = vld [vmem:[#allocation2 + $0x10] sm:$0xff] }
 0x18f   : > { %20962 = vmatmul.mubr.f32.vlgmr.msra.gmra.mrb[42].mxu0 %v4311_v10  ;;  %24305 = vmatprep.subr.bf16.mxu1 %v26252_v3  ;;  %v4869_v10 = vand.u32 4294901760, %v4868_v23 }
 0x190   : > { %24289 = vmatpush3.bf16.msra.mxu0 %v24288_v32  ;;  %20999 = vmatprep.mubr.msk.f32.mxu0 %vm26253_vm0, %v26254_v13  ;;  %v4875_v32 = vsub.f32 %v28133_v55, %v4874_v61 }
 0x191   : > { %24290 = vmatprep.subr.bf16.mxu0 %v26252_v3 }
 0x192   : > { %v1880_v36 = vpop.f32.mrb[16].mxu0  ;;  %24307 = vmatpush3.bf16.msra.mxu1 %v28041_v57 }
 0x193   : > { %v1881_v41 = vadd.f32 %v1880_v36, %v1786_v14  ;;  %v20469_v31 = vpop.f32.mrb[17].mxu0  ;;  %24308 = vmatprep.subr.bf16.mxu1 %v26252_v3  ;;  %v4876_v36 = vand.u32 4294901760, %v4875_v32 }
 0x194   : > { %24292 = vmatpush3.bf16.msra.mxu0 %v24291_v37  ;;  %v24348_v37 = vpack.c.bf16 %v4869_v10, %v4862_v60  ;;  %v4772_v31 = vsel %vm293_vm1, %v4211_v51, 0 }
 0x195   : > { %v1960_v21 = vadd.f32 %v1959_v63, %v1881_v41  ;;  %24293 = vmatprep.subr.bf16.mxu0 %v26252_v3 }
 0x196   : > { %24310 = vmatpush3.bf16.msra.mxu1 %v28051_v9 }
 0x197   : > { %v28104_v28 = vadd.f32 %v1960_v21, %v27866_v45  ;;  %24323 = vmatprep.subr.bf16.mxu1 %v26252_v3  ;;  %v28121_v45 = vld [vmem:[%s33596_s1 + $0x1e0] sm:$0xff]  ;;  %v4896_v21 = vsub.f32 %v28183_v53, %v4895_v48 }
 0x198   : > { %24295 = vmatpush3.bf16.msra.mxu0 %v24294_v35  ;;  %v4787_v19 = vand.u32 4294901760, %v28121_v45 }
 0x199   : > { %24296 = vmatprep.subr.bf16.mxu0 %v26252_v3  ;;  %21019 = vmatmul.mubr.f32.vlgmr.msra.gmra.mrb[44].mxu1 %v4309_v20  ;;  %v4881_v20 = vand.u32 4294901760, %v28138_v49 }
 0x19a   : > { %24325 = vmatpush3.bf16.msra.mxu1 %v28005_v6  ;;  %21056 = vmatprep.mubr.msk.f32.mxu1 %vm26253_vm0, %v26254_v13  ;;  %v28272_v50 = vpack.c.bf16 %v4790_v62, %v4787_v19 }
 0x19b   : > { %24326 = vmatprep.subr.bf16.mxu1 %v26252_v3  ;;  %v4882_v63 = vsub.f32 %v28138_v49, %v4881_v20 }
 0x19c   : > { %24298 = vmatpush3.bf16.msra.mxu0 %v24297_v5  ;;  %v2167_v59 = vpop.f32.mrb[18].mxu1 }
 0x19d   : > { %24311 = vmatprep.subr.bf16.mxu0 %v26252_v3  ;;  %v20526_v6 = vpop.f32.mrb[19].mxu1  ;;  %v4883_v41 = vand.u32 4294901760, %v4882_v63 }
 0x19e   : > { %24328 = vmatpush3.bf16.msra.mxu1 %v28029_v54  ;;  %v24318_v54 = vpack.c.bf16 %v4355_v34, %v4348_v29  ;;  %v28207_v29 = vsub.f32 %v28152_v26, %v4793_v12  ;;  %v28212_v34 = vsub.f32 %v28157_v40, %v4796_v16  ;;  %v28298_v40 = vld [vmem:[%s33596_s1 + $0x240] sm:$0xff] }
 0x19f   : > { %21000 = vmatmul.mubr.f32.vlgmr.msra.gmra.mrb[44].mxu0 %v28022_v22  ;;  %v28178_v22 = vsub.f32 %v28121_v45, %v4787_v19  ;;  %24329 = vmatprep.subr.bf16.mxu1 %v26252_v3  ;;  %v28282_v45 = vpack.c.bf16 %v4796_v16, %v4793_v12  ;;  %v24360_v19 = vpack.c.bf16 %v28109_v17, %v28101_v25  ;;  %v28303_v12 = vld [vmem:[%s33596_s1 + $0x248] sm:$0xff]  ;;  %v28388_v25 = vld [vmem:[%s33596_s1 + $0x278] sm:$0xff] }
 0x1a0   : > { %24313 = vmatpush3.bf16.msra.mxu0 %v24312_v52  ;;  %21037 = vmatprep.mubr.msk.f32.mxu0 %vm26253_vm0, %v26254_v13  ;;  %v4902_v33 = vand.u32 4294901760, %v28207_v29  ;;  %v4909_v8 = vand.u32 4294901760, %v28212_v34  ;;  %v4897_v52 = vand.u32 4294901760, %v4896_v21  ;;  %v24363_v16 = vpack.c.bf16 %v28138_v49, %v28133_v55 }
 0x1a1   : > { %24314 = vmatprep.subr.bf16.mxu0 %v26252_v3  ;;  %v4888_v15 = vand.u32 4294901760, %v28178_v22  ;;  %v5328_v10 = vand.u32 4294901760, %v28303_v12  ;;  %v24366_v51 = vpack.c.bf16 %v28183_v53, %v28178_v22 }
 0x1a2   : > { %v2056_v24 = vpop.f32.mrb[18].mxu0  ;;  %24331 = vmatpush3.bf16.msra.mxu1 %v28041_v57  ;;  %v24321_v57 = vpack.c.bf16 %v4369_v18, %v4362_v42  ;;  %v28236_v42 = vpack.c.bf16 %v4778_v39, %v4775_v56  ;;  %v24351_v18 = vpack.c.bf16 %v4883_v41, %v4876_v36  ;;  %v4910_v27 = vsub.f32 %v28212_v34, %v4909_v8 }
 0x1a3   : > { %v20507_v14 = vpop.f32.mrb[19].mxu0  ;;  %v2168_v38 = vadd.f32 %v2167_v59, %v2056_v24  ;;  %24332 = vmatprep.subr.bf16.mxu1 %v26252_v3  ;;  %v4889_v35 = vsub.f32 %v28178_v22, %v4888_v15  ;;  %v4903_v59 = vsub.f32 %v28207_v29, %v4902_v33  ;;  %v5311_v22 = vld [vmem:[#allocation2 + $0x12] sm:$0xff]  ;;  %v24393_v53 = vpack.c.bf16 %v4909_v8, %v4902_v33 }
 0x1a4   : > { %24316 = vmatpush3.bf16.msra.mxu0 %v24315_v4  ;;  %v4911_v23 = vand.u32 4294901760, %v4910_v27 }
 0x1a5   : > { %24317 = vmatprep.subr.bf16.mxu0 %v26252_v3  ;;  %v4890_v5 = vand.u32 4294901760, %v4889_v35  ;;  %v4904_v6 = vand.u32 4294901760, %v4903_v59 }
 0x1a6   : > { %24334 = vmatpush3.bf16.msra.mxu1 %v28051_v9  ;;  %v28239_v9 = vand.u32 4294901760, %v4772_v31 }
 0x1a7   : > { %24347 = vmatprep.subr.bf16.mxu1 %v26252_v3  ;;  %v24354_v4 = vpack.c.bf16 %v4897_v52, %v4890_v5  ;;  %v24357_v11 = vpack.c.bf16 %v4911_v23, %v4904_v6  ;;  %v24369_v5 = vpack.c.bf16 %v28212_v34, %v28207_v29  ;;  %v28350_v52 = vld [vmem:[%s33596_s1 + $0x260] sm:$0xff]  ;;  %v24384_v6 = vpack.c.bf16 %v4867_v2, %v4860_v0 }
 0x1a8   : > { %24319 = vmatpush3.bf16.msra.mxu0 %v24318_v54  ;;  %v28253_v39 = vsub.f32 %v4772_v31, %v28239_v9  ;;  %v28337_v31 = vsub.f32 %v28303_v12, %v5328_v10  ;;  %v5322_v34 = vsel %vm293_vm1, %v5311_v22, 0 }
 0x1a9   : > { %24320 = vmatprep.subr.bf16.mxu0 %v26252_v3  ;;  %21057 = vmatmul.mubr.f32.vlgmr.msra.gmra.mrb[46].mxu1 %v28008_v47 }
 0x1aa   : > { %24349 = vmatpush3.bf16.msra.mxu1 %v24348_v37  ;;  %21094 = vmatprep.mubr.msk.f32.mxu1 %vm26253_vm0, %v26254_v13  ;;  %v4849_v30 = vand.u32 4294901760, %v28253_v39  ;;  %v28325_v37 = vld [vmem:[%s33596_s1 + $0x258] sm:$0xff]  ;;  %v5417_v27 = vand.u32 4294901760, %v28337_v31 }
 0x1ab   : > { %24350 = vmatprep.subr.bf16.mxu1 %v26252_v3 }
 0x1ac   : > { %24322 = vmatpush3.bf16.msra.mxu0 %v24321_v57  ;;  %v2336_v58 = vpop.f32.mrb[20].mxu1  ;;  %v4850_v60 = vsub.f32 %v28253_v39, %v4849_v30  ;;  %v28320_v57 = vld [vmem:[%s33596_s1 + $0x250] sm:$0xff]  ;;  %v5418_v2 = vsub.f32 %v28337_v31, %v5417_v27 }
 0x1ad   : > { %24335 = vmatprep.subr.bf16.mxu0 %v26252_v3  ;;  %v20564_v56 = vpop.f32.mrb[21].mxu1  ;;  %v5331_v21 = vand.u32 4294901760, %v28320_v57 }
 0x1ae   : > { %24352 = vmatpush3.bf16.msra.mxu1 %v24351_v18  ;;  %v4851_v43 = vand.u32 4294901760, %v4850_v60  ;;  %v5334_v18 = vand.u32 4294901760, %v28325_v37  ;;  %v5346_v60 = vand.u32 4294901760, %v28388_v25  ;;  %v5419_v49 = vand.u32 4294901760, %v5418_v2 }
 0x1af   : > { %21038 = vmatmul.mubr.f32.vlgmr.msra.gmra.mrb[46].mxu0 %v28008_v47  ;;  %24353 = vmatprep.subr.bf16.mxu1 %v26252_v3 }
 0x1b0   : > { %24337 = vmatpush3.bf16.msra.mxu0 %v28236_v42  ;;  %21075 = vmatprep.mubr.msk.f32.mxu0 %vm26253_vm0, %v26254_v13  ;;  %v28369_v56 = vsub.f32 %v28325_v37, %v5334_v18 }
 0x1b1   : > { %24338 = vmatprep.subr.bf16.mxu0 %v26252_v3 }
 0x1b2   : > { %v2255_v47 = vpop.f32.mrb[20].mxu0  ;;  %24355 = vmatpush3.bf16.msra.mxu1 %v24354_v4  ;;  %v5337_v4 = vand.u32 4294901760, %v28350_v52 }
 0x1b3   : > { %v2256_v24 = vadd.f32 %v2255_v47, %v2168_v38  ;;  %v20545_v54 = vpop.f32.mrb[21].mxu0  ;;  %24356 = vmatprep.subr.bf16.mxu1 %v26252_v3  ;;  %v5325_v38 = vand.u32 4294901760, %v28298_v40  ;;  %v28383_v47 = vld [vmem:[%s33596_s1 + $0x270] sm:$0xff] }
 0x1b4   : > { %24340 = vmatpush3.bf16.msra.mxu0 %v28260_v44  ;;  %v5431_v54 = vand.u32 4294901760, %v28369_v56 }
 0x1b5   : > { %v2337_v1 = vadd.f32 %v2336_v58, %v2256_v24  ;;  %24341 = vmatprep.subr.bf16.mxu0 %v26252_v3  ;;  %v28332_v41 = vsub.f32 %v28298_v40, %v5325_v38  ;;  %v28364_v58 = vsub.f32 %v28320_v57, %v5331_v21  ;;  %v28467_v33 = vpack.c.bf16 %v5328_v10, %v5325_v38 }
 0x1b6   : > { %24358 = vmatpush3.bf16.msra.mxu1 %v24357_v11  ;;  %v24387_v11 = vpack.c.bf16 %v4881_v20, %v4874_v61 }
 0x1b7   : > { %24371 = vmatprep.subr.bf16.mxu1 %v26252_v3  ;;  %v5410_v59 = vand.u32 4294901760, %v28332_v41  ;;  %v5424_v24 = vand.u32 4294901760, %v28364_v58 }
 0x1b8   : > { %24343 = vmatpush3.bf16.msra.mxu0 %v28272_v50 }
 0x1b9   : > { %24344 = vmatprep.subr.bf16.mxu0 %v26252_v3  ;;  %21095 = vmatmul.mubr.f32.vlgmr.msra.gmra.mrb[48].mxu1 %v28239_v9  ;;  %v5411_v0 = vsub.f32 %v28332_v41, %v5410_v59 }
 0x1ba   : > { %24373 = vmatpush3.bf16.msra.mxu1 %v28236_v42  ;;  %21132 = vmatprep.mubr.msk.f32.mxu1 %vm26253_vm0, %v26254_v13 }
 0x1bb   : > { %24374 = vmatprep.subr.bf16.mxu1 %v26252_v3  ;;  %v5412_v55 = vand.u32 4294901760, %v5411_v0  ;;  %v28491_v0 = vpack.c.bf16 %v5334_v18, %v5331_v21 }
 0x1bc   : > { %24346 = vmatpush3.bf16.msra.mxu0 %v28282_v45  ;;  %v2510_v62 = vpop.f32.mrb[22].mxu1 }
 0x1bd   : > { %24359 = vmatprep.subr.bf16.mxu0 %v26252_v3  ;;  %v20602_v26 = vpop.f32.mrb[23].mxu1 }
 0x1be   : > { %24376 = vmatpush3.bf16.msra.mxu1 %v28260_v44  ;;  %v24390_v26 = vpack.c.bf16 %v4895_v48, %v4888_v15  ;;  %v24420_v15 = vpack.c.bf16 %v5419_v49, %v5412_v55 }
 0x1bf   : > { %21076 = vmatmul.mubr.f32.vlgmr.msra.gmra.mrb[48].mxu0 %v4851_v43  ;;  %24377 = vmatprep.subr.bf16.mxu1 %v26252_v3 }
 0x1c0   : > { %24361 = vmatpush3.bf16.msra.mxu0 %v24360_v19  ;;  %21113 = vmatprep.mubr.msk.f32.mxu0 %vm26253_vm0, %v26254_v13  ;;  %v5432_v19 = vsub.f32 %v28369_v56, %v5431_v54 }
 0x1c1   : > { %24362 = vmatprep.subr.bf16.mxu0 %v26252_v3 }
 0x1c2   : > { %v2431_v14 = vpop.f32.mrb[22].mxu0  ;;  %24379 = vmatpush3.bf16.msra.mxu1 %v28272_v50 }
 0x1c3   : > { %v2432_v32 = vadd.f32 %v2431_v14, %v2337_v1  ;;  %v20583_v63 = vpop.f32.mrb[23].mxu0  ;;  %24380 = vmatprep.subr.bf16.mxu1 %v26252_v3  ;;  %v5343_v1 = vand.u32 4294901760, %v28383_v47 }
 0x1c4   : > { %24364 = vmatpush3.bf16.msra.mxu0 %v24363_v16 }
 0x1c5   : > { %v2511_v36 = vadd.f32 %v2510_v62, %v2432_v32  ;;  %24365 = vmatprep.subr.bf16.mxu0 %v26252_v3  ;;  %v28438_v14 = vsub.f32 %v28383_v47, %v5343_v1  ;;  %v28443_v32 = vsub.f32 %v28388_v25, %v5346_v60  ;;  %v28529_v25 = vld [vmem:[%s33596_s1 + $0x280] sm:$0xff] }
 0x1c6   : > { %24382 = vmatpush3.bf16.msra.mxu1 %v28282_v45 }
 0x1c7   : > { %v28340_v35 = vadd.f32 %v2511_v36, %v28104_v28  ;;  %24395 = vmatprep.subr.bf16.mxu1 %v26252_v3  ;;  %v28357_v28 = vld [vmem:[%s33596_s1 + $0x268] sm:$0xff]  ;;  %v5452_v36 = vand.u32 4294901760, %v28438_v14  ;;  %v5459_v29 = vand.u32 4294901760, %v28443_v32 }
 0x1c8   : > { %24367 = vmatpush3.bf16.msra.mxu0 %v24366_v51  ;;  %v5340_v23 = vand.u32 4294901760, %v28357_v28 }
 0x1c9   : > { %24368 = vmatprep.subr.bf16.mxu0 %v26252_v3  ;;  %21133 = vmatmul.mubr.f32.vlgmr.msra.gmra.mrb[50].mxu1 %v4849_v30  ;;  %v28404_v30 = vsub.f32 %v28350_v52, %v5337_v4  ;;  %v5460_v40 = vsub.f32 %v28443_v32, %v5459_v29  ;;  %v28513_v52 = vpack.c.bf16 %v5346_v60, %v5343_v1  ;;  %v28534_v1 = vld [vmem:[%s33596_s1 + $0x288] sm:$0xff] }
 0x1ca   : > { %24397 = vmatpush3.bf16.msra.mxu1 %v28236_v42  ;;  %21170 = vmatprep.mubr.msk.f32.mxu1 %vm26253_vm0, %v26254_v13  ;;  %v28503_v37 = vpack.c.bf16 %v5340_v23, %v5337_v4  ;;  %v24432_v4 = vpack.c.bf16 %v28337_v31, %v28332_v41  ;;  %v24435_v60 = vpack.c.bf16 %v28369_v56, %v28364_v58  ;;  %v28619_v41 = vld [vmem:[%s33596_s1 + $0x2b8] sm:$0xff] }
 0x1cb   : > { %24398 = vmatprep.subr.bf16.mxu1 %v26252_v3  ;;  %v5438_v62 = vand.u32 4294901760, %v28404_v30 }
 0x1cc   : > { %24370 = vmatpush3.bf16.msra.mxu0 %v24369_v5  ;;  %v2718_v17 = vpop.f32.mrb[24].mxu1 }
 0x1cd   : > { %24383 = vmatprep.subr.bf16.mxu0 %v26252_v3  ;;  %v20640_v42 = vpop.f32.mrb[25].mxu1  ;;  %v5439_v63 = vsub.f32 %v28404_v30, %v5438_v62 }
 0x1ce   : > { %24400 = vmatpush3.bf16.msra.mxu1 %v28260_v44  ;;  %v5425_v44 = vsub.f32 %v28364_v58, %v5424_v24 }
 0x1cf   : > { %21114 = vmatmul.mubr.f32.vlgmr.msra.gmra.mrb[50].mxu0 %v28253_v39  ;;  %v28414_v39 = vsub.f32 %v28357_v28, %v5340_v23  ;;  %24401 = vmatprep.subr.bf16.mxu1 %v26252_v3  ;;  %v5440_v5 = vand.u32 4294901760, %v5439_v63 }
 0x1d0   : > { %24385 = vmatpush3.bf16.msra.mxu0 %v24384_v6  ;;  %21151 = vmatprep.mubr.msk.f32.mxu0 %vm26253_vm0, %v26254_v13  ;;  %v5426_v48 = vand.u32 4294901760, %v5425_v44  ;;  %v5879_v44 = vand.u32 4294901760, %v28534_v1 }
 0x1d1   : > { %24386 = vmatprep.subr.bf16.mxu0 %v26252_v3  ;;  %v5445_v16 = vand.u32 4294901760, %v28414_v39  ;;  %v24438_v22 = vpack.c.bf16 %v28414_v39, %v28404_v30  ;;  %v5862_v30 = vld [vmem:[#allocation2 + $0x13] sm:$0xff] }
 0x1d2   : > { %v2607_v43 = vpop.f32.mrb[24].mxu0  ;;  %24403 = vmatpush3.bf16.msra.mxu1 %v28272_v50  ;;  %v5433_v50 = vand.u32 4294901760, %v5432_v19  ;;  %v28568_v63 = vsub.f32 %v28534_v1, %v5879_v44 }
 0x1d3   : > { %v20621_v61 = vpop.f32.mrb[25].mxu0  ;;  %v2719_v20 = vadd.f32 %v2718_v17, %v2607_v43  ;;  %24404 = vmatprep.subr.bf16.mxu1 %v26252_v3  ;;  %v5446_v51 = vsub.f32 %v28414_v39, %v5445_v16  ;;  %v5453_v17 = vsub.f32 %v28438_v14, %v5452_v36  ;;  %v24465_v39 = vpack.c.bf16 %v5459_v29, %v5452_v36 }
 0x1d4   : > { %24388 = vmatpush3.bf16.msra.mxu0 %v24387_v11  ;;  %v24423_v8 = vpack.c.bf16 %v5433_v50, %v5426_v48  ;;  %v5461_v11 = vand.u32 4294901760, %v5460_v40  ;;  %v5968_v40 = vand.u32 4294901760, %v28568_v63 }
 0x1d5   : > { %24389 = vmatprep.subr.bf16.mxu0 %v26252_v3  ;;  %v5447_v6 = vand.u32 4294901760, %v5446_v51  ;;  %v5454_v42 = vand.u32 4294901760, %v5453_v17 }
 0x1d6   : > { %24406 = vmatpush3.bf16.msra.mxu1 %v28282_v45  ;;  %v28470_v45 = vand.u32 4294901760, %v5322_v34 }
 0x1d7   : > { %24419 = vmatprep.subr.bf16.mxu1 %v26252_v3  ;;  %v24426_v2 = vpack.c.bf16 %v5447_v6, %v5440_v5  ;;  %v24429_v21 = vpack.c.bf16 %v5461_v11, %v5454_v42  ;;  %v24441_v5 = vpack.c.bf16 %v28443_v32, %v28438_v14  ;;  %v28581_v6 = vld [vmem:[%s33596_s1 + $0x2a0] sm:$0xff]  ;;  %v24456_v42 = vpack.c.bf16 %v5417_v27, %v5410_v59 }
 0x1d8   : > { %24391 = vmatpush3.bf16.msra.mxu0 %v24390_v26  ;;  %v28484_v10 = vsub.f32 %v5322_v34, %v28470_v45  ;;  %v5969_v27 = vsub.f32 %v28568_v63, %v5968_v40  ;;  %v5873_v32 = vsel %vm293_vm1, %v5862_v30, 0 }
 0x1d9   : > { %24392 = vmatprep.subr.bf16.mxu0 %v26252_v3  ;;  %21171 = vmatmul.mubr.f32.vlgmr.msra.gmra.mrb[52].mxu1 %v28239_v9 }
 0x1da   : > { %24421 = vmatpush3.bf16.msra.mxu1 %v24420_v15  ;;  %21208 = vmatprep.mubr.msk.f32.mxu1 %vm26253_vm0, %v26254_v13  ;;  %v5399_v57 = vand.u32 4294901760, %v28484_v10  ;;  %v28556_v15 = vld [vmem:[%s33596_s1 + $0x298] sm:$0xff]  ;;  %v5970_v56 = vand.u32 4294901760, %v5969_v27 }
 0x1db   : > { %24422 = vmatprep.subr.bf16.mxu1 %v26252_v3 }
 0x1dc   : > { %24394 = vmatpush3.bf16.msra.mxu0 %v24393_v53  ;;  %v2887_v12 = vpop.f32.mrb[26].mxu1  ;;  %v5400_v49 = vsub.f32 %v28484_v10, %v5399_v57  ;;  %v28551_v53 = vld [vmem:[%s33596_s1 + $0x290] sm:$0xff] }
 0x1dd   : > { %24407 = vmatprep.subr.bf16.mxu0 %v26252_v3  ;;  %v20678_v38 = vpop.f32.mrb[27].mxu1  ;;  %v5882_v34 = vand.u32 4294901760, %v28551_v53 }
 0x1de   : > { %24424 = vmatpush3.bf16.msra.mxu1 %v24423_v8  ;;  %v5401_v28 = vand.u32 4294901760, %v5400_v49  ;;  %v5885_v8 = vand.u32 4294901760, %v28556_v15  ;;  %v5897_v49 = vand.u32 4294901760, %v28619_v41 }
 0x1df   : > { %21152 = vmatmul.mubr.f32.vlgmr.msra.gmra.mrb[52].mxu0 %v28239_v9  ;;  %24425 = vmatprep.subr.bf16.mxu1 %v26252_v3 }
 0x1e0   : > { %24409 = vmatpush3.bf16.msra.mxu0 %v28467_v33  ;;  %21189 = vmatprep.mubr.msk.f32.mxu0 %vm26253_vm0, %v26254_v13  ;;  %v28600_v38 = vsub.f32 %v28556_v15, %v5885_v8 }
 0x1e1   : > { %24410 = vmatprep.subr.bf16.mxu0 %v26252_v3 }
 0x1e2   : > { %v2806_v9 = vpop.f32.mrb[26].mxu0  ;;  %24427 = vmatpush3.bf16.msra.mxu1 %v24426_v2  ;;  %v5888_v2 = vand.u32 4294901760, %v28581_v6 }
 0x1e3   : > { %v2807_v43 = vadd.f32 %v2806_v9, %v2719_v20  ;;  %v20659_v55 = vpop.f32.mrb[27].mxu0  ;;  %24428 = vmatprep.subr.bf16.mxu1 %v26252_v3  ;;  %v5876_v20 = vand.u32 4294901760, %v28529_v25  ;;  %v28614_v9 = vld [vmem:[%s33596_s1 + $0x2b0] sm:$0xff] }
 0x1e4   : > { %24412 = vmatpush3.bf16.msra.mxu0 %v28491_v0  ;;  %v5982_v55 = vand.u32 4294901760, %v28600_v38 }
 0x1e5   : > { %v2888_v18 = vadd.f32 %v2887_v12, %v2807_v43  ;;  %24413 = vmatprep.subr.bf16.mxu0 %v26252_v3  ;;  %v28563_v50 = vsub.f32 %v28529_v25, %v5876_v20  ;;  %v28595_v12 = vsub.f32 %v28551_v53, %v5882_v34  ;;  %v28698_v36 = vpack.c.bf16 %v5879_v44, %v5876_v20 }
 0x1e6   : > { %24430 = vmatpush3.bf16.msra.mxu1 %v24429_v21  ;;  %v24459_v21 = vpack.c.bf16 %v5431_v54, %v5424_v24 }
 0x1e7   : > { %24443 = vmatprep.subr.bf16.mxu1 %v26252_v3  ;;  %v5961_v17 = vand.u32 4294901760, %v28563_v50  ;;  %v5975_v43 = vand.u32 4294901760, %v28595_v12 }
 0x1e8   : > { %24415 = vmatpush3.bf16.msra.mxu0 %v28503_v37 }
 0x1e9   : > { %24416 = vmatprep.subr.bf16.mxu0 %v26252_v3  ;;  %21209 = vmatmul.mubr.f32.vlgmr.msra.gmra.mrb[54].mxu1 %v28470_v45  ;;  %v5962_v59 = vsub.f32 %v28563_v50, %v5961_v17 }
 0x1ea   : > { %24445 = vmatpush3.bf16.msra.mxu1 %v28467_v33  ;;  %21246 = vmatprep.mubr.msk.f32.mxu1 %vm26253_vm0, %v26254_v13 }
 0x1eb   : > { %24446 = vmatprep.subr.bf16.mxu1 %v26252_v3  ;;  %v5963_v58 = vand.u32 4294901760, %v5962_v59  ;;  %v28722_v59 = vpack.c.bf16 %v5885_v8, %v5882_v34 }
 0x1ec   : > { %24418 = vmatpush3.bf16.msra.mxu0 %v28513_v52  ;;  %v3061_v23 = vpop.f32.mrb[28].mxu1 }
 0x1ed   : > { %24431 = vmatprep.subr.bf16.mxu0 %v26252_v3  ;;  %v20716_v47 = vpop.f32.mrb[29].mxu1 }
 0x1ee   : > { %24448 = vmatpush3.bf16.msra.mxu1 %v28491_v0  ;;  %v24462_v47 = vpack.c.bf16 %v5445_v16, %v5438_v62  ;;  %v24492_v62 = vpack.c.bf16 %v5970_v56, %v5963_v58 }
 0x1ef   : > { %21190 = vmatmul.mubr.f32.vlgmr.msra.gmra.mrb[54].mxu0 %v5401_v28  ;;  %24449 = vmatprep.subr.bf16.mxu1 %v26252_v3 }
 0x1f0   : > { %24433 = vmatpush3.bf16.msra.mxu0 %v24432_v4  ;;  %21227 = vmatprep.mubr.msk.f32.mxu0 %vm26253_vm0, %v26254_v13  ;;  %v5983_v4 = vsub.f32 %v28600_v38, %v5982_v55 }
 0x1f1   : > { %24434 = vmatprep.subr.bf16.mxu0 %v26252_v3 }
 0x1f2   : > { %v2982_v61 = vpop.f32.mrb[28].mxu0  ;;  %24451 = vmatpush3.bf16.msra.mxu1 %v28503_v37 }
 0x1f3   : > { %v2983_v19 = vadd.f32 %v2982_v61, %v2888_v18  ;;  %v20697_v26 = vpop.f32.mrb[29].mxu0  ;;  %24452 = vmatprep.subr.bf16.mxu1 %v26252_v3  ;;  %v5894_v18 = vand.u32 4294901760, %v28614_v9 }
 0x1f4   : > { %24436 = vmatpush3.bf16.msra.mxu0 %v24435_v60 }
 0x1f5   : > { %v3062_v48 = vadd.f32 %v3061_v23, %v2983_v19  ;;  %24437 = vmatprep.subr.bf16.mxu0 %v26252_v3  ;;  %v28669_v61 = vsub.f32 %v28614_v9, %v5894_v18  ;;  %v28674_v19 = vsub.f32 %v28619_v41, %v5897_v49  ;;  %v28760_v41 = vld [vmem:[%s33596_s1 + $0x2c0] sm:$0xff] }
 0x1f6   : > { %24454 = vmatpush3.bf16.msra.mxu1 %v28513_v52 }
 0x1f7   : > { %v28571_v51 = vadd.f32 %v3062_v48, %v28340_v35  ;;  %24467 = vmatprep.subr.bf16.mxu1 %v26252_v3  ;;  %v28588_v35 = vld [vmem:[%s33596_s1 + $0x2a8] sm:$0xff]  ;;  %v6003_v48 = vand.u32 4294901760, %v28669_v61  ;;  %v6010_v14 = vand.u32 4294901760, %v28674_v19 }
 0x1f8   : > { %24439 = vmatpush3.bf16.msra.mxu0 %v24438_v22  ;;  %v5891_v11 = vand.u32 4294901760, %v28588_v35 }
 0x1f9   : > { %24440 = vmatprep.subr.bf16.mxu0 %v26252_v3  ;;  %21247 = vmatmul.mubr.f32.vlgmr.msra.gmra.mrb[56].mxu1 %v5399_v57  ;;  %v28635_v57 = vsub.f32 %v28581_v6, %v5888_v2  ;;  %v6011_v25 = vsub.f32 %v28674_v19, %v6010_v14  ;;  %v28744_v6 = vpack.c.bf16 %v5897_v49, %v5894_v18  ;;  %v28765_v18 = vld [vmem:[%s33596_s1 + $0x2c8] sm:$0xff] }
 0x1fa   : > { %24469 = vmatpush3.bf16.msra.mxu1 %v28467_v33  ;;  %21284 = vmatprep.mubr.msk.f32.mxu1 %vm26253_vm0, %v26254_v13  ;;  %v28734_v15 = vpack.c.bf16 %v5891_v11, %v5888_v2  ;;  %v24504_v2 = vpack.c.bf16 %v28568_v63, %v28563_v50  ;;  %v24507_v49 = vpack.c.bf16 %v28600_v38, %v28595_v12  ;;  %v28850_v50 = vld [vmem:[%s33596_s1 + $0x2f8] sm:$0xff] }
 0x1fb   : > { %24470 = vmatprep.subr.bf16.mxu1 %v26252_v3  ;;  %v5989_v23 = vand.u32 4294901760, %v28635_v57 }
 0x1fc   : > { %24442 = vmatpush3.bf16.msra.mxu0 %v24441_v5  ;;  %v3269_v31 = vpop.f32.mrb[30].mxu1 }
 0x1fd   : > { %24455 = vmatprep.subr.bf16.mxu0 %v26252_v3  ;;  %v20754_v33 = vpop.f32.mrb[31].mxu1  ;;  %v5990_v26 = vsub.f32 %v28635_v57, %v5989_v23 }
 0x1fe   : > { %24472 = vmatpush3.bf16.msra.mxu1 %v28491_v0  ;;  %v5976_v0 = vsub.f32 %v28595_v12, %v5975_v43 }
 0x1ff   : > { %21228 = vmatmul.mubr.f32.vlgmr.msra.gmra.mrb[56].mxu0 %v28484_v10  ;;  %v28645_v10 = vsub.f32 %v28588_v35, %v5891_v11  ;;  %24473 = vmatprep.subr.bf16.mxu1 %v26252_v3  ;;  %v5991_v5 = vand.u32 4294901760, %v5990_v26 }
 0x200   : > { %24457 = vmatpush3.bf16.msra.mxu0 %v24456_v42  ;;  %21265 = vmatprep.mubr.msk.f32.mxu0 %vm26253_vm0, %v26254_v13  ;;  %v5977_v16 = vand.u32 4294901760, %v5976_v0  ;;  %v6430_v0 = vand.u32 4294901760, %v28765_v18 }
 0x201   : > { %24458 = vmatprep.subr.bf16.mxu0 %v26252_v3  ;;  %v5996_v60 = vand.u32 4294901760, %v28645_v10  ;;  %v24510_v30 = vpack.c.bf16 %v28645_v10, %v28635_v57  ;;  %v6413_v57 = vld [vmem:[#allocation2 + $0x14] sm:$0xff] }
 0x202   : > { %v3158_v28 = vpop.f32.mrb[30].mxu0  ;;  %24475 = vmatpush3.bf16.msra.mxu1 %v28503_v37  ;;  %v5984_v37 = vand.u32 4294901760, %v5983_v4  ;;  %v28799_v26 = vsub.f32 %v28765_v18, %v6430_v0 }
 0x203   : > { %v20735_v24 = vpop.f32.mrb[31].mxu0  ;;  %v3270_v54 = vadd.f32 %v3269_v31, %v3158_v28  ;;  %24476 = vmatprep.subr.bf16.mxu1 %v26252_v3  ;;  %v5997_v22 = vsub.f32 %v28645_v10, %v5996_v60  ;;  %v6004_v31 = vsub.f32 %v28669_v61, %v6003_v48  ;;  %v24537_v10 = vpack.c.bf16 %v6010_v14, %v6003_v48 }
 0x204   : > { %24460 = vmatpush3.bf16.msra.mxu0 %v24459_v21  ;;  %v24495_v29 = vpack.c.bf16 %v5984_v37, %v5977_v16  ;;  %v6012_v21 = vand.u32 4294901760, %v6011_v25  ;;  %v6519_v25 = vand.u32 4294901760, %v28799_v26 }
 0x205   : > { %24461 = vmatprep.subr.bf16.mxu0 %v26252_v3  ;;  %v5998_v42 = vand.u32 4294901760, %v5997_v22  ;;  %v6005_v33 = vand.u32 4294901760, %v6004_v31 }
 0x206   : > { %24478 = vmatpush3.bf16.msra.mxu1 %v28513_v52  ;;  %v28701_v52 = vand.u32 4294901760, %v5873_v32 }
 0x207   : > { %24491 = vmatprep.subr.bf16.mxu1 %v26252_v3  ;;  %v24498_v27 = vpack.c.bf16 %v5998_v42, %v5991_v5  ;;  %v24501_v34 = vpack.c.bf16 %v6012_v21, %v6005_v33  ;;  %v24513_v5 = vpack.c.bf16 %v28674_v19, %v28669_v61  ;;  %v28812_v42 = vld [vmem:[%s33596_s1 + $0x2e0] sm:$0xff]  ;;  %v24528_v33 = vpack.c.bf16 %v5968_v40, %v5961_v17 }
 0x208   : > { %24463 = vmatpush3.bf16.msra.mxu0 %v24462_v47  ;;  %v28715_v44 = vsub.f32 %v5873_v32, %v28701_v52  ;;  %v6520_v40 = vsub.f32 %v28799_v26, %v6519_v25  ;;  %v6424_v19 = vsel %vm293_vm1, %v6413_v57, 0 }
 0x209   : > { %24464 = vmatprep.subr.bf16.mxu0 %v26252_v3  ;;  %21285 = vmatmul.mubr.f32.vlgmr.msra.gmra.mrb[58].mxu1 %v28470_v45 }
 0x20a   : > { %24493 = vmatpush3.bf16.msra.mxu1 %v24492_v62  ;;  %21322 = vmatprep.mubr.msk.f32.mxu1 %vm26253_vm0, %v26254_v13  ;;  %v5950_v53 = vand.u32 4294901760, %v28715_v44  ;;  %v28787_v62 = vld [vmem:[%s33596_s1 + $0x2d8] sm:$0xff]  ;;  %v6521_v38 = vand.u32 4294901760, %v6520_v40 }
 0x20b   : > { %24494 = vmatprep.subr.bf16.mxu1 %v26252_v3 }
 0x20c   : > { %24466 = vmatpush3.bf16.msra.mxu0 %v24465_v39  ;;  %v3438_v1 = vpop.f32.mrb[32].mxu1  ;;  %v5951_v56 = vsub.f32 %v28715_v44, %v5950_v53  ;;  %v28782_v39 = vld [vmem:[%s33596_s1 + $0x2d0] sm:$0xff] }
 0x20d   : > { %24479 = vmatprep.subr.bf16.mxu0 %v26252_v3  ;;  %v20792_v20 = vpop.f32.mrb[33].mxu1  ;;  %v6433_v32 = vand.u32 4294901760, %v28782_v39 }
 0x20e   : > { %24496 = vmatpush3.bf16.msra.mxu1 %v24495_v29  ;;  %v5952_v35 = vand.u32 4294901760, %v5951_v56  ;;  %v6436_v29 = vand.u32 4294901760, %v28787_v62  ;;  %v6448_v56 = vand.u32 4294901760, %v28850_v50 }
 0x20f   : > { %21266 = vmatmul.mubr.f32.vlgmr.msra.gmra.mrb[58].mxu0 %v28470_v45  ;;  %24497 = vmatprep.subr.bf16.mxu1 %v26252_v3 }
 0x210   : > { %24481 = vmatpush3.bf16.msra.mxu0 %v28698_v36  ;;  %21303 = vmatprep.mubr.msk.f32.mxu0 %vm26253_vm0, %v26254_v13  ;;  %v28831_v20 = vsub.f32 %v28787_v62, %v6436_v29 }
 0x211   : > { %24482 = vmatprep.subr.bf16.mxu0 %v26252_v3 }
 0x212   : > { %v3357_v45 = vpop.f32.mrb[32].mxu0  ;;  %24499 = vmatpush3.bf16.msra.mxu1 %v24498_v27  ;;  %v6439_v27 = vand.u32 4294901760, %v28812_v42 }
 0x213   : > { %v3358_v28 = vadd.f32 %v3357_v45, %v3270_v54  ;;  %v20773_v58 = vpop.f32.mrb[33].mxu0  ;;  %24500 = vmatprep.subr.bf16.mxu1 %v26252_v3  ;;  %v6427_v54 = vand.u32 4294901760, %v28760_v41  ;;  %v28845_v45 = vld [vmem:[%s33596_s1 + $0x2f0] sm:$0xff] }
 0x214   : > { %24484 = vmatpush3.bf16.msra.mxu0 %v28722_v59  ;;  %v6533_v58 = vand.u32 4294901760, %v28831_v20 }
 0x215   : > { %v3439_v8 = vadd.f32 %v3438_v1, %v3358_v28  ;;  %24485 = vmatprep.subr.bf16.mxu0 %v26252_v3  ;;  %v28794_v37 = vsub.f32 %v28760_v41, %v6427_v54  ;;  %v28826_v1 = vsub.f32 %v28782_v39, %v6433_v32  ;;  %v28929_v48 = vpack.c.bf16 %v6430_v0, %v6427_v54 }
 0x216   : > { %24502 = vmatpush3.bf16.msra.mxu1 %v24501_v34  ;;  %v24531_v34 = vpack.c.bf16 %v5982_v55, %v5975_v43 }
 0x217   : > { %24515 = vmatprep.subr.bf16.mxu1 %v26252_v3  ;;  %v6512_v31 = vand.u32 4294901760, %v28794_v37  ;;  %v6526_v28 = vand.u32 4294901760, %v28826_v1 }
 0x218   : > { %24487 = vmatpush3.bf16.msra.mxu0 %v28734_v15 }
 0x219   : > { %24488 = vmatprep.subr.bf16.mxu0 %v26252_v3  ;;  %21323 = vmatmul.mubr.f32.vlgmr.msra.gmra.mrb[60].mxu1 %v28701_v52  ;;  %v6513_v17 = vsub.f32 %v28794_v37, %v6512_v31 }
 0x21a   : > { %24517 = vmatpush3.bf16.msra.mxu1 %v28698_v36  ;;  %21360 = vmatprep.mubr.msk.f32.mxu1 %vm26253_vm0, %v26254_v13 }
 0x21b   : > { %24518 = vmatprep.subr.bf16.mxu1 %v26252_v3  ;;  %v6514_v12 = vand.u32 4294901760, %v6513_v17  ;;  %v28953_v17 = vpack.c.bf16 %v6436_v29, %v6433_v32 }
 0x21c   : > { %24490 = vmatpush3.bf16.msra.mxu0 %v28744_v6  ;;  %v3612_v11 = vpop.f32.mrb[34].mxu1 }
 0x21d   : > { %24503 = vmatprep.subr.bf16.mxu0 %v26252_v3  ;;  %v20830_v9 = vpop.f32.mrb[35].mxu1 }
 0x21e   : > { %24520 = vmatpush3.bf16.msra.mxu1 %v28722_v59  ;;  %v24534_v9 = vpack.c.bf16 %v5996_v60, %v5989_v23  ;;  %v24564_v23 = vpack.c.bf16 %v6521_v38, %v6514_v12 }
 0x21f   : > { %21304 = vmatmul.mubr.f32.vlgmr.msra.gmra.mrb[60].mxu0 %v5952_v35  ;;  %24521 = vmatprep.subr.bf16.mxu1 %v26252_v3 }
 0x220   : > { %24505 = vmatpush3.bf16.msra.mxu0 %v24504_v2  ;;  %21341 = vmatprep.mubr.msk.f32.mxu0 %vm26253_vm0, %v26254_v13  ;;  %v6534_v2 = vsub.f32 %v28831_v20, %v6533_v58 }
 0x221   : > { %24506 = vmatprep.subr.bf16.mxu0 %v26252_v3 }
 0x222   : > { %v3533_v24 = vpop.f32.mrb[34].mxu0  ;;  %24523 = vmatpush3.bf16.msra.mxu1 %v28734_v15 }
 0x223   : > { %v3534_v4 = vadd.f32 %v3533_v24, %v3439_v8  ;;  %v20811_v47 = vpop.f32.mrb[35].mxu0  ;;  %24524 = vmatprep.subr.bf16.mxu1 %v26252_v3  ;;  %v6445_v8 = vand.u32 4294901760, %v28845_v45 }
 0x224   : > { %24508 = vmatpush3.bf16.msra.mxu0 %v24507_v49 }
 0x225   : > { %v3613_v16 = vadd.f32 %v3612_v11, %v3534_v4  ;;  %24509 = vmatprep.subr.bf16.mxu0 %v26252_v3  ;;  %v28900_v24 = vsub.f32 %v28845_v45, %v6445_v8  ;;  %v28905_v4 = vsub.f32 %v28850_v50, %v6448_v56 }
 0x226   : > { %24526 = vmatpush3.bf16.msra.mxu1 %v28744_v6 }
 0x227   : > { %v28802_v22 = vadd.f32 %v3613_v16, %v28571_v51  ;;  %24539 = vmatprep.subr.bf16.mxu1 %v26252_v3  ;;  %v28819_v51 = vld [vmem:[%s33596_s1 + $0x2e8] sm:$0xff]  ;;  %v6554_v16 = vand.u32 4294901760, %v28900_v24  ;;  %v6561_v61 = vand.u32 4294901760, %v28905_v4 }
 0x228   : > { %24511 = vmatpush3.bf16.msra.mxu0 %v24510_v30  ;;  %v6442_v21 = vand.u32 4294901760, %v28819_v51 }
 0x229   : > { %24512 = vmatprep.subr.bf16.mxu0 %v26252_v3  ;;  %21361 = vmatmul.mubr.f32.vlgmr.msra.gmra.mrb[62].mxu1 %v5950_v53  ;;  %v28866_v53 = vsub.f32 %v28812_v42, %v6439_v27  ;;  %v6562_v41 = vsub.f32 %v28905_v4, %v6561_v61  ;;  %v28977_v42 = vpack.c.bf16 %v6448_v56, %v6445_v8  ;;  %v29005_v56 = vld [vmem:[%s33596_s1 + $0x300] sm:$0xff] }
 0x22a   : > { %24541 = vmatpush3.bf16.msra.mxu1 %v28698_v36  ;;  %21398 = vmatprep.mubr.msk.f32.mxu1 %vm26253_vm0, %v26254_v13  ;;  %v28965_v62 = vpack.c.bf16 %v6442_v21, %v6439_v27  ;;  %v24576_v27 = vpack.c.bf16 %v28799_v26, %v28794_v37  ;;  %v24579_v8 = vpack.c.bf16 %v28831_v20, %v28826_v1  ;;  %v6978_v57 = vand.u32 4294901760, %v29005_v56 }
 0x22b   : > { %24542 = vmatprep.subr.bf16.mxu1 %v26252_v3  ;;  %v6540_v11 = vand.u32 4294901760, %v28866_v53 }
 0x22c   : > { %24514 = vmatpush3.bf16.msra.mxu0 %v24513_v5  ;;  %v3820_v63 = vpop.f32.mrb[36].mxu1 }
 0x22d   : > { %24527 = vmatprep.subr.bf16.mxu0 %v26252_v3  ;;  %v20868_v36 = vpop.f32.mrb[37].mxu1  ;;  %v6541_v47 = vsub.f32 %v28866_v53, %v6540_v11 }
 0x22e   : > { %24544 = vmatpush3.bf16.msra.mxu1 %v28722_v59  ;;  %v6527_v59 = vsub.f32 %v28826_v1, %v6526_v28 }
 0x22f   : > { %21342 = vmatmul.mubr.f32.vlgmr.msra.gmra.mrb[62].mxu0 %v28715_v44  ;;  %v28876_v44 = vsub.f32 %v28819_v51, %v6442_v21  ;;  %24545 = vmatprep.subr.bf16.mxu1 %v26252_v3  ;;  %v6542_v5 = vand.u32 4294901760, %v6541_v47  ;;  %v28987_v21 = vld [vmem:[%s26397_s30 + $0x10] sm:$0xff]  ;;  %v4169_v47 = vstv %s28993_s13 }
 0x230   : > { %24529 = vmatpush3.bf16.msra.mxu0 %v24528_v33  ;;  %21379 = vmatprep.mubr.msk.f32.mxu0 %vm26253_vm0, %v26254_v13  ;;  %v6528_v60 = vand.u32 4294901760, %v6527_v59  ;;  %33637 = vst [vmem:[#allocation9_spill] sm:$0xff] %v28987_v21  ;;  %311 = vst.msk [vmem:[#allocation2 + $0x23] sm:$0xff] %vm293_vm1, %v28987_v21 }
 0x231   : > { %24530 = vmatprep.subr.bf16.mxu0 %v26252_v3  ;;  %v6547_v49 = vand.u32 4294901760, %v28876_v44 }
 0x232   : > { %v3709_v35 = vpop.f32.mrb[36].mxu0  ;;  %24547 = vmatpush3.bf16.msra.mxu1 %v28734_v15  ;;  %v6535_v15 = vand.u32 4294901760, %v6534_v2 }
 0x233   : > { %v20849_v43 = vpop.f32.mrb[37].mxu0  ;;  %v3821_v55 = vadd.f32 %v3820_v63, %v3709_v35  ;;  %24548 = vmatprep.subr.bf16.mxu1 %v26252_v3  ;;  %v6548_v30 = vsub.f32 %v28876_v44, %v6547_v49  ;;  %v6555_v63 = vsub.f32 %v28900_v24, %v6554_v16 }
 0x234   : > { %24532 = vmatpush3.bf16.msra.mxu0 %v24531_v34  ;;  %v24567_v14 = vpack.c.bf16 %v6535_v15, %v6528_v60  ;;  %v6563_v34 = vand.u32 4294901760, %v6562_v41  ;;  %v29010_v43 = vld [vmem:[%s33596_s1 + $0x308] sm:$0xff]  ;;  %v29024_v60 = vld [vmem:[%s33596_s1 + $0x310] sm:$0xff]  ;;  %v29029_v15 = vld [vmem:[%s33596_s1 + $0x318] sm:$0xff] }
 0x235   : > { %24533 = vmatprep.subr.bf16.mxu0 %v26252_v3  ;;  %v6549_v33 = vand.u32 4294901760, %v6548_v30  ;;  %v6556_v36 = vand.u32 4294901760, %v6555_v63  ;;  %v29055_v41 = vld [vmem:[%s33596_s1 + $0x320] sm:$0xff] }
 0x236   : > { %24550 = vmatpush3.bf16.msra.mxu1 %v28744_v6  ;;  %v28932_v6 = vand.u32 4294901760, %v6424_v19  ;;  %v6990_v26 = vand.u32 4294901760, %v29055_v41 }
 0x237   : > { %24563 = vmatprep.subr.bf16.mxu1 %v26252_v3  ;;  %v24570_v40 = vpack.c.bf16 %v6549_v33, %v6542_v5  ;;  %v24573_v32 = vpack.c.bf16 %v6563_v34, %v6556_v36  ;;  %v6984_v33 = vand.u32 4294901760, %v29024_v60 }
 0x238   : > { %24535 = vmatpush3.bf16.msra.mxu0 %v24534_v9  ;;  %v28946_v0 = vsub.f32 %v6424_v19, %v28932_v6  ;;  %v24582_v9 = vpack.c.bf16 %v28876_v44, %v28866_v53  ;;  %v24585_v19 = vpack.c.bf16 %v28905_v4, %v28900_v24  ;;  %v29120_v1 = vsub.f32 %v29055_v41, %v6990_v26 }
 0x239   : > { %24536 = vmatprep.subr.bf16.mxu0 %v26252_v3  ;;  %21399 = vmatmul.mubr.f32.vlgmr.msra.gmra.mrb[64].mxu1 %v28701_v52 }
 0x23a   : > { %24565 = vmatpush3.bf16.msra.mxu1 %v24564_v23  ;;  %21436 = vmatprep.mubr.msk.f32.mxu1 %vm26253_vm0, %v26254_v13  ;;  %v6501_v39 = vand.u32 4294901760, %v28946_v0  ;;  %v7091_v53 = vand.u32 4294901760, %v29120_v1 }
 0x23b   : > { %24566 = vmatprep.subr.bf16.mxu1 %v26252_v3 }
 0x23c   : > { %24538 = vmatpush3.bf16.msra.mxu0 %v24537_v10  ;;  %v3989_v18 = vpop.f32.mrb[38].mxu1  ;;  %v6502_v38 = vsub.f32 %v28946_v0, %v6501_v39  ;;  %v6981_v10 = vand.u32 4294901760, %v29010_v43 }
 0x23d   : > { %24551 = vmatprep.subr.bf16.mxu0 %v26252_v3  ;;  %v20906_v54 = vpop.f32.mrb[39].mxu1 }
 0x23e   : > { %24568 = vmatpush3.bf16.msra.mxu1 %v24567_v14  ;;  %v6503_v51 = vand.u32 4294901760, %v6502_v38  ;;  %v29039_v14 = vsub.f32 %v29005_v56, %v6978_v57  ;;  %v29044_v5 = vsub.f32 %v29010_v43, %v6981_v10 }
 0x23f   : > { %21380 = vmatmul.mubr.f32.vlgmr.msra.gmra.mrb[64].mxu0 %v28701_v52  ;;  %24569 = vmatprep.subr.bf16.mxu1 %v26252_v3 }
 0x240   : > { %24553 = vmatpush3.bf16.msra.mxu0 %v28929_v48  ;;  %21417 = vmatprep.mubr.msk.f32.mxu0 %vm26253_vm0, %v26254_v13  ;;  %v7063_v34 = vand.u32 4294901760, %v29039_v14 }
 0x241   : > { %24554 = vmatprep.subr.bf16.mxu0 %v26252_v3 }
 0x242   : > { %v3908_v52 = vpop.f32.mrb[38].mxu0  ;;  %24571 = vmatpush3.bf16.msra.mxu1 %v24570_v40  ;;  %v24600_v40 = vpack.c.bf16 %v6519_v25, %v6512_v31  ;;  %v7064_v38 = vsub.f32 %v29039_v14, %v7063_v34 }
 0x243   : > { %v3909_v35 = vadd.f32 %v3908_v52, %v3821_v55  ;;  %v20887_v12 = vpop.f32.mrb[39].mxu0  ;;  %24572 = vmatprep.subr.bf16.mxu1 %v26252_v3  ;;  %v7070_v52 = vand.u32 4294901760, %v29044_v5 }
 0x244   : > { %24556 = vmatpush3.bf16.msra.mxu0 %v28953_v17  ;;  %v29094_v12 = vld [vmem:[%s33596_s1 + $0x330] sm:$0xff] }
 0x245   : > { %v3990_v29 = vadd.f32 %v3989_v18, %v3909_v35  ;;  %24557 = vmatprep.subr.bf16.mxu0 %v26252_v3  ;;  %v29060_v18 = vld [vmem:[%s33596_s1 + $0x328] sm:$0xff]  ;;  %v29077_v35 = vsub.f32 %v29024_v60, %v6984_v33 }
 0x246   : > { %24574 = vmatpush3.bf16.msra.mxu1 %v24573_v32  ;;  %v6993_v31 = vand.u32 4294901760, %v29060_v18  ;;  %v24603_v32 = vpack.c.bf16 %v6533_v58, %v6526_v28  ;;  %v6996_v28 = vand.u32 4294901760, %v29094_v12 }
 0x247   : > { %24587 = vmatprep.subr.bf16.mxu1 %v26252_v3 }
 0x248   : > { %24559 = vmatpush3.bf16.msra.mxu0 %v28965_v62  ;;  %v29125_v20 = vsub.f32 %v29060_v18, %v6993_v31 }
 0x249   : > { %24560 = vmatprep.subr.bf16.mxu0 %v26252_v3  ;;  %21437 = vmatmul.mubr.f32.vlgmr.msra.gmra.mrb[66].mxu1 %v28932_v6 }
 0x24a   : > { %24589 = vmatpush3.bf16.msra.mxu1 %v28929_v48  ;;  %21474 = vmatprep.mubr.msk.f32.mxu1 %vm26253_vm0, %v26254_v13  ;;  %v7098_v44 = vand.u32 4294901760, %v29125_v20 }
 0x24b   : > { %24590 = vmatprep.subr.bf16.mxu1 %v26252_v3 }
 0x24c   : > { %24562 = vmatpush3.bf16.msra.mxu0 %v28977_v42  ;;  %v4163_v45 = vpop.f32.mrb[40].mxu1  ;;  %v7099_v24 = vsub.f32 %v29125_v20, %v7098_v44 }
 0x24d   : > { %24575 = vmatprep.subr.bf16.mxu0 %v26252_v3  ;;  %v20944_v50 = vpop.f32.mrb[41].mxu1 }
 0x24e   : > { %24592 = vmatpush3.bf16.msra.mxu1 %v28953_v17 }
 0x24f   : > { %21418 = vmatmul.mubr.f32.vlgmr.msra.gmra.mrb[66].mxu0 %v6503_v51  ;;  %24593 = vmatprep.subr.bf16.mxu1 %v26252_v3  ;;  %v7071_v51 = vsub.f32 %v29044_v5, %v7070_v52 }
 0x250   : > { %24577 = vmatpush3.bf16.msra.mxu0 %v24576_v27  ;;  %21455 = vmatprep.mubr.msk.f32.mxu0 %vm26253_vm0, %v26254_v13 }
 0x251   : > { %24578 = vmatprep.subr.bf16.mxu0 %v26252_v3 }
 0x252   : > { %v4084_v55 = vpop.f32.mrb[40].mxu0  ;;  %24595 = vmatpush3.bf16.msra.mxu1 %v28965_v62 }
 0x253   : > { %v4085_v59 = vadd.f32 %v4084_v55, %v3990_v29  ;;  %v20925_v2 = vpop.f32.mrb[41].mxu0  ;;  %24596 = vmatprep.subr.bf16.mxu1 %v26252_v3  ;;  %v7065_v55 = vand.u32 4294901760, %v7064_v38 }
 0x254   : > { %24580 = vmatpush3.bf16.msra.mxu0 %v24579_v8  ;;  %v24606_v8 = vpack.c.bf16 %v6547_v49, %v6540_v11  ;;  %v29149_v11 = vsub.f32 %v29094_v12, %v6996_v28 }
 0x255   : > { %v4164_v23 = vadd.f32 %v4163_v45, %v4085_v59  ;;  %24581 = vmatprep.subr.bf16.mxu0 %v26252_v3  ;;  %v7072_v59 = vand.u32 4294901760, %v7071_v51 }
 0x256   : > { %24598 = vmatpush3.bf16.msra.mxu1 %v28977_v42  ;;  %v7105_v4 = vand.u32 4294901760, %v29149_v11 }
 0x257   : > { %v4167_v30 = vadd.f32 %v4164_v23, %v28802_v22  ;;  %v6987_v22 = vand.u32 4294901760, %v29029_v15  ;;  %24611 = vmatprep.subr.bf16.mxu1 %v26252_v3  ;;  %v6964_v23 = vld [vmem:[#allocation2 + $0x15] sm:$0xff] }
 0x258   : > { %24583 = vmatpush3.bf16.msra.mxu0 %v24582_v9 }
 0x259   : > { %24584 = vmatprep.subr.bf16.mxu0 %v26252_v3  ;;  %v29049_v63 = vadd.f32 %v4169_v47, %v4167_v30  ;;  %21475 = vmatmul.mubr.f32.vlgmr.msra.gmra.mrb[68].mxu1 %v6501_v39  ;;  %v29082_v37 = vsub.f32 %v29029_v15, %v6987_v22  ;;  %v29099_v39 = vld [vmem:[%s33596_s1 + $0x338] sm:$0xff]  ;;  %v24636_v47 = vpack.c.bf16 %v7072_v59, %v7065_v55 }
 0x25a   : > { %24613 = vmatpush3.bf16.msra.mxu1 %v28929_v48  ;;  %21512 = vmatprep.mubr.msk.f32.mxu1 %vm26253_vm0, %v26254_v13  ;;  %v6999_v58 = vand.u32 4294901760, %v29099_v39  ;;  %v29213_v15 = vpack.c.bf16 %v6993_v31, %v6990_v26  ;;  %v24648_v26 = vpack.c.bf16 %v29044_v5, %v29039_v14 }
 0x25b   : > { %v4171_v54 = vsel %vm293_vm1, %v29049_v63, 0.0  ;;  %v4182_v36 = vmul.f32 %v29049_v63, %v29049_v63  ;;  %24614 = vmatprep.subr.bf16.mxu1 %v26252_v3  ;;  %v7084_v27 = vand.u32 4294901760, %v29082_v37 }
 0x25c   : > { %24586 = vmatpush3.bf16.msra.mxu0 %v24585_v19  ;;  %4172 = vadd.xlane.f32.xlu0 %v4171_v54  ;;  %v4424_v25 = vpop.f32.mrb[42].mxu1  ;;  %v29154_v49 = vsub.f32 %v29099_v39, %v6999_v58  ;;  %v6975_v54 = vsel %vm293_vm1, %v6964_v23, 0  ;;  %v29223_v41 = vpack.c.bf16 %v6999_v58, %v6996_v28  ;;  %v24651_v39 = vpack.c.bf16 %v29082_v37, %v29077_v35  ;;  %v29243_v28 = vld [vmem:[%s33596_s1 + $0x340] sm:$0xff]  ;;  %v29250_v58 = vld [vmem:[%s33596_s1 + $0x348] sm:$0xff] }
 0x25d   : > { %24599 = vmatprep.subr.bf16.mxu0 %v26252_v3  ;;  %v4183_v48 = vsel %vm293_vm1, %v4182_v36, 0.0  ;;  %v20982_v29 = vpop.f32.mrb[43].mxu1  ;;  %v7085_v9 = vsub.f32 %v29082_v37, %v7084_v27  ;;  %v24654_v23 = vpack.c.bf16 %v29125_v20, %v29120_v1 }
 0x25e   : > { %24616 = vmatpush3.bf16.msra.mxu1 %v28953_v17 }
 0x25f   : > { %21456 = vmatmul.mubr.f32.vlgmr.msra.gmra.mrb[68].mxu0 %v28946_v0  ;;  %v7077_v0 = vand.u32 4294901760, %v29077_v35  ;;  %24617 = vmatprep.subr.bf16.mxu1 %v26252_v3  ;;  %v7086_v19 = vand.u32 4294901760, %v7085_v9  ;;  %v7529_v9 = vand.u32 4294901760, %v29243_v28 }
 0x260   : > { %24601 = vmatpush3.bf16.msra.mxu0 %v24600_v40  ;;  %4184 = vadd.xlane.f32.xlu0 %v4183_v48  ;;  %v7092_v40 = vsub.f32 %v29120_v1, %v7091_v53  ;;  %v7100_v48 = vand.u32 4294901760, %v7099_v24 }
 0x261   : > { %24602 = vmatprep.subr.bf16.mxu0 %v26252_v3  ;;  %21493 = vmatprep.mubr.msk.f32.mxu0 %vm26253_vm0, %v26254_v13  ;;  %v7078_v2 = vsub.f32 %v29077_v35, %v7077_v0 }
 0x262   : > { %v4313_v45 = vpop.f32.mrb[42].mxu0  ;;  %24619 = vmatpush3.bf16.msra.mxu1 %v28965_v62  ;;  %v24609_v62 = vpack.c.bf16 %v6561_v61, %v6554_v16  ;;  %v7112_v16 = vand.u32 4294901760, %v29154_v49  ;;  %v29173_v61 = vand.u32 4294901760, %v6975_v54 }
 0x263   : > { %v20963_v17 = vpop.f32.mrb[43].mxu0  ;;  %v4425_v50 = vadd.f32 %v4424_v25, %v4313_v45  ;;  %24620 = vmatprep.subr.bf16.mxu1 %v26252_v3  ;;  %v7079_v30 = vand.u32 4294901760, %v7078_v2  ;;  %v7093_v25 = vand.u32 4294901760, %v7092_v40  ;;  %v24657_v40 = vpack.c.bf16 %v29154_v49, %v29149_v11 }
 0x264   : > { %24604 = vmatpush3.bf16.msra.mxu0 %v24603_v32  ;;  %v7106_v32 = vsub.f32 %v29149_v11, %v7105_v4  ;;  %v7113_v56 = vsub.f32 %v29154_v49, %v7112_v16 }
 0x265   : > { %24605 = vmatprep.subr.bf16.mxu0 %v26252_v3  ;;  %v24639_v36 = vpack.c.bf16 %v7086_v19, %v7079_v30  ;;  %v24642_v38 = vpack.c.bf16 %v7100_v48, %v7093_v25  ;;  %v29262_v30 = vld [vmem:[%s33596_s1 + $0x350] sm:$0xff]  ;;  %v29267_v19 = vld [vmem:[%s33596_s1 + $0x358] sm:$0xff]  ;;  %v29289_v48 = vld [vmem:[%s33596_s1 + $0x360] sm:$0xff] }
 0x266   : > { %24622 = vmatpush3.bf16.msra.mxu1 %v28977_v42  ;;  %v29179_v42 = vpack.c.bf16 %v6981_v10, %v6978_v57  ;;  %v29194_v57 = vsub.f32 %v6975_v54, %v29173_v61  ;;  %v29201_v10 = vpack.c.bf16 %v6987_v22, %v6984_v33  ;;  %v7114_v51 = vand.u32 4294901760, %v7113_v56 }
 0x267   : > { %24635 = vmatprep.subr.bf16.mxu1 %v26252_v3  ;;  %v29273_v54 = vsub.f32 %v29243_v28, %v7529_v9  ;;  %v7538_v25 = vand.u32 4294901760, %v29267_v19  ;;  %v24672_v56 = vpack.c.bf16 %v7070_v52, %v7063_v34  ;;  %v7541_v14 = vand.u32 4294901760, %v29289_v48  ;;  %v29323_v52 = vld [vmem:[%s33596_s1 + $0x370] sm:$0xff] }
 0x268   : > { %24607 = vmatpush3.bf16.msra.mxu0 %v24606_v8  ;;  %v7052_v60 = vand.u32 4294901760, %v29194_v57 }
 0x269   : > { %24608 = vmatprep.subr.bf16.mxu0 %v26252_v3  ;;  %21513 = vmatmul.mubr.f32.vlgmr.msra.gmra.mrb[70].mxu1 %v28932_v6  ;;  %v29348_v37 = vsub.f32 %v29289_v48, %v7541_v14 }
 0x26a   : > { %24637 = vmatpush3.bf16.msra.mxu1 %v24636_v47  ;;  %21550 = vmatprep.mubr.msk.f32.mxu1 %vm26253_vm0, %v26254_v13 }
 0x26b   : > { %24638 = vmatprep.subr.bf16.mxu1 %v26252_v3 }
 0x26c   : > { %24610 = vmatpush3.bf16.msra.mxu0 %v24609_v62  ;;  %v4593_v29 = vpop.f32.mrb[44].mxu1  ;;  %v7532_v62 = vand.u32 4294901760, %v29250_v58 }
 0x26d   : > { %24623 = vmatprep.subr.bf16.mxu0 %v26252_v3  ;;  %v21020_v43 = vpop.f32.mrb[45].mxu1 }
 0x26e   : > { %24640 = vmatpush3.bf16.msra.mxu1 %v24639_v36  ;;  %v29280_v24 = vsub.f32 %v29250_v58, %v7532_v62  ;;  %v7535_v36 = vand.u32 4294901760, %v29262_v30 }
 0x26f   : > { %21494 = vmatmul.mubr.f32.vlgmr.msra.gmra.mrb[70].mxu0 %v28932_v6  ;;  %v7107_v6 = vand.u32 4294901760, %v7106_v32  ;;  %24641 = vmatprep.subr.bf16.mxu1 %v26252_v3  ;;  %v29295_v32 = vld [vmem:[%s33596_s1 + $0x368] sm:$0xff] }
 0x270   : > { %24625 = vmatpush3.bf16.msra.mxu0 %v29179_v42  ;;  %21531 = vmatprep.mubr.msk.f32.mxu0 %vm26253_vm0, %v26254_v13  ;;  %v7621_v43 = vand.u32 4294901760, %v29280_v24  ;;  %v7544_v5 = vand.u32 4294901760, %v29295_v32 }
 0x271   : > { %24626 = vmatprep.subr.bf16.mxu0 %v26252_v3  ;;  %v24645_v22 = vpack.c.bf16 %v7114_v51, %v7107_v6  ;;  %v29311_v6 = vsub.f32 %v29267_v19, %v7538_v25  ;;  %v29328_v51 = vld [vmem:[%s33596_s1 + $0x378] sm:$0xff] }
 0x272   : > { %v4512_v45 = vpop.f32.mrb[44].mxu0  ;;  %24643 = vmatpush3.bf16.msra.mxu1 %v24642_v38  ;;  %v29306_v38 = vsub.f32 %v29262_v30, %v7535_v36  ;;  %v29441_v19 = vpack.c.bf16 %v7544_v5, %v7541_v14  ;;  %v24720_v14 = vpack.c.bf16 %v29280_v24, %v29273_v54 }
 0x273   : > { %v4513_v17 = vadd.f32 %v4512_v45, %v4425_v50  ;;  %v21001_v8 = vpop.f32.mrb[45].mxu0  ;;  %24644 = vmatprep.subr.bf16.mxu1 %v26252_v3  ;;  %v7053_v50 = vsub.f32 %v29194_v57, %v7052_v60  ;;  %v7635_v35 = vand.u32 4294901760, %v29311_v6 }
 0x274   : > { %24628 = vmatpush3.bf16.msra.mxu0 %v29201_v10  ;;  %v7622_v8 = vsub.f32 %v29280_v24, %v7621_v43 }
 0x275   : > { %v4594_v33 = vadd.f32 %v4593_v29, %v4513_v17  ;;  %24629 = vmatprep.subr.bf16.mxu0 %v26252_v3  ;;  %v7054_v18 = vand.u32 4294901760, %v7053_v50  ;;  %v7614_v29 = vand.u32 4294901760, %v29273_v54 }
 0x276   : > { %24646 = vmatpush3.bf16.msra.mxu1 %v24645_v22 }
 0x277   : > { %24659 = vmatprep.subr.bf16.mxu1 %v26252_v3  ;;  %v7615_v17 = vsub.f32 %v29273_v54, %v7614_v29 }
 0x278   : > { %24631 = vmatpush3.bf16.msra.mxu0 %v29213_v15 }
 0x279   : > { %24632 = vmatprep.subr.bf16.mxu0 %v26252_v3  ;;  %21551 = vmatmul.mubr.f32.vlgmr.msra.gmra.mrb[72].mxu1 %v29173_v61 }
 0x27a   : > { %24661 = vmatpush3.bf16.msra.mxu1 %v29179_v42  ;;  %21588 = vmatprep.mubr.msk.f32.mxu1 %vm26253_vm0, %v26254_v13 }
 0x27b   : > { %24662 = vmatprep.subr.bf16.mxu1 %v26252_v3 }
 0x27c   : > { %24634 = vmatpush3.bf16.msra.mxu0 %v29223_v41  ;;  %v4767_v31 = vpop.f32.mrb[46].mxu1 }
 0x27d   : > { %24647 = vmatprep.subr.bf16.mxu0 %v26252_v3  ;;  %v21058_v12 = vpop.f32.mrb[47].mxu1 }
 0x27e   : > { %24664 = vmatpush3.bf16.msra.mxu1 %v29201_v10  ;;  %v7636_v12 = vsub.f32 %v29311_v6, %v7635_v35 }
 0x27f   : > { %21532 = vmatmul.mubr.f32.vlgmr.msra.gmra.mrb[72].mxu0 %v7054_v18  ;;  %24665 = vmatprep.subr.bf16.mxu1 %v26252_v3  ;;  %v24678_v18 = vpack.c.bf16 %v7098_v44, %v7091_v53  ;;  %v7515_v44 = vld [vmem:[#allocation2 + $0x16] sm:$0xff] }
 0x280   : > { %24649 = vmatpush3.bf16.msra.mxu0 %v24648_v26  ;;  %21569 = vmatprep.mubr.msk.f32.mxu0 %vm26253_vm0, %v26254_v13  ;;  %v7623_v26 = vand.u32 4294901760, %v7622_v8 }
 0x281   : > { %24650 = vmatprep.subr.bf16.mxu0 %v26252_v3 }
 0x282   : > { %v4688_v55 = vpop.f32.mrb[46].mxu0  ;;  %24667 = vmatpush3.bf16.msra.mxu1 %v29213_v15 }
 0x283   : > { %v4689_v59 = vadd.f32 %v4688_v55, %v4594_v33  ;;  %v21039_v2 = vpop.f32.mrb[47].mxu0  ;;  %24668 = vmatprep.subr.bf16.mxu1 %v26252_v3 }
 0x284   : > { %24652 = vmatpush3.bf16.msra.mxu0 %v24651_v39  ;;  %v7642_v39 = vand.u32 4294901760, %v29348_v37 }
 0x285   : > { %v4768_v47 = vadd.f32 %v4767_v31, %v4689_v59  ;;  %24653 = vmatprep.subr.bf16.mxu0 %v26252_v3 }
 0x286   : > { %24670 = vmatpush3.bf16.msra.mxu1 %v29223_v41 }
 0x287   : > { %24683 = vmatprep.subr.bf16.mxu1 %v26252_v3 }
 0x288   : > { %24655 = vmatpush3.bf16.msra.mxu0 %v24654_v23  ;;  %v7637_v23 = vand.u32 4294901760, %v7636_v12 }
 0x289   : > { %24656 = vmatprep.subr.bf16.mxu0 %v26252_v3  ;;  %21589 = vmatmul.mubr.f32.vlgmr.msra.gmra.mrb[74].mxu1 %v7052_v60  ;;  %v7550_v60 = vand.u32 4294901760, %v29328_v51 }
 0x28a   : > { %24685 = vmatpush3.bf16.msra.mxu1 %v29179_v42  ;;  %21626 = vmatprep.mubr.msk.f32.mxu1 %vm26253_vm0, %v26254_v13  ;;  %v24675_v42 = vpack.c.bf16 %v7084_v27, %v7077_v0  ;;  %v29355_v0 = vsub.f32 %v29295_v32, %v7544_v5  ;;  %v7547_v27 = vand.u32 4294901760, %v29323_v52 }
 0x28b   : > { %24686 = vmatprep.subr.bf16.mxu1 %v26252_v3  ;;  %v29382_v53 = vsub.f32 %v29328_v51, %v7550_v60  ;;  %v24723_v51 = vpack.c.bf16 %v29311_v6, %v29306_v38 }
 0x28c   : > { %24658 = vmatpush3.bf16.msra.mxu0 %v24657_v40  ;;  %v4964_v34 = vpop.f32.mrb[48].mxu1  ;;  %v7649_v1 = vand.u32 4294901760, %v29355_v0  ;;  %v29377_v20 = vsub.f32 %v29323_v52, %v7547_v27  ;;  %v7643_v40 = vsub.f32 %v29348_v37, %v7642_v39  ;;  %v29451_v48 = vpack.c.bf16 %v7550_v60, %v7547_v27  ;;  %v29473_v27 = vld [vmem:[%s33596_s1 + $0x3c0] sm:$0xff]  ;;  %v29478_v60 = vld [vmem:[%s33596_s1 + $0x3c8] sm:$0xff] }
 0x28d   : > { %24671 = vmatprep.subr.bf16.mxu0 %v26252_v3  ;;  %v21096_v45 = vpop.f32.mrb[49].mxu1 }
 0x28e   : > { %24688 = vmatpush3.bf16.msra.mxu1 %v29201_v10  ;;  %v7616_v10 = vand.u32 4294901760, %v7615_v17  ;;  %v7650_v11 = vsub.f32 %v29355_v0, %v7649_v1  ;;  %v7656_v49 = vand.u32 4294901760, %v29377_v20 }
 0x28f   : > { %21570 = vmatmul.mubr.f32.vlgmr.msra.gmra.mrb[74].mxu0 %v29194_v57  ;;  %v7628_v57 = vand.u32 4294901760, %v29306_v38  ;;  %24689 = vmatprep.subr.bf16.mxu1 %v26252_v3 }
 0x290   : > { %24673 = vmatpush3.bf16.msra.mxu0 %v24672_v56  ;;  %21607 = vmatprep.mubr.msk.f32.mxu0 %vm26253_vm0, %v26254_v13  ;;  %v24708_v59 = vpack.c.bf16 %v7623_v26, %v7616_v10  ;;  %v7657_v45 = vsub.f32 %v29377_v20, %v7656_v49 }
 0x291   : > { %24674 = vmatprep.subr.bf16.mxu0 %v26252_v3  ;;  %v7629_v31 = vsub.f32 %v29306_v38, %v7628_v57 }
 0x292   : > { %v4853_v33 = vpop.f32.mrb[48].mxu0  ;;  %24691 = vmatpush3.bf16.msra.mxu1 %v29213_v15  ;;  %v24681_v15 = vpack.c.bf16 %v7112_v16, %v7105_v4  ;;  %v7663_v4 = vand.u32 4294901760, %v29382_v53 }
 0x293   : > { %v4854_v22 = vadd.f32 %v4853_v33, %v4768_v47  ;;  %v21077_v50 = vpop.f32.mrb[49].mxu0  ;;  %24692 = vmatprep.subr.bf16.mxu1 %v26252_v3  ;;  %v7630_v2 = vand.u32 4294901760, %v7629_v31  ;;  %v7526_v47 = vsel %vm293_vm1, %v7515_v44, 0  ;;  %v8133_v44 = vand.u32 4294901760, %v29473_v27 }
 0x294   : > { %24676 = vmatpush3.bf16.msra.mxu0 %v24675_v42  ;;  %v29401_v16 = vand.u32 4294901760, %v7526_v47  ;;  %v7651_v42 = vand.u32 4294901760, %v7650_v11  ;;  %v7664_v28 = vsub.f32 %v29382_v53, %v7663_v4 }
 0x295   : > { %v4965_v55 = vadd.f32 %v4964_v34, %v4854_v22  ;;  %24677 = vmatprep.subr.bf16.mxu0 %v26252_v3  ;;  %v24711_v56 = vpack.c.bf16 %v7637_v23, %v7630_v2  ;;  %v7644_v34 = vand.u32 4294901760, %v7643_v40  ;;  %v29492_v2 = vld [vmem:[%s33596_s1 + $0x3d0] sm:$0xff]  ;;  %v29497_v23 = vld [vmem:[%s33596_s1 + $0x3d8] sm:$0xff]  ;;  %v29505_v40 = vsub.f32 %v29473_v27, %v8133_v44 }
 0x296   : > { %24694 = vmatpush3.bf16.msra.mxu1 %v29223_v41  ;;  %v29407_v41 = vpack.c.bf16 %v7532_v62, %v7529_v9  ;;  %v29422_v9 = vsub.f32 %v7526_v47, %v29401_v16  ;;  %v29429_v62 = vpack.c.bf16 %v7538_v25, %v7535_v36  ;;  %v7665_v33 = vand.u32 4294901760, %v7664_v28 }
 0x297   : > { %24707 = vmatprep.subr.bf16.mxu1 %v26252_v3  ;;  %v24714_v8 = vpack.c.bf16 %v7651_v42, %v7644_v34  ;;  %v24729_v47 = vpack.c.bf16 %v29382_v53, %v29377_v20  ;;  %v8142_v34 = vand.u32 4294901760, %v29497_v23  ;;  %v29520_v42 = vld [vmem:[%s33596_s1 + $0x3e0] sm:$0xff]  ;;  %v24744_v28 = vpack.c.bf16 %v7621_v43, %v7614_v29  ;;  %v29553_v43 = vld [vmem:[%s33596_s1 + $0x3f0] sm:$0xff] }
 0x298   : > { %24679 = vmatpush3.bf16.msra.mxu0 %v24678_v18  ;;  %v7603_v30 = vand.u32 4294901760, %v29422_v9  ;;  %v8145_v54 = vand.u32 4294901760, %v29520_v42 }
 0x299   : > { %24680 = vmatprep.subr.bf16.mxu0 %v26252_v3  ;;  %21627 = vmatmul.mubr.f32.vlgmr.msra.gmra.mrb[76].mxu1 %v29173_v61 }
 0x29a   : > { %24709 = vmatpush3.bf16.msra.mxu1 %v24708_v59  ;;  %21664 = vmatprep.mubr.msk.f32.mxu1 %vm26253_vm0, %v26254_v13  ;;  %v7604_v10 = vsub.f32 %v29422_v9, %v7603_v30  ;;  %v29580_v6 = vsub.f32 %v29520_v42, %v8145_v54 }
 0x29b   : > { %24710 = vmatprep.subr.bf16.mxu1 %v26252_v3 }
 0x29c   : > { %24682 = vmatpush3.bf16.msra.mxu0 %v24681_v15  ;;  %v5133_v17 = vpop.f32.mrb[50].mxu1  ;;  %v7605_v32 = vand.u32 4294901760, %v7604_v10  ;;  %v8136_v15 = vand.u32 4294901760, %v29478_v60 }
 0x29d   : > { %24695 = vmatprep.subr.bf16.mxu0 %v26252_v3  ;;  %v21134_v58 = vpop.f32.mrb[51].mxu1 }
 0x29e   : > { %24712 = vmatpush3.bf16.msra.mxu1 %v24711_v56  ;;  %v29510_v11 = vsub.f32 %v29478_v60, %v8136_v15  ;;  %v8139_v56 = vand.u32 4294901760, %v29492_v2 }
 0x29f   : > { %21608 = vmatmul.mubr.f32.vlgmr.msra.gmra.mrb[76].mxu0 %v29173_v61  ;;  %v7658_v61 = vand.u32 4294901760, %v7657_v45  ;;  %24713 = vmatprep.subr.bf16.mxu1 %v26252_v3  ;;  %v29525_v45 = vld [vmem:[%s33596_s1 + $0x3e8] sm:$0xff] }
 0x2a0   : > { %24697 = vmatpush3.bf16.msra.mxu0 %v29407_v41  ;;  %21645 = vmatprep.mubr.msk.f32.mxu0 %vm26253_vm0, %v26254_v13  ;;  %v8225_v58 = vand.u32 4294901760, %v29510_v11  ;;  %v8148_v24 = vand.u32 4294901760, %v29525_v45 }
 0x2a1   : > { %24698 = vmatprep.subr.bf16.mxu0 %v26252_v3  ;;  %v24717_v25 = vpack.c.bf16 %v7665_v33, %v7658_v61  ;;  %v29541_v61 = vsub.f32 %v29497_v23, %v8142_v34  ;;  %v29558_v33 = vld [vmem:[%s33596_s1 + $0x3f8] sm:$0xff] }
 0x2a2   : > { %v5052_v22 = vpop.f32.mrb[50].mxu0  ;;  %24715 = vmatpush3.bf16.msra.mxu1 %v24714_v8  ;;  %v29536_v8 = vsub.f32 %v29492_v2, %v8139_v56  ;;  %v29671_v23 = vpack.c.bf16 %v8148_v24, %v8145_v54  ;;  %v24792_v54 = vpack.c.bf16 %v29510_v11, %v29505_v40 }
 0x2a3   : > { %v5053_v50 = vadd.f32 %v5052_v22, %v4965_v55  ;;  %v21115_v18 = vpop.f32.mrb[51].mxu0  ;;  %24716 = vmatprep.subr.bf16.mxu1 %v26252_v3  ;;  %v24726_v55 = vpack.c.bf16 %v29355_v0, %v29348_v37  ;;  %v8239_v38 = vand.u32 4294901760, %v29541_v61  ;;  %v8246_v37 = vand.u32 4294901760, %v29580_v6 }
 0x2a4   : > { %24700 = vmatpush3.bf16.msra.mxu0 %v29429_v62  ;;  %v8226_v18 = vsub.f32 %v29510_v11, %v8225_v58 }
 0x2a5   : > { %v5134_v36 = vadd.f32 %v5133_v17, %v5053_v50  ;;  %24701 = vmatprep.subr.bf16.mxu0 %v26252_v3  ;;  %v8218_v17 = vand.u32 4294901760, %v29505_v40 }
 0x2a6   : > { %24718 = vmatpush3.bf16.msra.mxu1 %v24717_v25 }
 0x2a7   : > { %24731 = vmatprep.subr.bf16.mxu1 %v26252_v3  ;;  %v8219_v50 = vsub.f32 %v29505_v40, %v8218_v17 }
 0x2a8   : > { %24703 = vmatpush3.bf16.msra.mxu0 %v29441_v19 }
 0x2a9   : > { %24704 = vmatprep.subr.bf16.mxu0 %v26252_v3  ;;  %21665 = vmatmul.mubr.f32.vlgmr.msra.gmra.mrb[78].mxu1 %v29401_v16 }
 0x2aa   : > { %24733 = vmatpush3.bf16.msra.mxu1 %v29407_v41  ;;  %21702 = vmatprep.mubr.msk.f32.mxu1 %vm26253_vm0, %v26254_v13 }
 0x2ab   : > { %24734 = vmatprep.subr.bf16.mxu1 %v26252_v3 }
 0x2ac   : > { %24706 = vmatpush3.bf16.msra.mxu0 %v29451_v48  ;;  %v5307_v5 = vpop.f32.mrb[52].mxu1 }
 0x2ad   : > { %24719 = vmatprep.subr.bf16.mxu0 %v26252_v3  ;;  %v21172_v52 = vpop.f32.mrb[53].mxu1 }
 0x2ae   : > { %24736 = vmatpush3.bf16.msra.mxu1 %v29429_v62  ;;  %v8240_v52 = vsub.f32 %v29541_v61, %v8239_v38 }
 0x2af   : > { %21646 = vmatmul.mubr.f32.vlgmr.msra.gmra.mrb[78].mxu0 %v7605_v32  ;;  %24737 = vmatprep.subr.bf16.mxu1 %v26252_v3  ;;  %v8220_v32 = vand.u32 4294901760, %v8219_v50 }
 0x2b0   : > { %24721 = vmatpush3.bf16.msra.mxu0 %v24720_v14  ;;  %21683 = vmatprep.mubr.msk.f32.mxu0 %vm26253_vm0, %v26254_v13  ;;  %v8227_v14 = vand.u32 4294901760, %v8226_v18 }
 0x2b1   : > { %24722 = vmatprep.subr.bf16.mxu0 %v26252_v3 }
 0x2b2   : > { %v5228_v26 = vpop.f32.mrb[52].mxu0  ;;  %24739 = vmatpush3.bf16.msra.mxu1 %v29441_v19 }
 0x2b3   : > { %v5229_v31 = vadd.f32 %v5228_v26, %v5134_v36  ;;  %v21153_v12 = vpop.f32.mrb[53].mxu0  ;;  %24740 = vmatprep.subr.bf16.mxu1 %v26252_v3  ;;  %v24780_v26 = vpack.c.bf16 %v8227_v14, %v8220_v32 }
 0x2b4   : > { %24724 = vmatpush3.bf16.msra.mxu0 %v24723_v51  ;;  %v8119_v51 = vld [vmem:[#allocation2 + $0x21] sm:$0xff]  ;;  %v8241_v12 = vand.u32 4294901760, %v8240_v52 }
 0x2b5   : > { %v29485_v59 = vadd.f32 %v5307_v5, %v5229_v31  ;;  %24725 = vmatprep.subr.bf16.mxu0 %v26252_v3 }
 0x2b6   : > { %24742 = vmatpush3.bf16.msra.mxu1 %v29451_v48 }
 0x2b7   : > { %24755 = vmatprep.subr.bf16.mxu1 %v26252_v3 }
 0x2b8   : > { %24727 = vmatpush3.bf16.msra.mxu0 %v24726_v55  ;;  %v8130_v55 = vsel %vm293_vm1, %v8119_v51, 0 }
 0x2b9   : > { %24728 = vmatprep.subr.bf16.mxu0 %v26252_v3  ;;  %21703 = vmatmul.mubr.f32.vlgmr.msra.gmra.mrb[80].mxu1 %v7603_v30  ;;  %v8154_v30 = vand.u32 4294901760, %v29558_v33 }
 0x2ba   : > { %24757 = vmatpush3.bf16.msra.mxu1 %v29407_v41  ;;  %21740 = vmatprep.mubr.msk.f32.mxu1 %vm26253_vm0, %v26254_v13  ;;  %v24747_v41 = vpack.c.bf16 %v7635_v35, %v7628_v57  ;;  %v29585_v57 = vsub.f32 %v29525_v45, %v8148_v24  ;;  %v8151_v35 = vand.u32 4294901760, %v29553_v43 }
 0x2bb   : > { %24758 = vmatprep.subr.bf16.mxu1 %v26252_v3 }
 0x2bc   : > { %24730 = vmatpush3.bf16.msra.mxu0 %v24729_v47  ;;  %v5514_v29 = vpop.f32.mrb[54].mxu1  ;;  %v8253_v0 = vand.u32 4294901760, %v29585_v57  ;;  %v8247_v47 = vsub.f32 %v29580_v6, %v8246_v37  ;;  %v29683_v42 = vpack.c.bf16 %v8154_v30, %v8151_v35 }
 0x2bd   : > { %24743 = vmatprep.subr.bf16.mxu0 %v26252_v3  ;;  %v21210_v22 = vpop.f32.mrb[55].mxu1 }
 0x2be   : > { %24760 = vmatpush3.bf16.msra.mxu1 %v29429_v62  ;;  %v24750_v62 = vpack.c.bf16 %v7649_v1, %v7642_v39  ;;  %v29607_v39 = vsub.f32 %v29553_v43, %v8151_v35  ;;  %v29612_v1 = vsub.f32 %v29558_v33, %v8154_v30  ;;  %v8254_v20 = vsub.f32 %v29585_v57, %v8253_v0  ;;  %v29703_v35 = vld [vmem:[%s33596_s1 + $0x380] sm:$0xff]  ;;  %v29708_v30 = vld [vmem:[%s33596_s1 + $0x388] sm:$0xff] }
 0x2bf   : > { %21684 = vmatmul.mubr.f32.vlgmr.msra.gmra.mrb[80].mxu0 %v29422_v9  ;;  %v8232_v9 = vand.u32 4294901760, %v29536_v8  ;;  %24761 = vmatprep.subr.bf16.mxu1 %v26252_v3  ;;  %v24795_v33 = vpack.c.bf16 %v29541_v61, %v29536_v8  ;;  %v8673_v51 = vand.u32 4294901760, %v29703_v35 }
 0x2c0   : > { %24745 = vmatpush3.bf16.msra.mxu0 %v24744_v28  ;;  %21721 = vmatprep.mubr.msk.f32.mxu0 %vm26253_vm0, %v26254_v13  ;;  %v8260_v53 = vand.u32 4294901760, %v29607_v39 }
 0x2c1   : > { %24746 = vmatprep.subr.bf16.mxu0 %v26252_v3  ;;  %v8233_v5 = vsub.f32 %v29536_v8, %v8232_v9 }
 0x2c2   : > { %v5403_v36 = vpop.f32.mrb[54].mxu0  ;;  %24763 = vmatpush3.bf16.msra.mxu1 %v29441_v19  ;;  %v24753_v19 = vpack.c.bf16 %v7663_v4, %v7656_v49  ;;  %v8267_v49 = vand.u32 4294901760, %v29612_v1  ;;  %v29631_v4 = vand.u32 4294901760, %v8130_v55  ;;  %v8261_v22 = vsub.f32 %v29607_v39, %v8260_v53 }
 0x2c3   : > { %v21191_v25 = vpop.f32.mrb[55].mxu0  ;;  %v5515_v10 = vadd.f32 %v5514_v29, %v5403_v36  ;;  %24764 = vmatprep.subr.bf16.mxu1 %v26252_v3  ;;  %v8234_v31 = vand.u32 4294901760, %v8233_v5  ;;  %v8248_v29 = vand.u32 4294901760, %v8247_v47 }
 0x2c4   : > { %24748 = vmatpush3.bf16.msra.mxu0 %v24747_v41  ;;  %v8255_v41 = vand.u32 4294901760, %v8254_v20  ;;  %v8268_v27 = vsub.f32 %v29612_v1, %v8267_v49  ;;  %v29736_v20 = vsub.f32 %v29703_v35, %v8673_v51 }
 0x2c5   : > { %24749 = vmatprep.subr.bf16.mxu0 %v26252_v3  ;;  %v24783_v28 = vpack.c.bf16 %v8241_v12, %v8234_v31  ;;  %v29722_v12 = vld [vmem:[%s33596_s1 + $0x390] sm:$0xff] }
 0x2c6   : > { %24766 = vmatpush3.bf16.msra.mxu1 %v29451_v48  ;;  %v29637_v48 = vpack.c.bf16 %v8136_v15, %v8133_v44  ;;  %v29652_v44 = vsub.f32 %v8130_v55, %v29631_v4  ;;  %v29659_v15 = vpack.c.bf16 %v8142_v34, %v8139_v56  ;;  %v24786_v18 = vpack.c.bf16 %v8255_v41, %v8248_v29  ;;  %v29727_v55 = vld [vmem:[%s33596_s1 + $0x398] sm:$0xff] }
 0x2c7   : > { %24779 = vmatprep.subr.bf16.mxu1 %v26252_v3  ;;  %v8269_v36 = vand.u32 4294901760, %v8268_v27  ;;  %v24801_v29 = vpack.c.bf16 %v29612_v1, %v29607_v39  ;;  %v8679_v41 = vand.u32 4294901760, %v29722_v12 }
 0x2c8   : > { %24751 = vmatpush3.bf16.msra.mxu0 %v24750_v62  ;;  %v8207_v2 = vand.u32 4294901760, %v29652_v44 }
 0x2c9   : > { %24752 = vmatprep.subr.bf16.mxu0 %v26252_v3  ;;  %21741 = vmatmul.mubr.f32.vlgmr.msra.gmra.mrb[82].mxu1 %v29401_v16 }
 0x2ca   : > { %24781 = vmatpush3.bf16.msra.mxu1 %v24780_v26  ;;  %21778 = vmatprep.mubr.msk.f32.mxu1 %vm26253_vm0, %v26254_v13  ;;  %v24798_v26 = vpack.c.bf16 %v29585_v57, %v29580_v6 }
 0x2cb   : > { %24782 = vmatprep.subr.bf16.mxu1 %v26252_v3 }
 0x2cc   : > { %24754 = vmatpush3.bf16.msra.mxu0 %v24753_v19  ;;  %v5683_v50 = vpop.f32.mrb[56].mxu1  ;;  %v8676_v19 = vand.u32 4294901760, %v29708_v30 }
 0x2cd   : > { %24767 = vmatprep.subr.bf16.mxu0 %v26252_v3  ;;  %v21248_v60 = vpop.f32.mrb[57].mxu1 }
 0x2ce   : > { %24784 = vmatpush3.bf16.msra.mxu1 %v24783_v28  ;;  %v29741_v28 = vsub.f32 %v29708_v30, %v8676_v19  ;;  %v29758_v60 = vld [vmem:[%s33596_s1 + $0x3a8] sm:$0xff] }
 0x2cf   : > { %21722 = vmatmul.mubr.f32.vlgmr.msra.gmra.mrb[82].mxu0 %v29401_v16  ;;  %v8262_v16 = vand.u32 4294901760, %v8261_v22  ;;  %24785 = vmatprep.subr.bf16.mxu1 %v26252_v3  ;;  %v8682_v22 = vand.u32 4294901760, %v29727_v55 }
 0x2d0   : > { %24769 = vmatpush3.bf16.msra.mxu0 %v29637_v48  ;;  %21759 = vmatprep.mubr.msk.f32.mxu0 %vm26253_vm0, %v26254_v13 }
 0x2d1   : > { %24770 = vmatprep.subr.bf16.mxu0 %v26252_v3  ;;  %v24789_v34 = vpack.c.bf16 %v8269_v36, %v8262_v16  ;;  %v8758_v16 = vand.u32 4294901760, %v29736_v20  ;;  %v8765_v36 = vand.u32 4294901760, %v29741_v28  ;;  %v29776_v40 = vsub.f32 %v29727_v55, %v8682_v22 }
 0x2d2   : > { %v5602_v25 = vpop.f32.mrb[56].mxu0  ;;  %24787 = vmatpush3.bf16.msra.mxu1 %v24786_v18  ;;  %v24816_v18 = vpack.c.bf16 %v8225_v58, %v8218_v17  ;;  %v8688_v58 = vand.u32 4294901760, %v29758_v60 }
 0x2d3   : > { %v5603_v62 = vadd.f32 %v5602_v25, %v5515_v10  ;;  %v21229_v32 = vpop.f32.mrb[57].mxu0  ;;  %24788 = vmatprep.subr.bf16.mxu1 %v26252_v3  ;;  %v8208_v10 = vsub.f32 %v29652_v44, %v8207_v2  ;;  %v8779_v61 = vand.u32 4294901760, %v29776_v40 }
 0x2d4   : > { %24772 = vmatpush3.bf16.msra.mxu0 %v29659_v15 }
 0x2d5   : > { %v5684_v56 = vadd.f32 %v5683_v50, %v5603_v62  ;;  %24773 = vmatprep.subr.bf16.mxu0 %v26252_v3  ;;  %v8209_v45 = vand.u32 4294901760, %v8208_v10  ;;  %v29753_v50 = vld [vmem:[%s33596_s1 + $0x3a0] sm:$0xff]  ;;  %v29771_v62 = vsub.f32 %v29722_v12, %v8679_v41  ;;  %v24819_v10 = vpack.c.bf16 %v8239_v38, %v8232_v9 }
 0x2d6   : > { %24790 = vmatpush3.bf16.msra.mxu1 %v24789_v34  ;;  %v8685_v17 = vand.u32 4294901760, %v29753_v50  ;;  %v29788_v34 = vld [vmem:[%s33596_s1 + $0x3b0] sm:$0xff]  ;;  %v29820_v38 = vsub.f32 %v29758_v60, %v8688_v58 }
 0x2d7   : > { %24803 = vmatprep.subr.bf16.mxu1 %v26252_v3  ;;  %v8772_v8 = vand.u32 4294901760, %v29771_v62 }
 0x2d8   : > { %24775 = vmatpush3.bf16.msra.mxu0 %v29671_v23  ;;  %v29815_v9 = vsub.f32 %v29753_v50, %v8685_v17  ;;  %v8793_v57 = vand.u32 4294901760, %v29820_v38  ;;  %v29906_v55 = vpack.c.bf16 %v8688_v58, %v8685_v17  ;;  %v24864_v17 = vpack.c.bf16 %v29741_v28, %v29736_v20 }
 0x2d9   : > { %24776 = vmatprep.subr.bf16.mxu0 %v26252_v3  ;;  %21779 = vmatmul.mubr.f32.vlgmr.msra.gmra.mrb[84].mxu1 %v29631_v4 }
 0x2da   : > { %24805 = vmatpush3.bf16.msra.mxu1 %v29637_v48  ;;  %21816 = vmatprep.mubr.msk.f32.mxu1 %vm26253_vm0, %v26254_v13  ;;  %v8786_v6 = vand.u32 4294901760, %v29815_v9  ;;  %v8794_v39 = vsub.f32 %v29820_v38, %v8793_v57 }
 0x2db   : > { %24806 = vmatprep.subr.bf16.mxu1 %v26252_v3 }
 0x2dc   : > { %24778 = vmatpush3.bf16.msra.mxu0 %v29683_v42  ;;  %v5857_v24 = vpop.f32.mrb[58].mxu1 }
 0x2dd   : > { %24791 = vmatprep.subr.bf16.mxu0 %v26252_v3  ;;  %v21286_v43 = vpop.f32.mrb[59].mxu1 }
 0x2de   : > { %24808 = vmatpush3.bf16.msra.mxu1 %v29659_v15 }
 0x2df   : > { %21760 = vmatmul.mubr.f32.vlgmr.msra.gmra.mrb[84].mxu0 %v8209_v45  ;;  %24809 = vmatprep.subr.bf16.mxu1 %v26252_v3 }
 0x2e0   : > { %24793 = vmatpush3.bf16.msra.mxu0 %v24792_v54  ;;  %21797 = vmatprep.mubr.msk.f32.mxu0 %vm26253_vm0, %v26254_v13  ;;  %v8759_v54 = vsub.f32 %v29736_v20, %v8758_v16 }
 0x2e1   : > { %24794 = vmatprep.subr.bf16.mxu0 %v26252_v3 }
 0x2e2   : > { %v5778_v14 = vpop.f32.mrb[58].mxu0  ;;  %24811 = vmatpush3.bf16.msra.mxu1 %v29671_v23 }
 0x2e3   : > { %v5779_v5 = vadd.f32 %v5778_v14, %v5684_v56  ;;  %v21267_v52 = vpop.f32.mrb[59].mxu0  ;;  %24812 = vmatprep.subr.bf16.mxu1 %v26252_v3 }
 0x2e4   : > { %24796 = vmatpush3.bf16.msra.mxu0 %v24795_v33 }
 0x2e5   : > { %v5858_v31 = vadd.f32 %v5857_v24, %v5779_v5  ;;  %24797 = vmatprep.subr.bf16.mxu0 %v26252_v3  ;;  %v8766_v24 = vsub.f32 %v29741_v28, %v8765_v36 }
 0x2e6   : > { %24814 = vmatpush3.bf16.msra.mxu1 %v29683_v42 }
 0x2e7   : > { %v29731_v47 = vadd.f32 %v5858_v31, %v29485_v59  ;;  %24827 = vmatprep.subr.bf16.mxu1 %v26252_v3 }
 0x2e8   : > { %24799 = vmatpush3.bf16.msra.mxu0 %v24798_v26 }
 0x2e9   : > { %v4173_v59 = vpop.xlane.xlu0 %4172  ;;  %24800 = vmatprep.subr.bf16.mxu0 %v26252_v3  ;;  %21817 = vmatmul.mubr.f32.vlgmr.msra.gmra.mrb[86].mxu1 %v8207_v2 }
 0x2ea   : > { %v4174_v27 = vrot.slane %v4173_v59, 4  ;;  %24829 = vmatpush3.bf16.msra.mxu1 %v29637_v48  ;;  %21854 = vmatprep.mubr.msk.f32.mxu1 %vm26253_vm0, %v26254_v13  ;;  %v29793_v48 = vld [vmem:[%s33596_s1 + $0x3b8] sm:$0xff] }
 0x2eb   : > { %24830 = vmatprep.subr.bf16.mxu1 %v26252_v3  ;;  %v8694_v14 = vand.u32 4294901760, %v29793_v48 }
 0x2ec   : > { %v4175_v25 = vadd.f32 %v4174_v27, %v4173_v59  ;;  %24802 = vmatpush3.bf16.msra.mxu0 %v24801_v29  ;;  %v6065_v56 = vpop.f32.mrb[60].mxu1  ;;  %v24822_v29 = vpack.c.bf16 %v8253_v0, %v8246_v37  ;;  %v8760_v59 = vand.u32 4294901760, %v8759_v54  ;;  %v8767_v27 = vand.u32 4294901760, %v8766_v24 }
 0x2ed   : > { %v4185_v11 = vpop.xlane.xlu0 %4184  ;;  %24815 = vmatprep.subr.bf16.mxu0 %v26252_v3  ;;  %v21324_v45 = vpop.f32.mrb[61].mxu1  ;;  %v29847_v0 = vsub.f32 %v29793_v48, %v8694_v14  ;;  %v24867_v48 = vpack.c.bf16 %v29776_v40, %v29771_v62 }
 0x2ee   : > { %v4176_v32 = vrot.slane %v4175_v25, 2  ;;  %v4186_v2 = vrot.slane %v4185_v11, 4  ;;  %24832 = vmatpush3.bf16.msra.mxu1 %v29659_v15 }
 0x2ef   : > { %21798 = vmatmul.mubr.f32.vlgmr.msra.gmra.mrb[86].mxu0 %v29652_v44  ;;  %v8691_v44 = vand.u32 4294901760, %v29788_v34  ;;  %24833 = vmatprep.subr.bf16.mxu1 %v26252_v3 }
 0x2f0   : > { %v4187_v43 = vadd.f32 %v4186_v2, %v4185_v11  ;;  %24817 = vmatpush3.bf16.msra.mxu0 %v24816_v18  ;;  %v4177_v33 = vadd.f32 %v4176_v32, %v4175_v25  ;;  %21835 = vmatprep.mubr.msk.f32.mxu0 %vm26253_vm0, %v26254_v13  ;;  %v8773_v11 = vsub.f32 %v29771_v62, %v8772_v8  ;;  %v8109_v2 = vld [vmem:[#allocation2 + $0x20] sm:$0xff] }
 0x2f1   : > { %24818 = vmatprep.subr.bf16.mxu0 %v26252_v3  ;;  %v8780_v32 = vsub.f32 %v29776_v40, %v8779_v61  ;;  %v29842_v37 = vsub.f32 %v29788_v34, %v8691_v44  ;;  %v29916_v50 = vpack.c.bf16 %v8694_v14, %v8691_v44  ;;  %v29938_v44 = vld [vmem:[%s33596_s1 + $0x400] sm:$0xff]  ;;  %v29943_v14 = vld [vmem:[%s33596_s1 + $0x408] sm:$0xff] }
 0x2f2   : > { %v4188_v5 = vrot.slane %v4187_v43, 2  ;;  %v5954_v52 = vpop.f32.mrb[60].mxu0  ;;  %v4178_v26 = vrot.slane %v4177_v33, 1  ;;  %24835 = vmatpush3.bf16.msra.mxu1 %v29671_v23  ;;  %v24825_v23 = vpack.c.bf16 %v8267_v49, %v8260_v53  ;;  %v8774_v54 = vand.u32 4294901760, %v8773_v11 }
 0x2f3   : > { %v21305_v15 = vpop.f32.mrb[61].mxu0  ;;  %v6066_v31 = vadd.f32 %v6065_v56, %v5954_v52  ;;  %24836 = vmatprep.subr.bf16.mxu1 %v26252_v3  ;;  %v8781_v24 = vand.u32 4294901760, %v8780_v32  ;;  %v8800_v1 = vand.u32 4294901760, %v29842_v37  ;;  %v8807_v53 = vand.u32 4294901760, %v29847_v0 }
 0x2f4   : > { %24820 = vmatpush3.bf16.msra.mxu0 %v24819_v10  ;;  %v4179_v18 = vadd.f32 %v4178_v26, %v4177_v33  ;;  %v4189_v25 = vadd.f32 %v4188_v5, %v4187_v43  ;;  %v24852_v10 = vpack.c.bf16 %v8767_v27, %v8760_v59  ;;  %v8670_v43 = vsel %vm293_vm1, %v8109_v2, 0 }
 0x2f5   : > { %24821 = vmatprep.subr.bf16.mxu0 %v26252_v3  ;;  %v8787_v33 = vsub.f32 %v29815_v9, %v8786_v6  ;;  %v29866_v49 = vand.u32 4294901760, %v8670_v43  ;;  %v24855_v5 = vpack.c.bf16 %v8781_v24, %v8774_v54  ;;  %v8795_v26 = vand.u32 4294901760, %v8794_v39  ;;  %v29955_v24 = vld [vmem:[%s33596_s1 + $0x410] sm:$0xff] }
 0x2f6   : > { %26135 = vpush %v4179_v18  ;;  %v4190_v56 = vrot.slane %v4189_v25, 1  ;;  %24838 = vmatpush3.bf16.msra.mxu1 %v29683_v42  ;;  %v29872_v42 = vpack.c.bf16 %v8676_v19, %v8673_v51  ;;  %v8801_v15 = vsub.f32 %v29842_v37, %v8800_v1  ;;  %v8808_v35 = vsub.f32 %v29847_v0, %v8807_v53 }
 0x2f7   : > { %24851 = vmatprep.subr.bf16.mxu1 %v26252_v3  ;;  %v8788_v52 = vand.u32 4294901760, %v8787_v33  ;;  %v29887_v51 = vsub.f32 %v8670_v43, %v29866_v49  ;;  %v29894_v19 = vpack.c.bf16 %v8682_v22, %v8679_v41  ;;  %v29960_v43 = vld [vmem:[%s33596_s1 + $0x418] sm:$0xff]  ;;  %v24873_v39 = vpack.c.bf16 %v29847_v0, %v29842_v37 }
 0x2f8   : > { %24823 = vmatpush3.bf16.msra.mxu0 %v24822_v29  ;;  %v4191_v45 = vadd.f32 %v4190_v56, %v4189_v25  ;;  %v8809_v27 = vand.u32 4294901760, %v8808_v35  ;;  %v29991_v35 = vld [vmem:[%s33596_s1 + $0x428] sm:$0xff] }
 0x2f9   : > { %24824 = vmatprep.subr.bf16.mxu0 %v26252_v3  ;;  %21855 = vmatmul.mubr.f32.vlgmr.msra.gmra.mrb[88].mxu1 %v29631_v4  ;;  %v24858_v59 = vpack.c.bf16 %v8795_v26, %v8788_v52  ;;  %v8747_v12 = vand.u32 4294901760, %v29887_v51  ;;  %v9229_v26 = vand.u32 4294901760, %v29955_v24  ;;  %v9238_v28 = vand.u32 4294901760, %v29991_v35 }
 0x2fa   : > { %26137 = vpush %v4191_v45  ;;  %24853 = vmatpush3.bf16.msra.mxu1 %v24852_v10  ;;  %21892 = vmatprep.mubr.msk.f32.mxu1 %vm26253_vm0, %v26254_v13  ;;  %v9223_v10 = vand.u32 4294901760, %v29938_v44  ;;  %v9226_v45 = vand.u32 4294901760, %v29943_v14 }
 0x2fb   : > { %24854 = vmatprep.subr.bf16.mxu1 %v26252_v3 }
 0x2fc   : > { %24826 = vmatpush3.bf16.msra.mxu0 %v24825_v23  ;;  %v6234_v29 = vpop.f32.mrb[62].mxu1  ;;  %v24870_v23 = vpack.c.bf16 %v29820_v38, %v29815_v9  ;;  %v29976_v52 = vsub.f32 %v29943_v14, %v9226_v45 }
 0x2fd   : > { %24839 = vmatprep.subr.bf16.mxu0 %v26252_v3  ;;  %v21362_v30 = vpop.f32.mrb[63].mxu1 }
 0x2fe   : > { %24856 = vmatpush3.bf16.msra.mxu1 %v24855_v5  ;;  %v29971_v5 = vsub.f32 %v29938_v44, %v9223_v10 }
 0x2ff   : > { %21836 = vmatmul.mubr.f32.vlgmr.msra.gmra.mrb[88].mxu0 %v29631_v4  ;;  %v8802_v4 = vand.u32 4294901760, %v8801_v15  ;;  %24857 = vmatprep.subr.bf16.mxu1 %v26252_v3  ;;  %v9232_v15 = vand.u32 4294901760, %v29960_v43 }
 0x300   : > { %24841 = vmatpush3.bf16.msra.mxu0 %v29872_v42  ;;  %21873 = vmatprep.mubr.msk.f32.mxu0 %vm26253_vm0, %v26254_v13  ;;  %v9308_v30 = vand.u32 4294901760, %v29971_v5 }
 0x301   : > { %24842 = vmatprep.subr.bf16.mxu0 %v26252_v3  ;;  %v24861_v22 = vpack.c.bf16 %v8809_v27, %v8802_v4  ;;  %v30002_v4 = vsub.f32 %v29955_v24, %v9229_v26  ;;  %v30007_v27 = vsub.f32 %v29960_v43, %v9232_v15 }
 0x302   : > { %v6153_v18 = vpop.f32.mrb[62].mxu0  ;;  %24859 = vmatpush3.bf16.msra.mxu1 %v24858_v59  ;;  %v9315_v59 = vand.u32 4294901760, %v29976_v52 }
 0x303   : > { %v6154_v25 = vadd.f32 %v6153_v18, %v6066_v31  ;;  %v21343_v11 = vpop.f32.mrb[63].mxu0  ;;  %24860 = vmatprep.subr.bf16.mxu1 %v26252_v3  ;;  %v8748_v31 = vsub.f32 %v29887_v51, %v8747_v12  ;;  %v30024_v18 = vld [vmem:[%s33596_s1 + $0x438] sm:$0xff]  ;;  %v9329_v62 = vand.u32 4294901760, %v30007_v27 }
 0x304   : > { %24844 = vmatpush3.bf16.msra.mxu0 %v29894_v19  ;;  %v9309_v11 = vsub.f32 %v29971_v5, %v9308_v30 }
 0x305   : > { %v6235_v41 = vadd.f32 %v6234_v29, %v6154_v25  ;;  %24845 = vmatprep.subr.bf16.mxu0 %v26252_v3  ;;  %v8749_v60 = vand.u32 4294901760, %v8748_v31  ;;  %v24888_v29 = vpack.c.bf16 %v8765_v36, %v8758_v16  ;;  %v30019_v36 = vld [vmem:[%s33596_s1 + $0x430] sm:$0xff] }
 0x306   : > { %24862 = vmatpush3.bf16.msra.mxu1 %v24861_v22 }
 0x307   : > { %24875 = vmatprep.subr.bf16.mxu1 %v26252_v3 }
 0x308   : > { %24847 = vmatpush3.bf16.msra.mxu0 %v29906_v55 }
 0x309   : > { %24848 = vmatprep.subr.bf16.mxu0 %v26252_v3  ;;  %21893 = vmatmul.mubr.f32.vlgmr.msra.gmra.mrb[90].mxu1 %v29866_v49 }
 0x30a   : > { %24877 = vmatpush3.bf16.msra.mxu1 %v29872_v42  ;;  %21930 = vmatprep.mubr.msk.f32.mxu1 %vm26253_vm0, %v26254_v13 }
 0x30b   : > { %24878 = vmatprep.subr.bf16.mxu1 %v26252_v3 }
 0x30c   : > { %24850 = vmatpush3.bf16.msra.mxu0 %v29916_v50  ;;  %v6408_v58 = vpop.f32.mrb[64].mxu1 }
 0x30d   : > { %24863 = vmatprep.subr.bf16.mxu0 %v26252_v3  ;;  %v21400_v34 = vpop.f32.mrb[65].mxu1 }
 0x30e   : > { %24880 = vmatpush3.bf16.msra.mxu1 %v29894_v19 }
 0x30f   : > { %21874 = vmatmul.mubr.f32.vlgmr.msra.gmra.mrb[90].mxu0 %v8749_v60  ;;  %24881 = vmatprep.subr.bf16.mxu1 %v26252_v3 }
 0x310   : > { %24865 = vmatpush3.bf16.msra.mxu0 %v24864_v17  ;;  %21911 = vmatprep.mubr.msk.f32.mxu0 %vm26253_vm0, %v26254_v13  ;;  %v9310_v17 = vand.u32 4294901760, %v9309_v11  ;;  %v30131_v11 = vpack.c.bf16 %v9232_v15, %v9229_v26 }
 0x311   : > { %24866 = vmatprep.subr.bf16.mxu0 %v26252_v3 }
 0x312   : > { %v6329_v32 = vpop.f32.mrb[64].mxu0  ;;  %24883 = vmatpush3.bf16.msra.mxu1 %v29906_v55 }
 0x313   : > { %v6330_v2 = vadd.f32 %v6329_v32, %v6235_v41  ;;  %v21381_v56 = vpop.f32.mrb[65].mxu0  ;;  %24884 = vmatprep.subr.bf16.mxu1 %v26252_v3  ;;  %v9244_v41 = vand.u32 4294901760, %v30024_v18  ;;  %v9209_v32 = vld [vmem:[#allocation2 + $0x22] sm:$0xff] }
 0x314   : > { %24868 = vmatpush3.bf16.msra.mxu0 %v24867_v48  ;;  %v9330_v48 = vsub.f32 %v30007_v27, %v9329_v62 }
 0x315   : > { %v6409_v54 = vadd.f32 %v6408_v58, %v6330_v2  ;;  %24869 = vmatprep.subr.bf16.mxu0 %v26252_v3 }
 0x316   : > { %24886 = vmatpush3.bf16.msra.mxu1 %v29916_v50 }
 0x317   : > { %v29964_v33 = vadd.f32 %v6409_v54, %v29731_v47  ;;  %24899 = vmatprep.subr.bf16.mxu1 %v26252_v3  ;;  %v29986_v47 = vld [vmem:[%s33596_s1 + $0x420] sm:$0xff]  ;;  %v9220_v54 = vsel %vm293_vm1, %v9209_v32, 0 }
 0x318   : > { %24871 = vmatpush3.bf16.msra.mxu0 %v24870_v23  ;;  %v9235_v20 = vand.u32 4294901760, %v29986_v47  ;;  %v9331_v23 = vand.u32 4294901760, %v9330_v48 }
 0x319   : > { %24872 = vmatprep.subr.bf16.mxu0 %v26252_v3  ;;  %21931 = vmatmul.mubr.f32.vlgmr.msra.gmra.mrb[92].mxu1 %v8747_v12  ;;  %v9316_v12 = vsub.f32 %v29976_v52, %v9315_v59 }
 0x31a   : > { %24901 = vmatpush3.bf16.msra.mxu1 %v29872_v42  ;;  %21968 = vmatprep.mubr.msk.f32.mxu1 %vm26253_vm0, %v26254_v13  ;;  %v24891_v42 = vpack.c.bf16 %v8779_v61, %v8772_v8  ;;  %v30046_v40 = vsub.f32 %v29986_v47, %v9235_v20  ;;  %v30051_v8 = vsub.f32 %v29991_v35, %v9238_v28  ;;  %v9241_v61 = vand.u32 4294901760, %v30019_v36 }
 0x31b   : > { %24902 = vmatprep.subr.bf16.mxu1 %v26252_v3  ;;  %v9317_v58 = vand.u32 4294901760, %v9316_v12  ;;  %v30144_v26 = vpack.c.bf16 %v9238_v28, %v9235_v20  ;;  %v24936_v20 = vpack.c.bf16 %v29976_v52, %v29971_v5 }
 0x31c   : > { %24874 = vmatpush3.bf16.msra.mxu0 %v24873_v39  ;;  %v6616_v16 = vpop.f32.mrb[66].mxu1  ;;  %v9336_v9 = vand.u32 4294901760, %v30046_v40  ;;  %v9343_v38 = vand.u32 4294901760, %v30051_v8  ;;  %v30103_v39 = vand.u32 4294901760, %v9220_v54  ;;  %v30154_v47 = vpack.c.bf16 %v9244_v41, %v9241_v61 }
 0x31d   : > { %24887 = vmatprep.subr.bf16.mxu0 %v26252_v3  ;;  %v21438_v25 = vpop.f32.mrb[67].mxu1  ;;  %v24924_v2 = vpack.c.bf16 %v9317_v58, %v9310_v17 }
 0x31e   : > { %24904 = vmatpush3.bf16.msra.mxu1 %v29894_v19  ;;  %v24894_v19 = vpack.c.bf16 %v8793_v57, %v8786_v6  ;;  %v30075_v6 = vsub.f32 %v30019_v36, %v9241_v61  ;;  %v30080_v57 = vsub.f32 %v30024_v18, %v9244_v41  ;;  %v9337_v37 = vsub.f32 %v30046_v40, %v9336_v9  ;;  %v30176_v41 = vld [vmem:[%s33596_s1 + $0x440] sm:$0xff] }
 0x31f   : > { %21912 = vmatmul.mubr.f32.vlgmr.msra.gmra.mrb[92].mxu0 %v29887_v51  ;;  %v9322_v51 = vand.u32 4294901760, %v30002_v4  ;;  %24905 = vmatprep.subr.bf16.mxu1 %v26252_v3  ;;  %v9344_v0 = vsub.f32 %v30051_v8, %v9343_v38  ;;  %v24939_v18 = vpack.c.bf16 %v30007_v27, %v30002_v4 }
 0x320   : > { %24889 = vmatpush3.bf16.msra.mxu0 %v24888_v29  ;;  %21949 = vmatprep.mubr.msk.f32.mxu0 %vm26253_vm0, %v26254_v13 }
 0x321   : > { %24890 = vmatprep.subr.bf16.mxu0 %v26252_v3  ;;  %v9323_v34 = vsub.f32 %v30002_v4, %v9322_v51 }
 0x322   : > { %v6505_v22 = vpop.f32.mrb[66].mxu0  ;;  %24907 = vmatpush3.bf16.msra.mxu1 %v29906_v55  ;;  %v24897_v55 = vpack.c.bf16 %v8807_v53, %v8800_v1  ;;  %v9350_v1 = vand.u32 4294901760, %v30075_v6  ;;  %v9357_v53 = vand.u32 4294901760, %v30080_v57 }
 0x323   : > { %v21419_v31 = vpop.f32.mrb[67].mxu0  ;;  %v30056_v60 = vadd.f32 %v6616_v16, %v6505_v22  ;;  %24908 = vmatprep.subr.bf16.mxu1 %v26252_v3  ;;  %v9324_v56 = vand.u32 4294901760, %v9323_v34  ;;  %v9338_v16 = vand.u32 4294901760, %v9337_v37  ;;  %v30181_v34 = vld [vmem:[%s33596_s1 + $0x448] sm:$0xff]  ;;  %v30193_v37 = vld [vmem:[%s33596_s1 + $0x450] sm:$0xff] }
 0x324   : > { %24892 = vmatpush3.bf16.msra.mxu0 %v24891_v42  ;;  %v9345_v42 = vand.u32 4294901760, %v9344_v0  ;;  %v9351_v25 = vsub.f32 %v30075_v6, %v9350_v1  ;;  %v9358_v44 = vsub.f32 %v30080_v57, %v9357_v53  ;;  %v30198_v0 = vld [vmem:[%s33596_s1 + $0x458] sm:$0xff] }
 0x325   : > { %24893 = vmatprep.subr.bf16.mxu0 %v26252_v3  ;;  %v24927_v29 = vpack.c.bf16 %v9331_v23, %v9324_v56  ;;  %v9774_v56 = vand.u32 4294901760, %v30176_v41  ;;  %v9777_v23 = vand.u32 4294901760, %v30181_v34 }
 0x326   : > { %24910 = vmatpush3.bf16.msra.mxu1 %v29916_v50  ;;  %v30109_v50 = vpack.c.bf16 %v9226_v45, %v9223_v10  ;;  %v30124_v45 = vsub.f32 %v9220_v54, %v30103_v39  ;;  %v9352_v12 = vand.u32 4294901760, %v9351_v25  ;;  %v9359_v22 = vand.u32 4294901760, %v9358_v44 }
 0x327   : > { %s26136_s18 = spop %26135  ;;  %24923 = vmatprep.subr.bf16.mxu1 %v26252_v3  ;;  %v30214_v25 = vsub.f32 %v30181_v34, %v9777_v23  ;;  %v9780_v44 = vand.u32 4294901760, %v30193_v37 }
 0x328   : > { %s30087_s19 = smul.f32 0.001953125, %s26136_s18  ;;  %24895 = vmatpush3.bf16.msra.mxu0 %v24894_v19  ;;  %v9297_v43 = vand.u32 4294901760, %v30124_v45  ;;  %v24933_v58 = vpack.c.bf16 %v9359_v22, %v9352_v12 }
 0x329   : > { %24896 = vmatprep.subr.bf16.mxu0 %v26252_v3  ;;  %21969 = vmatmul.mubr.f32.vlgmr.msra.gmra.mrb[94].mxu1 %v29866_v49  ;;  %v9866_v22 = vand.u32 4294901760, %v30214_v25 }
 0x32a   : > { %s4194_s20 = smul.f32 %s30087_s19, %s30087_s19  ;;  %24925 = vmatpush3.bf16.msra.mxu1 %v24924_v2  ;;  %22006 = vmatprep.mubr.msk.f32.mxu1 %vm26253_vm0, %v26254_v13  ;;  %v24942_v2 = vpack.c.bf16 %v30051_v8, %v30046_v40 }
 0x32b   : > { %s26138_s21 = spop %26137  ;;  %24926 = vmatprep.subr.bf16.mxu1 %v26252_v3 }
 0x32c   : > { %s4193_s22 = smul.f32 0.001953125, %s26138_s21  ;;  %24898 = vmatpush3.bf16.msra.mxu0 %v24897_v55  ;;  %v6785_v14 = vpop.f32.mrb[68].mxu1 }
 0x32d   : > { %24911 = vmatprep.subr.bf16.mxu0 %v26252_v3  ;;  %v21476_v10 = vpop.f32.mrb[69].mxu1 }
 0x32e   : > { %s4195_s23 = ssub.f32 %s4193_s22, %s4194_s20  ;;  %24928 = vmatpush3.bf16.msra.mxu1 %v24927_v29  ;;  %v30229_v10 = vld [vmem:[%s33596_s1 + $0x468] sm:$0xff] }
 0x32f   : > { %21950 = vmatmul.mubr.f32.vlgmr.msra.gmra.mrb[94].mxu0 %v29866_v49  ;;  %v24930_v49 = vpack.c.bf16 %v9345_v42, %v9338_v16  ;;  %24929 = vmatprep.subr.bf16.mxu1 %v26252_v3  ;;  %v24945_v16 = vpack.c.bf16 %v30080_v57, %v30075_v6  ;;  %v30209_v42 = vsub.f32 %v30176_v41, %v9774_v56  ;;  %v9789_v52 = vand.u32 4294901760, %v30229_v10 }
 0x330   : > { %s4198_s26 = sadd.f32 1e-05, %s4195_s23  ;;  %24913 = vmatpush3.bf16.msra.mxu0 %v30109_v50  ;;  %21987 = vmatprep.mubr.msk.f32.mxu0 %vm26253_vm0, %v26254_v13  ;;  %s30389_s23 = sld [smem:[#allocation4 + $0x80]] }
 0x331   : > { %24914 = vmatprep.subr.bf16.mxu0 %v26252_v3  ;;  %v9859_v12 = vand.u32 4294901760, %v30209_v42 }
 0x332   : > { %v4199_v31 = vstv %s4198_s26  ;;  %v6704_v19 = vpop.f32.mrb[68].mxu0  ;;  %24931 = vmatpush3.bf16.msra.mxu1 %v24930_v49  ;;  %v24960_v49 = vpack.c.bf16 %v9315_v59, %v9308_v30  ;;  %v30257_v30 = vld [vmem:[%s33596_s1 + $0x470] sm:$0xff]  ;;  %v30262_v59 = vld [vmem:[%s33596_s1 + $0x478] sm:$0xff]  ;;  %s30392_s26 = sld [smem:[#allocation4 + $0x100]] }
 0x333   : > { %26184 = vrsqrt.f32 %v4199_v31  ;;  %v6705_v24 = vadd.f32 %v6704_v19, %v30056_v60  ;;  %v21457_v17 = vpop.f32.mrb[69].mxu0  ;;  %24932 = vmatprep.subr.bf16.mxu1 %v26252_v3  ;;  %v9298_v60 = vsub.f32 %v30124_v45, %v9297_v43  ;;  %v30240_v31 = vsub.f32 %v30193_v37, %v9780_v44 }
 0x334   : > { %24916 = vmatpush3.bf16.msra.mxu0 %v30131_v11 }
 0x335   : > { %v6786_v15 = vadd.f32 %v6785_v14, %v6705_v24  ;;  %24917 = vmatprep.subr.bf16.mxu0 %v26252_v3  ;;  %v9299_v35 = vand.u32 4294901760, %v9298_v60  ;;  %v9783_v14 = vand.u32 4294901760, %v30198_v0 }
 0x336   : > { %24934 = vmatpush3.bf16.msra.mxu1 %v24933_v58  ;;  %v9795_v58 = vand.u32 4294901760, %v30262_v59 }
 0x337   : > { %24947 = vmatprep.subr.bf16.mxu1 %v26252_v3  ;;  %v30245_v19 = vsub.f32 %v30198_v0, %v9783_v14 }
 0x338   : > { %24919 = vmatpush3.bf16.msra.mxu0 %v30144_v26 }
 0x339   : > { %24920 = vmatprep.subr.bf16.mxu0 %v26252_v3  ;;  %22007 = vmatmul.mubr.f32.vlgmr.msra.gmra.mrb[96].mxu1 %v30103_v39  ;;  %v9880_v4 = vand.u32 4294901760, %v30245_v19 }
 0x33a   : > { %24949 = vmatpush3.bf16.msra.mxu1 %v30109_v50  ;;  %22044 = vmatprep.mubr.msk.f32.mxu1 %vm26253_vm0, %v26254_v13 }
 0x33b   : > { %24950 = vmatprep.subr.bf16.mxu1 %v26252_v3 }
 0x33c   : > { %24922 = vmatpush3.bf16.msra.mxu0 %v30154_v47  ;;  %v6959_v36 = vpop.f32.mrb[70].mxu1 }
 0x33d   : > { %v26185_v28 = vpop.eup %26184  ;;  %24935 = vmatprep.subr.bf16.mxu0 %v26252_v3  ;;  %v21514_v61 = vpop.f32.mrb[71].mxu1 }
 0x33e   : > { %26139 = vpush %v26185_v28  ;;  %24952 = vmatpush3.bf16.msra.mxu1 %v30131_v11  ;;  %v9881_v61 = vsub.f32 %v30245_v19, %v9880_v4 }
 0x33f   : > { %21988 = vmatmul.mubr.f32.vlgmr.msra.gmra.mrb[96].mxu0 %v9299_v35  ;;  %24953 = vmatprep.subr.bf16.mxu1 %v26252_v3 }
 0x340   : > { %24937 = vmatpush3.bf16.msra.mxu0 %v24936_v20  ;;  %22025 = vmatprep.mubr.msk.f32.mxu0 %vm26253_vm0, %v26254_v13 }
 0x341   : > { %24938 = vmatprep.subr.bf16.mxu0 %v26252_v3 }
 0x342   : > { %v6880_v48 = vpop.f32.mrb[70].mxu0  ;;  %24955 = vmatpush3.bf16.msra.mxu1 %v30144_v26 }
 0x343   : > { %v6881_v32 = vadd.f32 %v6880_v48, %v6786_v15  ;;  %v21495_v55 = vpop.f32.mrb[71].mxu0  ;;  %24956 = vmatprep.subr.bf16.mxu1 %v26252_v3  ;;  %v9867_v15 = vsub.f32 %v30214_v25, %v9866_v22  ;;  %v9760_v48 = vld [vmem:[#allocation2 + $0x23] sm:$0xff] }
 0x344   : > { %24940 = vmatpush3.bf16.msra.mxu0 %v24939_v18 }
 0x345   : > { %v6960_v54 = vadd.f32 %v6959_v36, %v6881_v32  ;;  %24941 = vmatprep.subr.bf16.mxu0 %v26252_v3  ;;  %v9868_v36 = vand.u32 4294901760, %v9867_v15 }
 0x346   : > { %24958 = vmatpush3.bf16.msra.mxu1 %v30154_v47 }
 0x347   : > { %v30202_v29 = vadd.f32 %v6960_v54, %v29964_v33  ;;  %24971 = vmatprep.subr.bf16.mxu1 %v26252_v3  ;;  %v30224_v33 = vld [vmem:[%s33596_s1 + $0x460] sm:$0xff]  ;;  %v9771_v54 = vsel %vm293_vm1, %v9760_v48, 0  ;;  %v30421_v48 = vld [vmem:[%s33596_s1 + $0x488] sm:$0xff] }
 0x348   : > { %24943 = vmatpush3.bf16.msra.mxu0 %v24942_v2  ;;  %v9786_v5 = vand.u32 4294901760, %v30224_v33  ;;  %v9882_v2 = vand.u32 4294901760, %v9881_v61 }
 0x349   : > { %24944 = vmatprep.subr.bf16.mxu0 %v26252_v3  ;;  %22045 = vmatmul.mubr.f32.vlgmr.msra.gmra.mrb[98].mxu1 %v9297_v43  ;;  %v9860_v43 = vsub.f32 %v30209_v42, %v9859_v12 }
 0x34a   : > { %24973 = vmatpush3.bf16.msra.mxu1 %v30109_v50  ;;  %22082 = vmatprep.mubr.msk.f32.mxu1 %vm26253_vm0, %v26254_v13  ;;  %v24963_v50 = vpack.c.bf16 %v9329_v62, %v9322_v51  ;;  %v30284_v27 = vsub.f32 %v30224_v33, %v9786_v5  ;;  %v30289_v51 = vsub.f32 %v30229_v10, %v9789_v52  ;;  %v9792_v62 = vand.u32 4294901760, %v30257_v30 }
 0x34b   : > { %24974 = vmatprep.subr.bf16.mxu1 %v26252_v3  ;;  %v9861_v28 = vand.u32 4294901760, %v9860_v43  ;;  %v30375_v0 = vpack.c.bf16 %v9789_v52, %v9786_v5  ;;  %v4196_v5 = vstv %s30087_s19  ;;  %v25008_v52 = vpack.c.bf16 %v30214_v25, %v30209_v42 }
 0x34c   : > { %24946 = vmatpush3.bf16.msra.mxu0 %v24945_v16  ;;  %v7167_v24 = vpop.f32.mrb[72].mxu1  ;;  %v9887_v40 = vand.u32 4294901760, %v30284_v27  ;;  %v9894_v8 = vand.u32 4294901760, %v30289_v51  ;;  %v30387_v33 = vpack.c.bf16 %v9795_v58, %v9792_v62 }
 0x34d   : > { %24959 = vmatprep.subr.bf16.mxu0 %v26252_v3  ;;  %v21552_v17 = vpop.f32.mrb[73].mxu1  ;;  %v24996_v32 = vpack.c.bf16 %v9868_v36, %v9861_v28  ;;  %v25011_v36 = vpack.c.bf16 %v30245_v19, %v30240_v31 }
 0x34e   : > { %24976 = vmatpush3.bf16.msra.mxu1 %v30131_v11  ;;  %v24966_v11 = vpack.c.bf16 %v9343_v38, %v9336_v9  ;;  %v30311_v9 = vsub.f32 %v30257_v30, %v9792_v62  ;;  %v30316_v38 = vsub.f32 %v30262_v59, %v9795_v58  ;;  %v9888_v16 = vsub.f32 %v30284_v27, %v9887_v40 }
 0x34f   : > { %22026 = vmatmul.mubr.f32.vlgmr.msra.gmra.mrb[98].mxu0 %v30124_v45  ;;  %v9873_v45 = vand.u32 4294901760, %v30240_v31  ;;  %24977 = vmatprep.subr.bf16.mxu1 %v26252_v3  ;;  %v9895_v6 = vsub.f32 %v30289_v51, %v9894_v8  ;;  %v4197_v30 = vsub.f32 %v29049_v63, %v4196_v5  ;;  %v4205_v58 = vstv %s30389_s23  ;;  %v30416_v63 = vld [vmem:[%s33596_s1 + $0x480] sm:$0xff]  ;;  %s30647_s23 = sld [smem:[#allocation4 + $0x1]] }
 0x350   : > { %24961 = vmatpush3.bf16.msra.mxu0 %v24960_v49  ;;  %22063 = vmatprep.mubr.msk.f32.mxu0 %vm26253_vm0, %v26254_v13  ;;  %v9901_v57 = vand.u32 4294901760, %v30311_v9 }
 0x351   : > { %24962 = vmatprep.subr.bf16.mxu0 %v26252_v3  ;;  %v9874_v18 = vsub.f32 %v30240_v31, %v9873_v45 }
 0x352   : > { %v7056_v60 = vpop.f32.mrb[72].mxu0  ;;  %24979 = vmatpush3.bf16.msra.mxu1 %v30144_v26  ;;  %v24969_v26 = vpack.c.bf16 %v9357_v53, %v9350_v1  ;;  %v9908_v1 = vand.u32 4294901760, %v30316_v38  ;;  %v30335_v53 = vand.u32 4294901760, %v9771_v54  ;;  %v9902_v17 = vsub.f32 %v30311_v9, %v9901_v57 }
 0x353   : > { %v21533_v35 = vpop.f32.mrb[73].mxu0  ;;  %v7168_v20 = vadd.f32 %v7167_v24, %v7056_v60  ;;  %24980 = vmatprep.subr.bf16.mxu1 %v26252_v3  ;;  %v9875_v55 = vand.u32 4294901760, %v9874_v18  ;;  %v9896_v24 = vand.u32 4294901760, %v9895_v6  ;;  %v10325_v6 = vand.u32 4294901760, %v30416_v63 }
 0x354   : > { %24964 = vmatpush3.bf16.msra.mxu0 %v24963_v50  ;;  %v9889_v50 = vand.u32 4294901760, %v9888_v16  ;;  %v9909_v41 = vsub.f32 %v30316_v38, %v9908_v1  ;;  %v9903_v15 = vand.u32 4294901760, %v9902_v17  ;;  %v25014_v16 = vpack.c.bf16 %v30289_v51, %v30284_v27  ;;  %v30434_v17 = vld [vmem:[%s33596_s1 + $0x490] sm:$0xff] }
 0x355   : > { %24965 = vmatprep.subr.bf16.mxu0 %v26252_v3  ;;  %v24999_v49 = vpack.c.bf16 %v9882_v2, %v9875_v55 }
 0x356   : > { %24982 = vmatpush3.bf16.msra.mxu1 %v30154_v47  ;;  %v30341_v47 = vpack.c.bf16 %v9777_v23, %v9774_v56  ;;  %v30356_v56 = vsub.f32 %v9771_v54, %v30335_v53  ;;  %v30363_v23 = vpack.c.bf16 %v9783_v14, %v9780_v44  ;;  %v9910_v60 = vand.u32 4294901760, %v9909_v41  ;;  %v30439_v41 = vld [vmem:[%s33596_s1 + $0x498] sm:$0xff] }
 0x357   : > { %24995 = vmatprep.subr.bf16.mxu1 %v26252_v3 }
 0x358   : > { %24967 = vmatpush3.bf16.msra.mxu0 %v24966_v11  ;;  %v9848_v37 = vand.u32 4294901760, %v30356_v56  ;;  %v25005_v14 = vpack.c.bf16 %v9910_v60, %v9903_v15  ;;  %v10331_v60 = vand.u32 4294901760, %v30434_v17 }
 0x359   : > { %24968 = vmatprep.subr.bf16.mxu0 %v26252_v3  ;;  %22083 = vmatmul.mubr.f32.vlgmr.msra.gmra.mrb[100].mxu1 %v30103_v39 }
 0x35a   : > { %24997 = vmatpush3.bf16.msra.mxu1 %v24996_v32  ;;  %22120 = vmatprep.mubr.msk.f32.mxu1 %vm26253_vm0, %v26254_v13 }
 0x35b   : > { %24998 = vmatprep.subr.bf16.mxu1 %v26252_v3 }
 0x35c   : > { %24970 = vmatpush3.bf16.msra.mxu0 %v24969_v26  ;;  %v7336_v34 = vpop.f32.mrb[74].mxu1  ;;  %v4208_v26 = vstv %s30392_s26 }
 0x35d   : > { %24983 = vmatprep.subr.bf16.mxu0 %v26252_v3  ;;  %v21590_v43 = vpop.f32.mrb[75].mxu1 }
 0x35e   : > { %25000 = vmatpush3.bf16.msra.mxu1 %v24999_v49  ;;  %v10328_v49 = vand.u32 4294901760, %v30421_v48  ;;  %v25017_v43 = vpack.c.bf16 %v30316_v38, %v30311_v9 }
 0x35f   : > { %22064 = vmatmul.mubr.f32.vlgmr.msra.gmra.mrb[100].mxu0 %v30103_v39  ;;  %v25002_v39 = vpack.c.bf16 %v9896_v24, %v9889_v50  ;;  %25001 = vmatprep.subr.bf16.mxu1 %v26252_v3 }
 0x360   : > { %24985 = vmatpush3.bf16.msra.mxu0 %v30341_v47  ;;  %22101 = vmatprep.mubr.msk.f32.mxu0 %vm26253_vm0, %v26254_v13  ;;  %v30456_v15 = vsub.f32 %v30421_v48, %v10328_v49 }
 0x361   : > { %24986 = vmatprep.subr.bf16.mxu0 %v26252_v3 }
 0x362   : > { %v7255_v35 = vpop.f32.mrb[74].mxu0  ;;  %25003 = vmatpush3.bf16.msra.mxu1 %v25002_v39  ;;  %v30451_v39 = vsub.f32 %v30416_v63, %v10325_v6 }
 0x363   : > { %v7256_v11 = vadd.f32 %v7255_v35, %v7168_v20  ;;  %v21571_v28 = vpop.f32.mrb[75].mxu0  ;;  %25004 = vmatprep.subr.bf16.mxu1 %v26252_v3  ;;  %v9849_v20 = vsub.f32 %v30356_v56, %v9848_v37  ;;  %v10334_v35 = vand.u32 4294901760, %v30439_v41 }
 0x364   : > { %24988 = vmatpush3.bf16.msra.mxu0 %v30363_v23  ;;  %v25032_v28 = vpack.c.bf16 %v9866_v22, %v9859_v12  ;;  %v30501_v22 = vld [vmem:[%s33596_s1 + $0x4b0] sm:$0xff] }
 0x365   : > { %v7337_v44 = vadd.f32 %v7336_v34, %v7256_v11  ;;  %24989 = vmatprep.subr.bf16.mxu0 %v26252_v3  ;;  %v9850_v10 = vand.u32 4294901760, %v9849_v20  ;;  %v30471_v11 = vld [vmem:[%s33596_s1 + $0x4a8] sm:$0xff]  ;;  %v30484_v20 = vsub.f32 %v30434_v17, %v10331_v60  ;;  %v30489_v42 = vsub.f32 %v30439_v41, %v10334_v35 }
 0x366   : > { %25006 = vmatpush3.bf16.msra.mxu1 %v25005_v14  ;;  %v10417_v14 = vand.u32 4294901760, %v30456_v15  ;;  %v10340_v12 = vand.u32 4294901760, %v30471_v11 }
 0x367   : > { %25019 = vmatprep.subr.bf16.mxu1 %v26252_v3  ;;  %v10431_v31 = vand.u32 4294901760, %v30489_v42 }
 0x368   : > { %24991 = vmatpush3.bf16.msra.mxu0 %v30375_v0 }
 0x369   : > { %24992 = vmatprep.subr.bf16.mxu0 %v26252_v3  ;;  %22121 = vmatmul.mubr.f32.vlgmr.msra.gmra.mrb[102].mxu1 %v30335_v53 }
 0x36a   : > { %25021 = vmatpush3.bf16.msra.mxu1 %v30341_v47  ;;  %22158 = vmatprep.mubr.msk.f32.mxu1 %vm26253_vm0, %v26254_v13 }
 0x36b   : > { %25022 = vmatprep.subr.bf16.mxu1 %v26252_v3 }
 0x36c   : > { %24994 = vmatpush3.bf16.msra.mxu0 %v30387_v33  ;;  %v7510_v59 = vpop.f32.mrb[76].mxu1 }
 0x36d   : > { %25007 = vmatprep.subr.bf16.mxu0 %v26252_v3  ;;  %v21628_v18 = vpop.f32.mrb[77].mxu1 }
 0x36e   : > { %25024 = vmatpush3.bf16.msra.mxu1 %v30363_v23 }
 0x36f   : > { %s26140_s19 = spop %26139  ;;  %22102 = vmatmul.mubr.f32.vlgmr.msra.gmra.mrb[102].mxu0 %v9850_v10  ;;  %25025 = vmatprep.subr.bf16.mxu1 %v26252_v3 }
 0x370   : > { %v4202_v62 = vstv %s26140_s19  ;;  %25009 = vmatpush3.bf16.msra.mxu0 %v25008_v52  ;;  %22139 = vmatprep.mubr.msk.f32.mxu0 %vm26253_vm0, %v26254_v13 }
 0x371   : > { %v4203_v61 = vmul.f32 %v4202_v62, %v4197_v30  ;;  %25010 = vmatprep.subr.bf16.mxu0 %v26252_v3  ;;  %v10418_v30 = vsub.f32 %v30456_v15, %v10417_v14 }
 0x372   : > { %v7431_v32 = vpop.f32.mrb[76].mxu0  ;;  %25027 = vmatpush3.bf16.msra.mxu1 %v30375_v0 }
 0x373   : > { %v4206_v55 = vmul.f32 %v4205_v58, %v4203_v61  ;;  %v7432_v2 = vadd.f32 %v7431_v32, %v7337_v44  ;;  %v21609_v54 = vpop.f32.mrb[77].mxu0  ;;  %25028 = vmatprep.subr.bf16.mxu1 %v26252_v3  ;;  %v10410_v44 = vand.u32 4294901760, %v30451_v39  ;;  %v10419_v61 = vand.u32 4294901760, %v10418_v30 }
 0x374   : > { %25012 = vmatpush3.bf16.msra.mxu0 %v25011_v36  ;;  %v10432_v32 = vsub.f32 %v30489_v42, %v10431_v31 }
 0x375   : > { %v4209_v50 = vadd.f32 %v4208_v26, %v4206_v55  ;;  %v7511_v24 = vadd.f32 %v7510_v59, %v7432_v2  ;;  %25013 = vmatprep.subr.bf16.mxu0 %v26252_v3  ;;  %v10411_v52 = vsub.f32 %v30451_v39, %v10410_v44  ;;  %v10311_v55 = vld [vmem:[#allocation2 + $0x24] sm:$0xff] }
 0x376   : > { %25030 = vmatpush3.bf16.msra.mxu1 %v30387_v33 }
 0x377   : > { %4210 = vst.msk [vmem:[#allocation3] sm:$0xff] %vm293_vm1, %v4209_v50  ;;  %v30444_v34 = vadd.f32 %v7511_v24, %v30202_v29  ;;  %25043 = vmatprep.subr.bf16.mxu1 %v26252_v3  ;;  %v30466_v29 = vld [vmem:[%s33596_s1 + $0x4a0] sm:$0xff]  ;;  %v10412_v18 = vand.u32 4294901760, %v10411_v52  ;;  %v10322_v50 = vsel %vm293_vm1, %v10311_v55, 0 }
 0x378   : > { %25015 = vmatpush3.bf16.msra.mxu0 %v25014_v16  ;;  %v10337_v25 = vand.u32 4294901760, %v30466_v29  ;;  %v10433_v16 = vand.u32 4294901760, %v10432_v32 }
 0x379   : > { %25016 = vmatprep.subr.bf16.mxu0 %v26252_v3  ;;  %22159 = vmatmul.mubr.f32.vlgmr.msra.gmra.mrb[104].mxu1 %v9848_v37  ;;  %v30506_v37 = vld [vmem:[%s33596_s1 + $0x4b8] sm:$0xff]  ;;  %v25068_v2 = vpack.c.bf16 %v10419_v61, %v10412_v18  ;;  %v30666_v61 = vld [vmem:[%s33596_s1 + $0x4c8] sm:$0xff] }
 0x37a   : > { %25045 = vmatpush3.bf16.msra.mxu1 %v30341_v47  ;;  %22196 = vmatprep.mubr.msk.f32.mxu1 %vm26253_vm0, %v26254_v13  ;;  %v25035_v47 = vpack.c.bf16 %v9880_v4, %v9873_v45  ;;  %v30528_v19 = vsub.f32 %v30466_v29, %v10337_v25  ;;  %v30533_v45 = vsub.f32 %v30471_v11, %v10340_v12  ;;  %v10343_v4 = vand.u32 4294901760, %v30501_v22 }
 0x37b   : > { %25046 = vmatprep.subr.bf16.mxu1 %v26252_v3  ;;  %v10346_v59 = vand.u32 4294901760, %v30506_v37  ;;  %v30619_v41 = vpack.c.bf16 %v10340_v12, %v10337_v25  ;;  %v25080_v25 = vpack.c.bf16 %v30456_v15, %v30451_v39  ;;  %v30640_v12 = vld [vmem:[%s26397_s30 + $0x18] sm:$0xff] }
 0x37c   : > { %25018 = vmatpush3.bf16.msra.mxu0 %v25017_v43  ;;  %v7718_v10 = vpop.f32.mrb[78].mxu1  ;;  %v10438_v27 = vand.u32 4294901760, %v30528_v19  ;;  %v10445_v51 = vand.u32 4294901760, %v30533_v45  ;;  %33638 = vst [vmem:[#allocation10_spill] sm:$0xff] %v30640_v12  ;;  %313 = vst.msk [vmem:[#allocation2 + $0x33] sm:$0xff] %vm293_vm1, %v30640_v12  ;;  %v25086_v55 = vpack.c.bf16 %v30533_v45, %v30528_v19 }
 0x37d   : > { %25031 = vmatprep.subr.bf16.mxu0 %v26252_v3  ;;  %v21666_v5 = vpop.f32.mrb[79].mxu1  ;;  %v30631_v29 = vpack.c.bf16 %v10346_v59, %v10343_v4 }
 0x37e   : > { %25048 = vmatpush3.bf16.msra.mxu1 %v30363_v23  ;;  %v25038_v23 = vpack.c.bf16 %v9894_v8, %v9887_v40  ;;  %v30555_v40 = vsub.f32 %v30501_v22, %v10343_v4  ;;  %v30560_v8 = vsub.f32 %v30506_v37, %v10346_v59  ;;  %v10439_v24 = vsub.f32 %v30528_v19, %v10438_v27  ;;  %v30660_v59 = vld [vmem:[%s33596_s1 + $0x4c0] sm:$0xff] }
 0x37f   : > { %22140 = vmatmul.mubr.f32.vlgmr.msra.gmra.mrb[104].mxu0 %v30356_v56  ;;  %v10424_v56 = vand.u32 4294901760, %v30484_v20  ;;  %25049 = vmatprep.subr.bf16.mxu1 %v26252_v3  ;;  %v10446_v9 = vsub.f32 %v30533_v45, %v10445_v51  ;;  %v25083_v37 = vpack.c.bf16 %v30489_v42, %v30484_v20 }
 0x380   : > { %25033 = vmatpush3.bf16.msra.mxu0 %v25032_v28  ;;  %22177 = vmatprep.mubr.msk.f32.mxu0 %vm26253_vm0, %v26254_v13  ;;  %v10452_v38 = vand.u32 4294901760, %v30555_v40  ;;  %v10440_v28 = vand.u32 4294901760, %v10439_v24  ;;  %v30684_v24 = vld [vmem:[%s33596_s1 + $0x4d8] sm:$0xff] }
 0x381   : > { %25034 = vmatprep.subr.bf16.mxu0 %v26252_v3  ;;  %v10425_v26 = vsub.f32 %v30484_v20, %v10424_v56 }
 0x382   : > { %v7607_v62 = vpop.f32.mrb[78].mxu0  ;;  %25051 = vmatpush3.bf16.msra.mxu1 %v30375_v0  ;;  %v25041_v0 = vpack.c.bf16 %v9908_v1, %v9901_v57  ;;  %v10459_v57 = vand.u32 4294901760, %v30560_v8  ;;  %v30579_v1 = vand.u32 4294901760, %v10322_v50 }
 0x383   : > { %v21647_v58 = vpop.f32.mrb[79].mxu0  ;;  %v7719_v36 = vadd.f32 %v7718_v10, %v7607_v62  ;;  %25052 = vmatprep.subr.bf16.mxu1 %v26252_v3  ;;  %v10426_v54 = vand.u32 4294901760, %v10425_v26  ;;  %v10453_v10 = vsub.f32 %v30555_v40, %v10452_v38 }
 0x384   : > { %25036 = vmatpush3.bf16.msra.mxu0 %v25035_v47  ;;  %v10447_v47 = vand.u32 4294901760, %v10446_v9  ;;  %v10460_v63 = vsub.f32 %v30560_v8, %v10459_v57 }
 0x385   : > { %25037 = vmatprep.subr.bf16.mxu0 %v26252_v3  ;;  %v25071_v43 = vpack.c.bf16 %v10433_v16, %v10426_v54  ;;  %v10454_v52 = vand.u32 4294901760, %v10453_v10  ;;  %v10879_v54 = vand.u32 4294901760, %v30666_v61  ;;  %v8067_v16 = vstv %s30647_s23 }
 0x386   : > { %25054 = vmatpush3.bf16.msra.mxu1 %v30387_v33  ;;  %v30585_v33 = vpack.c.bf16 %v10328_v49, %v10325_v6  ;;  %v30600_v6 = vsub.f32 %v10322_v50, %v30579_v1  ;;  %v30607_v49 = vpack.c.bf16 %v10334_v35, %v10331_v60  ;;  %v10461_v30 = vand.u32 4294901760, %v10460_v63  ;;  %v30679_v50 = vld [vmem:[%s33596_s1 + $0x4d0] sm:$0xff] }
 0x387   : > { %25067 = vmatprep.subr.bf16.mxu1 %v26252_v3  ;;  %v30701_v10 = vsub.f32 %v30666_v61, %v10879_v54  ;;  %v10885_v63 = vand.u32 4294901760, %v30684_v24 }
 0x388   : > { %25039 = vmatpush3.bf16.msra.mxu0 %v25038_v23  ;;  %v10399_v17 = vand.u32 4294901760, %v30600_v6  ;;  %v25077_v35 = vpack.c.bf16 %v10461_v30, %v10454_v52  ;;  %v30718_v52 = vld [vmem:[%s33596_s1 + $0x4e8] sm:$0xff]  ;;  %v25104_v30 = vpack.c.bf16 %v10417_v14, %v10410_v44 }
 0x389   : > { %25040 = vmatprep.subr.bf16.mxu0 %v26252_v3  ;;  %22197 = vmatmul.mubr.f32.vlgmr.msra.gmra.mrb[106].mxu1 %v30335_v53  ;;  %v30737_v39 = vsub.f32 %v30684_v24, %v10885_v63  ;;  %v10891_v44 = vand.u32 4294901760, %v30718_v52 }
 0x38a   : > { %25069 = vmatpush3.bf16.msra.mxu1 %v25068_v2  ;;  %22234 = vmatprep.mubr.msk.f32.mxu1 %vm26253_vm0, %v26254_v13 }
 0x38b   : > { %25070 = vmatprep.subr.bf16.mxu1 %v26252_v3  ;;  %v10982_v20 = vand.u32 4294901760, %v30737_v39 }
 0x38c   : > { %25042 = vmatpush3.bf16.msra.mxu0 %v25041_v0  ;;  %v7887_v48 = vpop.f32.mrb[80].mxu1  ;;  %v10876_v0 = vand.u32 4294901760, %v30660_v59 }
 0x38d   : > { %25055 = vmatprep.subr.bf16.mxu0 %v26252_v3  ;;  %v21704_v5 = vpop.f32.mrb[81].mxu1 }
 0x38e   : > { %25072 = vmatpush3.bf16.msra.mxu1 %v25071_v43  ;;  %v25089_v43 = vpack.c.bf16 %v30560_v8, %v30555_v40 }
 0x38f   : > { %22178 = vmatmul.mubr.f32.vlgmr.msra.gmra.mrb[106].mxu0 %v30335_v53  ;;  %v25074_v53 = vpack.c.bf16 %v10447_v47, %v10440_v28  ;;  %25073 = vmatprep.subr.bf16.mxu1 %v26252_v3  ;;  %v30692_v28 = vsub.f32 %v30660_v59, %v10876_v0 }
 0x390   : > { %25057 = vmatpush3.bf16.msra.mxu0 %v30585_v33  ;;  %22215 = vmatprep.mubr.msk.f32.mxu0 %vm26253_vm0, %v26254_v13 }
 0x391   : > { %25058 = vmatprep.subr.bf16.mxu0 %v26252_v3 }
 0x392   : > { %v7806_v62 = vpop.f32.mrb[80].mxu0  ;;  %25075 = vmatpush3.bf16.msra.mxu1 %v25074_v53  ;;  %v30713_v53 = vld [vmem:[%s33596_s1 + $0x4e0] sm:$0xff] }
 0x393   : > { %v7807_v58 = vadd.f32 %v7806_v62, %v7719_v36  ;;  %v21685_v23 = vpop.f32.mrb[81].mxu0  ;;  %25076 = vmatprep.subr.bf16.mxu1 %v26252_v3  ;;  %v10400_v36 = vsub.f32 %v30600_v6, %v10399_v17  ;;  %v10961_v62 = vand.u32 4294901760, %v30692_v28  ;;  %v10888_v15 = vand.u32 4294901760, %v30713_v53 }
 0x394   : > { %25060 = vmatpush3.bf16.msra.mxu0 %v30607_v49 }
 0x395   : > { %v7888_v60 = vadd.f32 %v7887_v48, %v7807_v58  ;;  %25061 = vmatprep.subr.bf16.mxu0 %v26252_v3  ;;  %v10401_v11 = vand.u32 4294901760, %v10400_v36  ;;  %v10968_v58 = vand.u32 4294901760, %v30701_v10  ;;  %v10962_v36 = vsub.f32 %v30692_v28, %v10961_v62 }
 0x396   : > { %25078 = vmatpush3.bf16.msra.mxu1 %v25077_v35  ;;  %v30867_v24 = vpack.c.bf16 %v10891_v44, %v10888_v15 }
 0x397   : > { %25091 = vmatprep.subr.bf16.mxu1 %v26252_v3 }
 0x398   : > { %25063 = vmatpush3.bf16.msra.mxu0 %v30619_v41 }
 0x399   : > { %25064 = vmatprep.subr.bf16.mxu0 %v26252_v3  ;;  %22235 = vmatmul.mubr.f32.vlgmr.msra.gmra.mrb[108].mxu1 %v30579_v1 }
 0x39a   : > { %25093 = vmatpush3.bf16.msra.mxu1 %v30585_v33  ;;  %22272 = vmatprep.mubr.msk.f32.mxu1 %vm26253_vm0, %v26254_v13 }
 0x39b   : > { %25094 = vmatprep.subr.bf16.mxu1 %v26252_v3 }
 0x39c   : > { %25066 = vmatpush3.bf16.msra.mxu0 %v30631_v29  ;;  %v8061_v22 = vpop.f32.mrb[82].mxu1 }
 0x39d   : > { %25079 = vmatprep.subr.bf16.mxu0 %v26252_v3  ;;  %v21742_v4 = vpop.f32.mrb[83].mxu1 }
 0x39e   : > { %25096 = vmatpush3.bf16.msra.mxu1 %v30607_v49 }
 0x39f   : > { %22216 = vmatmul.mubr.f32.vlgmr.msra.gmra.mrb[108].mxu0 %v10401_v11  ;;  %25097 = vmatprep.subr.bf16.mxu1 %v26252_v3  ;;  %v10969_v11 = vsub.f32 %v30701_v10, %v10968_v58 }
 0x3a0   : > { %25081 = vmatpush3.bf16.msra.mxu0 %v25080_v25  ;;  %22253 = vmatprep.mubr.msk.f32.mxu0 %vm26253_vm0, %v26254_v13 }
 0x3a1   : > { %25082 = vmatprep.subr.bf16.mxu0 %v26252_v3 }
 0x3a2   : > { %v7982_v18 = vpop.f32.mrb[82].mxu0  ;;  %25099 = vmatpush3.bf16.msra.mxu1 %v30619_v41 }
 0x3a3   : > { %v7983_v26 = vadd.f32 %v7982_v18, %v7888_v60  ;;  %v21723_v32 = vpop.f32.mrb[83].mxu0  ;;  %25100 = vmatprep.subr.bf16.mxu1 %v26252_v3  ;;  %v30750_v60 = vld [vmem:[%s33596_s1 + $0x4f0] sm:$0xff] }
 0x3a4   : > { %25084 = vmatpush3.bf16.msra.mxu0 %v25083_v37  ;;  %v10970_v32 = vand.u32 4294901760, %v10969_v11 }
 0x3a5   : > { %v8062_v2 = vadd.f32 %v8061_v22, %v7983_v26  ;;  %25085 = vmatprep.subr.bf16.mxu0 %v26252_v3  ;;  %v10894_v22 = vand.u32 4294901760, %v30750_v60  ;;  %v10963_v26 = vand.u32 4294901760, %v10962_v36 }
 0x3a6   : > { %25102 = vmatpush3.bf16.msra.mxu1 %v30631_v29 }
 0x3a7   : > { %v8065_v9 = vadd.f32 %v8062_v2, %v30444_v34  ;;  %v10882_v34 = vand.u32 4294901760, %v30679_v50  ;;  %25115 = vmatprep.subr.bf16.mxu1 %v26252_v3  ;;  %v10983_v2 = vsub.f32 %v30737_v39, %v10982_v20 }
 0x3a8   : > { %25087 = vmatpush3.bf16.msra.mxu0 %v25086_v55 }
 0x3a9   : > { %25088 = vmatprep.subr.bf16.mxu0 %v26252_v3  ;;  %v30695_v47 = vadd.f32 %v8067_v16, %v8065_v9  ;;  %22273 = vmatmul.mubr.f32.vlgmr.msra.gmra.mrb[110].mxu1 %v10399_v17  ;;  %v30732_v23 = vsub.f32 %v30679_v50, %v10882_v34  ;;  %v10862_v16 = vld [vmem:[#allocation2 + $0x25] sm:$0xff] }
 0x3aa   : > { %25117 = vmatpush3.bf16.msra.mxu1 %v30585_v33  ;;  %22310 = vmatprep.mubr.msk.f32.mxu1 %vm26253_vm0, %v26254_v13  ;;  %v30755_v33 = vld [vmem:[%s33596_s1 + $0x4f8] sm:$0xff]  ;;  %v10873_v9 = vsel %vm293_vm1, %v10862_v16, 0 }
 0x3ab   : > { %v8069_v48 = vsel %vm293_vm1, %v30695_v47, 0.0  ;;  %v8080_v5 = vmul.f32 %v30695_v47, %v30695_v47  ;;  %25118 = vmatprep.subr.bf16.mxu1 %v26252_v3  ;;  %v10975_v25 = vand.u32 4294901760, %v30732_v23  ;;  %v10897_v37 = vand.u32 4294901760, %v30755_v33 }
 0x3ac   : > { %25090 = vmatpush3.bf16.msra.mxu0 %v25089_v43  ;;  %8070 = vadd.xlane.f32.xlu1 %v8069_v48  ;;  %v8322_v17 = vpop.f32.mrb[84].mxu1  ;;  %v25140_v43 = vpack.c.bf16 %v10970_v32, %v10963_v26  ;;  %v30904_v32 = vld [vmem:[%s33596_s1 + $0x508] sm:$0xff] }
 0x3ad   : > { %25103 = vmatprep.subr.bf16.mxu0 %v26252_v3  ;;  %v8081_v14 = vsel %vm293_vm1, %v8080_v5, 0.0  ;;  %v21780_v35 = vpop.f32.mrb[85].mxu1  ;;  %v10976_v55 = vsub.f32 %v30732_v23, %v10975_v25  ;;  %v10984_v5 = vand.u32 4294901760, %v10983_v2 }
 0x3ae   : > { %25120 = vmatpush3.bf16.msra.mxu1 %v30607_v49  ;;  %v25110_v49 = vpack.c.bf16 %v10445_v51, %v10438_v27  ;;  %v30803_v27 = vsub.f32 %v30750_v60, %v10894_v22  ;;  %v30808_v51 = vsub.f32 %v30755_v33, %v10897_v37  ;;  %v25155_v60 = vpack.c.bf16 %v30737_v39, %v30732_v23 }
 0x3af   : > { %22254 = vmatmul.mubr.f32.vlgmr.msra.gmra.mrb[110].mxu0 %v30600_v6  ;;  %v25107_v6 = vpack.c.bf16 %v10431_v31, %v10424_v56  ;;  %v30776_v56 = vsub.f32 %v30713_v53, %v10888_v15  ;;  %v30781_v31 = vsub.f32 %v30718_v52, %v10891_v44  ;;  %25121 = vmatprep.subr.bf16.mxu1 %v26252_v3  ;;  %v10977_v48 = vand.u32 4294901760, %v10976_v55 }
 0x3b0   : > { %25105 = vmatpush3.bf16.msra.mxu0 %v25104_v30  ;;  %8082 = vadd.xlane.f32.xlu1 %v8081_v14  ;;  %v11003_v8 = vand.u32 4294901760, %v30803_v27  ;;  %v30877_v53 = vpack.c.bf16 %v10897_v37, %v10894_v22  ;;  %v25152_v15 = vpack.c.bf16 %v30701_v10, %v30692_v28  ;;  %v30898_v22 = vld [vmem:[%s33596_s1 + $0x500] sm:$0xff] }
 0x3b1   : > { %25106 = vmatprep.subr.bf16.mxu0 %v26252_v3  ;;  %22291 = vmatprep.mubr.msk.f32.mxu0 %vm26253_vm0, %v26254_v13  ;;  %v10989_v19 = vand.u32 4294901760, %v30776_v56  ;;  %v10996_v45 = vand.u32 4294901760, %v30781_v31  ;;  %v25143_v14 = vpack.c.bf16 %v10984_v5, %v10977_v48  ;;  %v25158_v16 = vpack.c.bf16 %v30781_v31, %v30776_v56  ;;  %v30916_v48 = vld [vmem:[%s33596_s1 + $0x510] sm:$0xff]  ;;  %v30921_v5 = vld [vmem:[%s33596_s1 + $0x518] sm:$0xff] }
 0x3b2   : > { %v8211_v42 = vpop.f32.mrb[84].mxu0  ;;  %25123 = vmatpush3.bf16.msra.mxu1 %v30619_v41  ;;  %v25113_v41 = vpack.c.bf16 %v10459_v57, %v10452_v38  ;;  %v11010_v38 = vand.u32 4294901760, %v30808_v51  ;;  %v30827_v57 = vand.u32 4294901760, %v10873_v9  ;;  %v11004_v35 = vsub.f32 %v30803_v27, %v11003_v8 }
 0x3b3   : > { %v21761_v4 = vpop.f32.mrb[85].mxu0  ;;  %v8323_v18 = vadd.f32 %v8322_v17, %v8211_v42  ;;  %25124 = vmatprep.subr.bf16.mxu1 %v26252_v3  ;;  %v10990_v30 = vsub.f32 %v30776_v56, %v10989_v19  ;;  %v10997_v40 = vsub.f32 %v30781_v31, %v10996_v45 }
 0x3b4   : > { %25108 = vmatpush3.bf16.msra.mxu0 %v25107_v6  ;;  %v11011_v59 = vsub.f32 %v30808_v51, %v11010_v38  ;;  %v11005_v42 = vand.u32 4294901760, %v11004_v35  ;;  %v30944_v35 = vld [vmem:[%s33596_s1 + $0x520] sm:$0xff] }
 0x3b5   : > { %25109 = vmatprep.subr.bf16.mxu0 %v26252_v3  ;;  %v10991_v17 = vand.u32 4294901760, %v10990_v30  ;;  %v10998_v6 = vand.u32 4294901760, %v10997_v40  ;;  %v25161_v30 = vpack.c.bf16 %v30808_v51, %v30803_v27  ;;  %v11439_v28 = vand.u32 4294901760, %v30944_v35 }
 0x3b6   : > { %25126 = vmatpush3.bf16.msra.mxu1 %v30631_v29  ;;  %v30833_v29 = vpack.c.bf16 %v10879_v54, %v10876_v0  ;;  %v30848_v0 = vsub.f32 %v10873_v9, %v30827_v57  ;;  %v30855_v54 = vpack.c.bf16 %v10885_v63, %v10882_v34  ;;  %v11012_v4 = vand.u32 4294901760, %v11011_v59  ;;  %v30949_v59 = vld [vmem:[%s33596_s1 + $0x528] sm:$0xff] }
 0x3b7   : > { %25139 = vmatprep.subr.bf16.mxu1 %v26252_v3  ;;  %v25146_v11 = vpack.c.bf16 %v10998_v6, %v10991_v17  ;;  %v11433_v17 = vand.u32 4294901760, %v30916_v48  ;;  %v11436_v6 = vand.u32 4294901760, %v30921_v5  ;;  %v11442_v10 = vand.u32 4294901760, %v30949_v59 }
 0x3b8   : > { %25111 = vmatpush3.bf16.msra.mxu0 %v25110_v49  ;;  %v10950_v50 = vand.u32 4294901760, %v30848_v0  ;;  %v25149_v63 = vpack.c.bf16 %v11012_v4, %v11005_v42  ;;  %v25179_v4 = vpack.c.bf16 %v10982_v20, %v10975_v25  ;;  %v31004_v25 = vsub.f32 %v30944_v35, %v11439_v28 }
 0x3b9   : > { %25112 = vmatprep.subr.bf16.mxu0 %v26252_v3  ;;  %22311 = vmatmul.mubr.f32.vlgmr.msra.gmra.mrb[112].mxu1 %v30579_v1  ;;  %v30966_v42 = vsub.f32 %v30921_v5, %v11436_v6  ;;  %v31009_v20 = vsub.f32 %v30949_v59, %v11442_v10  ;;  %v31095_v5 = vpack.c.bf16 %v11442_v10, %v11439_v28 }
 0x3ba   : > { %25141 = vmatpush3.bf16.msra.mxu1 %v25140_v43  ;;  %22348 = vmatprep.mubr.msk.f32.mxu1 %vm26253_vm0, %v26254_v13  ;;  %v11430_v43 = vand.u32 4294901760, %v30904_v32  ;;  %v11540_v56 = vand.u32 4294901760, %v31004_v25 }
 0x3bb   : > { %25142 = vmatprep.subr.bf16.mxu1 %v26252_v3  ;;  %v11533_v23 = vand.u32 4294901760, %v30966_v42  ;;  %v11547_v31 = vand.u32 4294901760, %v31009_v20 }
 0x3bc   : > { %25114 = vmatpush3.bf16.msra.mxu0 %v25113_v41  ;;  %v8491_v61 = vpop.f32.mrb[86].mxu1  ;;  %v11427_v41 = vand.u32 4294901760, %v30898_v22 }
 0x3bd   : > { %25127 = vmatprep.subr.bf16.mxu0 %v26252_v3  ;;  %v21818_v36 = vpop.f32.mrb[87].mxu1  ;;  %v11548_v27 = vsub.f32 %v31009_v20, %v11547_v31 }
 0x3be   : > { %25144 = vmatpush3.bf16.msra.mxu1 %v25143_v14  ;;  %v30929_v40 = vsub.f32 %v30898_v22, %v11427_v41  ;;  %v30935_v14 = vsub.f32 %v30904_v32, %v11430_v43 }
 0x3bf   : > { %22292 = vmatmul.mubr.f32.vlgmr.msra.gmra.mrb[112].mxu0 %v30579_v1  ;;  %25145 = vmatprep.subr.bf16.mxu1 %v26252_v3 }
 0x3c0   : > { %25129 = vmatpush3.bf16.msra.mxu0 %v30833_v29  ;;  %22329 = vmatprep.mubr.msk.f32.mxu0 %vm26253_vm0, %v26254_v13  ;;  %v11512_v36 = vand.u32 4294901760, %v30929_v40  ;;  %v25224_v28 = vpack.c.bf16 %v30935_v14, %v30929_v40 }
 0x3c1   : > { %25130 = vmatprep.subr.bf16.mxu0 %v26252_v3 }
 0x3c2   : > { %v8410_v1 = vpop.f32.mrb[86].mxu0  ;;  %25147 = vmatpush3.bf16.msra.mxu1 %v25146_v11  ;;  %v30961_v11 = vsub.f32 %v30916_v48, %v11433_v17 }
 0x3c3   : > { %v8411_v49 = vadd.f32 %v8410_v1, %v8323_v18  ;;  %v21799_v26 = vpop.f32.mrb[87].mxu0  ;;  %25148 = vmatprep.subr.bf16.mxu1 %v26252_v3  ;;  %v10951_v18 = vsub.f32 %v30848_v0, %v10950_v50  ;;  %v11519_v1 = vand.u32 4294901760, %v30935_v14 }
 0x3c4   : > { %25132 = vmatpush3.bf16.msra.mxu0 %v30855_v54 }
 0x3c5   : > { %v8492_v34 = vadd.f32 %v8491_v61, %v8411_v49  ;;  %25133 = vmatprep.subr.bf16.mxu0 %v26252_v3  ;;  %v10952_v52 = vand.u32 4294901760, %v10951_v18  ;;  %v25176_v61 = vpack.c.bf16 %v10968_v58, %v10961_v62  ;;  %v30978_v58 = vld [vmem:[%s33596_s1 + $0x530] sm:$0xff]  ;;  %v11513_v49 = vsub.f32 %v30929_v40, %v11512_v36 }
 0x3c6   : > { %25150 = vmatpush3.bf16.msra.mxu1 %v25149_v63  ;;  %v11520_v26 = vsub.f32 %v30935_v14, %v11519_v1 }
 0x3c7   : > { %25163 = vmatprep.subr.bf16.mxu1 %v26252_v3 }
 0x3c8   : > { %25135 = vmatpush3.bf16.msra.mxu0 %v30867_v24 }
 0x3c9   : > { %25136 = vmatprep.subr.bf16.mxu0 %v26252_v3  ;;  %22349 = vmatmul.mubr.f32.vlgmr.msra.gmra.mrb[114].mxu1 %v30827_v57 }
 0x3ca   : > { %25165 = vmatpush3.bf16.msra.mxu1 %v30833_v29  ;;  %22386 = vmatprep.mubr.msk.f32.mxu1 %vm26253_vm0, %v26254_v13 }
 0x3cb   : > { %25166 = vmatprep.subr.bf16.mxu1 %v26252_v3 }
 0x3cc   : > { %25138 = vmatpush3.bf16.msra.mxu0 %v30877_v53  ;;  %v8665_v44 = vpop.f32.mrb[88].mxu1 }
 0x3cd   : > { %25151 = vmatprep.subr.bf16.mxu0 %v26252_v3  ;;  %v21856_v33 = vpop.f32.mrb[89].mxu1 }
 0x3ce   : > { %25168 = vmatpush3.bf16.msra.mxu1 %v30855_v54 }
 0x3cf   : > { %22330 = vmatmul.mubr.f32.vlgmr.msra.gmra.mrb[114].mxu0 %v10952_v52  ;;  %25169 = vmatprep.subr.bf16.mxu1 %v26252_v3 }
 0x3d0   : > { %25153 = vmatpush3.bf16.msra.mxu0 %v25152_v15  ;;  %22367 = vmatprep.mubr.msk.f32.mxu0 %vm26253_vm0, %v26254_v13  ;;  %v11514_v15 = vand.u32 4294901760, %v11513_v49 }
 0x3d1   : > { %25154 = vmatprep.subr.bf16.mxu0 %v26252_v3 }
 0x3d2   : > { %v8586_v37 = vpop.f32.mrb[88].mxu0  ;;  %25171 = vmatpush3.bf16.msra.mxu1 %v30867_v24 }
 0x3d3   : > { %v8587_v55 = vadd.f32 %v8586_v37, %v8492_v34  ;;  %v21837_v2 = vpop.f32.mrb[89].mxu0  ;;  %25172 = vmatprep.subr.bf16.mxu1 %v26252_v3  ;;  %v11445_v34 = vand.u32 4294901760, %v30978_v58  ;;  %v11534_v37 = vsub.f32 %v30966_v42, %v11533_v23 }
 0x3d4   : > { %25156 = vmatpush3.bf16.msra.mxu0 %v25155_v60  ;;  %v11521_v60 = vand.u32 4294901760, %v11520_v26 }
 0x3d5   : > { %v8666_v9 = vadd.f32 %v8665_v44, %v8587_v55  ;;  %25157 = vmatprep.subr.bf16.mxu0 %v26252_v3  ;;  %v11413_v55 = vld [vmem:[#allocation2 + $0x26] sm:$0xff] }
 0x3d6   : > { %25174 = vmatpush3.bf16.msra.mxu1 %v30877_v53  ;;  %v11424_v2 = vsel %vm293_vm1, %v11413_v55, 0  ;;  %v25230_v55 = vpack.c.bf16 %v31009_v20, %v31004_v25 }
 0x3d7   : > { %25187 = vmatprep.subr.bf16.mxu1 %v26252_v3 }
 0x3d8   : > { %25159 = vmatpush3.bf16.msra.mxu0 %v25158_v16  ;;  %v25212_v16 = vpack.c.bf16 %v11521_v60, %v11514_v15  ;;  %v31132_v60 = vld [vmem:[%s33596_s1 + $0x588] sm:$0xff] }
 0x3d9   : > { %25160 = vmatprep.subr.bf16.mxu0 %v26252_v3  ;;  %22387 = vmatmul.mubr.f32.vlgmr.msra.gmra.mrb[116].mxu1 %v10950_v50  ;;  %v11526_v50 = vand.u32 4294901760, %v30961_v11 }
 0x3da   : > { %25189 = vmatpush3.bf16.msra.mxu1 %v30833_v29  ;;  %22424 = vmatprep.mubr.msk.f32.mxu1 %vm26253_vm0, %v26254_v13  ;;  %v30983_v29 = vld [vmem:[%s33596_s1 + $0x538] sm:$0xff] }
 0x3db   : > { %25190 = vmatprep.subr.bf16.mxu1 %v26252_v3  ;;  %v11448_v63 = vand.u32 4294901760, %v30983_v29  ;;  %v11527_v33 = vsub.f32 %v30961_v11, %v11526_v50 }
 0x3dc   : > { %25162 = vmatpush3.bf16.msra.mxu0 %v25161_v30  ;;  %v8862_v62 = vpop.f32.mrb[90].mxu1  ;;  %v11535_v30 = vand.u32 4294901760, %v11534_v37 }
 0x3dd   : > { %25175 = vmatprep.subr.bf16.mxu0 %v26252_v3  ;;  %v31105_v35 = vpack.c.bf16 %v11448_v63, %v11445_v34 }
 0x3de   : > { %25192 = vmatpush3.bf16.msra.mxu1 %v30855_v54  ;;  %v25182_v54 = vpack.c.bf16 %v10996_v45, %v10989_v19  ;;  %v31031_v19 = vsub.f32 %v30978_v58, %v11445_v34  ;;  %v31036_v45 = vsub.f32 %v30983_v29, %v11448_v63  ;;  %v25227_v58 = vpack.c.bf16 %v30966_v42, %v30961_v11  ;;  %v31127_v63 = vld [vmem:[%s33596_s1 + $0x580] sm:$0xff] }
 0x3df   : > { %22368 = vmatmul.mubr.f32.vlgmr.msra.gmra.mrb[116].mxu0 %v30848_v0  ;;  %v21894_v0 = vpop.f32.mrb[91].mxu1  ;;  %25193 = vmatprep.subr.bf16.mxu1 %v26252_v3 }
 0x3e0   : > { %25177 = vmatpush3.bf16.msra.mxu0 %v25176_v61  ;;  %22405 = vmatprep.mubr.msk.f32.mxu0 %vm26253_vm0, %v26254_v13  ;;  %v11541_v61 = vsub.f32 %v31004_v25, %v11540_v56  ;;  %v11554_v51 = vand.u32 4294901760, %v31031_v19  ;;  %v11549_v0 = vand.u32 4294901760, %v11548_v27 }
 0x3e1   : > { %25178 = vmatprep.subr.bf16.mxu0 %v26252_v3 }
 0x3e2   : > { %v8751_v39 = vpop.f32.mrb[90].mxu0  ;;  %25195 = vmatpush3.bf16.msra.mxu1 %v30867_v24  ;;  %v25185_v24 = vpack.c.bf16 %v11010_v38, %v11003_v8  ;;  %v11561_v8 = vand.u32 4294901760, %v31036_v45  ;;  %v31055_v38 = vand.u32 4294901760, %v11424_v2  ;;  %v11555_v49 = vsub.f32 %v31031_v19, %v11554_v51 }
 0x3e3   : > { %v8752_v18 = vadd.f32 %v8751_v39, %v8666_v9  ;;  %v21875_v52 = vpop.f32.mrb[91].mxu0  ;;  %25196 = vmatprep.subr.bf16.mxu1 %v26252_v3  ;;  %v11528_v9 = vand.u32 4294901760, %v11527_v33 }
 0x3e4   : > { %25180 = vmatpush3.bf16.msra.mxu0 %v25179_v4  ;;  %v11542_v4 = vand.u32 4294901760, %v11541_v61  ;;  %v11562_v22 = vsub.f32 %v31036_v45, %v11561_v8  ;;  %v25233_v61 = vpack.c.bf16 %v31036_v45, %v31031_v19 }
 0x3e5   : > { %v8863_v44 = vadd.f32 %v8862_v62, %v8752_v18  ;;  %25181 = vmatprep.subr.bf16.mxu0 %v26252_v3  ;;  %v25215_v62 = vpack.c.bf16 %v11535_v30, %v11528_v9  ;;  %v11556_v18 = vand.u32 4294901760, %v11555_v49  ;;  %v31146_v9 = vld [vmem:[%s33596_s1 + $0x590] sm:$0xff]  ;;  %v31151_v30 = vld [vmem:[%s33596_s1 + $0x598] sm:$0xff]  ;;  %v31174_v49 = vld [vmem:[%s33596_s1 + $0x5a0] sm:$0xff] }
 0x3e6   : > { %25198 = vmatpush3.bf16.msra.mxu1 %v30877_v53  ;;  %v31061_v53 = vpack.c.bf16 %v11430_v43, %v11427_v41  ;;  %v31076_v41 = vsub.f32 %v11424_v2, %v31055_v38  ;;  %v31083_v43 = vpack.c.bf16 %v11436_v6, %v11433_v17  ;;  %v25218_v39 = vpack.c.bf16 %v11549_v0, %v11542_v4 }
 0x3e7   : > { %25211 = vmatprep.subr.bf16.mxu1 %v26252_v3  ;;  %v11563_v52 = vand.u32 4294901760, %v11562_v22  ;;  %v12031_v2 = vand.u32 4294901760, %v31127_v63  ;;  %v12037_v4 = vand.u32 4294901760, %v31146_v9  ;;  %v12040_v0 = vand.u32 4294901760, %v31151_v30  ;;  %v31179_v22 = vld [vmem:[%s33596_s1 + $0x5a8] sm:$0xff] }
 0x3e8   : > { %25183 = vmatpush3.bf16.msra.mxu0 %v25182_v54  ;;  %v11501_v48 = vand.u32 4294901760, %v31076_v41  ;;  %v12043_v40 = vand.u32 4294901760, %v31174_v49  ;;  %v12046_v14 = vand.u32 4294901760, %v31179_v22 }
 0x3e9   : > { %25184 = vmatprep.subr.bf16.mxu0 %v26252_v3  ;;  %22425 = vmatmul.mubr.f32.vlgmr.msra.gmra.mrb[118].mxu1 %v30827_v57  ;;  %v25221_v6 = vpack.c.bf16 %v11563_v52, %v11556_v18  ;;  %v31160_v27 = vsub.f32 %v31127_v63, %v12031_v2  ;;  %v31196_v18 = vsub.f32 %v31151_v30, %v12040_v0 }
 0x3ea   : > { %25213 = vmatpush3.bf16.msra.mxu1 %v25212_v16  ;;  %22462 = vmatprep.mubr.msk.f32.mxu1 %vm26253_vm0, %v26254_v13  ;;  %v12034_v16 = vand.u32 4294901760, %v31132_v60  ;;  %v25251_v52 = vpack.c.bf16 %v11533_v23, %v11526_v50  ;;  %v31234_v50 = vsub.f32 %v31174_v49, %v12043_v40  ;;  %v31239_v23 = vsub.f32 %v31179_v22, %v12046_v14 }
 0x3eb   : > { %25214 = vmatprep.subr.bf16.mxu1 %v26252_v3  ;;  %v12137_v11 = vand.u32 4294901760, %v31196_v18  ;;  %v31325_v30 = vpack.c.bf16 %v12046_v14, %v12043_v40 }
 0x3ec   : > { %25186 = vmatpush3.bf16.msra.mxu0 %v25185_v24  ;;  %v9031_v32 = vpop.f32.mrb[92].mxu1  ;;  %v12144_v25 = vand.u32 4294901760, %v31234_v50  ;;  %v12151_v20 = vand.u32 4294901760, %v31239_v23 }
 0x3ed   : > { %25199 = vmatprep.subr.bf16.mxu0 %v26252_v3  ;;  %v21932_v26 = vpop.f32.mrb[93].mxu1 }
 0x3ee   : > { %25216 = vmatpush3.bf16.msra.mxu1 %v25215_v62  ;;  %v31165_v62 = vsub.f32 %v31132_v60, %v12034_v16  ;;  %v12116_v26 = vand.u32 4294901760, %v31160_v27  ;;  %v12152_v19 = vsub.f32 %v31239_v23, %v12151_v20 }
 0x3ef   : > { %22406 = vmatmul.mubr.f32.vlgmr.msra.gmra.mrb[118].mxu0 %v30827_v57  ;;  %25217 = vmatprep.subr.bf16.mxu1 %v26252_v3 }
 0x3f0   : > { %25201 = vmatpush3.bf16.msra.mxu0 %v31061_v53  ;;  %22443 = vmatprep.mubr.msk.f32.mxu0 %vm26253_vm0, %v26254_v13  ;;  %v25296_v40 = vpack.c.bf16 %v31165_v62, %v31160_v27 }
 0x3f1   : > { %25202 = vmatprep.subr.bf16.mxu0 %v26252_v3 }
 0x3f2   : > { %v8950_v57 = vpop.f32.mrb[92].mxu0  ;;  %25219 = vmatpush3.bf16.msra.mxu1 %v25218_v39  ;;  %v31191_v39 = vsub.f32 %v31146_v9, %v12037_v4 }
 0x3f3   : > { %v8951_v54 = vadd.f32 %v8950_v57, %v8863_v44  ;;  %v21913_v15 = vpop.f32.mrb[93].mxu0  ;;  %25220 = vmatprep.subr.bf16.mxu1 %v26252_v3  ;;  %v11502_v44 = vsub.f32 %v31076_v41, %v11501_v48  ;;  %v12123_v57 = vand.u32 4294901760, %v31165_v62 }
 0x3f4   : > { %25204 = vmatpush3.bf16.msra.mxu0 %v31083_v43 }
 0x3f5   : > { %v9032_v17 = vadd.f32 %v9031_v32, %v8951_v54  ;;  %25205 = vmatprep.subr.bf16.mxu0 %v26252_v3  ;;  %v11503_v59 = vand.u32 4294901760, %v11502_v44  ;;  %v25248_v32 = vpack.c.bf16 %v11519_v1, %v11512_v36  ;;  %v31208_v1 = vld [vmem:[%s33596_s1 + $0x5b0] sm:$0xff]  ;;  %v12117_v54 = vsub.f32 %v31160_v27, %v12116_v26 }
 0x3f6   : > { %25222 = vmatpush3.bf16.msra.mxu1 %v25221_v6  ;;  %v12124_v15 = vsub.f32 %v31165_v62, %v12123_v57 }
 0x3f7   : > { %25235 = vmatprep.subr.bf16.mxu1 %v26252_v3 }
 0x3f8   : > { %25207 = vmatpush3.bf16.msra.mxu0 %v31095_v5 }
 0x3f9   : > { %25208 = vmatprep.subr.bf16.mxu0 %v26252_v3  ;;  %22463 = vmatmul.mubr.f32.vlgmr.msra.gmra.mrb[120].mxu1 %v31055_v38 }
 0x3fa   : > { %25237 = vmatpush3.bf16.msra.mxu1 %v31061_v53  ;;  %22500 = vmatprep.mubr.msk.f32.mxu1 %vm26253_vm0, %v26254_v13 }
 0x3fb   : > { %25238 = vmatprep.subr.bf16.mxu1 %v26252_v3 }
 0x3fc   : > { %25210 = vmatpush3.bf16.msra.mxu0 %v31105_v35  ;;  %v9205_v10 = vpop.f32.mrb[94].mxu1 }
 0x3fd   : > { %25223 = vmatprep.subr.bf16.mxu0 %v26252_v3  ;;  %v21970_v29 = vpop.f32.mrb[95].mxu1 }
 0x3fe   : > { %25240 = vmatpush3.bf16.msra.mxu1 %v31083_v43  ;;  %v12138_v29 = vsub.f32 %v31196_v18, %v12137_v11 }
 0x3ff   : > { %22444 = vmatmul.mubr.f32.vlgmr.msra.gmra.mrb[120].mxu0 %v11503_v59  ;;  %25241 = vmatprep.subr.bf16.mxu1 %v26252_v3 }
 0x400   : > { %25225 = vmatpush3.bf16.msra.mxu0 %v25224_v28  ;;  %22481 = vmatprep.mubr.msk.f32.mxu0 %vm26253_vm0, %v26254_v13  ;;  %v12118_v28 = vand.u32 4294901760, %v12117_v54 }
 0x401   : > { %25226 = vmatprep.subr.bf16.mxu0 %v26252_v3 }
 0x402   : > { %v9126_v34 = vpop.f32.mrb[94].mxu0  ;;  %25243 = vmatpush3.bf16.msra.mxu1 %v31095_v5 }
 0x403   : > { %v9127_v33 = vadd.f32 %v9126_v34, %v9032_v17  ;;  %v21951_v37 = vpop.f32.mrb[95].mxu0  ;;  %25244 = vmatprep.subr.bf16.mxu1 %v26252_v3  ;;  %v12049_v17 = vand.u32 4294901760, %v31208_v1  ;;  %v12017_v34 = vld [vmem:[#allocation2 + $0x31] sm:$0xff] }
 0x404   : > { %25228 = vmatpush3.bf16.msra.mxu0 %v25227_v58 }
 0x405   : > { %v31137_v24 = vadd.f32 %v9205_v10, %v9127_v33  ;;  %25229 = vmatprep.subr.bf16.mxu0 %v26252_v3  ;;  %v12125_v10 = vand.u32 4294901760, %v12124_v15  ;;  %v12028_v33 = vsel %vm293_vm1, %v12017_v34, 0 }
 0x406   : > { %25246 = vmatpush3.bf16.msra.mxu1 %v31105_v35 }
 0x407   : > { %25259 = vmatprep.subr.bf16.mxu1 %v26252_v3  ;;  %v25284_v37 = vpack.c.bf16 %v12125_v10, %v12118_v28 }
 0x408   : > { %25231 = vmatpush3.bf16.msra.mxu0 %v25230_v55 }
 0x409   : > { %25232 = vmatprep.subr.bf16.mxu0 %v26252_v3  ;;  %22501 = vmatmul.mubr.f32.vlgmr.msra.gmra.mrb[122].mxu1 %v11501_v48  ;;  %v12130_v48 = vand.u32 4294901760, %v31191_v39 }
 0x40a   : > { %25261 = vmatpush3.bf16.msra.mxu1 %v31061_v53  ;;  %22538 = vmatprep.mubr.msk.f32.mxu1 %vm26253_vm0, %v26254_v13  ;;  %v31213_v53 = vld [vmem:[%s33596_s1 + $0x5b8] sm:$0xff] }
 0x40b   : > { %25262 = vmatprep.subr.bf16.mxu1 %v26252_v3  ;;  %v12052_v6 = vand.u32 4294901760, %v31213_v53  ;;  %v12131_v58 = vsub.f32 %v31191_v39, %v12130_v48 }
 0x40c   : > { %25234 = vmatpush3.bf16.msra.mxu0 %v25233_v61  ;;  %v9412_v36 = vpop.f32.mrb[96].mxu1  ;;  %v12139_v61 = vand.u32 4294901760, %v12138_v29 }
 0x40d   : > { %25247 = vmatprep.subr.bf16.mxu0 %v26252_v3  ;;  %v12132_v55 = vand.u32 4294901760, %v12131_v58  ;;  %v31337_v49 = vpack.c.bf16 %v12052_v6, %v12049_v17 }
 0x40e   : > { %25264 = vmatpush3.bf16.msra.mxu1 %v31083_v43  ;;  %v25254_v43 = vpack.c.bf16 %v11547_v31, %v11540_v56  ;;  %v31261_v56 = vsub.f32 %v31208_v1, %v12049_v17  ;;  %v31266_v31 = vsub.f32 %v31213_v53, %v12052_v6  ;;  %v25299_v1 = vpack.c.bf16 %v31196_v18, %v31191_v39  ;;  %v31357_v17 = vld [vmem:[%s33596_s1 + $0x540] sm:$0xff]  ;;  %v31363_v6 = vld [vmem:[%s33596_s1 + $0x548] sm:$0xff] }
 0x40f   : > { %22482 = vmatmul.mubr.f32.vlgmr.msra.gmra.mrb[122].mxu0 %v31076_v41  ;;  %v22008_v41 = vpop.f32.mrb[97].mxu1  ;;  %25265 = vmatprep.subr.bf16.mxu1 %v26252_v3 }
 0x410   : > { %25249 = vmatpush3.bf16.msra.mxu0 %v25248_v32  ;;  %22519 = vmatprep.mubr.msk.f32.mxu0 %vm26253_vm0, %v26254_v13  ;;  %v12145_v32 = vsub.f32 %v31234_v50, %v12144_v25  ;;  %v12158_v45 = vand.u32 4294901760, %v31261_v56  ;;  %v12153_v41 = vand.u32 4294901760, %v12152_v19 }
 0x411   : > { %25250 = vmatprep.subr.bf16.mxu0 %v26252_v3 }
 0x412   : > { %v9301_v42 = vpop.f32.mrb[96].mxu0  ;;  %25267 = vmatpush3.bf16.msra.mxu1 %v31095_v5  ;;  %v25257_v5 = vpack.c.bf16 %v11561_v8, %v11554_v51  ;;  %v12165_v51 = vand.u32 4294901760, %v31266_v31  ;;  %v31285_v8 = vand.u32 4294901760, %v12028_v33  ;;  %v12159_v54 = vsub.f32 %v31261_v56, %v12158_v45 }
 0x413   : > { %v21989_v44 = vpop.f32.mrb[97].mxu0  ;;  %v9413_v59 = vadd.f32 %v9412_v36, %v9301_v42  ;;  %25268 = vmatprep.subr.bf16.mxu1 %v26252_v3  ;;  %v25287_v36 = vpack.c.bf16 %v12139_v61, %v12132_v55  ;;  %v31376_v61 = vld [vmem:[%s33596_s1 + $0x550] sm:$0xff] }
 0x414   : > { %25252 = vmatpush3.bf16.msra.mxu0 %v25251_v52  ;;  %v12146_v52 = vand.u32 4294901760, %v12145_v32  ;;  %v12166_v63 = vsub.f32 %v31266_v31, %v12165_v51  ;;  %v12160_v44 = vand.u32 4294901760, %v12159_v54  ;;  %v31381_v32 = vld [vmem:[%s33596_s1 + $0x558] sm:$0xff] }
 0x415   : > { %25253 = vmatprep.subr.bf16.mxu0 %v26252_v3 }
 0x416   : > { %25270 = vmatpush3.bf16.msra.mxu1 %v31105_v35  ;;  %v31291_v35 = vpack.c.bf16 %v12034_v16, %v12031_v2  ;;  %v31306_v2 = vsub.f32 %v12028_v33, %v31285_v8  ;;  %v31313_v16 = vpack.c.bf16 %v12040_v0, %v12037_v4  ;;  %v25290_v42 = vpack.c.bf16 %v12153_v41, %v12146_v52 }
 0x417   : > { %25283 = vmatprep.subr.bf16.mxu1 %v26252_v3  ;;  %v25302_v33 = vpack.c.bf16 %v31239_v23, %v31234_v50  ;;  %v25305_v52 = vpack.c.bf16 %v31266_v31, %v31261_v56 }
 0x418   : > { %25255 = vmatpush3.bf16.msra.mxu0 %v25254_v43  ;;  %v12167_v43 = vand.u32 4294901760, %v12166_v63  ;;  %v12105_v9 = vand.u32 4294901760, %v31306_v2  ;;  %v12580_v63 = vand.u32 4294901760, %v31381_v32 }
 0x419   : > { %25256 = vmatprep.subr.bf16.mxu0 %v26252_v3  ;;  %22539 = vmatmul.mubr.f32.vlgmr.msra.gmra.mrb[124].mxu1 %v31055_v38 }
 0x41a   : > { %25285 = vmatpush3.bf16.msra.mxu1 %v25284_v37  ;;  %22576 = vmatprep.mubr.msk.f32.mxu1 %vm26253_vm0, %v26254_v13  ;;  %v25293_v0 = vpack.c.bf16 %v12167_v43, %v12160_v44  ;;  %v12574_v37 = vand.u32 4294901760, %v31363_v6  ;;  %v25320_v43 = vpack.c.bf16 %v12123_v57, %v12116_v26  ;;  %v31431_v27 = vsub.f32 %v31381_v32, %v12580_v63 }
 0x41b   : > { %25286 = vmatprep.subr.bf16.mxu1 %v26252_v3 }
 0x41c   : > { %25258 = vmatpush3.bf16.msra.mxu0 %v25257_v5  ;;  %v9581_v60 = vpop.f32.mrb[98].mxu1  ;;  %v12571_v5 = vand.u32 4294901760, %v31357_v17  ;;  %v31397_v41 = vsub.f32 %v31363_v6, %v12574_v37 }
 0x41d   : > { %25271 = vmatprep.subr.bf16.mxu0 %v26252_v3  ;;  %v22046_v15 = vpop.f32.mrb[99].mxu1 }
 0x41e   : > { %25288 = vmatpush3.bf16.msra.mxu1 %v25287_v36  ;;  %v31390_v36 = vsub.f32 %v31357_v17, %v12571_v5  ;;  %v31406_v15 = vld [vmem:[%s33596_s1 + $0x560] sm:$0xff] }
 0x41f   : > { %22520 = vmatmul.mubr.f32.vlgmr.msra.gmra.mrb[124].mxu0 %v31055_v38  ;;  %25289 = vmatprep.subr.bf16.mxu1 %v26252_v3  ;;  %v12583_v62 = vand.u32 4294901760, %v31406_v15 }
 0x420   : > { %25273 = vmatpush3.bf16.msra.mxu0 %v31291_v35  ;;  %22557 = vmatprep.mubr.msk.f32.mxu0 %vm26253_vm0, %v26254_v13 }
 0x421   : > { %25274 = vmatprep.subr.bf16.mxu0 %v26252_v3 }
 0x422   : > { %v9500_v38 = vpop.f32.mrb[98].mxu0  ;;  %25291 = vmatpush3.bf16.msra.mxu1 %v25290_v42  ;;  %v12656_v42 = vand.u32 4294901760, %v31390_v36 }
 0x423   : > { %v9501_v28 = vadd.f32 %v9500_v38, %v9413_v59  ;;  %v22027_v10 = vpop.f32.mrb[99].mxu0  ;;  %25292 = vmatprep.subr.bf16.mxu1 %v26252_v3  ;;  %v12106_v59 = vsub.f32 %v31306_v2, %v12105_v9  ;;  %v31411_v38 = vld [vmem:[%s33596_s1 + $0x568] sm:$0xff] }
 0x424   : > { %25276 = vmatpush3.bf16.msra.mxu0 %v31313_v16  ;;  %v12586_v26 = vand.u32 4294901760, %v31411_v38 }
 0x425   : > { %v9582_v4 = vadd.f32 %v9581_v60, %v9501_v28  ;;  %25277 = vmatprep.subr.bf16.mxu0 %v26252_v3  ;;  %v12107_v22 = vand.u32 4294901760, %v12106_v59  ;;  %v12663_v28 = vand.u32 4294901760, %v31397_v41 }
 0x426   : > { %25294 = vmatpush3.bf16.msra.mxu1 %v25293_v0  ;;  %v31560_v32 = vpack.c.bf16 %v12586_v26, %v12583_v62 }
 0x427   : > { %25307 = vmatprep.subr.bf16.mxu1 %v26252_v3 }
 0x428   : > { %25279 = vmatpush3.bf16.msra.mxu0 %v31325_v30 }
 0x429   : > { %25280 = vmatprep.subr.bf16.mxu0 %v26252_v3  ;;  %22577 = vmatmul.mubr.f32.vlgmr.msra.gmra.mrb[126].mxu1 %v31285_v8 }
 0x42a   : > { %25309 = vmatpush3.bf16.msra.mxu1 %v31291_v35  ;;  %22614 = vmatprep.mubr.msk.f32.mxu1 %vm26253_vm0, %v26254_v13 }
 0x42b   : > { %25310 = vmatprep.subr.bf16.mxu1 %v26252_v3 }
 0x42c   : > { %25282 = vmatpush3.bf16.msra.mxu0 %v31337_v49  ;;  %v9755_v14 = vpop.f32.mrb[100].mxu1 }
 0x42d   : > { %25295 = vmatprep.subr.bf16.mxu0 %v26252_v3  ;;  %v22084_v53 = vpop.f32.mrb[101].mxu1 }
 0x42e   : > { %25312 = vmatpush3.bf16.msra.mxu1 %v31313_v16  ;;  %v31473_v53 = vsub.f32 %v31411_v38, %v12586_v26 }
 0x42f   : > { %22558 = vmatmul.mubr.f32.vlgmr.msra.gmra.mrb[126].mxu0 %v12107_v22  ;;  %25313 = vmatprep.subr.bf16.mxu1 %v26252_v3  ;;  %v12657_v22 = vsub.f32 %v31390_v36, %v12656_v42 }
 0x430   : > { %25297 = vmatpush3.bf16.msra.mxu0 %v25296_v40  ;;  %22595 = vmatprep.mubr.msk.f32.mxu0 %vm26253_vm0, %v26254_v13  ;;  %v12691_v23 = vand.u32 4294901760, %v31473_v53 }
 0x431   : > { %25298 = vmatprep.subr.bf16.mxu0 %v26252_v3 }
 0x432   : > { %v9676_v58 = vpop.f32.mrb[100].mxu0  ;;  %25315 = vmatpush3.bf16.msra.mxu1 %v31325_v30  ;;  %v12692_v56 = vsub.f32 %v31473_v53, %v12691_v23 }
 0x433   : > { %v9677_v29 = vadd.f32 %v9676_v58, %v9582_v4  ;;  %v22065_v34 = vpop.f32.mrb[101].mxu0  ;;  %25316 = vmatprep.subr.bf16.mxu1 %v26252_v3 }
 0x434   : > { %25300 = vmatpush3.bf16.msra.mxu0 %v25299_v1  ;;  %v31468_v1 = vsub.f32 %v31406_v15, %v12583_v62  ;;  %v25368_v62 = vpack.c.bf16 %v31397_v41, %v31390_v36 }
 0x435   : > { %v9756_v55 = vadd.f32 %v9755_v14, %v9677_v29  ;;  %25301 = vmatprep.subr.bf16.mxu0 %v26252_v3  ;;  %v12677_v14 = vand.u32 4294901760, %v31431_v27 }
 0x436   : > { %25318 = vmatpush3.bf16.msra.mxu1 %v31337_v49 }
 0x437   : > { %v31384_v19 = vadd.f32 %v9756_v55, %v31137_v24  ;;  %v12577_v24 = vand.u32 4294901760, %v31376_v61  ;;  %25331 = vmatprep.subr.bf16.mxu1 %v26252_v3 }
 0x438   : > { %25303 = vmatpush3.bf16.msra.mxu0 %v25302_v33 }
 0x439   : > { %v8071_v54 = vpop.xlane.xlu1 %8070  ;;  %25304 = vmatprep.subr.bf16.mxu0 %v26252_v3  ;;  %22615 = vmatmul.mubr.f32.vlgmr.msra.gmra.mrb[128].mxu1 %v12105_v9  ;;  %v31426_v4 = vsub.f32 %v31376_v61, %v12577_v24  ;;  %v25323_v9 = vpack.c.bf16 %v12137_v11, %v12130_v48  ;;  %v12664_v11 = vsub.f32 %v31397_v41, %v12663_v28 }
 0x43a   : > { %v8072_v60 = vrot.slane %v8071_v54, 4  ;;  %25333 = vmatpush3.bf16.msra.mxu1 %v31291_v35  ;;  %22652 = vmatprep.mubr.msk.f32.mxu1 %vm26253_vm0, %v26254_v13  ;;  %v31450_v35 = vld [vmem:[%s33596_s1 + $0x570] sm:$0xff] }
 0x43b   : > { %25334 = vmatprep.subr.bf16.mxu1 %v26252_v3  ;;  %v12670_v40 = vand.u32 4294901760, %v31426_v4  ;;  %v12589_v33 = vand.u32 4294901760, %v31450_v35 }
 0x43c   : > { %v8073_v44 = vadd.f32 %v8072_v60, %v8071_v54  ;;  %25306 = vmatpush3.bf16.msra.mxu0 %v25305_v52  ;;  %v9963_v59 = vpop.f32.mrb[102].mxu1 }
 0x43d   : > { %v8083_v10 = vpop.xlane.xlu1 %8082  ;;  %25319 = vmatprep.subr.bf16.mxu0 %v26252_v3  ;;  %v22122_v18 = vpop.f32.mrb[103].mxu1 }
 0x43e   : > { %v8074_v57 = vrot.slane %v8073_v44, 2  ;;  %v8084_v0 = vrot.slane %v8083_v10, 4  ;;  %25336 = vmatpush3.bf16.msra.mxu1 %v31313_v16  ;;  %v12665_v16 = vand.u32 4294901760, %v12664_v11 }
 0x43f   : > { %22596 = vmatmul.mubr.f32.vlgmr.msra.gmra.mrb[128].mxu0 %v31306_v2  ;;  %v31455_v2 = vld [vmem:[%s33596_s1 + $0x578] sm:$0xff]  ;;  %25337 = vmatprep.subr.bf16.mxu1 %v26252_v3 }
 0x440   : > { %v8085_v39 = vadd.f32 %v8084_v0, %v8083_v10  ;;  %25321 = vmatpush3.bf16.msra.mxu0 %v25320_v43  ;;  %v8075_v48 = vadd.f32 %v8074_v57, %v8073_v44  ;;  %22633 = vmatprep.mubr.msk.f32.mxu0 %vm26253_vm0, %v26254_v13  ;;  %v12592_v55 = vand.u32 4294901760, %v31455_v2  ;;  %v25326_v44 = vpack.c.bf16 %v12151_v20, %v12144_v25 }
 0x441   : > { %25322 = vmatprep.subr.bf16.mxu0 %v26252_v3  ;;  %v12658_v10 = vand.u32 4294901760, %v12657_v22  ;;  %v12671_v57 = vsub.f32 %v31426_v4, %v12670_v40  ;;  %v12678_v0 = vsub.f32 %v31431_v27, %v12677_v14  ;;  %v31496_v25 = vsub.f32 %v31450_v35, %v12589_v33 }
 0x442   : > { %v8086_v58 = vrot.slane %v8085_v39, 2  ;;  %v9852_v29 = vpop.f32.mrb[102].mxu0  ;;  %v8076_v34 = vrot.slane %v8075_v48, 1  ;;  %25339 = vmatpush3.bf16.msra.mxu1 %v31325_v30  ;;  %v31501_v20 = vsub.f32 %v31455_v2, %v12592_v55  ;;  %v25329_v30 = vpack.c.bf16 %v12165_v51, %v12158_v45 }
 0x443   : > { %v22103_v52 = vpop.f32.mrb[103].mxu0  ;;  %v9964_v54 = vadd.f32 %v9963_v59, %v9852_v29  ;;  %v12007_v59 = vld [vmem:[#allocation2 + $0x30] sm:$0xff]  ;;  %25340 = vmatprep.subr.bf16.mxu1 %v26252_v3  ;;  %v25356_v18 = vpack.c.bf16 %v12665_v16, %v12658_v10  ;;  %v12679_v11 = vand.u32 4294901760, %v12678_v0  ;;  %v12698_v31 = vand.u32 4294901760, %v31496_v25 }
 0x444   : > { %25324 = vmatpush3.bf16.msra.mxu0 %v25323_v9  ;;  %v8077_v60 = vadd.f32 %v8076_v34, %v8075_v48  ;;  %v8087_v43 = vadd.f32 %v8086_v58, %v8085_v39  ;;  %v12684_v9 = vand.u32 4294901760, %v31468_v1  ;;  %v12568_v39 = vsel %vm293_vm1, %v12007_v59, 0  ;;  %v31597_v59 = vld [vmem:[%s33596_s1 + $0x5c8] sm:$0xff] }
 0x445   : > { %25325 = vmatprep.subr.bf16.mxu0 %v26252_v3  ;;  %v12672_v48 = vand.u32 4294901760, %v12671_v57  ;;  %v12705_v45 = vand.u32 4294901760, %v31501_v20  ;;  %v31520_v51 = vand.u32 4294901760, %v12568_v39  ;;  %v12693_v52 = vand.u32 4294901760, %v12692_v56 }
 0x446   : > { %26141 = vpush %v8077_v60  ;;  %v8088_v50 = vrot.slane %v8087_v43, 1  ;;  %25342 = vmatpush3.bf16.msra.mxu1 %v31337_v49  ;;  %v12685_v58 = vsub.f32 %v31468_v1, %v12684_v9  ;;  %v31526_v49 = vpack.c.bf16 %v12574_v37, %v12571_v5  ;;  %v12699_v60 = vsub.f32 %v31496_v25, %v12698_v31 }
 0x447   : > { %25355 = vmatprep.subr.bf16.mxu1 %v26252_v3  ;;  %v25359_v29 = vpack.c.bf16 %v12679_v11, %v12672_v48  ;;  %v12706_v17 = vsub.f32 %v31501_v20, %v12705_v45  ;;  %v31541_v5 = vsub.f32 %v12568_v39, %v31520_v51  ;;  %v31548_v37 = vpack.c.bf16 %v12580_v63, %v12577_v24  ;;  %v31609_v11 = vld [vmem:[%s33596_s1 + $0x5d0] sm:$0xff] }
 0x448   : > { %25327 = vmatpush3.bf16.msra.mxu0 %v25326_v44  ;;  %v8089_v22 = vadd.f32 %v8088_v50, %v8087_v43  ;;  %v12686_v34 = vand.u32 4294901760, %v12685_v58  ;;  %v12700_v10 = vand.u32 4294901760, %v12699_v60  ;;  %v31570_v15 = vpack.c.bf16 %v12592_v55, %v12589_v33  ;;  %v31592_v55 = vld [vmem:[%s33596_s1 + $0x5c0] sm:$0xff]  ;;  %v31614_v58 = vld [vmem:[%s33596_s1 + $0x5d8] sm:$0xff] }
 0x449   : > { %25328 = vmatprep.subr.bf16.mxu0 %v26252_v3  ;;  %22653 = vmatmul.mubr.f32.vlgmr.msra.gmra.mrb[130].mxu1 %v31285_v8  ;;  %v12707_v16 = vand.u32 4294901760, %v12706_v17  ;;  %v12645_v61 = vand.u32 4294901760, %v31541_v5  ;;  %v25371_v35 = vpack.c.bf16 %v31431_v27, %v31426_v4  ;;  %v13124_v48 = vand.u32 4294901760, %v31597_v59  ;;  %v31640_v17 = vld [vmem:[%s33596_s1 + $0x5e0] sm:$0xff] }
 0x44a   : > { %26143 = vpush %v8089_v22  ;;  %25357 = vmatpush3.bf16.msra.mxu1 %v25356_v18  ;;  %22690 = vmatprep.mubr.msk.f32.mxu1 %vm26253_vm0, %v26254_v13  ;;  %v25362_v43 = vpack.c.bf16 %v12693_v52, %v12686_v34  ;;  %v13121_v18 = vand.u32 4294901760, %v31592_v55  ;;  %v13130_v60 = vand.u32 4294901760, %v31614_v58  ;;  %v13133_v36 = vand.u32 4294901760, %v31640_v17 }
 0x44b   : > { %25358 = vmatprep.subr.bf16.mxu1 %v26252_v3  ;;  %v25365_v63 = vpack.c.bf16 %v12707_v16, %v12700_v10  ;;  %v31631_v52 = vsub.f32 %v31597_v59, %v13124_v48 }
 0x44c   : > { %25330 = vmatpush3.bf16.msra.mxu0 %v25329_v30  ;;  %v10132_v6 = vpop.f32.mrb[104].mxu1  ;;  %v25374_v30 = vpack.c.bf16 %v31473_v53, %v31468_v1  ;;  %v31626_v34 = vsub.f32 %v31592_v55, %v13121_v18  ;;  %v31662_v16 = vsub.f32 %v31614_v58, %v13130_v60 }
 0x44d   : > { %25343 = vmatprep.subr.bf16.mxu0 %v26252_v3  ;;  %v22160_v44 = vpop.f32.mrb[105].mxu1 }
 0x44e   : > { %25360 = vmatpush3.bf16.msra.mxu1 %v25359_v29  ;;  %v25377_v29 = vpack.c.bf16 %v31501_v20, %v31496_v25  ;;  %v25392_v44 = vpack.c.bf16 %v12663_v28, %v12656_v42  ;;  %v31674_v28 = vld [vmem:[%s33596_s1 + $0x5f0] sm:$0xff]  ;;  %v13227_v4 = vand.u32 4294901760, %v31662_v16 }
 0x44f   : > { %22634 = vmatmul.mubr.f32.vlgmr.msra.gmra.mrb[130].mxu0 %v31285_v8  ;;  %25361 = vmatprep.subr.bf16.mxu1 %v26252_v3 }
 0x450   : > { %25345 = vmatpush3.bf16.msra.mxu0 %v31526_v49  ;;  %22671 = vmatprep.mubr.msk.f32.mxu0 %vm26253_vm0, %v26254_v13 }
 0x451   : > { %25346 = vmatprep.subr.bf16.mxu0 %v26252_v3 }
 0x452   : > { %v10051_v8 = vpop.f32.mrb[104].mxu0  ;;  %25363 = vmatpush3.bf16.msra.mxu1 %v25362_v43  ;;  %v13213_v43 = vand.u32 4294901760, %v31631_v52 }
 0x453   : > { %v10052_v57 = vadd.f32 %v10051_v8, %v9964_v54  ;;  %v22141_v0 = vpop.f32.mrb[105].mxu0  ;;  %25364 = vmatprep.subr.bf16.mxu1 %v26252_v3  ;;  %v12646_v54 = vsub.f32 %v31541_v5, %v12645_v61  ;;  %v13206_v8 = vand.u32 4294901760, %v31626_v34 }
 0x454   : > { %25348 = vmatpush3.bf16.msra.mxu0 %v31548_v37 }
 0x455   : > { %v10133_v24 = vadd.f32 %v10132_v6, %v10052_v57  ;;  %25349 = vmatprep.subr.bf16.mxu0 %v26252_v3  ;;  %v12647_v38 = vand.u32 4294901760, %v12646_v54  ;;  %v31645_v6 = vld [vmem:[%s33596_s1 + $0x5e8] sm:$0xff]  ;;  %v25395_v57 = vpack.c.bf16 %v12677_v14, %v12670_v40  ;;  %v13207_v0 = vsub.f32 %v31626_v34, %v13206_v8 }
 0x456   : > { %25366 = vmatpush3.bf16.msra.mxu1 %v25365_v63  ;;  %v13136_v41 = vand.u32 4294901760, %v31645_v6  ;;  %v31700_v40 = vsub.f32 %v31640_v17, %v13133_v36  ;;  %v13139_v63 = vand.u32 4294901760, %v31674_v28 }
 0x457   : > { %25379 = vmatprep.subr.bf16.mxu1 %v26252_v3 }
 0x458   : > { %25351 = vmatpush3.bf16.msra.mxu0 %v31560_v32  ;;  %v31705_v14 = vsub.f32 %v31645_v6, %v13136_v41  ;;  %v13234_v1 = vand.u32 4294901760, %v31700_v40 }
 0x459   : > { %25352 = vmatprep.subr.bf16.mxu0 %v26252_v3  ;;  %22691 = vmatmul.mubr.f32.vlgmr.msra.gmra.mrb[132].mxu1 %v31520_v51 }
 0x45a   : > { %25381 = vmatpush3.bf16.msra.mxu1 %v31526_v49  ;;  %22728 = vmatprep.mubr.msk.f32.mxu1 %vm26253_vm0, %v26254_v13  ;;  %v13241_v53 = vand.u32 4294901760, %v31705_v14 }
 0x45b   : > { %25382 = vmatprep.subr.bf16.mxu1 %v26252_v3 }
 0x45c   : > { %25354 = vmatpush3.bf16.msra.mxu0 %v31570_v15  ;;  %v10306_v26 = vpop.f32.mrb[106].mxu1  ;;  %v13242_v25 = vsub.f32 %v31705_v14, %v13241_v53 }
 0x45d   : > { %25367 = vmatprep.subr.bf16.mxu0 %v26252_v3  ;;  %v22198_v2 = vpop.f32.mrb[107].mxu1 }
 0x45e   : > { %25384 = vmatpush3.bf16.msra.mxu1 %v31548_v37 }
 0x45f   : > { %22672 = vmatmul.mubr.f32.vlgmr.msra.gmra.mrb[132].mxu0 %v12647_v38  ;;  %25385 = vmatprep.subr.bf16.mxu1 %v26252_v3 }
 0x460   : > { %25369 = vmatpush3.bf16.msra.mxu0 %v25368_v62  ;;  %22709 = vmatprep.mubr.msk.f32.mxu0 %vm26253_vm0, %v26254_v13 }
 0x461   : > { %25370 = vmatprep.subr.bf16.mxu0 %v26252_v3 }
 0x462   : > { %v10227_v33 = vpop.f32.mrb[106].mxu0  ;;  %25387 = vmatpush3.bf16.msra.mxu1 %v31560_v32 }
 0x463   : > { %v10228_v50 = vadd.f32 %v10227_v33, %v10133_v24  ;;  %v22179_v22 = vpop.f32.mrb[107].mxu0  ;;  %25388 = vmatprep.subr.bf16.mxu1 %v26252_v3  ;;  %v13228_v33 = vsub.f32 %v31662_v16, %v13227_v4 }
 0x464   : > { %25372 = vmatpush3.bf16.msra.mxu0 %v25371_v35 }
 0x465   : > { %v10307_v39 = vadd.f32 %v10306_v26, %v10228_v50  ;;  %25373 = vmatprep.subr.bf16.mxu0 %v26252_v3  ;;  %v13208_v26 = vand.u32 4294901760, %v13207_v0  ;;  %v13107_v50 = vld [vmem:[#allocation2 + $0x32] sm:$0xff] }
 0x466   : > { %25390 = vmatpush3.bf16.msra.mxu1 %v31570_v15  ;;  %v13118_v22 = vsel %vm293_vm1, %v13107_v50, 0  ;;  %v31835_v50 = vld [vmem:[%s33596_s1 + $0x608] sm:$0xff] }
 0x467   : > { %v31617_v56 = vadd.f32 %v10307_v39, %v31384_v19  ;;  %v13127_v19 = vand.u32 4294901760, %v31609_v11  ;;  %25403 = vmatprep.subr.bf16.mxu1 %v26252_v3 }
 0x468   : > { %25375 = vmatpush3.bf16.msra.mxu0 %v25374_v30 }
 0x469   : > { %25376 = vmatprep.subr.bf16.mxu0 %v26252_v3  ;;  %22729 = vmatmul.mubr.f32.vlgmr.msra.gmra.mrb[134].mxu1 %v12645_v61  ;;  %v31657_v10 = vsub.f32 %v31609_v11, %v13127_v19  ;;  %v13214_v61 = vsub.f32 %v31631_v52, %v13213_v43 }
 0x46a   : > { %25405 = vmatpush3.bf16.msra.mxu1 %v31526_v49  ;;  %22766 = vmatprep.mubr.msk.f32.mxu1 %vm26253_vm0, %v26254_v13  ;;  %v31679_v49 = vld [vmem:[%s33596_s1 + $0x5f8] sm:$0xff] }
 0x46b   : > { %25406 = vmatprep.subr.bf16.mxu1 %v26252_v3  ;;  %v13220_v24 = vand.u32 4294901760, %v31657_v10  ;;  %v13142_v54 = vand.u32 4294901760, %v31679_v49  ;;  %v13215_v35 = vand.u32 4294901760, %v13214_v61 }
 0x46c   : > { %25378 = vmatpush3.bf16.msra.mxu0 %v25377_v29  ;;  %v10514_v42 = vpop.f32.mrb[108].mxu1  ;;  %v13229_v29 = vand.u32 4294901760, %v13228_v33  ;;  %v31830_v33 = vld [vmem:[%s33596_s1 + $0x600] sm:$0xff] }
 0x46d   : > { %25391 = vmatprep.subr.bf16.mxu0 %v26252_v3  ;;  %v13221_v2 = vsub.f32 %v31657_v10, %v13220_v24  ;;  %v25428_v30 = vpack.c.bf16 %v13215_v35, %v13208_v26  ;;  %v31808_v17 = vpack.c.bf16 %v13142_v54, %v13139_v63 }
 0x46e   : > { %25408 = vmatpush3.bf16.msra.mxu1 %v31548_v37  ;;  %v25398_v37 = vpack.c.bf16 %v12691_v23, %v12684_v9  ;;  %v31729_v9 = vsub.f32 %v31674_v28, %v13139_v63  ;;  %v31734_v23 = vsub.f32 %v31679_v49, %v13142_v54  ;;  %v25443_v28 = vpack.c.bf16 %v31662_v16, %v31657_v10 }
 0x46f   : > { %22710 = vmatmul.mubr.f32.vlgmr.msra.gmra.mrb[134].mxu0 %v31541_v5  ;;  %v22236_v5 = vpop.f32.mrb[109].mxu1  ;;  %25409 = vmatprep.subr.bf16.mxu1 %v26252_v3  ;;  %v13222_v39 = vand.u32 4294901760, %v13221_v2 }
 0x470   : > { %25393 = vmatpush3.bf16.msra.mxu0 %v25392_v44  ;;  %22747 = vmatprep.mubr.msk.f32.mxu0 %vm26253_vm0, %v26254_v13  ;;  %v13235_v44 = vsub.f32 %v31700_v40, %v13234_v1  ;;  %v13248_v20 = vand.u32 4294901760, %v31729_v9  ;;  %v13243_v5 = vand.u32 4294901760, %v13242_v25  ;;  %v31847_v25 = vld [vmem:[%s33596_s1 + $0x610] sm:$0xff] }
 0x471   : > { %25394 = vmatprep.subr.bf16.mxu0 %v26252_v3 }
 0x472   : > { %v10403_v27 = vpop.f32.mrb[108].mxu0  ;;  %25411 = vmatpush3.bf16.msra.mxu1 %v31560_v32  ;;  %v25401_v32 = vpack.c.bf16 %v12705_v45, %v12698_v31  ;;  %v13255_v31 = vand.u32 4294901760, %v31734_v23  ;;  %v31757_v45 = vand.u32 4294901760, %v13118_v22  ;;  %v13249_v0 = vsub.f32 %v31729_v9, %v13248_v20 }
 0x473   : > { %v22217_v38 = vpop.f32.mrb[109].mxu0  ;;  %v31709_v62 = vadd.f32 %v10514_v42, %v10403_v27  ;;  %25412 = vmatprep.subr.bf16.mxu1 %v26252_v3  ;;  %v25431_v42 = vpack.c.bf16 %v13229_v29, %v13222_v39  ;;  %v13672_v29 = vand.u32 4294901760, %v31830_v33 }
 0x474   : > { %25396 = vmatpush3.bf16.msra.mxu0 %v25395_v57  ;;  %v13236_v57 = vand.u32 4294901760, %v13235_v44  ;;  %v13256_v55 = vsub.f32 %v31734_v23, %v13255_v31  ;;  %v31778_v59 = vsub.f32 %v13118_v22, %v31757_v45  ;;  %v13675_v44 = vand.u32 4294901760, %v31835_v50 }
 0x475   : > { %25397 = vmatprep.subr.bf16.mxu0 %v26252_v3 }
 0x476   : > { %25414 = vmatpush3.bf16.msra.mxu1 %v31570_v15  ;;  %v31763_v15 = vpack.c.bf16 %v13124_v48, %v13121_v18  ;;  %v31785_v18 = vpack.c.bf16 %v13130_v60, %v13127_v19  ;;  %v25434_v38 = vpack.c.bf16 %v13243_v5, %v13236_v57  ;;  %v13257_v26 = vand.u32 4294901760, %v13256_v55 }
 0x477   : > { %s26142_s30 = spop %26141  ;;  %25427 = vmatprep.subr.bf16.mxu1 %v26252_v3  ;;  %v13195_v58 = vand.u32 4294901760, %v31778_v59  ;;  %v31798_v19 = vpack.c.bf16 %v13136_v41, %v13133_v36  ;;  %v25440_v36 = vpack.c.bf16 %v31631_v52, %v31626_v34  ;;  %v25449_v5 = vpack.c.bf16 %v31734_v23, %v31729_v9 }
 0x478   : > { %s31737_s26 = smul.f32 0.001953125, %s26142_s30  ;;  %25399 = vmatpush3.bf16.msra.mxu0 %v25398_v37  ;;  %v13250_v37 = vand.u32 4294901760, %v13249_v0  ;;  %v31864_v0 = vsub.f32 %v31830_v33, %v13672_v29  ;;  %v31869_v55 = vsub.f32 %v31835_v50, %v13675_v44 }
 0x479   : > { %25400 = vmatprep.subr.bf16.mxu0 %v26252_v3  ;;  %22767 = vmatmul.mubr.f32.vlgmr.msra.gmra.mrb[136].mxu1 %v31520_v51 }
 0x47a   : > { %s8092_s19 = smul.f32 %s31737_s26, %s31737_s26  ;;  %25429 = vmatpush3.bf16.msra.mxu1 %v25428_v30  ;;  %22804 = vmatprep.mubr.msk.f32.mxu1 %vm26253_vm0, %v26254_v13  ;;  %v25437_v2 = vpack.c.bf16 %v13257_v26, %v13250_v37  ;;  %v25446_v30 = vpack.c.bf16 %v31705_v14, %v31700_v40  ;;  %v13764_v37 = vand.u32 4294901760, %v31869_v55 }
 0x47b   : > { %s26144_s28 = spop %26143  ;;  %25430 = vmatprep.subr.bf16.mxu1 %v26252_v3 }
 0x47c   : > { %s8091_s29 = smul.f32 0.001953125, %s26144_s28  ;;  %25402 = vmatpush3.bf16.msra.mxu0 %v25401_v32  ;;  %v10683_v48 = vpop.f32.mrb[110].mxu1  ;;  %s32325_s28 = sld [smem:[#allocation4 + $0x2]] }
 0x47d   : > { %25415 = vmatprep.subr.bf16.mxu0 %v26252_v3 }
 0x47e   : > { %s8093_s8 = ssub.f32 %s8091_s29, %s8092_s19  ;;  %25432 = vmatpush3.bf16.msra.mxu1 %v25431_v42  ;;  %v31852_v42 = vld [vmem:[%s33596_s1 + $0x618] sm:$0xff]  ;;  %s32043_s29 = sld [smem:[#allocation4 + $0x81]] }
 0x47f   : > { %22748 = vmatmul.mubr.f32.vlgmr.msra.gmra.mrb[136].mxu0 %v31520_v51  ;;  %v22274_v51 = vpop.f32.mrb[111].mxu1  ;;  %25433 = vmatprep.subr.bf16.mxu1 %v26252_v3 }
 0x480   : > { %s8096_s9 = sadd.f32 1e-05, %s8093_s8  ;;  %25417 = vmatpush3.bf16.msra.mxu0 %v31763_v15  ;;  %22785 = vmatprep.mubr.msk.f32.mxu0 %vm26253_vm0, %v26254_v13  ;;  %v31878_v51 = vld [vmem:[%s33596_s1 + $0x620] sm:$0xff]  ;;  %s32046_s8 = sld [smem:[#allocation4 + $0x101]] }
 0x481   : > { %25418 = vmatprep.subr.bf16.mxu0 %v26252_v3  ;;  %v13684_v34 = vand.u32 4294901760, %v31878_v51 }
 0x482   : > { %v8097_v61 = vstv %s8096_s9  ;;  %v10602_v27 = vpop.f32.mrb[110].mxu0  ;;  %25435 = vmatpush3.bf16.msra.mxu1 %v25434_v38  ;;  %v13757_v38 = vand.u32 4294901760, %v31864_v0 }
 0x483   : > { %26186 = vrsqrt.f32 %v8097_v61  ;;  %v10603_v11 = vadd.f32 %v10602_v27, %v31709_v62  ;;  %v22255_v35 = vpop.f32.mrb[111].mxu0  ;;  %25436 = vmatprep.subr.bf16.mxu1 %v26252_v3  ;;  %v13196_v62 = vsub.f32 %v31778_v59, %v13195_v58  ;;  %v31883_v61 = vld [vmem:[%s33596_s1 + $0x628] sm:$0xff]  ;;  %v25464_v27 = vpack.c.bf16 %v13213_v43, %v13206_v8  ;;  %v31912_v8 = vld [vmem:[%s33596_s1 + $0x630] sm:$0xff]  ;;  %v31917_v43 = vld [vmem:[%s33596_s1 + $0x638] sm:$0xff] }
 0x484   : > { %25420 = vmatpush3.bf16.msra.mxu0 %v31785_v18  ;;  %v13687_v52 = vand.u32 4294901760, %v31883_v61 }
 0x485   : > { %v10684_v60 = vadd.f32 %v10683_v48, %v10603_v11  ;;  %25421 = vmatprep.subr.bf16.mxu0 %v26252_v3  ;;  %v13197_v6 = vand.u32 4294901760, %v13196_v62  ;;  %v13681_v48 = vand.u32 4294901760, %v31852_v42  ;;  %v13690_v62 = vand.u32 4294901760, %v31912_v8 }
 0x486   : > { %25438 = vmatpush3.bf16.msra.mxu1 %v25437_v2  ;;  %v31943_v2 = vsub.f32 %v31883_v61, %v13687_v52 }
 0x487   : > { %25451 = vmatprep.subr.bf16.mxu1 %v26252_v3  ;;  %v31900_v11 = vsub.f32 %v31852_v42, %v13681_v48  ;;  %v32029_v42 = vpack.c.bf16 %v13687_v52, %v13684_v34  ;;  %v25512_v52 = vpack.c.bf16 %v31869_v55, %v31864_v0 }
 0x488   : > { %25423 = vmatpush3.bf16.msra.mxu0 %v31798_v19  ;;  %v13792_v14 = vand.u32 4294901760, %v31943_v2 }
 0x489   : > { %25424 = vmatprep.subr.bf16.mxu0 %v26252_v3  ;;  %22805 = vmatmul.mubr.f32.vlgmr.msra.gmra.mrb[138].mxu1 %v31757_v45  ;;  %v13778_v16 = vand.u32 4294901760, %v31900_v11 }
 0x48a   : > { %25453 = vmatpush3.bf16.msra.mxu1 %v31763_v15  ;;  %22842 = vmatprep.mubr.msk.f32.mxu1 %vm26253_vm0, %v26254_v13  ;;  %v13793_v9 = vsub.f32 %v31943_v2, %v13792_v14 }
 0x48b   : > { %25454 = vmatprep.subr.bf16.mxu1 %v26252_v3 }
 0x48c   : > { %25426 = vmatpush3.bf16.msra.mxu0 %v31808_v17  ;;  %v10857_v49 = vpop.f32.mrb[112].mxu1 }
 0x48d   : > { %v26187_v41 = vpop.eup %26186  ;;  %25439 = vmatprep.subr.bf16.mxu0 %v26252_v3  ;;  %v22312_v63 = vpop.f32.mrb[113].mxu1 }
 0x48e   : > { %26145 = vpush %v26187_v41  ;;  %25456 = vmatpush3.bf16.msra.mxu1 %v31785_v18 }
 0x48f   : > { %22786 = vmatmul.mubr.f32.vlgmr.msra.gmra.mrb[138].mxu0 %v13197_v6  ;;  %25457 = vmatprep.subr.bf16.mxu1 %v26252_v3  ;;  %v13693_v6 = vand.u32 4294901760, %v31917_v43 }
 0x490   : > { %25441 = vmatpush3.bf16.msra.mxu0 %v25440_v36  ;;  %22823 = vmatprep.mubr.msk.f32.mxu0 %vm26253_vm0, %v26254_v13 }
 0x491   : > { %25442 = vmatprep.subr.bf16.mxu0 %v26252_v3 }
 0x492   : > { %v10778_v54 = vpop.f32.mrb[112].mxu0  ;;  %25459 = vmatpush3.bf16.msra.mxu1 %v31798_v19 }
 0x493   : > { %v10779_v32 = vadd.f32 %v10778_v54, %v10684_v60  ;;  %v22293_v22 = vpop.f32.mrb[113].mxu0  ;;  %25460 = vmatprep.subr.bf16.mxu1 %v26252_v3  ;;  %v13765_v60 = vsub.f32 %v31869_v55, %v13764_v37  ;;  %v13779_v54 = vsub.f32 %v31900_v11, %v13778_v16 }
 0x494   : > { %25444 = vmatpush3.bf16.msra.mxu0 %v25443_v28 }
 0x495   : > { %v10858_v39 = vadd.f32 %v10857_v49, %v10779_v32  ;;  %25445 = vmatprep.subr.bf16.mxu0 %v26252_v3  ;;  %v13766_v49 = vand.u32 4294901760, %v13765_v60  ;;  %v13658_v32 = vld [vmem:[#allocation2 + $0x33] sm:$0xff] }
 0x496   : > { %25462 = vmatpush3.bf16.msra.mxu1 %v31808_v17  ;;  %v13669_v22 = vsel %vm293_vm1, %v13658_v32, 0 }
 0x497   : > { %v31855_v57 = vadd.f32 %v10858_v39, %v31617_v56  ;;  %v13678_v56 = vand.u32 4294901760, %v31847_v25  ;;  %25475 = vmatprep.subr.bf16.mxu1 %v26252_v3 }
 0x498   : > { %25447 = vmatpush3.bf16.msra.mxu0 %v25446_v30 }
 0x499   : > { %25448 = vmatprep.subr.bf16.mxu0 %v26252_v3  ;;  %22843 = vmatmul.mubr.f32.vlgmr.msra.gmra.mrb[140].mxu1 %v13195_v58  ;;  %v31895_v26 = vsub.f32 %v31847_v25, %v13678_v56  ;;  %v13758_v58 = vsub.f32 %v31864_v0, %v13757_v38 }
 0x49a   : > { %25477 = vmatpush3.bf16.msra.mxu1 %v31763_v15  ;;  %22880 = vmatprep.mubr.msk.f32.mxu1 %vm26253_vm0, %v26254_v13  ;;  %v25467_v15 = vpack.c.bf16 %v13227_v4, %v13220_v24  ;;  %v31938_v4 = vsub.f32 %v31878_v51, %v13684_v34  ;;  %v32041_v51 = vpack.c.bf16 %v13693_v6, %v13690_v62  ;;  %v8094_v34 = vstv %s31737_s26 }
 0x49b   : > { %25478 = vmatprep.subr.bf16.mxu1 %v26252_v3  ;;  %v13771_v10 = vand.u32 4294901760, %v31895_v26  ;;  %v13759_v28 = vand.u32 4294901760, %v13758_v58 }
 0x49c   : > { %25450 = vmatpush3.bf16.msra.mxu0 %v25449_v5  ;;  %v11065_v35 = vpop.f32.mrb[114].mxu1  ;;  %v13785_v40 = vand.u32 4294901760, %v31938_v4  ;;  %v13780_v5 = vand.u32 4294901760, %v13779_v54 }
 0x49d   : > { %25463 = vmatprep.subr.bf16.mxu0 %v26252_v3  ;;  %v13772_v63 = vsub.f32 %v31895_v26, %v13771_v10  ;;  %v25500_v30 = vpack.c.bf16 %v13766_v49, %v13759_v28 }
 0x49e   : > { %25480 = vmatpush3.bf16.msra.mxu1 %v31785_v18  ;;  %v25470_v18 = vpack.c.bf16 %v13241_v53, %v13234_v1  ;;  %v31965_v1 = vsub.f32 %v31912_v8, %v13690_v62  ;;  %v31970_v53 = vsub.f32 %v31917_v43, %v13693_v6  ;;  %v8095_v8 = vsub.f32 %v30695_v47, %v8094_v34  ;;  %v32069_v47 = vld [vmem:[%s33596_s1 + $0x640] sm:$0xff] }
 0x49f   : > { %22824 = vmatmul.mubr.f32.vlgmr.msra.gmra.mrb[140].mxu0 %v31778_v59  ;;  %v22350_v59 = vpop.f32.mrb[115].mxu1  ;;  %25481 = vmatprep.subr.bf16.mxu1 %v26252_v3  ;;  %v13773_v39 = vand.u32 4294901760, %v13772_v63  ;;  %v8103_v62 = vstv %s32043_s29  ;;  %v25515_v6 = vpack.c.bf16 %v31900_v11, %v31895_v26  ;;  %s18331_s29 = sld [smem:[#allocation4 + $0x102]] }
 0x4a0   : > { %25465 = vmatpush3.bf16.msra.mxu0 %v25464_v27  ;;  %22861 = vmatprep.mubr.msk.f32.mxu0 %vm26253_vm0, %v26254_v13  ;;  %v13786_v27 = vsub.f32 %v31938_v4, %v13785_v40  ;;  %v13799_v23 = vand.u32 4294901760, %v31965_v1  ;;  %v13794_v59 = vand.u32 4294901760, %v13793_v9  ;;  %v25518_v9 = vpack.c.bf16 %v31943_v2, %v31938_v4 }
 0x4a1   : > { %25466 = vmatprep.subr.bf16.mxu0 %v26252_v3 }
 0x4a2   : > { %v10954_v24 = vpop.f32.mrb[114].mxu0  ;;  %25483 = vmatpush3.bf16.msra.mxu1 %v31798_v19  ;;  %v25473_v19 = vpack.c.bf16 %v13255_v31, %v13248_v20  ;;  %v13806_v20 = vand.u32 4294901760, %v31970_v53  ;;  %v31989_v31 = vand.u32 4294901760, %v13669_v22  ;;  %v13800_v58 = vsub.f32 %v31965_v1, %v13799_v23 }
 0x4a3   : > { %v22331_v36 = vpop.f32.mrb[115].mxu0  ;;  %v11066_v41 = vadd.f32 %v11065_v35, %v10954_v24  ;;  %25484 = vmatprep.subr.bf16.mxu1 %v26252_v3  ;;  %v13787_v35 = vand.u32 4294901760, %v13786_v27 }
 0x4a4   : > { %25468 = vmatpush3.bf16.msra.mxu0 %v25467_v15  ;;  %v25503_v15 = vpack.c.bf16 %v13780_v5, %v13773_v39  ;;  %v13807_v33 = vsub.f32 %v31970_v53, %v13806_v20  ;;  %v32010_v50 = vsub.f32 %v13669_v22, %v31989_v31  ;;  %v13801_v36 = vand.u32 4294901760, %v13800_v58 }
 0x4a5   : > { %25469 = vmatprep.subr.bf16.mxu0 %v26252_v3  ;;  %v25506_v24 = vpack.c.bf16 %v13794_v59, %v13787_v35  ;;  %v32082_v35 = vld [vmem:[#allocation3] sm:$0xff] }
 0x4a6   : > { %25486 = vmatpush3.bf16.msra.mxu1 %v31808_v17  ;;  %v31995_v17 = vpack.c.bf16 %v13675_v44, %v13672_v29  ;;  %v32017_v29 = vpack.c.bf16 %v13681_v48, %v13678_v56  ;;  %v13746_v25 = vand.u32 4294901760, %v32010_v50 }
 0x4a7   : > { %25499 = vmatprep.subr.bf16.mxu1 %v26252_v3 }
 0x4a8   : > { %25471 = vmatpush3.bf16.msra.mxu0 %v25470_v18  ;;  %v13808_v18 = vand.u32 4294901760, %v13807_v33 }
 0x4a9   : > { %25472 = vmatprep.subr.bf16.mxu0 %v26252_v3  ;;  %22881 = vmatmul.mubr.f32.vlgmr.msra.gmra.mrb[142].mxu1 %v31757_v45 }
 0x4aa   : > { %25501 = vmatpush3.bf16.msra.mxu1 %v25500_v30  ;;  %22918 = vmatprep.mubr.msk.f32.mxu1 %vm26253_vm0, %v26254_v13  ;;  %v25509_v48 = vpack.c.bf16 %v13808_v18, %v13801_v36  ;;  %v32076_v30 = vld [vmem:[%s33596_s1 + $0x648] sm:$0xff]  ;;  %v25521_v36 = vpack.c.bf16 %v31970_v53, %v31965_v1 }
 0x4ab   : > { %25502 = vmatprep.subr.bf16.mxu1 %v26252_v3  ;;  %v14226_v33 = vand.u32 4294901760, %v32076_v30 }
 0x4ac   : > { %25474 = vmatpush3.bf16.msra.mxu0 %v25473_v19  ;;  %v11234_v44 = vpop.f32.mrb[116].mxu1  ;;  %v8106_v19 = vstv %s32046_s8 }
 0x4ad   : > { %25487 = vmatprep.subr.bf16.mxu0 %v26252_v3 }
 0x4ae   : > { %25504 = vmatpush3.bf16.msra.mxu1 %v25503_v15  ;;  %v14223_v15 = vand.u32 4294901760, %v32069_v47 }
 0x4af   : > { %22862 = vmatmul.mubr.f32.vlgmr.msra.gmra.mrb[142].mxu0 %v31757_v45  ;;  %v22388_v45 = vpop.f32.mrb[117].mxu1  ;;  %25505 = vmatprep.subr.bf16.mxu1 %v26252_v3 }
 0x4b0   : > { %25489 = vmatpush3.bf16.msra.mxu0 %v31995_v17  ;;  %22899 = vmatprep.mubr.msk.f32.mxu0 %vm26253_vm0, %v26254_v13  ;;  %v32095_v45 = vld [vmem:[%s33596_s1 + $0x658] sm:$0xff]  ;;  %v32108_v18 = vsub.f32 %v32069_v47, %v14223_v15 }
 0x4b1   : > { %25490 = vmatprep.subr.bf16.mxu0 %v26252_v3 }
 0x4b2   : > { %v11153_v60 = vpop.f32.mrb[116].mxu0  ;;  %25507 = vmatpush3.bf16.msra.mxu1 %v25506_v24  ;;  %v33606_v24 = vand.u32 4294901760, %v32082_v35  ;;  %v14308_v34 = vand.u32 4294901760, %v32108_v18 }
 0x4b3   : > { %v11154_v28 = vadd.f32 %v11153_v60, %v11066_v41  ;;  %v22369_v49 = vpop.f32.mrb[117].mxu0  ;;  %25508 = vmatprep.subr.bf16.mxu1 %v26252_v3  ;;  %v13747_v41 = vsub.f32 %v32010_v50, %v13746_v25 }
 0x4b4   : > { %25492 = vmatpush3.bf16.msra.mxu0 %v32017_v29  ;;  %v14232_v49 = vand.u32 4294901760, %v32095_v45 }
 0x4b5   : > { %v11235_v56 = vadd.f32 %v11234_v44, %v11154_v28  ;;  %25493 = vmatprep.subr.bf16.mxu0 %v26252_v3  ;;  %v13748_v61 = vand.u32 4294901760, %v13747_v41  ;;  %v32090_v44 = vld [vmem:[%s33596_s1 + $0x650] sm:$0xff]  ;;  %v32133_v41 = vsub.f32 %v32082_v35, %v33606_v24 }
 0x4b6   : > { %25510 = vmatpush3.bf16.msra.mxu1 %v25509_v48  ;;  %v14229_v28 = vand.u32 4294901760, %v32090_v44  ;;  %v32128_v48 = vld [vmem:[%s33596_s1 + $0x668] sm:$0xff]  ;;  %v32152_v0 = vsub.f32 %v32095_v45, %v14232_v49 }
 0x4b7   : > { %25523 = vmatprep.subr.bf16.mxu1 %v26252_v3 }
 0x4b8   : > { %25495 = vmatpush3.bf16.msra.mxu0 %v32029_v42  ;;  %v33607_v11 = vand.u32 4294901760, %v32152_v0 }
 0x4b9   : > { %25496 = vmatprep.subr.bf16.mxu0 %v26252_v3  ;;  %22919 = vmatmul.mubr.f32.vlgmr.msra.gmra.mrb[144].mxu1 %v31989_v31 }
 0x4ba   : > { %25525 = vmatpush3.bf16.msra.mxu1 %v31995_v17  ;;  %22956 = vmatprep.mubr.msk.f32.mxu1 %vm26253_vm0, %v26254_v13 }
 0x4bb   : > { %25526 = vmatprep.subr.bf16.mxu1 %v26252_v3 }
 0x4bc   : > { %25498 = vmatpush3.bf16.msra.mxu0 %v32041_v51  ;;  %v11408_v63 = vpop.f32.mrb[118].mxu1 }
 0x4bd   : > { %25511 = vmatprep.subr.bf16.mxu0 %v26252_v3  ;;  %v22426_v32 = vpop.f32.mrb[119].mxu1 }
 0x4be   : > { %25528 = vmatpush3.bf16.msra.mxu1 %v32017_v29 }
 0x4bf   : > { %s26146_s9 = spop %26145  ;;  %22900 = vmatmul.mubr.f32.vlgmr.msra.gmra.mrb[144].mxu0 %v13748_v61  ;;  %25529 = vmatprep.subr.bf16.mxu1 %v26252_v3  ;;  %v25536_v61 = vpack.c.bf16 %v13764_v37, %v13757_v38  ;;  %v14238_v38 = vand.u32 4294901760, %v32128_v48 }
 0x4c0   : > { %v8100_v43 = vstv %s26146_s9  ;;  %25513 = vmatpush3.bf16.msra.mxu0 %v25512_v52  ;;  %22937 = vmatprep.mubr.msk.f32.mxu0 %vm26253_vm0, %v26254_v13  ;;  %s18388_s9 = sld [smem:[#allocation4 + $0x3]] }
 0x4c1   : > { %v8101_v54 = vmul.f32 %v8100_v43, %v8095_v8  ;;  %25514 = vmatprep.subr.bf16.mxu0 %v26252_v3  ;;  %v32147_v8 = vsub.f32 %v32090_v44, %v14229_v28 }
 0x4c2   : > { %v11329_v22 = vpop.f32.mrb[118].mxu0  ;;  %25531 = vmatpush3.bf16.msra.mxu1 %v32029_v42 }
 0x4c3   : > { %v8104_v39 = vmul.f32 %v8103_v62, %v8101_v54  ;;  %v11330_v5 = vadd.f32 %v11329_v22, %v11235_v56  ;;  %v22407_v27 = vpop.f32.mrb[119].mxu0  ;;  %25532 = vmatprep.subr.bf16.mxu1 %v26252_v3  ;;  %v32123_v56 = vld [vmem:[%s33596_s1 + $0x660] sm:$0xff]  ;;  %v33604_v62 = vand.u32 4294901760, %v32133_v41  ;;  %v14322_v26 = vand.u32 4294901760, %v32147_v8 }
 0x4c4   : > { %25516 = vmatpush3.bf16.msra.mxu0 %v25515_v6  ;;  %v14235_v55 = vand.u32 4294901760, %v32123_v56  ;;  %v32204_v22 = vsub.f32 %v32128_v48, %v14238_v38 }
 0x4c5   : > { %v8107_v59 = vadd.f32 %v8106_v19, %v8104_v39  ;;  %v11409_v58 = vadd.f32 %v11408_v63, %v11330_v5  ;;  %25517 = vmatprep.subr.bf16.mxu0 %v26252_v3  ;;  %v14309_v63 = vsub.f32 %v32108_v18, %v14308_v34 }
 0x4c6   : > { %25534 = vmatpush3.bf16.msra.mxu1 %v32041_v51  ;;  %v32199_v19 = vsub.f32 %v32123_v56, %v14235_v55  ;;  %v32303_v45 = vpack.c.bf16 %v14238_v38, %v14235_v55  ;;  %v25587_v38 = vpack.c.bf16 %v32152_v0, %v32147_v8 }
 0x4c7   : > { %8108 = vst.msk [vmem:[#allocation3 + $0x8] sm:$0xff] %vm293_vm1, %v8107_v59  ;;  %v32099_v60 = vadd.f32 %v11409_v58, %v31855_v57  ;;  %v32114_v57 = vsub.f32 %v32076_v30, %v14226_v33  ;;  %25547 = vmatprep.subr.bf16.mxu1 %v26252_v3 }
 0x4c8   : > { %25519 = vmatpush3.bf16.msra.mxu0 %v25518_v9  ;;  %v14336_v2 = vand.u32 4294901760, %v32199_v19 }
 0x4c9   : > { %25520 = vmatprep.subr.bf16.mxu0 %v26252_v3  ;;  %22957 = vmatmul.mubr.f32.vlgmr.msra.gmra.mrb[146].mxu1 %v13746_v25  ;;  %v14315_v52 = vand.u32 4294901760, %v32114_v57  ;;  %v32166_v25 = vld [vmem:[%s33596_s1 + $0x670] sm:$0xff]  ;;  %v25584_v55 = vpack.c.bf16 %v32114_v57, %v32108_v18 }
 0x4ca   : > { %25549 = vmatpush3.bf16.msra.mxu1 %v31995_v17  ;;  %22994 = vmatprep.mubr.msk.f32.mxu1 %vm26253_vm0, %v26254_v13  ;;  %v32171_v17 = vld [vmem:[%s33596_s1 + $0x678] sm:$0xff]  ;;  %v14241_v39 = vand.u32 4294901760, %v32166_v25 }
 0x4cb   : > { %25550 = vmatprep.subr.bf16.mxu1 %v26252_v3  ;;  %v14316_v32 = vsub.f32 %v32114_v57, %v14315_v52  ;;  %v14244_v5 = vand.u32 4294901760, %v32171_v17 }
 0x4cc   : > { %25522 = vmatpush3.bf16.msra.mxu0 %v25521_v36  ;;  %v11616_v6 = vpop.f32.mrb[120].mxu1  ;;  %v25542_v36 = vpack.c.bf16 %v13792_v14, %v13785_v40  ;;  %v14343_v40 = vand.u32 4294901760, %v32204_v22  ;;  %v32237_v14 = vsub.f32 %v32166_v25, %v14241_v39 }
 0x4cd   : > { %25535 = vmatprep.subr.bf16.mxu0 %v26252_v3  ;;  %v22464_v54 = vpop.f32.mrb[121].mxu1  ;;  %v32315_v56 = vpack.c.bf16 %v14244_v5, %v14241_v39  ;;  %v32338_v39 = vld [vmem:[%s33596_s1 + $0x680] sm:$0xff] }
 0x4ce   : > { %v32159_v37 = vld [vmem:[#allocation3 + $0x8] sm:$0xff]  ;;  %25552 = vmatpush3.bf16.msra.mxu1 %v32017_v29  ;;  %v16303_v29 = vsub.f32 %v32133_v41, %v33604_v62  ;;  %v14323_v54 = vsub.f32 %v32147_v8, %v14322_v26  ;;  %v14344_v1 = vsub.f32 %v32204_v22, %v14343_v40  ;;  %v14350_v53 = vand.u32 4294901760, %v32237_v14 }
 0x4cf   : > { %22938 = vmatmul.mubr.f32.vlgmr.msra.gmra.mrb[146].mxu0 %v32010_v50  ;;  %v33605_v43 = vand.u32 4294901760, %v32159_v37  ;;  %v25539_v50 = vpack.c.bf16 %v13778_v16, %v13771_v10  ;;  %25553 = vmatprep.subr.bf16.mxu1 %v26252_v3 }
 0x4d0   : > { %25537 = vmatpush3.bf16.msra.mxu0 %v25536_v61  ;;  %22975 = vmatprep.mubr.msk.f32.mxu0 %vm26253_vm0, %v26254_v13  ;;  %v14310_v61 = vand.u32 4294901760, %v14309_v63  ;;  %v16304_v63 = vand.u32 4294901760, %v16303_v29  ;;  %v14337_v29 = vsub.f32 %v32199_v19, %v14336_v2 }
 0x4d1   : > { %25538 = vmatprep.subr.bf16.mxu0 %v26252_v3  ;;  %v32193_v10 = vsub.f32 %v32159_v37, %v33605_v43  ;;  %v14324_v43 = vand.u32 4294901760, %v14323_v54  ;;  %v14351_v54 = vsub.f32 %v32237_v14, %v14350_v53 }
 0x4d2   : > { %v11505_v16 = vpop.f32.mrb[120].mxu0  ;;  %25555 = vmatpush3.bf16.msra.mxu1 %v32029_v42  ;;  %v25545_v42 = vpack.c.bf16 %v13806_v20, %v13799_v23 }
 0x4d3   : > { %v22445_v27 = vpop.f32.mrb[121].mxu0  ;;  %v11617_v9 = vadd.f32 %v11616_v6, %v11505_v16  ;;  %v33603_v59 = vand.u32 4294901760, %v32193_v10  ;;  %v32215_v58 = vpack.c.bf16 %v32193_v10, %v32133_v41  ;;  %v14317_v6 = vand.u32 4294901760, %v14316_v32  ;;  %25556 = vmatprep.subr.bf16.mxu1 %v26252_v3 }
 0x4d4   : > { %25540 = vmatpush3.bf16.msra.mxu0 %v25539_v50  ;;  %v14330_v16 = vsub.f32 %v32152_v0, %v33607_v11  ;;  %v14209_v27 = vld [vmem:[#allocation2 + $0x34] sm:$0xff]  ;;  %v32242_v50 = vsub.f32 %v32171_v17, %v14244_v5 }
 0x4d5   : > { %25541 = vmatprep.subr.bf16.mxu0 %v26252_v3  ;;  %v16310_v4 = vsub.f32 %v32193_v10, %v33603_v59  ;;  %v14220_v59 = vsel %vm293_vm1, %v14209_v27, 0  ;;  %v25572_v62 = vpack.c.bf16 %v14317_v6, %v14310_v61  ;;  %v14338_v61 = vand.u32 4294901760, %v14337_v29 }
 0x4d6   : > { %v14331_v24 = vand.u32 4294901760, %v14330_v16  ;;  %25558 = vmatpush3.bf16.msra.mxu1 %v32041_v51  ;;  %v14357_v23 = vand.u32 4294901760, %v32242_v50  ;;  %v32263_v20 = vand.u32 4294901760, %v14220_v59  ;;  %v32269_v51 = vpack.c.bf16 %v14226_v33, %v14223_v15 }
 0x4d7   : > { %v16311_v32 = vand.u32 4294901760, %v16310_v4  ;;  %25571 = vmatprep.subr.bf16.mxu1 %v26252_v3  ;;  %v14345_v6 = vand.u32 4294901760, %v14344_v1  ;;  %v32291_v15 = vpack.c.bf16 %v14232_v49, %v14229_v28  ;;  %v32344_v4 = vld [vmem:[%s33596_s1 + $0x688] sm:$0xff]  ;;  %v14774_v29 = vand.u32 4294901760, %v32338_v39 }
 0x4d8   : > { %25543 = vmatpush3.bf16.msra.mxu0 %v25542_v36  ;;  %v25575_v36 = vpack.c.bf16 %v14331_v24, %v14324_v43  ;;  %v14358_v47 = vsub.f32 %v32242_v50, %v14357_v23  ;;  %v32284_v30 = vsub.f32 %v14220_v59, %v32263_v20 }
 0x4d9   : > { %25544 = vmatprep.subr.bf16.mxu0 %v26252_v3  ;;  %v32251_v11 = vpack.c.bf16 %v16311_v32, %v16304_v63  ;;  %22995 = vmatmul.mubr.f32.vlgmr.msra.gmra.mrb[148].mxu1 %v31989_v31  ;;  %v25578_v43 = vpack.c.bf16 %v14345_v6, %v14338_v61  ;;  %v11965_v61 = vstv %s32325_s28  ;;  %v32357_v6 = vld [vmem:[%s33596_s1 + $0x690] sm:$0xff]  ;;  %s18330_s28 = sld [smem:[#allocation4 + $0x82]] }
 0x4da   : > { %25573 = vmatpush3.bf16.msra.mxu1 %v25572_v62  ;;  %23032 = vmatprep.mubr.msk.f32.mxu1 %vm26253_vm0, %v26254_v13  ;;  %v14352_v62 = vand.u32 4294901760, %v14351_v54  ;;  %v14359_v59 = vand.u32 4294901760, %v14358_v47  ;;  %v14297_v44 = vand.u32 4294901760, %v32284_v30  ;;  %v32362_v54 = vld [vmem:[%s33596_s1 + $0x698] sm:$0xff] }
 0x4db   : > { %25574 = vmatprep.subr.bf16.mxu1 %v26252_v3 }
 0x4dc   : > { %25546 = vmatpush3.bf16.msra.mxu0 %v25545_v42  ;;  %v11785_v33 = vpop.f32.mrb[122].mxu1  ;;  %v25581_v49 = vpack.c.bf16 %v14359_v59, %v14352_v62  ;;  %v25590_v42 = vpack.c.bf16 %v32204_v22, %v32199_v19  ;;  %v14783_v62 = vand.u32 4294901760, %v32362_v54 }
 0x4dd   : > { %25559 = vmatprep.subr.bf16.mxu0 %v26252_v3 }
 0x4de   : > { %25576 = vmatpush3.bf16.msra.mxu1 %v25575_v36  ;;  %v14777_v36 = vand.u32 4294901760, %v32344_v4  ;;  %v32417_v18 = vsub.f32 %v32362_v54, %v14783_v62 }
 0x4df   : > { %22976 = vmatmul.mubr.f32.vlgmr.msra.gmra.mrb[148].mxu0 %v31989_v31  ;;  %v22502_v31 = vpop.f32.mrb[123].mxu1  ;;  %25577 = vmatprep.subr.bf16.mxu1 %v26252_v3 }
 0x4e0   : > { %25561 = vmatpush3.bf16.msra.mxu0 %v32269_v51  ;;  %23013 = vmatprep.mubr.msk.f32.mxu0 %vm26253_vm0, %v26254_v13  ;;  %v32371_v31 = vsub.f32 %v32338_v39, %v14774_v29 }
 0x4e1   : > { %25562 = vmatprep.subr.bf16.mxu0 %v26252_v3 }
 0x4e2   : > { %v11704_v24 = vpop.f32.mrb[122].mxu0  ;;  %25579 = vmatpush3.bf16.msra.mxu1 %v25578_v43  ;;  %v32379_v43 = vsub.f32 %v32344_v4, %v14777_v36 }
 0x4e3   : > { %v11705_v16 = vadd.f32 %v11704_v24, %v11617_v9  ;;  %v22483_v27 = vpop.f32.mrb[123].mxu0  ;;  %25580 = vmatprep.subr.bf16.mxu1 %v26252_v3  ;;  %v14298_v9 = vsub.f32 %v32284_v30, %v14297_v44 }
 0x4e4   : > { %25564 = vmatpush3.bf16.msra.mxu0 %v32291_v15  ;;  %v32392_v27 = vld [vmem:[%s33596_s1 + $0x6a0] sm:$0xff] }
 0x4e5   : > { %v11786_v28 = vadd.f32 %v11785_v33, %v11705_v16  ;;  %25565 = vmatprep.subr.bf16.mxu0 %v26252_v3  ;;  %v14299_v48 = vand.u32 4294901760, %v14298_v9  ;;  %v25593_v33 = vpack.c.bf16 %v32242_v50, %v32237_v14  ;;  %v14859_v9 = vand.u32 4294901760, %v32371_v31 }
 0x4e6   : > { %25582 = vmatpush3.bf16.msra.mxu1 %v25581_v49  ;;  %v25608_v49 = vpack.c.bf16 %v14315_v52, %v14308_v34  ;;  %v14786_v57 = vand.u32 4294901760, %v32392_v27  ;;  %v32427_v52 = vld [vmem:[%s33596_s1 + $0x6b0] sm:$0xff] }
 0x4e7   : > { %25595 = vmatprep.subr.bf16.mxu1 %v26252_v3 }
 0x4e8   : > { %25567 = vmatpush3.bf16.msra.mxu0 %v32303_v45 }
 0x4e9   : > { %25568 = vmatprep.subr.bf16.mxu0 %v26252_v3  ;;  %23033 = vmatmul.mubr.f32.vlgmr.msra.gmra.mrb[150].mxu1 %v32263_v20 }
 0x4ea   : > { %25597 = vmatpush3.bf16.msra.mxu1 %v32269_v51  ;;  %23070 = vmatprep.mubr.msk.f32.mxu1 %vm26253_vm0, %v26254_v13 }
 0x4eb   : > { %25598 = vmatprep.subr.bf16.mxu1 %v26252_v3 }
 0x4ec   : > { %25570 = vmatpush3.bf16.msra.mxu0 %v32315_v56  ;;  %v11959_v25 = vpop.f32.mrb[124].mxu1 }
 0x4ed   : > { %25583 = vmatprep.subr.bf16.mxu0 %v26252_v3  ;;  %v22540_v17 = vpop.f32.mrb[125].mxu1 }
 0x4ee   : > { %25600 = vmatpush3.bf16.msra.mxu1 %v32291_v15 }
 0x4ef   : > { %23014 = vmatmul.mubr.f32.vlgmr.msra.gmra.mrb[150].mxu0 %v14299_v48  ;;  %25601 = vmatprep.subr.bf16.mxu1 %v26252_v3 }
 0x4f0   : > { %25585 = vmatpush3.bf16.msra.mxu0 %v25584_v55  ;;  %23051 = vmatprep.mubr.msk.f32.mxu0 %vm26253_vm0, %v26254_v13  ;;  %v14866_v55 = vand.u32 4294901760, %v32379_v43 }
 0x4f1   : > { %25586 = vmatprep.subr.bf16.mxu0 %v26252_v3 }
 0x4f2   : > { %v11880_v5 = vpop.f32.mrb[124].mxu0  ;;  %25603 = vmatpush3.bf16.msra.mxu1 %v32303_v45  ;;  %v14867_v8 = vsub.f32 %v32379_v43, %v14866_v55 }
 0x4f3   : > { %v11881_v63 = vadd.f32 %v11880_v5, %v11786_v28  ;;  %v22521_v32 = vpop.f32.mrb[125].mxu0  ;;  %25604 = vmatprep.subr.bf16.mxu1 %v26252_v3  ;;  %v32397_v28 = vld [vmem:[%s33596_s1 + $0x6a8] sm:$0xff]  ;;  %v14860_v5 = vsub.f32 %v32371_v31, %v14859_v9 }
 0x4f4   : > { %25588 = vmatpush3.bf16.msra.mxu0 %v25587_v38  ;;  %v14789_v34 = vand.u32 4294901760, %v32397_v28  ;;  %v32455_v32 = vsub.f32 %v32392_v27, %v14786_v57 }
 0x4f5   : > { %v11960_v1 = vadd.f32 %v11959_v25, %v11881_v63  ;;  %25589 = vmatprep.subr.bf16.mxu0 %v26252_v3 }
 0x4f6   : > { %25606 = vmatpush3.bf16.msra.mxu1 %v32315_v56  ;;  %v14887_v19 = vand.u32 4294901760, %v32455_v32  ;;  %v32546_v54 = vpack.c.bf16 %v14789_v34, %v14786_v57  ;;  %v25656_v57 = vpack.c.bf16 %v32379_v43, %v32371_v31 }
 0x4f7   : > { %v11963_v47 = vadd.f32 %v11960_v1, %v32099_v60  ;;  %v14780_v60 = vand.u32 4294901760, %v32357_v6  ;;  %25619 = vmatprep.subr.bf16.mxu1 %v26252_v3  ;;  %v14792_v1 = vand.u32 4294901760, %v32427_v52 }
 0x4f8   : > { %25591 = vmatpush3.bf16.msra.mxu0 %v25590_v42  ;;  %v32460_v42 = vsub.f32 %v32397_v28, %v14789_v34 }
 0x4f9   : > { %v32373_v24 = vadd.f32 %v11965_v61, %v11963_v47  ;;  %25592 = vmatprep.subr.bf16.mxu0 %v26252_v3  ;;  %23071 = vmatmul.mubr.f32.vlgmr.msra.gmra.mrb[152].mxu1 %v14297_v44  ;;  %v32412_v38 = vsub.f32 %v32357_v6, %v14780_v60  ;;  %v32432_v44 = vld [vmem:[%s33596_s1 + $0x6b8] sm:$0xff] }
 0x4fa   : > { %25621 = vmatpush3.bf16.msra.mxu1 %v32269_v51  ;;  %v33639_v51 = vand.u32 4294901760, %v32152_v0  ;;  %23108 = vmatprep.mubr.msk.f32.mxu1 %vm26253_vm0, %v26254_v13  ;;  %v14795_v61 = vand.u32 4294901760, %v32432_v44  ;;  %v14894_v22 = vand.u32 4294901760, %v32460_v42 }
 0x4fb   : > { %v11967_v59 = vsel %vm293_vm1, %v32373_v24, 0.0  ;;  %v11978_v16 = vmul.f32 %v32373_v24, %v32373_v24  ;;  %25622 = vmatprep.subr.bf16.mxu1 %v26252_v3  ;;  %v14873_v0 = vand.u32 4294901760, %v32412_v38  ;;  %v25659_v34 = vpack.c.bf16 %v32417_v18, %v32412_v38 }
 0x4fc   : > { %25594 = vmatpush3.bf16.msra.mxu0 %v25593_v33  ;;  %11968 = vadd.xlane.f32.xlu0 %v11967_v59  ;;  %v25611_v25 = vpack.c.bf16 %v33639_v51, %v14322_v26  ;;  %v12220_v17 = vpop.f32.mrb[126].mxu1  ;;  %v14880_v26 = vand.u32 4294901760, %v32417_v18  ;;  %v14861_v59 = vand.u32 4294901760, %v14860_v5  ;;  %v14760_v51 = vld [vmem:[#allocation2 + $0x35] sm:$0xff]  ;;  %v14895_v14 = vsub.f32 %v32460_v42, %v14894_v22 }
 0x4fd   : > { %25607 = vmatprep.subr.bf16.mxu0 %v26252_v3  ;;  %v11979_v48 = vsel %vm293_vm1, %v11978_v16, 0.0  ;;  %v14868_v16 = vand.u32 4294901760, %v14867_v8  ;;  %v14888_v8 = vsub.f32 %v32455_v32, %v14887_v19  ;;  %v32556_v27 = vpack.c.bf16 %v14795_v61, %v14792_v1 }
 0x4fe   : > { %11980 = vadd.xlane.f32.xlu1 %v11979_v48  ;;  %25624 = vmatpush3.bf16.msra.mxu1 %v32291_v15  ;;  %v25614_v15 = vpack.c.bf16 %v14343_v40, %v14336_v2  ;;  %v14881_v48 = vsub.f32 %v32417_v18, %v14880_v26  ;;  %v32482_v2 = vsub.f32 %v32427_v52, %v14792_v1  ;;  %v32577_v1 = vld [vmem:[%s33596_s1 + $0x6c0] sm:$0xff] }
 0x4ff   : > { %23052 = vmatmul.mubr.f32.vlgmr.msra.gmra.mrb[152].mxu0 %v32284_v30  ;;  %v22578_v30 = vpop.f32.mrb[127].mxu1  ;;  %25625 = vmatprep.subr.bf16.mxu1 %v26252_v3  ;;  %v32487_v40 = vsub.f32 %v32432_v44, %v14795_v61 }
 0x500   : > { %25609 = vmatpush3.bf16.msra.mxu0 %v25608_v49  ;;  %23089 = vmatprep.mubr.msk.f32.mxu0 %vm26253_vm0, %v26254_v13  ;;  %v14874_v49 = vsub.f32 %v32412_v38, %v14873_v0  ;;  %v14882_v5 = vand.u32 4294901760, %v14881_v48  ;;  %v14901_v50 = vand.u32 4294901760, %v32482_v2 }
 0x501   : > { %25610 = vmatprep.subr.bf16.mxu0 %v26252_v3 }
 0x502   : > { %v12109_v63 = vpop.f32.mrb[126].mxu0  ;;  %25627 = vmatpush3.bf16.msra.mxu1 %v32303_v45  ;;  %v25617_v45 = vpack.c.bf16 %v14357_v23, %v14350_v53  ;;  %v14875_v30 = vand.u32 4294901760, %v14874_v49  ;;  %v14908_v53 = vand.u32 4294901760, %v32487_v40 }
 0x503   : > { %v22559_v47 = vpop.f32.mrb[127].mxu0  ;;  %v12221_v33 = vadd.f32 %v12220_v17, %v12109_v63  ;;  %25628 = vmatprep.subr.bf16.mxu1 %v26252_v3  ;;  %v25644_v17 = vpack.c.bf16 %v14868_v16, %v14861_v59  ;;  %v14902_v59 = vsub.f32 %v32482_v2, %v14901_v50 }
 0x504   : > { %25612 = vmatpush3.bf16.msra.mxu0 %v25611_v25  ;;  %v14771_v25 = vsel %vm293_vm1, %v14760_v51, 0  ;;  %v25647_v63 = vpack.c.bf16 %v14882_v5, %v14875_v30  ;;  %v14889_v47 = vand.u32 4294901760, %v14888_v8  ;;  %v14909_v39 = vsub.f32 %v32487_v40, %v14908_v53 }
 0x505   : > { %25613 = vmatprep.subr.bf16.mxu0 %v26252_v3  ;;  %v32506_v23 = vand.u32 4294901760, %v14771_v25  ;;  %v14903_v48 = vand.u32 4294901760, %v14902_v59  ;;  %v25662_v8 = vpack.c.bf16 %v32460_v42, %v32455_v32  ;;  %v32600_v59 = vld [vmem:[%s33596_s1 + $0x6d8] sm:$0xff] }
 0x506   : > { %25630 = vmatpush3.bf16.msra.mxu1 %v32315_v56  ;;  %v32512_v56 = vpack.c.bf16 %v14777_v36, %v14774_v29  ;;  %v32534_v29 = vpack.c.bf16 %v14783_v62, %v14780_v60  ;;  %v14910_v51 = vand.u32 4294901760, %v14909_v39  ;;  %v25665_v39 = vpack.c.bf16 %v32487_v40, %v32482_v2 }
 0x507   : > { %25643 = vmatprep.subr.bf16.mxu1 %v26252_v3  ;;  %v32527_v4 = vsub.f32 %v14771_v25, %v32506_v23 }
 0x508   : > { %25615 = vmatpush3.bf16.msra.mxu0 %v25614_v15  ;;  %v14896_v15 = vand.u32 4294901760, %v14895_v14  ;;  %v25653_v62 = vpack.c.bf16 %v14910_v51, %v14903_v48  ;;  %v15325_v14 = vand.u32 4294901760, %v32577_v1  ;;  %v32623_v48 = vld [vmem:[%s33596_s1 + $0x6e0] sm:$0xff]  ;;  %v32628_v51 = vld [vmem:[%s33596_s1 + $0x6e8] sm:$0xff] }
 0x509   : > { %25616 = vmatprep.subr.bf16.mxu0 %v26252_v3  ;;  %23109 = vmatmul.mubr.f32.vlgmr.msra.gmra.mrb[154].mxu1 %v32263_v20  ;;  %v14848_v6 = vand.u32 4294901760, %v32527_v4  ;;  %v15337_v31 = vand.u32 4294901760, %v32623_v48  ;;  %v15340_v43 = vand.u32 4294901760, %v32628_v51 }
 0x50a   : > { %25645 = vmatpush3.bf16.msra.mxu1 %v25644_v17  ;;  %23146 = vmatprep.mubr.msk.f32.mxu1 %vm26253_vm0, %v26254_v13  ;;  %v25650_v49 = vpack.c.bf16 %v14896_v15, %v14889_v47  ;;  %v32583_v17 = vld [vmem:[%s33596_s1 + $0x6c8] sm:$0xff]  ;;  %v32595_v15 = vld [vmem:[%s33596_s1 + $0x6d0] sm:$0xff] }
 0x50b   : > { %25646 = vmatprep.subr.bf16.mxu1 %v26252_v3  ;;  %v15328_v47 = vand.u32 4294901760, %v32583_v17 }
 0x50c   : > { %25618 = vmatpush3.bf16.msra.mxu0 %v25617_v45  ;;  %v12389_v36 = vpop.f32.mrb[128].mxu1 }
 0x50d   : > { %25631 = vmatprep.subr.bf16.mxu0 %v26252_v3 }
 0x50e   : > { %25648 = vmatpush3.bf16.msra.mxu1 %v25647_v63 }
 0x50f   : > { %23090 = vmatmul.mubr.f32.vlgmr.msra.gmra.mrb[154].mxu0 %v32263_v20  ;;  %v22616_v20 = vpop.f32.mrb[129].mxu1  ;;  %25649 = vmatprep.subr.bf16.mxu1 %v26252_v3 }
 0x510   : > { %25633 = vmatpush3.bf16.msra.mxu0 %v32512_v56  ;;  %23127 = vmatprep.mubr.msk.f32.mxu0 %vm26253_vm0, %v26254_v13  ;;  %v32614_v20 = vsub.f32 %v32583_v17, %v15328_v47 }
 0x511   : > { %25634 = vmatprep.subr.bf16.mxu0 %v26252_v3 }
 0x512   : > { %v12308_v16 = vpop.f32.mrb[128].mxu0  ;;  %25651 = vmatpush3.bf16.msra.mxu1 %v25650_v49  ;;  %v15334_v49 = vand.u32 4294901760, %v32600_v59 }
 0x513   : > { %v12309_v45 = vadd.f32 %v12308_v16, %v12221_v33  ;;  %v22597_v25 = vpop.f32.mrb[129].mxu0  ;;  %25652 = vmatprep.subr.bf16.mxu1 %v26252_v3  ;;  %v14849_v33 = vsub.f32 %v32527_v4, %v14848_v6  ;;  %v15331_v16 = vand.u32 4294901760, %v32595_v15 }
 0x514   : > { %25636 = vmatpush3.bf16.msra.mxu0 %v32534_v29 }
 0x515   : > { %v12390_v60 = vadd.f32 %v12389_v36, %v12309_v45  ;;  %25637 = vmatprep.subr.bf16.mxu0 %v26252_v3  ;;  %v14850_v28 = vand.u32 4294901760, %v14849_v33  ;;  %v32608_v36 = vsub.f32 %v32577_v1, %v15325_v14  ;;  %v25680_v45 = vpack.c.bf16 %v14866_v55, %v14859_v9  ;;  %v32657_v9 = vld [vmem:[%s33596_s1 + $0x6f0] sm:$0xff]  ;;  %v32662_v55 = vld [vmem:[%s33596_s1 + $0x6f8] sm:$0xff] }
 0x516   : > { %25654 = vmatpush3.bf16.msra.mxu1 %v25653_v62  ;;  %v32640_v62 = vsub.f32 %v32595_v15, %v15331_v16  ;;  %v32645_v33 = vsub.f32 %v32600_v59, %v15334_v49  ;;  %v32774_v59 = vpack.c.bf16 %v15340_v43, %v15337_v31 }
 0x517   : > { %25667 = vmatprep.subr.bf16.mxu1 %v26252_v3  ;;  %v15410_v25 = vand.u32 4294901760, %v32608_v36 }
 0x518   : > { %25639 = vmatpush3.bf16.msra.mxu0 %v32546_v54  ;;  %v15424_v38 = vand.u32 4294901760, %v32640_v62  ;;  %v15431_v18 = vand.u32 4294901760, %v32645_v33 }
 0x519   : > { %25640 = vmatprep.subr.bf16.mxu0 %v26252_v3  ;;  %23147 = vmatmul.mubr.f32.vlgmr.msra.gmra.mrb[156].mxu1 %v32506_v23 }
 0x51a   : > { %25669 = vmatpush3.bf16.msra.mxu1 %v32512_v56  ;;  %23184 = vmatprep.mubr.msk.f32.mxu1 %vm26253_vm0, %v26254_v13 }
 0x51b   : > { %25670 = vmatprep.subr.bf16.mxu1 %v26252_v3 }
 0x51c   : > { %25642 = vmatpush3.bf16.msra.mxu0 %v32556_v27  ;;  %v12563_v52 = vpop.f32.mrb[130].mxu1 }
 0x51d   : > { %25655 = vmatprep.subr.bf16.mxu0 %v26252_v3  ;;  %v22654_v44 = vpop.f32.mrb[131].mxu1 }
 0x51e   : > { %25672 = vmatpush3.bf16.msra.mxu1 %v32534_v29  ;;  %v15346_v44 = vand.u32 4294901760, %v32662_v55 }
 0x51f   : > { %23128 = vmatmul.mubr.f32.vlgmr.msra.gmra.mrb[156].mxu0 %v14850_v28  ;;  %25673 = vmatprep.subr.bf16.mxu1 %v26252_v3 }
 0x520   : > { %25657 = vmatpush3.bf16.msra.mxu0 %v25656_v57  ;;  %23165 = vmatprep.mubr.msk.f32.mxu0 %vm26253_vm0, %v26254_v13 }
 0x521   : > { %25658 = vmatprep.subr.bf16.mxu0 %v26252_v3 }
 0x522   : > { %v12484_v61 = vpop.f32.mrb[130].mxu0  ;;  %25675 = vmatpush3.bf16.msra.mxu1 %v32546_v54 }
 0x523   : > { %v12485_v30 = vadd.f32 %v12484_v61, %v12390_v60  ;;  %v22635_v5 = vpop.f32.mrb[131].mxu0  ;;  %25676 = vmatprep.subr.bf16.mxu1 %v26252_v3  ;;  %v15417_v60 = vand.u32 4294901760, %v32614_v20 }
 0x524   : > { %25660 = vmatpush3.bf16.msra.mxu0 %v25659_v34  ;;  %v32688_v34 = vsub.f32 %v32628_v51, %v15340_v43  ;;  %v25731_v43 = vpack.c.bf16 %v32645_v33, %v32640_v62 }
 0x525   : > { %v12564_v63 = vadd.f32 %v12563_v52, %v12485_v30  ;;  %25661 = vmatprep.subr.bf16.mxu0 %v26252_v3  ;;  %v15418_v57 = vsub.f32 %v32614_v20, %v15417_v60  ;;  %v15343_v52 = vand.u32 4294901760, %v32657_v9 }
 0x526   : > { %25678 = vmatpush3.bf16.msra.mxu1 %v32556_v27  ;;  %v15445_v42 = vand.u32 4294901760, %v32688_v34 }
 0x527   : > { %25691 = vmatprep.subr.bf16.mxu1 %v26252_v3 }
 0x528   : > { %25663 = vmatpush3.bf16.msra.mxu0 %v25662_v8  ;;  %v15446_v2 = vsub.f32 %v32688_v34, %v15445_v42 }
 0x529   : > { %25664 = vmatprep.subr.bf16.mxu0 %v26252_v3  ;;  %23185 = vmatmul.mubr.f32.vlgmr.msra.gmra.mrb[158].mxu1 %v14848_v6 }
 0x52a   : > { %25693 = vmatpush3.bf16.msra.mxu1 %v32512_v56  ;;  %23222 = vmatprep.mubr.msk.f32.mxu1 %vm26253_vm0, %v26254_v13  ;;  %v25683_v56 = vpack.c.bf16 %v14880_v26, %v14873_v0  ;;  %v32683_v26 = vsub.f32 %v32623_v48, %v15337_v31  ;;  %v25713_v48 = vpack.c.bf16 %v15346_v44, %v15343_v52 }
 0x52b   : > { %25694 = vmatprep.subr.bf16.mxu1 %v26252_v3  ;;  %v25728_v31 = vpack.c.bf16 %v32614_v20, %v32608_v36 }
 0x52c   : > { %25666 = vmatpush3.bf16.msra.mxu0 %v25665_v39  ;;  %v12760_v6 = vpop.f32.mrb[132].mxu1  ;;  %v15419_v39 = vand.u32 4294901760, %v15418_v57  ;;  %v15438_v32 = vand.u32 4294901760, %v32683_v26 }
 0x52d   : > { %25679 = vmatprep.subr.bf16.mxu0 %v26252_v3  ;;  %v22692_v28 = vpop.f32.mrb[133].mxu1 }
 0x52e   : > { %25696 = vmatpush3.bf16.msra.mxu1 %v32534_v29  ;;  %v25686_v29 = vpack.c.bf16 %v14894_v22, %v14887_v19  ;;  %v15311_v28 = vld [vmem:[#allocation2 + $0x36] sm:$0xff]  ;;  %v32710_v19 = vsub.f32 %v32657_v9, %v15343_v52  ;;  %v32715_v22 = vsub.f32 %v32662_v55, %v15346_v44 }
 0x52f   : > { %23166 = vmatmul.mubr.f32.vlgmr.msra.gmra.mrb[158].mxu0 %v32527_v4  ;;  %v15411_v4 = vsub.f32 %v32608_v36, %v15410_v25  ;;  %25697 = vmatprep.subr.bf16.mxu1 %v26252_v3  ;;  %v25755_v36 = vpack.c.bf16 %v15431_v18, %v15424_v38 }
 0x530   : > { %25681 = vmatpush3.bf16.msra.mxu0 %v25680_v45  ;;  %23203 = vmatprep.mubr.msk.f32.mxu0 %vm26253_vm0, %v26254_v13  ;;  %v15425_v45 = vsub.f32 %v32640_v62, %v15424_v38  ;;  %v15452_v40 = vand.u32 4294901760, %v32710_v19  ;;  %v25758_v62 = vpack.c.bf16 %v15445_v42, %v15438_v32  ;;  %v33641_v38 = vand.u32 4294901760, %v32159_v37 }
 0x531   : > { %25682 = vmatprep.subr.bf16.mxu0 %v26252_v3  ;;  %v15412_v5 = vand.u32 4294901760, %v15411_v4 }
 0x532   : > { %v12649_v0 = vpop.f32.mrb[132].mxu0  ;;  %25699 = vmatpush3.bf16.msra.mxu1 %v32546_v54  ;;  %v25689_v54 = vpack.c.bf16 %v14908_v53, %v14901_v50  ;;  %v15426_v4 = vand.u32 4294901760, %v15425_v45  ;;  %v15459_v50 = vand.u32 4294901760, %v32715_v22 }
 0x533   : > { %v12650_v61 = vadd.f32 %v12649_v0, %v12564_v63  ;;  %v22673_v30 = vpop.f32.mrb[133].mxu0  ;;  %v15432_v63 = vsub.f32 %v32645_v33, %v15431_v18  ;;  %25700 = vmatprep.subr.bf16.mxu1 %v26252_v3  ;;  %v15439_v0 = vsub.f32 %v32683_v26, %v15438_v32  ;;  %v33640_v33 = vand.u32 4294901760, %v32082_v35 }
 0x534   : > { %25684 = vmatpush3.bf16.msra.mxu0 %v25683_v56  ;;  %v15322_v56 = vsel %vm293_vm1, %v15311_v28, 0  ;;  %v15460_v1 = vsub.f32 %v32715_v22, %v15459_v50 }
 0x535   : > { %v12761_v8 = vadd.f32 %v12760_v6, %v12650_v61  ;;  %25685 = vmatprep.subr.bf16.mxu0 %v26252_v3  ;;  %v25716_v6 = vpack.c.bf16 %v15419_v39, %v15412_v5  ;;  %v15433_v57 = vand.u32 4294901760, %v15432_v63  ;;  %v32734_v53 = vand.u32 4294901760, %v15322_v56 }
 0x536   : > { %25702 = vmatpush3.bf16.msra.mxu1 %v32556_v27  ;;  %v32740_v27 = vpack.c.bf16 %v15328_v47, %v15325_v14  ;;  %v15440_v30 = vand.u32 4294901760, %v15439_v0  ;;  %v15453_v5 = vsub.f32 %v32710_v19, %v15452_v40  ;;  %v32762_v14 = vpack.c.bf16 %v15334_v49, %v15331_v16 }
 0x537   : > { %25715 = vmatprep.subr.bf16.mxu1 %v26252_v3  ;;  %v25719_v61 = vpack.c.bf16 %v15433_v57, %v15426_v4  ;;  %v32755_v17 = vsub.f32 %v15322_v56, %v32734_v53  ;;  %v15461_v28 = vand.u32 4294901760, %v15460_v1  ;;  %v25734_v4 = vpack.c.bf16 %v32688_v34, %v32683_v26 }
 0x538   : > { %25687 = vmatpush3.bf16.msra.mxu0 %v25686_v29  ;;  %v15447_v29 = vand.u32 4294901760, %v15446_v2  ;;  %v15454_v63 = vand.u32 4294901760, %v15453_v5  ;;  %v25737_v0 = vpack.c.bf16 %v32715_v22, %v32710_v19  ;;  %v25752_v2 = vpack.c.bf16 %v15417_v60, %v15410_v25 }
 0x539   : > { %25688 = vmatprep.subr.bf16.mxu0 %v26252_v3  ;;  %23223 = vmatmul.mubr.f32.vlgmr.msra.gmra.mrb[160].mxu1 %v32506_v23  ;;  %v15399_v15 = vand.u32 4294901760, %v32755_v17  ;;  %v32845_v18 = vpack.c.bf16 %v33641_v38, %v33640_v33 }
 0x53a   : > { %25717 = vmatpush3.bf16.msra.mxu1 %v25716_v6  ;;  %23260 = vmatprep.mubr.msk.f32.mxu1 %vm26253_vm0, %v26254_v13  ;;  %v25722_v45 = vpack.c.bf16 %v15447_v29, %v15440_v30  ;;  %v25725_v49 = vpack.c.bf16 %v15461_v28, %v15454_v63 }
 0x53b   : > { %25718 = vmatprep.subr.bf16.mxu1 %v26252_v3 }
 0x53c   : > { %25690 = vmatpush3.bf16.msra.mxu0 %v25689_v54  ;;  %v12929_v47 = vpop.f32.mrb[134].mxu1 }
 0x53d   : > { %25703 = vmatprep.subr.bf16.mxu0 %v26252_v3 }
 0x53e   : > { %25720 = vmatpush3.bf16.msra.mxu1 %v25719_v61 }
 0x53f   : > { %23204 = vmatmul.mubr.f32.vlgmr.msra.gmra.mrb[160].mxu0 %v32506_v23  ;;  %v22730_v23 = vpop.f32.mrb[135].mxu1  ;;  %25721 = vmatprep.subr.bf16.mxu1 %v26252_v3 }
 0x540   : > { %25705 = vmatpush3.bf16.msra.mxu0 %v32740_v27  ;;  %23241 = vmatprep.mubr.msk.f32.mxu0 %vm26253_vm0, %v26254_v13 }
 0x541   : > { %25706 = vmatprep.subr.bf16.mxu0 %v26252_v3 }
 0x542   : > { %v12848_v39 = vpop.f32.mrb[134].mxu0  ;;  %25723 = vmatpush3.bf16.msra.mxu1 %v25722_v45 }
 0x543   : > { %v12849_v54 = vadd.f32 %v12848_v39, %v12761_v8  ;;  %v22711_v56 = vpop.f32.mrb[135].mxu0  ;;  %25724 = vmatprep.subr.bf16.mxu1 %v26252_v3  ;;  %v15400_v8 = vsub.f32 %v32755_v17, %v15399_v15 }
 0x544   : > { %25708 = vmatpush3.bf16.msra.mxu0 %v32762_v14 }
 0x545   : > { %v12930_v16 = vadd.f32 %v12929_v47, %v12849_v54  ;;  %25709 = vmatprep.subr.bf16.mxu0 %v26252_v3  ;;  %v15401_v51 = vand.u32 4294901760, %v15400_v8 }
 0x546   : > { %25726 = vmatpush3.bf16.msra.mxu1 %v25725_v49 }
 0x547   : > { %25739 = vmatprep.subr.bf16.mxu1 %v26252_v3 }
 0x548   : > { %25711 = vmatpush3.bf16.msra.mxu0 %v32774_v59 }
 0x549   : > { %25712 = vmatprep.subr.bf16.mxu0 %v26252_v3  ;;  %23261 = vmatmul.mubr.f32.vlgmr.msra.gmra.mrb[162].mxu1 %v32734_v53 }
 0x54a   : > { %25741 = vmatpush3.bf16.msra.mxu1 %v32740_v27  ;;  %23298 = vmatprep.mubr.msk.f32.mxu1 %vm26253_vm0, %v26254_v13 }
 0x54b   : > { %25742 = vmatprep.subr.bf16.mxu1 %v26252_v3 }
 0x54c   : > { %25714 = vmatpush3.bf16.msra.mxu0 %v25713_v48  ;;  %v13103_v9 = vpop.f32.mrb[136].mxu1 }
 0x54d   : > { %25727 = vmatprep.subr.bf16.mxu0 %v26252_v3  ;;  %v22768_v55 = vpop.f32.mrb[137].mxu1 }
 0x54e   : > { %25744 = vmatpush3.bf16.msra.mxu1 %v32762_v14 }
 0x54f   : > { %23242 = vmatmul.mubr.f32.vlgmr.msra.gmra.mrb[162].mxu0 %v15401_v51  ;;  %25745 = vmatprep.subr.bf16.mxu1 %v26252_v3 }
 0x550   : > { %25729 = vmatpush3.bf16.msra.mxu0 %v25728_v31  ;;  %23279 = vmatprep.mubr.msk.f32.mxu0 %vm26253_vm0, %v26254_v13 }
 0x551   : > { %25730 = vmatprep.subr.bf16.mxu0 %v26252_v3 }
 0x552   : > { %v13024_v52 = vpop.f32.mrb[136].mxu0  ;;  %25747 = vmatpush3.bf16.msra.mxu1 %v32774_v59 }
 0x553   : > { %v13025_v44 = vadd.f32 %v13024_v52, %v12930_v16  ;;  %v22749_v6 = vpop.f32.mrb[137].mxu0  ;;  %25748 = vmatprep.subr.bf16.mxu1 %v26252_v3 }
 0x554   : > { %25732 = vmatpush3.bf16.msra.mxu0 %v25731_v43 }
 0x555   : > { %v13104_v57 = vadd.f32 %v13103_v9, %v13025_v44  ;;  %25733 = vmatprep.subr.bf16.mxu0 %v26252_v3 }
 0x556   : > { %25750 = vmatpush3.bf16.msra.mxu1 %v25713_v48 }
 0x557   : > { %25763 = vmatprep.subr.bf16.mxu1 %v26252_v3 }
 0x558   : > { %25735 = vmatpush3.bf16.msra.mxu0 %v25734_v4 }
 0x559   : > { %25736 = vmatprep.subr.bf16.mxu0 %v26252_v3  ;;  %23299 = vmatmul.mubr.f32.vlgmr.msra.gmra.mrb[164].mxu1 %v15399_v15 }
 0x55a   : > { %25765 = vmatpush3.bf16.msra.mxu1 %v32740_v27  ;;  %23336 = vmatprep.mubr.msk.f32.mxu1 %vm26253_vm0, %v26254_v13 }
 0x55b   : > { %25766 = vmatprep.subr.bf16.mxu1 %v26252_v3 }
 0x55c   : > { %25738 = vmatpush3.bf16.msra.mxu0 %v25737_v0  ;;  %v13310_v20 = vpop.f32.mrb[138].mxu1 }
 0x55d   : > { %25751 = vmatprep.subr.bf16.mxu0 %v26252_v3  ;;  %v22806_v25 = vpop.f32.mrb[139].mxu1 }
 0x55e   : > { %25768 = vmatpush3.bf16.msra.mxu1 %v32762_v14 }
 0x55f   : > { %23280 = vmatmul.mubr.f32.vlgmr.msra.gmra.mrb[164].mxu0 %v32755_v17  ;;  %25769 = vmatprep.subr.bf16.mxu1 %v26252_v3 }
 0x560   : > { %25753 = vmatpush3.bf16.msra.mxu0 %v25752_v2  ;;  %23317 = vmatprep.mubr.msk.f32.mxu0 %vm26253_vm0, %v26254_v13  ;;  %v25761_v13 = vpack.c.bf16 %v15459_v50, %v15452_v40 }
 0x561   : > { %25754 = vmatprep.subr.bf16.mxu0 %v26252_v3 }
 0x562   : > { %v13199_v60 = vpop.f32.mrb[138].mxu0  ;;  %25771 = vmatpush3.bf16.msra.mxu1 %v32774_v59 }
 0x563   : > { %v22787_v27 = vpop.f32.mrb[139].mxu0  ;;  %v13311_v61 = vadd.f32 %v13310_v20, %v13199_v60  ;;  %25772 = vmatprep.subr.bf16.mxu1 %v26252_v3 }
 0x564   : > { %25756 = vmatpush3.bf16.msra.mxu0 %v25755_v36 }
 0x565   : > { %25757 = vmatprep.subr.bf16.mxu0 %v26252_v3 }
 0x566   : > { %25774 = vmatpush3.bf16.msra.mxu1 %v25713_v48 }
 0x568   : > { %25759 = vmatpush3.bf16.msra.mxu0 %v25758_v62 }
 0x569   : > { %25760 = vmatprep.subr.bf16.mxu0 %v26252_v3  ;;  %23337 = vmatmul.mubr.f32.vlgmr.msra.gmra.mrb[166].mxu1 %v32734_v53 }
 0x56c   : > { %25762 = vmatpush3.bf16.msra.mxu0 %v25761_v13  ;;  %v13479_v26 = vpop.f32.mrb[140].mxu1 }
 0x56d   : > { %25776 = vmatprep.subr.bf16.mxu0 %v32845_v18  ;;  %v22844_v34 = vpop.f32.mrb[141].mxu1 }
 0x56f   : > { %23318 = vmatmul.mubr.f32.vlgmr.msra.gmra.mrb[166].mxu0 %v32734_v53 }
 0x570   : > { %25778 = vmatpush3.bf16.msra.mxu0 %v32845_v18 }
 0x572   : > { %v13398_v32 = vpop.f32.mrb[140].mxu0 }
 0x573   : > { %v13399_v3 = vadd.f32 %v13398_v32, %v13311_v61  ;;  %v22825_v42 = vpop.f32.mrb[141].mxu0 }
 0x575   : > { %v13480_v19 = vadd.f32 %v13479_v26, %v13399_v3 }
 0x57c   : > { %v13653_v35 = vpop.f32.mrb[142].mxu1 }
 0x57d   : > { %v22882_v22 = vpop.f32.mrb[143].mxu1 }
 0x582   : > { %v13574_v37 = vpop.f32.mrb[142].mxu0 }
 0x583   : > { %v13575_v40 = vadd.f32 %v13574_v37, %v13480_v19  ;;  %v22863_v50 = vpop.f32.mrb[143].mxu0 }
 0x585   : > { %v13654_v30 = vadd.f32 %v13653_v35, %v13575_v40 }
 0x587   : > { %v13657_v29 = vadd.f32 %v13654_v30, %v13104_v57 }
 0x589   : > { %v11969_v5 = vpop.xlane.xlu0 %11968 }
 0x58a   : > { %v11970_v1 = vrot.slane %v11969_v5, 4 }
 0x58b   : > { %v11981_v17 = vpop.xlane.xlu1 %11980 }
 0x58c   : > { %v11971_v14 = vadd.f32 %v11970_v1, %v11969_v5  ;;  %v11982_v53 = vrot.slane %v11981_v17, 4  ;;  %v13861_v45 = vpop.f32.mrb[144].mxu1 }
 0x58d   : > { %v22920_v28 = vpop.f32.mrb[145].mxu1 }
 0x58e   : > { %v11972_v47 = vrot.slane %v11971_v14, 2  ;;  %v11983_v23 = vadd.f32 %v11982_v53, %v11981_v17 }
 0x590   : > { %v11984_v39 = vrot.slane %v11983_v23, 2  ;;  %v11973_v63 = vadd.f32 %v11972_v47, %v11971_v14 }
 0x592   : > { %v13750_v54 = vpop.f32.mrb[144].mxu0  ;;  %v11974_v56 = vrot.slane %v11973_v63, 1  ;;  %v11985_v15 = vadd.f32 %v11984_v39, %v11983_v23 }
 0x593   : > { %v22901_v59 = vpop.f32.mrb[145].mxu0  ;;  %v13862_v16 = vadd.f32 %v13861_v45, %v13750_v54 }
 0x594   : > { %v11975_v49 = vadd.f32 %v11974_v56, %v11973_v63  ;;  %v11986_v8 = vrot.slane %v11985_v15, 1  ;;  %v12001_v56 = vstv %s18330_s28 }
 0x596   : > { %26147 = vpush %v11975_v49  ;;  %v11987_v48 = vadd.f32 %v11986_v8, %v11985_v15 }
 0x598   : > { %26149 = vpush %v11987_v48 }
 0x59c   : > { %v14030_v51 = vpop.f32.mrb[146].mxu1 }
 0x59d   : > { %v22958_v31 = vpop.f32.mrb[147].mxu1 }
 0x5a2   : > { %v13949_v43 = vpop.f32.mrb[146].mxu0 }
 0x5a3   : > { %v13950_v9 = vadd.f32 %v13949_v43, %v13862_v16  ;;  %v22939_v55 = vpop.f32.mrb[147].mxu0  ;;  %v12004_v16 = vstv %s18331_s29 }
 0x5a5   : > { %v14031_v52 = vadd.f32 %v14030_v51, %v13950_v9 }
 0x5ac   : > { %v14204_v44 = vpop.f32.mrb[148].mxu1 }
 0x5ad   : > { %v22996_v6 = vpop.f32.mrb[149].mxu1 }
 0x5b2   : > { %v14125_v4 = vpop.f32.mrb[148].mxu0 }
 0x5b3   : > { %v14126_v57 = vadd.f32 %v14125_v4, %v14031_v52  ;;  %v22977_v0 = vpop.f32.mrb[149].mxu0 }
 0x5b5   : > { %v14205_v2 = vadd.f32 %v14204_v44, %v14126_v57 }
 0x5b7   : > { %v14208_v36 = vadd.f32 %v14205_v2, %v13657_v29 }
 0x5bc   : > { %v14412_v20 = vpop.f32.mrb[150].mxu1 }
 0x5bd   : > { %v23034_v25 = vpop.f32.mrb[151].mxu1 }
 0x5c2   : > { %v14301_v60 = vpop.f32.mrb[150].mxu0 }
 0x5c3   : > { %v23015_v27 = vpop.f32.mrb[151].mxu0  ;;  %v14413_v61 = vadd.f32 %v14412_v20, %v14301_v60 }
 0x5c7   : > { %s26148_s18 = spop %26147 }
 0x5c8   : > { %s32851_s20 = smul.f32 0.001953125, %s26148_s18  ;;  %s18389_s18 = sld [smem:[#allocation4 + $0x83]] }
 0x5c9   : > { %s26150_s21 = spop %26149 }
 0x5ca   : > { %s11990_s22 = smul.f32 %s32851_s20, %s32851_s20  ;;  %v11992_v63 = vstv %s32851_s20  ;;  %s18390_s20 = sld [smem:[#allocation4 + $0x103]] }
 0x5cb   : > { %s11989_s23 = smul.f32 0.001953125, %s26150_s21  ;;  %v11993_v28 = vsub.f32 %v32373_v24, %v11992_v63 }
 0x5cc   : > { %v14581_v62 = vpop.f32.mrb[152].mxu1 }
 0x5cd   : > { %s11991_s30 = ssub.f32 %s11989_s23, %s11990_s22  ;;  %v23072_v33 = vpop.f32.mrb[153].mxu1  ;;  %s292_s22 = scalar_lea.vmem %s33602_s7, %s18393_s27 }
 0x5cf   : > { %s11994_s19 = sadd.f32 1e-05, %s11991_s30 }
 0x5d1   : > { %v11995_v13 = vstv %s11994_s19 }
 0x5d2   : > { %26188 = vrsqrt.f32 %v11995_v13  ;;  %v14500_v38 = vpop.f32.mrb[152].mxu0 }
 0x5d3   : > { %v14501_v26 = vadd.f32 %v14500_v38, %v14413_v61  ;;  %v23053_v34 = vpop.f32.mrb[153].mxu0  ;;  %v15863_v38 = vstv %s18388_s9 }
 0x5d5   : > { %v14582_v32 = vadd.f32 %v14581_v62, %v14501_v26 }
 0x5dc   : > { %v26189_v3 = vpop.eup %26188  ;;  %v14755_v42 = vpop.f32.mrb[154].mxu1 }
 0x5dd   : > { %26151 = vpush %v26189_v3  ;;  %v23110_v19 = vpop.f32.mrb[155].mxu1 }
 0x5e2   : > { %v14676_v35 = vpop.f32.mrb[154].mxu0 }
 0x5e3   : > { %v14677_v22 = vadd.f32 %v14676_v35, %v14582_v32  ;;  %v23091_v37 = vpop.f32.mrb[155].mxu0 }
 0x5e5   : > { %v14756_v40 = vadd.f32 %v14755_v42, %v14677_v22 }
 0x5e7   : > { %v14759_v50 = vadd.f32 %v14756_v40, %v14208_v36 }
 0x5ec   : > { %v14963_v30 = vpop.f32.mrb[156].mxu1 }
 0x5ed   : > { %v23148_v29 = vpop.f32.mrb[157].mxu1 }
 0x5f2   : > { %v14852_v5 = vpop.f32.mrb[156].mxu0 }
 0x5f3   : > { %v23129_v1 = vpop.f32.mrb[157].mxu0  ;;  %v14964_v17 = vadd.f32 %v14963_v30, %v14852_v5 }
 0x5fc   : > { %v15132_v14 = vpop.f32.mrb[158].mxu1 }
 0x5fd   : > { %v23186_v53 = vpop.f32.mrb[159].mxu1 }
 0x602   : > { %v15051_v47 = vpop.f32.mrb[158].mxu0 }
 0x603   : > { %v15052_v23 = vadd.f32 %v15051_v47, %v14964_v17  ;;  %v23167_v39 = vpop.f32.mrb[159].mxu0 }
 0x605   : > { %v15133_v45 = vadd.f32 %v15132_v14, %v15052_v23  ;;  %v15909_v23 = vld [vmem:[%s33598_s3] sm:$0xff] }
 0x606   : > { %v16023_v39 = vsel %vm16021_vm3, %v15909_v23, 0  ;;  %v15919_v23 = vld [vmem:[%s33598_s3 + $0x50] sm:$0xff] }
 0x60c   : > { %v15306_v59 = vpop.f32.mrb[160].mxu1 }
 0x60d   : > { %v23224_v49 = vpop.f32.mrb[161].mxu1 }
 0x60e   : > { %s26152_s8 = spop %26151  ;;  %v15910_v49 = vld [vmem:[%s33598_s3 + $0x8] sm:$0xff] }
 0x60f   : > { %v11998_v54 = vstv %s26152_s8 }
 0x610   : > { %v11999_v15 = vmul.f32 %v11998_v54, %v11993_v28 }
 0x612   : > { %v12002_v8 = vmul.f32 %v12001_v56, %v11999_v15  ;;  %v15227_v48 = vpop.f32.mrb[160].mxu0 }
 0x613   : > { %v15228_v51 = vadd.f32 %v15227_v48, %v15133_v45  ;;  %v23205_v31 = vpop.f32.mrb[161].mxu0  ;;  %v32864_v45 = vand.u32 4294901760, %v16023_v39 }
 0x614   : > { %v12005_v43 = vadd.f32 %v12004_v16, %v12002_v8  ;;  %v15911_v8 = vld [vmem:[%s33598_s3 + $0x10] sm:$0xff]  ;;  %v15899_v31 = vstv %s18389_s18 }
 0x615   : > { %v15307_v9 = vadd.f32 %v15306_v59, %v15228_v51  ;;  %v32867_v63 = vsub.f32 %v16023_v39, %v32864_v45 }
 0x616   : > { %12006 = vst.msk [vmem:[#allocation3 + $0x10] sm:$0xff] %vm293_vm1, %v12005_v43  ;;  %v16026_v43 = vsel %vm16021_vm3, %v15910_v49, 0 }
 0x617   : > { %v15310_v55 = vadd.f32 %v15307_v9, %v14759_v50  ;;  %v16141_v28 = vand.u32 4294901760, %v32867_v63  ;;  %v15912_v9 = vld [vmem:[%s33598_s3 + $0x18] sm:$0xff] }
 0x619   : > { %v16142_v54 = vsub.f32 %v32867_v63, %v16141_v28 }
 0x61b   : > { %v16143_v56 = vand.u32 4294901760, %v16142_v54 }
 0x61c   : > { %v15514_v52 = vpop.f32.mrb[162].mxu1 }
 0x61d   : > { %v23262_v44 = vpop.f32.mrb[163].mxu1  ;;  %23347 = vmatprep.mubr.f32.mxu0 %v16143_v56 }
 0x61e   : > { %v15902_v44 = vstv %s18390_s20 }
 0x622   : > { %v15403_v6 = vpop.f32.mrb[162].mxu0 }
 0x623   : > { %v23243_v24 = vpop.f32.mrb[163].mxu0  ;;  %v15515_v4 = vadd.f32 %v15514_v52, %v15403_v6  ;;  %v16029_v52 = vsel %vm16021_vm3, %v15911_v8, 0  ;;  %v15907_v6 = vld [vmem:[#allocation3 + $0x10] sm:$0xff] }
 0x624   : > { %v15913_v24 = vld [vmem:[%s33598_s3 + $0x20] sm:$0xff] }
 0x62c   : > { %v15683_v57 = vpop.f32.mrb[164].mxu1 }
 0x62d   : > { %v23300_v0 = vpop.f32.mrb[165].mxu1 }
 0x62e   : > { %v16032_v0 = vsel %vm16021_vm3, %v15912_v9, 0 }
 0x632   : > { %v15602_v2 = vpop.f32.mrb[164].mxu0 }
 0x633   : > { %v15603_v36 = vadd.f32 %v15602_v2, %v15515_v4  ;;  %v23281_v20 = vpop.f32.mrb[165].mxu0  ;;  %v32890_v2 = vand.u32 4294901760, %v16029_v52 }
 0x634   : > { %v15915_v20 = vld [vmem:[%s33598_s3 + $0x30] sm:$0xff] }
 0x635   : > { %v15684_v25 = vadd.f32 %v15683_v57, %v15603_v36  ;;  %v32887_v57 = vand.u32 4294901760, %v16026_v43  ;;  %v15914_v36 = vld [vmem:[%s33598_s3 + $0x28] sm:$0xff] }
 0x63c   : > { %v15857_v60 = vpop.f32.mrb[166].mxu1 }
 0x63d   : > { %v23338_v27 = vpop.f32.mrb[167].mxu1 }
 0x63e   : > { %v16035_v27 = vsel %vm16021_vm3, %v15913_v24, 0 }
 0x642   : > { %v15778_v61 = vpop.f32.mrb[166].mxu0 }
 0x643   : > { %v15779_v62 = vadd.f32 %v15778_v61, %v15684_v25  ;;  %v23319_v13 = vpop.f32.mrb[167].mxu0  ;;  %v32899_v61 = vand.u32 4294901760, %v16032_v0 }
 0x644   : > { %v16038_v13 = vsel %vm16021_vm3, %v15914_v36, 0 }
 0x645   : > { %v15858_v33 = vadd.f32 %v15857_v60, %v15779_v62  ;;  %v16077_v60 = vand.u32 4294901760, %v15907_v6  ;;  %v32903_v62 = vsub.f32 %v16026_v43, %v32887_v57 }
 0x647   : > { %v15861_v26 = vadd.f32 %v15858_v33, %v15310_v55  ;;  %v16041_v33 = vsel %vm16021_vm3, %v15915_v20, 0 }
 0x649   : > { %v15864_v34 = vadd.f32 %v15863_v38, %v15861_v26  ;;  %v32908_v38 = vsub.f32 %v16029_v52, %v32890_v2  ;;  %v32910_v26 = vand.u32 4294901760, %v16035_v27 }
 0x64b   : > { %v15865_v32 = vsel %vm293_vm1, %v15864_v34, 0.0  ;;  %v15876_v3 = vmul.f32 %v15864_v34, %v15864_v34 }
 0x64c   : > { %15866 = vadd.xlane.f32.xlu0 %v15865_v32  ;;  %v32915_v32 = vsub.f32 %v15907_v6, %v16077_v60 }
 0x64d   : > { %v15877_v42 = vsel %vm293_vm1, %v15876_v3, 0.0  ;;  %v15917_v3 = vld [vmem:[%s33598_s3 + $0x40] sm:$0xff] }
 0x64e   : > { %15878 = vadd.xlane.f32.xlu1 %v15877_v42  ;;  %v32921_v42 = vsub.f32 %v16032_v0, %v32899_v61 }
 0x6d9   : > { %v15867_v19 = vpop.xlane.xlu0 %15866 }
 0x6da   : > { %v15868_v35 = vrot.slane %v15867_v19, 4 }
 0x6db   : > { %v15879_v22 = vpop.xlane.xlu1 %15878 }
 0x6dc   : > { %v15869_v37 = vadd.f32 %v15868_v35, %v15867_v19  ;;  %v15880_v40 = vrot.slane %v15879_v22, 4  ;;  %v32923_v19 = vand.u32 4294901760, %v16038_v13  ;;  %v32925_v35 = vand.u32 4294901760, %v16041_v33 }
 0x6de   : > { %v15870_v50 = vrot.slane %v15869_v37, 2  ;;  %v15881_v30 = vadd.f32 %v15880_v40, %v15879_v22  ;;  %v16151_v22 = vand.u32 4294901760, %v32903_v62  ;;  %v16161_v40 = vand.u32 4294901760, %v32908_v38 }
 0x6e0   : > { %v15882_v29 = vrot.slane %v15881_v30, 2  ;;  %v15871_v5 = vadd.f32 %v15870_v50, %v15869_v37  ;;  %v32931_v50 = vsub.f32 %v16035_v27, %v32910_v26  ;;  %v16152_v54 = vsub.f32 %v32903_v62, %v16151_v22 }
 0x6e2   : > { %v15872_v1 = vrot.slane %v15871_v5, 1  ;;  %v15883_v17 = vadd.f32 %v15882_v29, %v15881_v30  ;;  %v16047_v30 = vsel %vm16021_vm3, %v15917_v3, 0  ;;  %v16316_v29 = vand.u32 4294901760, %v32915_v32 }
 0x6e3   : > { %v32953_v56 = vand.u32 4294901760, %v16047_v30  ;;  %v16153_v6 = vand.u32 4294901760, %v16152_v54 }
 0x6e4   : > { %v15873_v14 = vadd.f32 %v15872_v1, %v15871_v5  ;;  %v15884_v53 = vrot.slane %v15883_v17, 1  ;;  %v15918_v5 = vld [vmem:[%s33598_s3 + $0x48] sm:$0xff]  ;;  %v16317_v8 = vsub.f32 %v32915_v32, %v16316_v29 }
 0x6e6   : > { %26153 = vpush %v15873_v14  ;;  %v15885_v47 = vadd.f32 %v15884_v53, %v15883_v17  ;;  %v16171_v17 = vand.u32 4294901760, %v32921_v42  ;;  %v32940_v14 = vsub.f32 %v16038_v13, %v32923_v19  ;;  %v32943_v53 = vsub.f32 %v16041_v33, %v32925_v35 }
 0x6e7   : > { %v16318_v27 = vand.u32 4294901760, %v16317_v8 }
 0x6e8   : > { %26155 = vpush %v15885_v47  ;;  %v16172_v43 = vsub.f32 %v32921_v42, %v16171_v17  ;;  %v33609_v9 = vand.u32 4294901760, %v32940_v14 }
 0x6ea   : > { %v16173_v3 = vand.u32 4294901760, %v16172_v43 }
 0x717   : > { %s26154_s11 = spop %26153 }
 0x718   : > { %s15875_s12 = smul.f32 0.001953125, %s26154_s11 }
 0x719   : > { %s26156_s13 = spop %26155 }
 0x71a   : > { %s15888_s14 = smul.f32 %s15875_s12, %s15875_s12  ;;  %v15890_v16 = vstv %s15875_s12 }
 0x71b   : > { %s15887_s15 = smul.f32 0.001953125, %s26156_s13  ;;  %v15891_v48 = vsub.f32 %v15864_v34, %v15890_v16  ;;  %v15916_v34 = vld [vmem:[%s33598_s3 + $0x38] sm:$0xff]  ;;  %v16050_v16 = vsel %vm16021_vm3, %v15918_v5, 0 }
 0x71c   : > { %v16044_v37 = vsel %vm16021_vm3, %v15916_v34, 0  ;;  %v32987_v0 = vand.u32 4294901760, %v16050_v16  ;;  %v15922_v34 = vld [vmem:[%s33598_s3 + $0x68] sm:$0xff] }
 0x71d   : > { %s15889_s16 = ssub.f32 %s15887_s15, %s15888_s14  ;;  %v32945_v47 = vand.u32 4294901760, %v16044_v37 }
 0x71e   : > { %v33016_v54 = vsub.f32 %v16050_v16, %v32987_v0  ;;  %v15924_v16 = vld [vmem:[%s33598_s3 + $0x78] sm:$0xff] }
 0x71f   : > { %s15892_s17 = sadd.f32 1e-05, %s15889_s16  ;;  %v32977_v52 = vsub.f32 %v16044_v37, %v32945_v47  ;;  %v16192_v37 = vsub.f32 %v32940_v14, %v33609_v9 }
 0x721   : > { %v15893_v15 = vstv %s15892_s17  ;;  %v33614_v5 = vand.u32 4294901760, %v32977_v52 }
 0x722   : > { %26190 = vrsqrt.f32 %v15893_v15  ;;  %v16162_v15 = vsub.f32 %v32908_v38, %v16161_v40 }
 0x724   : > { %v16163_v36 = vand.u32 4294901760, %v16162_v15 }
 0x72c   : > { %v26191_v59 = vpop.eup %26190 }
 0x72d   : > { %26157 = vpush %v26191_v59  ;;  %v16181_v59 = vand.u32 4294901760, %v32931_v50 }
 0x72f   : > { %v16182_v20 = vsub.f32 %v32931_v50, %v16181_v59 }
 0x731   : > { %v16183_v8 = vand.u32 4294901760, %v16182_v20 }
 0x75e   : > { %s26158_s19 = spop %26157 }
 0x75f   : > { %v15896_v51 = vstv %s26158_s19 }
 0x760   : > { %v15897_v55 = vmul.f32 %v15896_v51, %v15891_v48  ;;  %v16053_v51 = vsel %vm16021_vm3, %v15919_v23, 0 }
 0x762   : > { %v15900_v4 = vmul.f32 %v15899_v31, %v15897_v55  ;;  %v15920_v31 = vld [vmem:[%s33598_s3 + $0x58] sm:$0xff]  ;;  %v33608_v55 = vand.u32 4294901760, %v32943_v53 }
 0x764   : > { %v15903_v25 = vadd.f32 %v15902_v44, %v15900_v4  ;;  %v15921_v44 = vld [vmem:[%s33598_s3 + $0x60] sm:$0xff]  ;;  %v32985_v4 = vsub.f32 %v16047_v30, %v32953_v56  ;;  %v16202_v30 = vsub.f32 %v32943_v53, %v33608_v55  ;;  %v16193_v55 = vand.u32 4294901760, %v16192_v37 }
 0x765   : > { %v16059_v33 = vsel %vm16021_vm3, %v15921_v44, 0  ;;  %v16062_v44 = vsel %vm16021_vm3, %v15922_v34, 0 }
 0x766   : > { %15904 = vst.msk [vmem:[#allocation3 + $0x18] sm:$0xff] %vm293_vm1, %v15903_v25  ;;  %v32993_v25 = vand.u32 4294901760, %v16053_v51  ;;  %v33024_v43 = vand.u32 4294901760, %v16059_v33  ;;  %v16203_v9 = vand.u32 4294901760, %v16202_v30  ;;  %v16068_v30 = vsel %vm16021_vm3, %v15924_v16, 0 }
 0x768   : > { %v33045_v37 = vsub.f32 %v16059_v33, %v33024_v43 }
 0x76d   : > { %v15908_v1 = vld [vmem:[#allocation3 + $0x18] sm:$0xff] }
 0x76e   : > { %v16080_v39 = vand.u32 4294901760, %v15908_v1 }
 0x770   : > { %v32960_v49 = vpack.c.bf16 %v16080_v39, %v16077_v60  ;;  %v32965_v48 = vsub.f32 %v15908_v1, %v16080_v39  ;;  %v16056_v60 = vsel %vm16021_vm3, %v15920_v31, 0  ;;  %v15923_v1 = vld [vmem:[%s33598_s3 + $0x70] sm:$0xff]  ;;  %v33611_v39 = vand.u32 4294901760, %v32985_v4 }
 0x771   : > { %v33018_v15 = vand.u32 4294901760, %v16056_v60  ;;  %v33022_v31 = vsub.f32 %v16053_v51, %v32993_v25 }
 0x772   : > { %25780 = vmatprep.subr.bf16.mxu0 %v32960_v49  ;;  %v16323_v24 = vand.u32 4294901760, %v32965_v48  ;;  %v16222_v51 = vsub.f32 %v32985_v4, %v33611_v39 }
 0x773   : > { %25782 = vmatpush3.bf16.msra.mxu0 %v32960_v49  ;;  %v33039_v20 = vsub.f32 %v16056_v60, %v33018_v15  ;;  %v33612_v34 = vand.u32 4294901760, %v33022_v31 }
 0x774   : > { %25784 = vmatprep.subr.bf16.mxu0 %v32251_v11  ;;  %v16324_v13 = vsub.f32 %v32965_v48, %v16323_v24  ;;  %v16223_v33 = vand.u32 4294901760, %v16222_v51 }
 0x775   : > { %v16242_v16 = vsub.f32 %v33022_v31, %v33612_v34 }
 0x776   : > { %23348 = vmatmul.mubr.f32.vlgmr.msra.gmra.mrb[168].mxu0 %v16153_v6  ;;  %v16325_v23 = vand.u32 4294901760, %v16324_v13  ;;  %v16065_v13 = vsel %vm16021_vm3, %v15923_v1, 0 }
 0x777   : > { %25786 = vmatpush3.bf16.msra.mxu0 %v32251_v11  ;;  %23350 = vmatprep.mubr.f32.mxu0 %v16163_v36  ;;  %v16212_v11 = vsub.f32 %v32977_v52, %v33614_v5  ;;  %v33610_v36 = vand.u32 4294901760, %v33016_v54  ;;  %v16243_v51 = vand.u32 4294901760, %v16242_v16 }
 0x778   : > { %v25787_v6 = vpack.c.bf16 %v16325_v23, %v16318_v27  ;;  %v33041_v27 = vand.u32 4294901760, %v16062_v44  ;;  %v33613_v23 = vand.u32 4294901760, %v33039_v20 }
 0x779   : > { %v16213_v1 = vand.u32 4294901760, %v16212_v11  ;;  %v16232_v60 = vsub.f32 %v33016_v54, %v33610_v36  ;;  %v16261_v11 = vand.u32 4294901760, %v33045_v37 }
 0x77a   : > { %23351 = vmatmul.mubr.f32.gmra.mrb[170].mxu0 %v16173_v3  ;;  %25788 = vmatprep.subr.bf16.mxu0 %v25787_v6  ;;  %v33047_v3 = vand.u32 4294901760, %v16065_v13 }
 0x77b   : > { %25790 = vmatpush3.bf16.msra.mxu0 %v25787_v6  ;;  %23353 = vmatprep.mubr.f32.mxu0 %v16183_v8  ;;  %v33056_v8 = vsub.f32 %v16062_v44, %v33041_v27  ;;  %v33058_v6 = vand.u32 4294901760, %v16068_v30  ;;  %v16233_v36 = vand.u32 4294901760, %v16232_v60  ;;  %v16252_v44 = vsub.f32 %v33039_v20, %v33613_v23 }
 0x77c   : > { %25792 = vmatprep.subr.bf16.mxu0 %v32215_v58  ;;  %v16262_v34 = vsub.f32 %v33045_v37, %v16261_v11 }
 0x77d   : > { %v16271_v39 = vand.u32 4294901760, %v33056_v8 }
 0x77e   : > { %23354 = vmatmul.mubr.f32.gmra.mrb[172].mxu0 %v16193_v55  ;;  %v33065_v55 = vsub.f32 %v16065_v13, %v33047_v3  ;;  %v16263_v5 = vand.u32 4294901760, %v16262_v34  ;;  %v25795_v34 = vpack.c.bf16 %v32965_v48, %v32915_v32  ;;  %v33646_v32 = vand.u32 4294901760, %v32977_v52 }
 0x77f   : > { %23356 = vmatprep.mubr.f32.mxu0 %v16203_v9  ;;  %v33072_v9 = vsub.f32 %v16068_v30, %v33058_v6  ;;  %v16272_v60 = vsub.f32 %v33056_v8, %v16271_v39 }
 0x780   : > { %v16281_v13 = vand.u32 4294901760, %v33065_v55 }
 0x781   : > { %v16291_v23 = vand.u32 4294901760, %v33072_v9 }
 0x782   : > { %23357 = vmatmul.mubr.f32.gmra.mrb[174].mxu0 %v16213_v1  ;;  %v16253_v1 = vand.u32 4294901760, %v16252_v44  ;;  %v16282_v30 = vsub.f32 %v33065_v55, %v16281_v13 }
 0x783   : > { %23359 = vmatprep.mubr.f32.mxu0 %v16223_v33  ;;  %v16273_v33 = vand.u32 4294901760, %v16272_v60  ;;  %v16292_v16 = vsub.f32 %v33072_v9, %v16291_v23  ;;  %v15925_v60 = vld [vmem:[%s33599_s4] sm:$0xff] }
 0x785   : > { %v16293_v44 = vand.u32 4294901760, %v16292_v16  ;;  %v33642_v16 = vand.u32 4294901760, %v32133_v41  ;;  %v15938_v41 = vld [vmem:[%s33599_s4 + $0x68] sm:$0xff] }
 0x786   : > { %23360 = vmatmul.mubr.f32.gmra.mrb[176].mxu0 %v16233_v36  ;;  %v16283_v36 = vand.u32 4294901760, %v16282_v30  ;;  %v15934_v30 = vld [vmem:[%s33599_s4 + $0x48] sm:$0xff] }
 0x787   : > { %23362 = vmatprep.mubr.f32.mxu0 %v16243_v51  ;;  %v15927_v51 = vld [vmem:[%s33599_s4 + $0x10] sm:$0xff] }
 0x78a   : > { %23363 = vmatmul.mubr.f32.gmra.mrb[178].mxu0 %v16253_v1  ;;  %v15928_v1 = vld [vmem:[%s33599_s4 + $0x18] sm:$0xff] }
 0x78b   : > { %23365 = vmatprep.mubr.f32.mxu0 %v16263_v5  ;;  %v26255_v5 = vmov 0  }
 0x78c   : > { %26183 = vset.pattern.permute.xlu1 %v26255_v5  ;;  %26182 = vset.pattern.permute.xlu0 %v26255_v5  ;;  %v15940_v5 = vld [vmem:[%s33599_s4 + $0x78] sm:$0xff] }
 0x78d   : > { %15943 = vperm.xlu0 %26182, %v15925_v60   ;;  %v15933_v60 = vld [vmem:[%s33599_s4 + $0x40] sm:$0xff] }
 0x78e   : > { %23366 = vmatmul.mubr.f32.gmra.mrb[180].mxu0 %v16273_v33  ;;  %v15929_v33 = vld [vmem:[%s33599_s4 + $0x20] sm:$0xff] }
 0x78f   : > { %23368 = vmatprep.mubr.f32.mxu0 %v16283_v36  ;;  %v33643_v36 = vand.u32 4294901760, %v32193_v10  ;;  %v15931_v10 = vld [vmem:[%s33599_s4 + $0x30] sm:$0xff] }
 0x791   : > { %15988 = vperm.xlu0 %26182, %v15934_v30   ;;  %v17287_v30 = vld [vmem:[%s33601_s6 + $0x18] sm:$0xff] }
 0x792   : > { %23369 = vmatmul.mubr.f32.gmra.mrb[182].mxu0 %v16293_v44  ;;  %v25807_v44 = vpack.c.bf16 %v33643_v36, %v33642_v16  ;;  %v15937_v16 = vld [vmem:[%s33599_s4 + $0x60] sm:$0xff]  ;;  %v15939_v36 = vld [vmem:[%s33599_s4 + $0x70] sm:$0xff] }
 0x793   : > { %23379 = vmatprep.mubr.f32.mxu0 %v32864_v45 }
 0x796   : > { %23380 = vmatmul.mubr.f32.vlgmr.msra.gmra.mrb[168].mxu0 %v32887_v57 }
 0x797   : > { %25794 = vmatpush3.bf16.msra.mxu0 %v32215_v58  ;;  %23382 = vmatprep.mubr.f32.mxu0 %v32890_v2  ;;  %v15926_v58 = vld [vmem:[%s33599_s4 + $0x8] sm:$0xff] }
 0x798   : > { %25796 = vmatprep.subr.bf16.mxu0 %v25795_v34  ;;  %15948 = vperm.xlu1 %26183, %v15926_v58   ;;  %v15930_v58 = vld [vmem:[%s33599_s4 + $0x28] sm:$0xff] }
 0x79a   : > { %23383 = vmatmul.mubr.f32.gmra.mrb[170].mxu0 %v32899_v61 }
 0x79b   : > { %25798 = vmatpush3.bf16.msra.mxu0 %v25795_v34  ;;  %23385 = vmatprep.mubr.f32.mxu0 %v32910_v26  ;;  %v15936_v34 = vld [vmem:[%s33599_s4 + $0x58] sm:$0xff] }
 0x79c   : > { %25800 = vmatprep.subr.bf16.mxu0 %v32845_v18  ;;  %15953 = vperm.xlu1 %26183, %v15927_v51   ;;  %v15932_v51 = vld [vmem:[%s33599_s4 + $0x38] sm:$0xff] }
 0x79d   : > { %15998 = vperm.xlu0 %26182, %v15936_v34   ;;  %v25811_v34 = vpack.c.bf16 %v16323_v24, %v16316_v29 }
 0x79e   : > { %23386 = vmatmul.mubr.f32.gmra.mrb[172].mxu0 %v32923_v19 }
 0x79f   : > { %23388 = vmatprep.mubr.f32.mxu0 %v32925_v35 }
 0x7a0   : > { %15958 = vperm.xlu1 %26183, %v15928_v1   ;;  %v17285_v1 = vld [vmem:[%s33601_s6 + $0x8] sm:$0xff] }
 0x7a1   : > { %16008 = vperm.xlu0 %26182, %v15938_v41  }
 0x7a2   : > { %23389 = vmatmul.mubr.f32.gmra.mrb[174].mxu0 %v32945_v47 }
 0x7a3   : > { %23391 = vmatprep.mubr.f32.mxu0 %v32953_v56 }
 0x7a4   : > { %15963 = vperm.xlu1 %26183, %v15929_v33   ;;  %v15935_v33 = vld [vmem:[%s33599_s4 + $0x50] sm:$0xff] }
 0x7a5   : > { %16018 = vperm.xlu0 %26182, %v15940_v5  }
 0x7a6   : > { %23392 = vmatmul.mubr.f32.gmra.mrb[176].mxu0 %v32987_v0 }
 0x7a7   : > { %23394 = vmatprep.mubr.f32.mxu0 %v32993_v25 }
 0x7a8   : > { %15968 = vperm.xlu1 %26183, %v15930_v58  }
 0x7a9   : > { %17295 = vperm.xlu0 %26182, %v17285_v1  }
 0x7aa   : > { %23395 = vmatmul.mubr.f32.gmra.mrb[178].mxu0 %v33018_v15 }
 0x7ab   : > { %23397 = vmatprep.mubr.f32.mxu0 %v33024_v43 }
 0x7ac   : > { %15973 = vperm.xlu1 %26183, %v15931_v10  }
 0x7ad   : > { %17305 = vperm.xlu0 %26182, %v17287_v30  }
 0x7ae   : > { %23398 = vmatmul.mubr.f32.gmra.mrb[180].mxu0 %v33041_v27 }
 0x7af   : > { %23400 = vmatprep.mubr.f32.mxu0 %v33047_v3 }
 0x7b0   : > { %15978 = vperm.xlu1 %26183, %v15932_v51  }
 0x7b2   : > { %23401 = vmatmul.mubr.f32.gmra.mrb[182].mxu0 %v33058_v6 }
 0x7b3   : > { %23411 = vmatprep.mubr.f32.mxu0 %v32867_v63  ;;  %v17284_v63 = vld [vmem:[%s33601_s6] sm:$0xff] }
 0x7b4   : > { %15983 = vperm.xlu1 %26183, %v15933_v60  }
 0x7b6   : > { %23412 = vmatmul.mubr.f32.vlgmr.msra.gmra.mrb[168].mxu0 %v32903_v62  ;;  %v33644_v62 = vand.u32 4294901760, %v32940_v14 }
 0x7b7   : > { %25802 = vmatpush3.bf16.msra.mxu0 %v32845_v18  ;;  %23414 = vmatprep.mubr.f32.mxu0 %v32908_v38  ;;  %v33645_v38 = vand.u32 4294901760, %v32943_v53 }
 0x7b8   : > { %25804 = vmatprep.subr.bf16.mxu0 %v32960_v49  ;;  %15993 = vperm.xlu1 %26183, %v15935_v33  }
 0x7ba   : > { %23415 = vmatmul.mubr.f32.gmra.mrb[170].mxu0 %v32921_v42  ;;  %v33647_v42 = vand.u32 4294901760, %v32985_v4 }
 0x7bb   : > { %25806 = vmatpush3.bf16.msra.mxu0 %v32960_v49  ;;  %23417 = vmatprep.mubr.f32.mxu0 %v32931_v50  ;;  %v33650_v50 = vand.u32 4294901760, %v33039_v20 }
 0x7bc   : > { %25808 = vmatprep.subr.bf16.mxu0 %v25807_v44  ;;  %16003 = vperm.xlu1 %26183, %v15937_v16  }
 0x7be   : > { %23418 = vmatmul.mubr.f32.gmra.mrb[172].mxu0 %v32940_v14  ;;  %v17281_v14 = vld [vmem:[%s33600_s5 + $0x8] sm:$0xff] }
 0x7bf   : > { %23420 = vmatprep.mubr.f32.mxu0 %v32943_v53 }
 0x7c0   : > { %16013 = vperm.xlu1 %26183, %v15939_v36  }
 0x7c2   : > { %23421 = vmatmul.mubr.f32.gmra.mrb[174].mxu0 %v32977_v52 }
 0x7c3   : > { %23423 = vmatprep.mubr.f32.mxu0 %v32985_v4 }
 0x7c4   : > { %17290 = vperm.xlu1 %26183, %v17284_v63  }
 0x7c6   : > { %23424 = vmatmul.mubr.f32.gmra.mrb[176].mxu0 %v33016_v54 }
 0x7c7   : > { %23426 = vmatprep.mubr.f32.mxu0 %v33022_v31 }
 0x7ca   : > { %23427 = vmatmul.mubr.f32.gmra.mrb[178].mxu0 %v33039_v20 }
 0x7cb   : > { %23429 = vmatprep.mubr.f32.mxu0 %v33045_v37 }
 0x7ce   : > { %23430 = vmatmul.mubr.f32.gmra.mrb[180].mxu0 %v33056_v8 }
 0x7cf   : > { %23432 = vmatprep.mubr.f32.mxu0 %v33065_v55 }
 0x7d2   : > { %23433 = vmatmul.mubr.f32.gmra.mrb[182].mxu0 %v33072_v9 }
 0x7d3   : > { %23443 = vmatprep.mubr.f32.mxu0 %v16141_v28  ;;  %v17286_v28 = vld [vmem:[%s33601_s6 + $0x10] sm:$0xff] }
 0x7d4   : > { %17300 = vperm.xlu1 %26183, %v17286_v28  }
 0x7d6   : > { %23444 = vmatmul.mubr.f32.vlgmr.msra.gmra.mrb[168].mxu0 %v16151_v22  ;;  %v33648_v22 = vand.u32 4294901760, %v33016_v54 }
 0x7d7   : > { %25810 = vmatpush3.bf16.msra.mxu0 %v25807_v44  ;;  %23446 = vmatprep.mubr.f32.mxu0 %v16161_v40  ;;  %v33649_v40 = vand.u32 4294901760, %v33022_v31 }
 0x7d8   : > { %25812 = vmatprep.subr.bf16.mxu0 %v25811_v34 }
 0x7da   : > { %23447 = vmatmul.mubr.f32.gmra.mrb[170].mxu0 %v16171_v17 }
 0x7db   : > { %25814 = vmatpush3.bf16.msra.mxu0 %v25811_v34  ;;  %23449 = vmatprep.mubr.f32.mxu0 %v16181_v59 }
 0x7dc   : > { %25816 = vmatprep.subr.bf16.mxu0 %v32845_v18 }
 0x7de   : > { %23450 = vmatmul.mubr.f32.gmra.mrb[172].mxu0 %v33644_v62 }
 0x7df   : > { %23452 = vmatprep.mubr.f32.mxu0 %v33645_v38 }
 0x7e2   : > { %23453 = vmatmul.mubr.f32.gmra.mrb[174].mxu0 %v33646_v32 }
 0x7e3   : > { %23455 = vmatprep.mubr.f32.mxu0 %v33647_v42 }
 0x7e6   : > { %23456 = vmatmul.mubr.f32.gmra.mrb[176].mxu0 %v33648_v22 }
 0x7e7   : > { %23458 = vmatprep.mubr.f32.mxu0 %v33649_v40 }
 0x7ea   : > { %23459 = vmatmul.mubr.f32.gmra.mrb[178].mxu0 %v33650_v50 }
 0x7eb   : > { %23461 = vmatprep.mubr.f32.mxu0 %v16261_v11 }
 0x7ee   : > { %23462 = vmatmul.mubr.f32.gmra.mrb[180].mxu0 %v16271_v39 }
 0x7ef   : > { %23464 = vmatprep.mubr.f32.mxu0 %v16281_v13 }
 0x7f2   : > { %23465 = vmatmul.mubr.f32.gmra.mrb[182].mxu0 %v16291_v23 }
 0x7f3   : > { %23475 = vmatprep.mubr.f32.mxu0 %v32864_v45 }
 0x7f6   : > { %23476 = vmatmul.mubr.f32.vlgmr.msra.gmra.mrb[168].mxu0 %v32887_v57 }
 0x7f7   : > { %25818 = vmatpush3.bf16.msra.mxu0 %v32845_v18  ;;  %23478 = vmatprep.mubr.f32.mxu0 %v32890_v2  ;;  %v17280_v18 = vld [vmem:[%s33600_s5] sm:$0xff] }
 0x7f8   : > { %25820 = vmatprep.subr.bf16.mxu0 %v32960_v49 }
 0x7fa   : > { %23479 = vmatmul.mubr.f32.gmra.mrb[170].mxu0 %v32899_v61 }
 0x7fb   : > { %25822 = vmatpush3.bf16.msra.mxu0 %v32960_v49  ;;  %23481 = vmatprep.mubr.f32.mxu0 %v32910_v26  ;;  %v17283_v49 = vld [vmem:[%s33600_s5 + $0x18] sm:$0xff] }
 0x7fe   : > { %23482 = vmatmul.mubr.f32.gmra.mrb[172].mxu0 %v32923_v19 }
 0x7ff   : > { %23484 = vmatprep.mubr.f32.mxu0 %v32925_v35 }
 0x802   : > { %23485 = vmatmul.mubr.f32.gmra.mrb[174].mxu0 %v32945_v47 }
 0x803   : > { %23487 = vmatprep.mubr.f32.mxu0 %v32953_v56 }
 0x806   : > { %23488 = vmatmul.mubr.f32.gmra.mrb[176].mxu0 %v32987_v0 }
 0x807   : > { %23490 = vmatprep.mubr.f32.mxu0 %v32993_v25 }
 0x80a   : > { %23491 = vmatmul.mubr.f32.gmra.mrb[178].mxu0 %v33018_v15 }
 0x80b   : > { %23493 = vmatprep.mubr.f32.mxu0 %v33024_v43 }
 0x80c   : > { %v15944_v48 = vpop.permute.xlu0 %15943 }
 0x80e   : > { %23494 = vmatmul.mubr.f32.gmra.mrb[180].mxu0 %v33041_v27 }
 0x80f   : > { %23496 = vmatprep.mubr.f32.mxu0 %v33047_v3 }
 0x810   : > { %v15989_v1 = vpop.permute.xlu0 %15988 }
 0x812   : > { %23497 = vmatmul.mubr.f32.gmra.mrb[182].mxu0 %v33058_v6 }
 0x813   : > { %23507 = vmatprep.mubr.f32.mxu0 %v32864_v45  ;;  %v33266_v45 = vand.u32 4294901760, %v17280_v18 }
 0x816   : > { %23508 = vmatmul.mubr.f32.vlgmr.msra.gmra.mrb[168].mxu0 %v32887_v57  ;;  %v33269_v57 = vsub.f32 %v17280_v18, %v33266_v45 }
 0x817   : > { %23510 = vmatprep.mubr.f32.mxu0 %v32890_v2 }
 0x818   : > { %v33618_v2 = vand.u32 4294901760, %v33269_v57 }
 0x81a   : > { %23511 = vmatmul.mubr.f32.gmra.mrb[170].mxu0 %v32899_v61  ;;  %v17392_v61 = vsub.f32 %v33269_v57, %v33618_v2 }
 0x81b   : > { %23513 = vmatprep.mubr.f32.mxu0 %v32910_v26 }
 0x81c   : > { %v17393_v26 = vand.u32 4294901760, %v17392_v61 }
 0x81e   : > { %23514 = vmatmul.mubr.f32.gmra.mrb[172].mxu0 %v32923_v19  ;;  %23563 = vmatprep.mubr.f32.mxu1 %v17393_v26  ;;  %v15949_v19 = vpop.permute.xlu1 %15948 }
 0x81f   : > { %23516 = vmatprep.mubr.f32.mxu0 %v32925_v35 }
 0x822   : > { %23517 = vmatmul.mubr.f32.gmra.mrb[174].mxu0 %v32945_v47  ;;  %v15954_v35 = vpop.permute.xlu1 %15953  ;;  %v17282_v47 = vld [vmem:[%s33600_s5 + $0x10] sm:$0xff] }
 0x823   : > { %23519 = vmatprep.mubr.f32.mxu0 %v32953_v56  ;;  %v33281_v56 = vand.u32 4294901760, %v17281_v14  ;;  %v33283_v59 = vand.u32 4294901760, %v17282_v47 }
 0x825   : > { %v33292_v54 = vsub.f32 %v17282_v47, %v33283_v59 }
 0x826   : > { %23520 = vmatmul.mubr.f32.gmra.mrb[176].mxu0 %v32987_v0  ;;  %v15959_v29 = vpop.permute.xlu1 %15958 }
 0x827   : > { %23522 = vmatprep.mubr.f32.mxu0 %v32993_v25  ;;  %v33289_v25 = vsub.f32 %v17281_v14, %v33281_v56  ;;  %v33616_v8 = vand.u32 4294901760, %v33292_v54 }
 0x829   : > { %v33309_v5 = vsub.f32 %v33292_v54, %v33616_v8 }
 0x82a   : > { %23523 = vmatmul.mubr.f32.gmra.mrb[178].mxu0 %v33018_v15  ;;  %v15964_v17 = vpop.permute.xlu1 %15963  ;;  %v33294_v15 = vand.u32 4294901760, %v17283_v49 }
 0x82b   : > { %23525 = vmatprep.mubr.f32.mxu0 %v33024_v43 }
 0x82e   : > { %23526 = vmatmul.mubr.f32.gmra.mrb[180].mxu0 %v33041_v27  ;;  %v15969_v53 = vpop.permute.xlu1 %15968 }
 0x82f   : > { %23528 = vmatprep.mubr.f32.mxu0 %v33047_v3  ;;  %v33617_v3 = vand.u32 4294901760, %v33289_v25 }
 0x831   : > { %v33304_v41 = vsub.f32 %v33289_v25, %v33617_v3 }
 0x832   : > { %23529 = vmatmul.mubr.f32.gmra.mrb[182].mxu0 %v33058_v6  ;;  %v15974_v24 = vpop.permute.xlu1 %15973  ;;  %v33299_v6 = vsub.f32 %v17283_v49, %v33294_v15 }
 0x834   : > { %v33615_v51 = vand.u32 4294901760, %v33299_v6 }
 0x836   : > { %v15979_v11 = vpop.permute.xlu1 %15978  ;;  %v33317_v38 = vsub.f32 %v33299_v6, %v33615_v51 }
 0x83a   : > { %v15984_v16 = vpop.permute.xlu1 %15983 }
 0x8e9   : > { %v23509_v52 = vpop.f32.mrb[168].mxu0 }
 0x8ea   : > { %v26015_v4 = vadd.f32 %v23509_v52, %v15949_v19  ;;  %v17106_v0 = vpop.f32.mrb[169].mxu0 }
 0x8eb   : > { %v26016_v39 = vadd.f32 %v17106_v0, %v15944_v48  ;;  %v15994_v0 = vpop.permute.xlu1 %15993 }
 0x8ec   : > { %v17217_v31 = vmul.f32 0.70710677, %v26015_v4  ;;  %v17201_v42 = vmul.f32 0.5, %v26015_v4 }
 0x8ed   : > { %v17216_v43 = vmul.f32 0.70710677, %v26016_v39  ;;  %v23512_v20 = vpop.f32.mrb[170].mxu0  ;;  %v17200_v22 = vmul.f32 0.5, %v26016_v39 }
 0x8ee   : > { %26192 = verf.f32 %v17217_v31  ;;  %v26017_v27 = vadd.f32 %v23512_v20, %v15959_v29  ;;  %v17118_v37 = vpop.f32.mrb[171].mxu0 }
 0x8ef   : > { %26194 = verf.f32 %v17216_v43  ;;  %v26018_v23 = vadd.f32 %v17118_v37, %v15954_v35 }
 0x8f0   : > { %v17219_v55 = vmul.f32 0.70710677, %v26017_v27  ;;  %v17203_v40 = vmul.f32 0.5, %v26017_v27 }
 0x8f1   : > { %v17218_v9 = vmul.f32 0.70710677, %v26018_v23  ;;  %v23515_v13 = vpop.f32.mrb[172].mxu0  ;;  %v17202_v26 = vmul.f32 0.5, %v26018_v23 }
 0x8f2   : > { %26196 = verf.f32 %v17219_v55  ;;  %v26019_v44 = vadd.f32 %v23515_v13, %v15969_v53  ;;  %v17130_v58 = vpop.f32.mrb[173].mxu0 }
 0x8f3   : > { %26198 = verf.f32 %v17218_v9  ;;  %v26020_v10 = vadd.f32 %v17130_v58, %v15964_v17  ;;  %v15999_v17 = vpop.permute.xlu0 %15998 }
 0x8f4   : > { %v17221_v60 = vmul.f32 0.70710677, %v26019_v44  ;;  %v17205_v19 = vmul.f32 0.5, %v26019_v44 }
 0x8f5   : > { %v17220_v30 = vmul.f32 0.70710677, %v26020_v10  ;;  %v23518_v33 = vpop.f32.mrb[174].mxu0  ;;  %v17204_v53 = vmul.f32 0.5, %v26020_v10 }
 0x8f6   : > { %26200 = verf.f32 %v17221_v60  ;;  %v26021_v36 = vadd.f32 %v23518_v33, %v15979_v11  ;;  %v17142_v34 = vpop.f32.mrb[175].mxu0 }
 0x8f7   : > { %26202 = verf.f32 %v17220_v30  ;;  %v26022_v28 = vadd.f32 %v17142_v34, %v15974_v24 }
 0x8f8   : > { %v26193_v32 = vpop.eup %26192  ;;  %v17223_v50 = vmul.f32 0.70710677, %v26021_v36  ;;  %v33319_v52 = vmul.f32 0.5, %v26021_v36 }
 0x8f9   : > { %v26195_v18 = vpop.eup %26194  ;;  %v17249_v61 = vadd.f32 1.0, %v26193_v32  ;;  %v17222_v35 = vmul.f32 0.70710677, %v26022_v28  ;;  %v23521_v29 = vpop.f32.mrb[176].mxu0  ;;  %v33321_v31 = vmul.f32 0.5, %v26022_v28 }
 0x8fa   : > { %v17248_v14 = vadd.f32 1.0, %v26195_v18  ;;  %26204 = verf.f32 %v17223_v50  ;;  %v26023_v47 = vadd.f32 %v23521_v29, %v15989_v1  ;;  %v17154_v49 = vpop.f32.mrb[177].mxu0  ;;  %v16004_v29 = vpop.permute.xlu1 %16003 }
 0x8fb   : > { %v17265_v48 = vmul.f32 %v17249_v61, %v17201_v42  ;;  %26206 = verf.f32 %v17222_v35  ;;  %v26024_v24 = vadd.f32 %v17154_v49, %v15984_v16  ;;  %v16009_v16 = vpop.permute.xlu0 %16008 }
 0x8fc   : > { %v26197_v4 = vpop.eup %26196  ;;  %v17264_v39 = vmul.f32 %v17248_v14, %v17200_v22  ;;  %v33323_v43 = vmul.f32 0.5, %v26023_v47  ;;  %v17225_v20 = vmul.f32 0.70710677, %v26023_v47 }
 0x8fd   : > { %v26199_v27 = vpop.eup %26198  ;;  %v17312_v37 = vand.u32 4294901760, %v17265_v48  ;;  %v17251_v23 = vadd.f32 1.0, %v26197_v4  ;;  %v33325_v11 = vmul.f32 0.5, %v26024_v24  ;;  %v17224_v55 = vmul.f32 0.70710677, %v26024_v24  ;;  %v23524_v9 = vpop.f32.mrb[178].mxu0 }
 0x8fe   : > { %v17309_v13 = vand.u32 4294901760, %v17264_v39  ;;  %v17250_v44 = vadd.f32 1.0, %v26199_v27  ;;  %26208 = verf.f32 %v17225_v20  ;;  %v26025_v58 = vadd.f32 %v23524_v9, %v15999_v17  ;;  %v17166_v10 = vpop.f32.mrb[179].mxu0 }
 0x8ff   : > { %v33327_v1 = vsub.f32 %v17265_v48, %v17312_v37  ;;  %v17267_v60 = vmul.f32 %v17251_v23, %v17203_v40  ;;  %26210 = verf.f32 %v17224_v55  ;;  %v26026_v30 = vadd.f32 %v17166_v10, %v15994_v0 }
 0x900   : > { %v26201_v33 = vpop.eup %26200  ;;  %v33329_v36 = vpack.c.bf16 %v17312_v37, %v17309_v13  ;;  %v33331_v34 = vsub.f32 %v17264_v39, %v17309_v13  ;;  %v17266_v28 = vmul.f32 %v17250_v44, %v17202_v26  ;;  %v33333_v32 = vmul.f32 0.5, %v26025_v58  ;;  %v16019_v44 = vpop.permute.xlu0 %16018 }
 0x901   : > { %v26203_v42 = vpop.eup %26202  ;;  %v17318_v22 = vand.u32 4294901760, %v17267_v60  ;;  %v17253_v50 = vadd.f32 1.0, %v26201_v33  ;;  %v17227_v18 = vmul.f32 0.70710677, %v26025_v58  ;;  %v33335_v61 = vmul.f32 0.5, %v26026_v30  ;;  %v23527_v35 = vpop.f32.mrb[180].mxu0 }
 0x902   : > { %v17315_v40 = vand.u32 4294901760, %v17266_v28  ;;  %v17252_v17 = vadd.f32 1.0, %v26203_v42  ;;  %v17226_v14 = vmul.f32 0.70710677, %v26026_v30  ;;  %v26027_v47 = vadd.f32 %v23527_v35, %v16009_v16  ;;  %v17178_v49 = vpop.f32.mrb[181].mxu0  ;;  %25824 = vmatprep.subr.bf16.mxu1 %v33329_v36  ;;  %v16014_v35 = vpop.permute.xlu1 %16013 }
 0x903   : > { %v33338_v48 = vsub.f32 %v17267_v60, %v17318_v22  ;;  %v17269_v26 = vmul.f32 %v17253_v50, %v17205_v19  ;;  %26212 = verf.f32 %v17227_v18  ;;  %v26028_v24 = vadd.f32 %v17178_v49, %v16004_v29  ;;  %25826 = vmatpush3.bf16.msra.mxu1 %v33329_v36 }
 0x904   : > { %v26205_v4 = vpop.eup %26204  ;;  %v33341_v0 = vpack.c.bf16 %v17318_v22, %v17315_v40  ;;  %v33343_v39 = vsub.f32 %v17266_v28, %v17315_v40  ;;  %v17268_v20 = vmul.f32 %v17252_v17, %v17204_v53  ;;  %26214 = verf.f32 %v17226_v14 }
 0x905   : > { %v26207_v27 = vpop.eup %26206  ;;  %v17324_v37 = vand.u32 4294901760, %v17269_v26  ;;  %v17255_v23 = vadd.f32 1.0, %v26205_v4  ;;  %v33345_v55 = vmul.f32 0.5, %v26027_v47  ;;  %v17229_v9 = vmul.f32 0.70710677, %v26027_v47  ;;  %v23530_v13 = vpop.f32.mrb[182].mxu0 }
 0x906   : > { %v17321_v19 = vand.u32 4294901760, %v17268_v20  ;;  %v17254_v58 = vadd.f32 1.0, %v26207_v27  ;;  %v33347_v10 = vmul.f32 0.5, %v26028_v24  ;;  %v17228_v60 = vmul.f32 0.70710677, %v26028_v24  ;;  %v17190_v30 = vpop.f32.mrb[183].mxu0  ;;  %25828 = vmatprep.subr.bf16.mxu1 %v33341_v0 }
 0x907   : > { %v33350_v33 = vsub.f32 %v17269_v26, %v17324_v37  ;;  %v17271_v53 = vmul.f32 %v17255_v23, %v33319_v52  ;;  %26216 = verf.f32 %v17229_v9  ;;  %v26029_v16 = vadd.f32 %v23530_v13, %v16019_v44  ;;  %25830 = vmatpush3.bf16.msra.mxu1 %v33341_v0 }
 0x908   : > { %v26209_v28 = vpop.eup %26208  ;;  %v33354_v42 = vpack.c.bf16 %v17324_v37, %v17321_v19  ;;  %v33356_v22 = vsub.f32 %v17268_v20, %v17321_v19  ;;  %v17270_v50 = vmul.f32 %v17254_v58, %v33321_v31  ;;  %26218 = verf.f32 %v17228_v60 }
 0x909   : > { %v26211_v18 = vpop.eup %26210  ;;  %v17330_v29 = vand.u32 4294901760, %v17271_v53  ;;  %v17257_v40 = vadd.f32 1.0, %v26209_v28  ;;  %v33359_v17 = vmul.f32 0.5, %v26029_v16  ;;  %v17231_v14 = vmul.f32 0.70710677, %v26029_v16 }
 0x90a   : > { %v17327_v52 = vand.u32 4294901760, %v17270_v50  ;;  %v17256_v47 = vadd.f32 1.0, %v26211_v18  ;;  %v26030_v49 = vadd.f32 %v17190_v30, %v16014_v35  ;;  %25832 = vmatprep.subr.bf16.mxu1 %v33354_v42  ;;  %v33625_v26 = vand.u32 4294901760, %v33331_v34 }
 0x90b   : > { %v33363_v24 = vsub.f32 %v17271_v53, %v17330_v29  ;;  %v17273_v4 = vmul.f32 %v17257_v40, %v33323_v43  ;;  %26220 = verf.f32 %v17231_v14  ;;  %25834 = vmatpush3.bf16.msra.mxu1 %v33354_v42  ;;  %v33624_v31 = vand.u32 4294901760, %v33327_v1 }
 0x90c   : > { %v33368_v20 = vpack.c.bf16 %v17330_v29, %v17327_v52  ;;  %v33370_v27 = vsub.f32 %v17270_v50, %v17327_v52  ;;  %v17272_v37 = vmul.f32 %v17256_v47, %v33325_v11  ;;  %v33373_v23 = vmul.f32 0.5, %v26030_v49 }
 0x90d   : > { %v26213_v9 = vpop.eup %26212  ;;  %v17336_v13 = vand.u32 4294901760, %v17273_v4  ;;  %v17230_v44 = vmul.f32 0.70710677, %v26030_v49  ;;  %v17433_v43 = vsub.f32 %v33331_v34, %v33625_v26  ;;  %v17440_v19 = vsub.f32 %v33327_v1, %v33624_v31 }
 0x90e   : > { %v26215_v58 = vpop.eup %26214  ;;  %v17333_v60 = vand.u32 4294901760, %v17272_v37  ;;  %v17259_v30 = vadd.f32 1.0, %v26213_v9  ;;  %25836 = vmatprep.subr.bf16.mxu1 %v33368_v20  ;;  %v33623_v11 = vand.u32 4294901760, %v33343_v39  ;;  %v33622_v53 = vand.u32 4294901760, %v33338_v48 }
 0x90f   : > { %v33384_v16 = vsub.f32 %v17273_v4, %v17336_v13  ;;  %v17258_v28 = vadd.f32 1.0, %v26215_v58  ;;  %26222 = verf.f32 %v17230_v44  ;;  %25838 = vmatpush3.bf16.msra.mxu1 %v33368_v20  ;;  %v17434_v50 = vand.u32 4294901760, %v17433_v43 }
 0x910   : > { %v33387_v18 = vpack.c.bf16 %v17336_v13, %v17333_v60  ;;  %v33389_v35 = vsub.f32 %v17272_v37, %v17333_v60  ;;  %v17275_v29 = vmul.f32 %v17259_v30, %v33333_v32  ;;  %v17441_v40 = vand.u32 4294901760, %v17440_v19 }
 0x911   : > { %v26217_v14 = vpop.eup %26216  ;;  %v17274_v52 = vmul.f32 %v17258_v28, %v33335_v61  ;;  %v17447_v47 = vsub.f32 %v33343_v39, %v33623_v11  ;;  %v17454_v49 = vsub.f32 %v33338_v48, %v33622_v53  ;;  %v33621_v4 = vand.u32 4294901760, %v33356_v22 }
 0x912   : > { %v26219_v9 = vpop.eup %26218  ;;  %v17342_v13 = vand.u32 4294901760, %v17275_v29  ;;  %v17261_v37 = vadd.f32 1.0, %v26217_v14  ;;  %25840 = vmatprep.subr.bf16.mxu1 %v33387_v18  ;;  %v33401_v32 = vpack.c.bf16 %v17441_v40, %v17434_v50  ;;  %v33620_v44 = vand.u32 4294901760, %v33350_v33 }
 0x913   : > { %v17339_v61 = vand.u32 4294901760, %v17274_v52  ;;  %v17260_v43 = vadd.f32 1.0, %v26219_v9  ;;  %25842 = vmatpush3.bf16.msra.mxu1 %v33387_v18  ;;  %v17448_v19 = vand.u32 4294901760, %v17447_v47  ;;  %v17455_v58 = vand.u32 4294901760, %v17454_v49 }
 0x914   : > { %v33405_v60 = vsub.f32 %v17275_v29, %v17342_v13  ;;  %v17277_v30 = vmul.f32 %v17261_v37, %v33345_v55  ;;  %v17461_v28 = vsub.f32 %v33356_v22, %v33621_v4  ;;  %v17468_v50 = vsub.f32 %v33350_v33, %v33620_v44 }
 0x915   : > { %v26221_v40 = vpop.eup %26220  ;;  %v33414_v14 = vpack.c.bf16 %v17342_v13, %v17339_v61  ;;  %v33416_v9 = vsub.f32 %v17274_v52, %v17339_v61  ;;  %v17276_v47 = vmul.f32 %v17260_v43, %v33347_v10  ;;  %v33419_v49 = vpack.c.bf16 %v17455_v58, %v17448_v19 }
 0x916   : > { %v17348_v29 = vand.u32 4294901760, %v17277_v30  ;;  %v17263_v51 = vadd.f32 1.0, %v26221_v40  ;;  %v17462_v55 = vand.u32 4294901760, %v17461_v28  ;;  %v17469_v37 = vand.u32 4294901760, %v17468_v50 }
 0x917   : > { %v17345_v8 = vand.u32 4294901760, %v17276_v47  ;;  %25844 = vmatprep.subr.bf16.mxu1 %v33414_v14  ;;  %v33619_v3 = vand.u32 4294901760, %v33370_v27  ;;  %v17481_v2 = vand.u32 4294901760, %v33363_v24  ;;  %v17488_v13 = vand.u32 4294901760, %v33389_v35 }
 0x918   : > { %v33425_v62 = vsub.f32 %v17277_v30, %v17348_v29  ;;  %v17279_v52 = vmul.f32 %v17263_v51, %v33359_v17  ;;  %25846 = vmatpush3.bf16.msra.mxu1 %v33414_v14  ;;  %v33429_v10 = vpack.c.bf16 %v17469_v37, %v17462_v55  ;;  %v17495_v61 = vand.u32 4294901760, %v33384_v16 }
 0x919   : > { %v26223_v43 = vpop.eup %26222  ;;  %v33432_v19 = vpack.c.bf16 %v17348_v29, %v17345_v8  ;;  %v17515_v58 = vsub.f32 %v17276_v47, %v17345_v8  ;;  %v17475_v28 = vsub.f32 %v33370_v27, %v33619_v3  ;;  %v17482_v50 = vsub.f32 %v33363_v24, %v17481_v2 }
 0x91a   : > { %v17354_v30 = vand.u32 4294901760, %v17279_v52  ;;  %v17262_v40 = vadd.f32 1.0, %v26223_v43  ;;  %v17489_v51 = vsub.f32 %v33389_v35, %v17488_v13  ;;  %v17496_v17 = vsub.f32 %v33384_v16, %v17495_v61 }
 0x91b   : > { %33651 = vst [vmem:[#allocation11_spill] sm:$0xff] %v33432_v19  ;;  %25848 = vmatprep.subr.bf16.mxu1 %v33432_v19  ;;  %v17476_v55 = vand.u32 4294901760, %v17475_v28  ;;  %v17483_v37 = vand.u32 4294901760, %v17482_v50  ;;  %v17502_v29 = vand.u32 4294901760, %v33416_v9  ;;  %v17509_v8 = vand.u32 4294901760, %v33405_v60 }
 0x91c   : > { %v17536_v47 = vsub.f32 %v17279_v52, %v17354_v30  ;;  %v17278_v63 = vmul.f32 %v17262_v40, %v33373_v23  ;;  %25850 = vmatpush3.bf16.msra.mxu1 %v33432_v19  ;;  %v17490_v3 = vand.u32 4294901760, %v17489_v51  ;;  %v17497_v44 = vand.u32 4294901760, %v17496_v17 }
 0x91d   : > { %v25867_v43 = vpack.c.bf16 %v17483_v37, %v17476_v55  ;;  %v17503_v4 = vsub.f32 %v33416_v9, %v17502_v29  ;;  %v17510_v53 = vsub.f32 %v33405_v60, %v17509_v8  ;;  %v17516_v11 = vand.u32 4294901760, %v17515_v58 }
 0x91e   : > { %v17351_v31 = vand.u32 4294901760, %v17278_v63  ;;  %v25871_v28 = vpack.c.bf16 %v17497_v44, %v17490_v3  ;;  %v17523_v50 = vand.u32 4294901760, %v33425_v62  ;;  %v17537_v26 = vand.u32 4294901760, %v17536_v47 }
 0x91f   : > { %v17504_v21 = vand.u32 4294901760, %v17503_v4  ;;  %v17511_v12 = vand.u32 4294901760, %v17510_v53  ;;  %v17517_v52 = vsub.f32 %v17515_v58, %v17516_v11  ;;  %v25887_v23 = vpack.c.bf16 %v33327_v1, %v33331_v34 }
 0x920   : > { %v33450_v40 = vpack.c.bf16 %v17354_v30, %v17351_v31  ;;  %v17529_v51 = vsub.f32 %v17278_v63, %v17351_v31  ;;  %v17524_v17 = vsub.f32 %v33425_v62, %v17523_v50  ;;  %v17538_v55 = vsub.f32 %v17536_v47, %v17537_v26 }
 0x921   : > { %v25875_v37 = vpack.c.bf16 %v17511_v12, %v17504_v21  ;;  %v17518_v46 = vand.u32 4294901760, %v17517_v52  ;;  %v25891_v3 = vpack.c.bf16 %v33338_v48, %v33343_v39  ;;  %v25895_v44 = vpack.c.bf16 %v33350_v33, %v33356_v22 }
 0x922   : > { %33652 = vst [vmem:[#allocation12_spill] sm:$0xff] %v33450_v40  ;;  %25852 = vmatprep.subr.bf16.mxu1 %v33450_v40  ;;  %v17525_v53 = vand.u32 4294901760, %v17524_v17  ;;  %v17530_v4 = vand.u32 4294901760, %v17529_v51  ;;  %v17539_v7 = vand.u32 4294901760, %v17538_v55  ;;  %v25899_v30 = vpack.c.bf16 %v33363_v24, %v33370_v27 }
 0x923   : > { %25854 = vmatpush3.bf16.msra.mxu1 %v33450_v40  ;;  %v25903_v21 = vpack.c.bf16 %v33384_v16, %v33389_v35  ;;  %v25907_v12 = vpack.c.bf16 %v33405_v60, %v33416_v9  ;;  %v25911_v63 = vpack.c.bf16 %v33425_v62, %v17515_v58  ;;  %v25915_v31 = vpack.c.bf16 %v17536_v47, %v17529_v51 }
 0x924   : > { %25856 = vmatprep.subr.bf16.mxu1 %v33401_v32  ;;  %v25879_v52 = vpack.c.bf16 %v17525_v53, %v17518_v46  ;;  %v17531_v17 = vsub.f32 %v17529_v51, %v17530_v4  ;;  %v33653_v55 = vand.u32 4294901760, %v33331_v34  ;;  %v33654_v19 = vand.u32 4294901760, %v33327_v1 }
 0x925   : > { %v33655_v40 = vand.u32 4294901760, %v33343_v39  ;;  %v33656_v16 = vand.u32 4294901760, %v33338_v48  ;;  %v33657_v60 = vand.u32 4294901760, %v33356_v22  ;;  %v33658_v62 = vand.u32 4294901760, %v33350_v33 }
 0x926   : > { %v33471_v24 = vpack.c.bf16 %v33654_v19, %v33653_v55  ;;  %v33659_v46 = vand.u32 4294901760, %v33370_v27  ;;  %v33489_v34 = vpack.c.bf16 %v17495_v61, %v17488_v13  ;;  %v33491_v1 = vpack.c.bf16 %v17509_v8, %v17502_v29 }
 0x927   : > { %v33477_v35 = vpack.c.bf16 %v33656_v16, %v33655_v40  ;;  %v33483_v9 = vpack.c.bf16 %v33658_v62, %v33657_v60  ;;  %v33660_v39 = vand.u32 4294901760, %v33304_v41  ;;  %v17532_v48 = vand.u32 4294901760, %v17531_v17  ;;  %v33663_v41 = vld [vmem:[#allocation11_spill] sm:$0xff] }
 0x928   : > { %v33487_v58 = vpack.c.bf16 %v17481_v2, %v33659_v46  ;;  %v17423_v19 = vand.u32 4294901760, %v33317_v38  ;;  %v33496_v47 = vpack.c.bf16 %v17523_v50, %v17516_v11  ;;  %v33498_v22 = vpack.c.bf16 %v17537_v26, %v17530_v4  ;;  %v33669_v11 = vld [vmem:[#allocation7_spill] sm:$0xff] }
 0x929   : > { %23564 = vmatmul.mubr.f32.vlgmr.msra.gmra.mrb[168].mxu1 %v33660_v39  ;;  %v33661_v33 = vand.u32 4294901760, %v33309_v5  ;;  %v25883_v2 = vpack.c.bf16 %v17539_v7, %v17532_v48  ;;  %v33662_v7 = vand.u32 4294901760, %v33269_v57  ;;  %v33665_v5 = vand.u32 4294901760, %v33289_v25 }
 0x92a   : > { %25858 = vmatpush3.bf16.msra.mxu1 %v33401_v32  ;;  %v33666_v38 = vand.u32 4294901760, %v33292_v54  ;;  %v33667_v26 = vand.u32 4294901760, %v33299_v6 }
 0x92b   : > { %23566 = vmatprep.mubr.f32.mxu1 %v33661_v33  ;;  %25860 = vmatprep.subr.bf16.mxu1 %v33419_v49 }
 0x92d   : > { %23567 = vmatmul.mubr.f32.gmra.mrb[170].mxu1 %v17423_v19 }
 0x92e   : > { %25862 = vmatpush3.bf16.msra.mxu1 %v33419_v49  ;;  %23601 = vmatprep.mubr.f32.mxu1 %v33266_v45  ;;  %v33670_v49 = vld [vmem:[#allocation10_spill] sm:$0xff] }
 0x92f   : > { %25864 = vmatprep.subr.bf16.mxu1 %v33429_v10 }
 0x932   : > { %25866 = vmatpush3.bf16.msra.mxu1 %v33429_v10  ;;  %v33671_v10 = vld [vmem:[#allocation9_spill] sm:$0xff] }
 0x933   : > { %25868 = vmatprep.subr.bf16.mxu1 %v25867_v43 }
 0x936   : > { %25870 = vmatpush3.bf16.msra.mxu1 %v25867_v43 }
 0x937   : > { %25872 = vmatprep.subr.bf16.mxu1 %v25871_v28 }
 0x93a   : > { %25874 = vmatpush3.bf16.msra.mxu1 %v25871_v28 }
 0x93b   : > { %25876 = vmatprep.subr.bf16.mxu1 %v25875_v37 }
 0x93e   : > { %25878 = vmatpush3.bf16.msra.mxu1 %v25875_v37 }
 0x93f   : > { %25880 = vmatprep.subr.bf16.mxu1 %v25879_v52 }
 0x942   : > { %25882 = vmatpush3.bf16.msra.mxu1 %v25879_v52 }
 0x943   : > { %25884 = vmatprep.subr.bf16.mxu1 %v25883_v2 }
 0x946   : > { %25886 = vmatpush3.bf16.msra.mxu1 %v25883_v2 }
 0x947   : > { %25888 = vmatprep.subr.bf16.mxu1 %v25887_v23 }
 0x949   : > { %23602 = vmatmul.mubr.f32.vlgmr.msra.gmra.mrb[168].mxu1 %v33281_v56 }
 0x94a   : > { %25890 = vmatpush3.bf16.msra.mxu1 %v25887_v23  ;;  %23604 = vmatprep.mubr.f32.mxu1 %v33283_v59 }
 0x94b   : > { %25892 = vmatprep.subr.bf16.mxu1 %v25891_v3 }
 0x94d   : > { %23605 = vmatmul.mubr.f32.gmra.mrb[170].mxu1 %v33294_v15 }
 0x94e   : > { %25894 = vmatpush3.bf16.msra.mxu1 %v25891_v3  ;;  %23639 = vmatprep.mubr.f32.mxu1 %v33269_v57  ;;  %v33664_v57 = vld [vmem:[#allocation12_spill] sm:$0xff] }
 0x94f   : > { %25896 = vmatprep.subr.bf16.mxu1 %v25895_v44 }
 0x952   : > { %25898 = vmatpush3.bf16.msra.mxu1 %v25895_v44 }
 0x953   : > { %25900 = vmatprep.subr.bf16.mxu1 %v25899_v30 }
 0x956   : > { %25902 = vmatpush3.bf16.msra.mxu1 %v25899_v30 }
 0x957   : > { %25904 = vmatprep.subr.bf16.mxu1 %v25903_v21 }
 0x95a   : > { %25906 = vmatpush3.bf16.msra.mxu1 %v25903_v21 }
 0x95b   : > { %25908 = vmatprep.subr.bf16.mxu1 %v25907_v12 }
 0x95e   : > { %25910 = vmatpush3.bf16.msra.mxu1 %v25907_v12 }
 0x95f   : > { %25912 = vmatprep.subr.bf16.mxu1 %v25911_v63 }
 0x962   : > { %25914 = vmatpush3.bf16.msra.mxu1 %v25911_v63 }
 0x963   : > { %25916 = vmatprep.subr.bf16.mxu1 %v25915_v31 }
 0x966   : > { %25918 = vmatpush3.bf16.msra.mxu1 %v25915_v31 }
 0x967   : > { %25920 = vmatprep.subr.bf16.mxu1 %v33329_v36 }
 0x969   : > { %23640 = vmatmul.mubr.f32.vlgmr.msra.gmra.mrb[168].mxu1 %v33289_v25  ;;  %v17291_v25 = vpop.permute.xlu1 %17290 }
 0x96a   : > { %25922 = vmatpush3.bf16.msra.mxu1 %v33329_v36  ;;  %23642 = vmatprep.mubr.f32.mxu1 %v33292_v54 }
 0x96b   : > { %25924 = vmatprep.subr.bf16.mxu1 %v33341_v0 }
 0x96d   : > { %23643 = vmatmul.mubr.f32.gmra.mrb[170].mxu1 %v33299_v6 }
 0x96e   : > { %25926 = vmatpush3.bf16.msra.mxu1 %v33341_v0  ;;  %23677 = vmatprep.mubr.f32.mxu1 %v33662_v7 }
 0x96f   : > { %25928 = vmatprep.subr.bf16.mxu1 %v33354_v42 }
 0x972   : > { %25930 = vmatpush3.bf16.msra.mxu1 %v33354_v42 }
 0x973   : > { %25932 = vmatprep.subr.bf16.mxu1 %v33368_v20 }
 0x976   : > { %25934 = vmatpush3.bf16.msra.mxu1 %v33368_v20 }
 0x977   : > { %25936 = vmatprep.subr.bf16.mxu1 %v33387_v18 }
 0x97a   : > { %25938 = vmatpush3.bf16.msra.mxu1 %v33387_v18 }
 0x97b   : > { %25940 = vmatprep.subr.bf16.mxu1 %v33414_v14 }
 0x97e   : > { %25942 = vmatpush3.bf16.msra.mxu1 %v33414_v14 }
 0x97f   : > { %25944 = vmatprep.subr.bf16.mxu1 %v33663_v41 }
 0x982   : > { %25946 = vmatpush3.bf16.msra.mxu1 %v33663_v41 }
 0x983   : > { %25948 = vmatprep.subr.bf16.mxu1 %v33664_v57 }
 0x986   : > { %25950 = vmatpush3.bf16.msra.mxu1 %v33664_v57 }
 0x987   : > { %25952 = vmatprep.subr.bf16.mxu1 %v33471_v24 }
 0x989   : > { %23678 = vmatmul.mubr.f32.vlgmr.msra.gmra.mrb[168].mxu1 %v33665_v5 }
 0x98a   : > { %25954 = vmatpush3.bf16.msra.mxu1 %v33471_v24  ;;  %23680 = vmatprep.mubr.f32.mxu1 %v33666_v38 }
 0x98b   : > { %25956 = vmatprep.subr.bf16.mxu1 %v33477_v35 }
 0x98d   : > { %23681 = vmatmul.mubr.f32.gmra.mrb[170].mxu1 %v33667_v26 }
 0x98e   : > { %25958 = vmatpush3.bf16.msra.mxu1 %v33477_v35  ;;  %23715 = vmatprep.mubr.f32.mxu1 %v33266_v45 }
 0x98f   : > { %25960 = vmatprep.subr.bf16.mxu1 %v33483_v9 }
 0x992   : > { %25962 = vmatpush3.bf16.msra.mxu1 %v33483_v9 }
 0x993   : > { %25964 = vmatprep.subr.bf16.mxu1 %v33487_v58 }
 0x996   : > { %25966 = vmatpush3.bf16.msra.mxu1 %v33487_v58 }
 0x997   : > { %25968 = vmatprep.subr.bf16.mxu1 %v33489_v34 }
 0x99a   : > { %25970 = vmatpush3.bf16.msra.mxu1 %v33489_v34 }
 0x99b   : > { %25972 = vmatprep.subr.bf16.mxu1 %v33491_v1 }
 0x99e   : > { %25974 = vmatpush3.bf16.msra.mxu1 %v33491_v1 }
 0x99f   : > { %25976 = vmatprep.subr.bf16.mxu1 %v33496_v47 }
 0x9a2   : > { %25978 = vmatpush3.bf16.msra.mxu1 %v33496_v47 }
 0x9a3   : > { %25980 = vmatprep.subr.bf16.mxu1 %v33498_v22 }
 0x9a6   : > { %25982 = vmatpush3.bf16.msra.mxu1 %v33498_v22 }
 0x9a7   : > { %25984 = vmatprep.subr.bf16.mxu1 %v33329_v36 }
 0x9a9   : > { %23716 = vmatmul.mubr.f32.vlgmr.msra.gmra.mrb[168].mxu1 %v33281_v56 }
 0x9aa   : > { %25986 = vmatpush3.bf16.msra.mxu1 %v33329_v36  ;;  %23718 = vmatprep.mubr.f32.mxu1 %v33283_v59 }
 0x9ab   : > { %25988 = vmatprep.subr.bf16.mxu1 %v33341_v0 }
 0x9ad   : > { %23719 = vmatmul.mubr.f32.gmra.mrb[170].mxu1 %v33294_v15 }
 0x9ae   : > { %25990 = vmatpush3.bf16.msra.mxu1 %v33341_v0  ;;  %23753 = vmatprep.mubr.f32.mxu1 %v33266_v45  ;;  %v17296_v45 = vpop.permute.xlu0 %17295 }
 0x9af   : > { %25992 = vmatprep.subr.bf16.mxu1 %v33354_v42 }
 0x9b2   : > { %25994 = vmatpush3.bf16.msra.mxu1 %v33354_v42  ;;  %v33668_v42 = vld [vmem:[#allocation8_spill] sm:$0xff]  ;;  %v17306_v27 = vpop.permute.xlu0 %17305 }
 0x9b3   : > { %25996 = vmatprep.subr.bf16.mxu1 %v33368_v20 }
 0x9b6   : > { %25998 = vmatpush3.bf16.msra.mxu1 %v33368_v20 }
 0x9b7   : > { %26000 = vmatprep.subr.bf16.mxu1 %v33387_v18 }
 0x9ba   : > { %26002 = vmatpush3.bf16.msra.mxu1 %v33387_v18 }
 0x9bb   : > { %26004 = vmatprep.subr.bf16.mxu1 %v33414_v14 }
 0x9be   : > { %26006 = vmatpush3.bf16.msra.mxu1 %v33414_v14 }
 0x9bf   : > { %26008 = vmatprep.subr.bf16.mxu1 %v33663_v41 }
 0x9c2   : > { %26010 = vmatpush3.bf16.msra.mxu1 %v33663_v41 }
 0x9c3   : > { %26012 = vmatprep.subr.bf16.mxu1 %v33664_v57 }
 0x9c6   : > { %26014 = vmatpush3.bf16.msra.mxu1 %v33664_v57 }
 0x9c9   : > { %23754 = vmatmul.mubr.f32.vlgmr.msra.gmra.mrb[168].mxu1 %v33281_v56 }
 0x9ca   : > { %23756 = vmatprep.mubr.f32.mxu1 %v33283_v59  ;;  %v17301_v59 = vpop.permute.xlu1 %17300 }
 0x9cd   : > { %23757 = vmatmul.mubr.f32.gmra.mrb[170].mxu1 %v33294_v15 }
 0xa9c   : > { %v23755_v54 = vpop.f32.mrb[168].mxu1 }
 0xa9d   : > { %v26031_v6 = vadd.f32 %v23755_v54, %v17296_v45  ;;  %v18056_v36 = vpop.f32.mrb[169].mxu1 }
 0xa9e   : > { %v26032_v0 = vadd.f32 %v18056_v36, %v17291_v25 }
 0xa9f   : > { %v18079_v20 = vadd.f32 %v26031_v6, %v33668_v42 }
 0xaa0   : > { %v18078_v56 = vadd.f32 %v26032_v0, %v33669_v11  ;;  %v23758_v18 = vpop.f32.mrb[170].mxu1 }
 0xaa1   : > { %18083 = vst.msk [vmem:[%s292_s22 + $0x8] sm:$0xff] %vm293_vm1, %v18079_v20  ;;  %v26033_v15 = vadd.f32 %v23758_v18, %v17306_v27  ;;  %v18068_v32 = vpop.f32.mrb[171].mxu1 }
 0xaa2   : > { %18082 = vst.msk [vmem:[%s292_s22] sm:$0xff] %vm293_vm1, %v18078_v56  ;;  %v26034_v14 = vadd.f32 %v18068_v32, %v17301_v59 }
 0xaa3   : > { %v18081_v13 = vadd.f32 %v26033_v15, %v33670_v49 }
 0xaa4   : > { %v18080_v61 = vadd.f32 %v26034_v14, %v33671_v10 }
 0xaa5   : > { %18085 = vst.msk [vmem:[%s292_s22 + $0x18] sm:$0xff] %vm293_vm1, %v18081_v13 }
 0xaa6   : > { %18084 = vst.msk [vmem:[%s292_s22 + $0x10] sm:$0xff] %vm293_vm1, %v18080_v61 }
 0xaa7 PF: > { %s18_s24 = sadd.s32 1, %s26249_s24  }
 0xaa8   : > { %p15_p1 = scmp.ge.s32.totalorder %s18_s24, 4  }
 0xaaa   :  { %17 = sbr.rel (!%p15_p1) target bundleno = 1 (0x1), region = 113 }
 0xab1   :  { %18107 = vsyncpa [#allocation5], 1 }
 0xab2   :  { %18109 = vsyncpa [#allocation5 + $0x1], 1 }

</bundles_post_ra>
